<compile_context>
chip_gen: v7x
topology: tpu7x:2x2x1
jax: 0.10.0
libtpu: 0.0.40
codegen_flags: <defaults>
</compile_context>

<pallas_src>
import functools
import math

import jax
import jax.numpy as jnp
from jax.experimental import pallas as pl
from jax.experimental.pallas import tpu as pltpu

LN_EPS = 1e-5  # PyTorch nn.LayerNorm default eps


def _gelu_tanh(v):
    # TODO(synk): PyTorch nn.GELU defaults to the exact erf form; the tanh
    # approximation is used here (erf has no guaranteed Mosaic lowering).
    c = math.sqrt(2.0 / math.pi)
    return 0.5 * v * (1.0 + jnp.tanh(c * (v + 0.044715 * v * v * v)))


def _layernorm_1pass(v, g, b):
    """Single-pass LayerNorm over the last axis (sum & sum-of-squares), f32."""
    inv_n = 1.0 / v.shape[-1]
    s1 = jnp.sum(v, axis=-1, keepdims=True)
    s2 = jnp.sum(v * v, axis=-1, keepdims=True)
    mu = s1 * inv_n
    var = jnp.maximum(s2 * inv_n - mu * mu, 0.0)  # clamp: guard cancellation
    return (v - mu) * jax.lax.rsqrt(var + LN_EPS) * g + b


def structure_embedder_kernel(x_ref, peb_ref, win_ref, wqkv_ref, bqkv_ref,
                              wo_ref, wff1_ref, bff1_ref, wff2_ref, lnv_ref,
                              poolw_ref, w1h_ref, w2h_ref, hv_ref,
                              out_ref, *, n_heads):
    # Processes TB sequences per grid step.
    # TODO(synk): return_attention_weights / return_features optional outputs
    # of the PyTorch forward are not produced (default path only).
    TB, S, C = x_ref.shape
    D = win_ref.shape[1]
    L = wqkv_ref.shape[0]
    O = w2h_ref.shape[1]
    Dh = D // n_heads
    R = TB * S
    scale = 1.0 / math.sqrt(Dh)
    bf16 = jnp.bfloat16

    # ---- input projection + positional encoding (input bias folded into peb)
    x2 = x_ref[...].reshape(R, C)                                   # [R, C]
    h = jnp.dot(x2, win_ref[...], preferred_element_type=jnp.float32)
    h = (h.reshape(TB, S, D) + peb_ref[...][None, :, :]).reshape(R, D)

    # ---- transformer blocks (pre-norm), fori_loop with dynamic weight index
    def layer_body(l, h):
        lv = lnv_ref[l]                                             # [8, D] f32
        ln1_g, ln1_b = lv[0:1], lv[1:2]
        b_o = lv[2:3]
        ln2_g, ln2_b = lv[3:4], lv[4:5]
        b_ff2 = lv[5:6]

        # --- multi-head self-attention (dropout = identity in eval mode) ---
        n1 = _layernorm_1pass(h, ln1_g, ln1_b)
        qkv = jnp.dot(n1.astype(bf16), wqkv_ref[l],
                      preferred_element_type=jnp.float32) + bqkv_ref[l]
        q16 = (qkv[:, 0:D] * scale).astype(bf16)                    # fold scale
        k16 = qkv[:, D:2 * D].astype(bf16)
        v16 = qkv[:, 2 * D:3 * D].astype(bf16)

        # attention core stays per-sequence / per-head (small fraction of FLOPs)
        ctx_rows = []
        for b in range(TB):
            rows = slice(b * S, (b + 1) * S)
            heads = []
            for hh in range(n_heads):
                cols = slice(hh * Dh, (hh + 1) * Dh)
                qh, kh, vh = q16[rows, cols], k16[rows, cols], v16[rows, cols]
                s = jax.lax.dot_general(qh, kh, (((1,), (1,)), ((), ())),
                                        preferred_element_type=jnp.float32)
                s = s - jnp.max(s, axis=-1, keepdims=True)
                p = jnp.exp(s)
                p = p * pl.reciprocal(jnp.sum(p, axis=-1, keepdims=True),
                                      approx=True)
                heads.append(jnp.dot(p.astype(bf16), vh,
                                     preferred_element_type=jnp.float32))
            ctx_rows.append(jnp.concatenate(heads, axis=-1))        # [S, D]
        ctx = jnp.concatenate(ctx_rows, axis=0)                     # [R, D]
        # fused output projection: one full-K matmul instead of 4 K=32 matmuls
        attn_out = jnp.dot(ctx.astype(bf16), wo_ref[l],
                           preferred_element_type=jnp.float32) + b_o
        h = h + attn_out

        # --- feed-forward ---
        n2 = _layernorm_1pass(h, ln2_g, ln2_b)
        f = jnp.dot(n2.astype(bf16), wff1_ref[l],
                    preferred_element_type=jnp.float32) + bff1_ref[l]
        f = _gelu_tanh(f)
        f = jnp.dot(f.astype(bf16), wff2_ref[l],
                    preferred_element_type=jnp.float32) + b_ff2
        return h + f

    h = jax.lax.fori_loop(0, L, layer_body, h)                      # [R, D] f32

    # ---- attention pooling over the sequence axis (per sequence) ----
    pw = poolw_ref[0:1, :]                                          # [1, D]
    pb = poolw_ref[1:2, 0:1]                                        # [1, 1]
    logits = (jnp.sum(h * pw, axis=-1, keepdims=True) + pb).reshape(TB, S, 1)
    logits = logits - jnp.max(logits, axis=1, keepdims=True)
    aw = jnp.exp(logits)
    aw = aw * pl.reciprocal(jnp.sum(aw, axis=1, keepdims=True), approx=True)
    pooled = jnp.sum(h.reshape(TB, S, D) * aw, axis=1)              # [TB, D]

    # ---- mu / sigma heads (tiny; kept f32; first linears fused: [D, 2*O]) ----
    hv = hv_ref[...]                                                # [5, 2*O]
    z = jnp.dot(pooled, w1h_ref[...], preferred_element_type=jnp.float32) + hv[0:1]
    # mu branch
    zmu = _gelu_tanh(_layernorm_1pass(z[:, 0:O], hv[1:2, 0:O], hv[2:3, 0:O]))
    mu = jnp.dot(zmu, w2h_ref[0], preferred_element_type=jnp.float32) + hv[3:4, 0:O]
    mu = _layernorm_1pass(mu, hv[4:5, 0:O], hv[4:5, O:2 * O])
    # sigma branch (softplus + 1e-6)
    zs = _gelu_tanh(_layernorm_1pass(z[:, O:2 * O], hv[1:2, O:2 * O], hv[2:3, O:2 * O]))
    sp = jnp.dot(zs, w2h_ref[1], preferred_element_type=jnp.float32) + hv[3:4, O:2 * O]
    sigma = jnp.maximum(sp, 0.0) + jnp.log(1.0 + jnp.exp(-jnp.abs(sp))) + 1e-6

    # lane-dense 128-wide store: [mu | sigma]
    out_ref[...] = jnp.concatenate([mu, sigma], axis=-1).reshape(TB, 1, 2 * O)


def pack_params(p):
    """Pack per-tensor params into a few lane-aligned slabs for the kernel."""
    D = p["w_in"].shape[1]
    L = p["wqkv"].shape[0]
    bf16 = jnp.bfloat16

    peb = p["pe"] + p["b_in"][None, :]                                   # [S, D]
    zero = jnp.zeros((D,), jnp.float32)
    # per-layer LN / bias vectors packed into an 8-row (sublane-aligned) slab
    lnv = jnp.stack([
        jnp.stack([p["ln1_g"][l], p["ln1_b"][l], p["bo"][l],
                   p["ln2_g"][l], p["ln2_b"][l], p["bff2"][l], zero, zero],
                  axis=0)
        for l in range(L)], axis=0)                                      # [L, 8, D]
    bqkv = p["bqkv"][:, None, :]                                         # [L, 1, 3D]
    bff1 = p["bff1"][:, None, :]                                         # [L, 1, F]
    pool_b_row = jnp.zeros((D,), jnp.float32).at[0].set(p["pool_b"])
    poolw = jnp.stack([p["pool_w"], pool_b_row], axis=0)                 # [2, D]
    w1h = jnp.concatenate([p["mu_w1"], p["sig_w1"]], axis=1)             # [D, 2*O]
    w2h = jnp.stack([p["mu_w2"], p["sig_w2"]], axis=0)                   # [2, O, O]
    hv = jnp.stack([
        jnp.concatenate([p["mu_b1"], p["sig_b1"]]),
        jnp.concatenate([p["mu_ln1_g"], p["sig_ln1_g"]]),
        jnp.concatenate([p["mu_ln1_b"], p["sig_ln1_b"]]),
        jnp.concatenate([p["mu_b2"], p["sig_b2"]]),
        jnp.concatenate([p["mu_ln2_g"], p["mu_ln2_b"]]),
    ], axis=0)                                                           # [5, 2*O]
    # big MXU operands in bf16 (f32 accumulation in-kernel); vectors stay f32
    return (peb, p["w_in"],
            p["wqkv"].astype(bf16), bqkv,
            p["wo"].astype(bf16),
            p["wff1"].astype(bf16), bff1,
            p["wff2"].astype(bf16),
            lnv, poolw, w1h, w2h, hv)


def _pick_tb(B, S, target_rows=256):
    """Sequences per grid step: amortize overhead / fill MXU rows, but keep
    >= 2 grid steps when B >= 2 so v7x's two TensorCores both get work."""
    if B <= 1:
        return 1
    tb = max(1, pl.cdiv(target_rows, S))
    return max(1, min(tb, pl.cdiv(B, 2)))


@functools.partial(jax.jit, static_argnames=("n_heads",))
def structure_embedder_forward(x, params, *, n_heads=4):
    """x: [B, S, C] float32 -> (mu [B, O], sigma [B, O]) float32."""
    B, S, C = x.shape
    O = params["mu_w1"].shape[1]
    weights = pack_params(params)

    TB = _pick_tb(B, S)
    n_blocks = pl.cdiv(B, TB)
    B_pad = n_blocks * TB
    if B_pad != B:
        x = jnp.pad(x, ((0, B_pad - B), (0, 0), (0, 0)))

    def const_spec(a):
        nd = a.ndim
        # constant index_map -> the slab is fetched once and stays VMEM-resident
        return pl.BlockSpec(a.shape, lambda i, nd=nd: (0,) * nd)

    out = pl.pallas_call(
        functools.partial(structure_embedder_kernel, n_heads=n_heads),
        out_shape=jax.ShapeDtypeStruct((B_pad, 1, 2 * O), jnp.float32),
        grid_spec=pltpu.PrefetchScalarGridSpec(
            num_scalar_prefetch=0,
            grid=(n_blocks,),   # TB sequences per grid step
            in_specs=[pl.BlockSpec((TB, S, C), lambda i: (i, 0, 0))]
                     + [const_spec(a) for a in weights],
            out_specs=pl.BlockSpec((TB, 1, 2 * O), lambda i: (i, 0, 0)),
        ),
        compiler_params=pltpu.CompilerParams(
            dimension_semantics=("parallel",),   # v7x: shard batch over 2 TCs
        ),
    )(x, *weights)
    mu = out[:B, 0, :O]
    sigma = out[:B, 0, O:]
    return mu, sigma


def init_params(key, *, C=8, D=128, L=3, F=512, O=64, S=48):
    """Deterministic synthetic parameters matching the module's shapes."""
    kit = iter(jax.random.split(key, 40))
    nxt = lambda: next(kit)

    def xavier(k, shape):
        fan_in, fan_out = shape[-2], shape[-1]
        lim = math.sqrt(6.0 / (fan_in + fan_out))
        return jax.random.uniform(k, shape, jnp.float32, -lim, lim)

    def small(k, shape):
        return 0.02 * jax.random.normal(k, shape, jnp.float32)

    # sinusoidal positional encoding (same formula as the PyTorch module)
    pos = jnp.arange(S, dtype=jnp.float32)[:, None]
    div = jnp.exp(jnp.arange(0, D, 2, dtype=jnp.float32) * (-math.log(10000.0) / D))
    pe = jnp.zeros((S, D), jnp.float32)
    pe = pe.at[:, 0::2].set(jnp.sin(pos * div))
    pe = pe.at[:, 1::2].set(jnp.cos(pos * div))

    ones = lambda shape: jnp.ones(shape, jnp.float32)
    return {
        "w_in": xavier(nxt(), (C, D)), "b_in": small(nxt(), (D,)), "pe": pe,
        "wqkv": xavier(nxt(), (L, D, 3 * D)), "bqkv": small(nxt(), (L, 3 * D)),
        "wo": xavier(nxt(), (L, D, D)), "bo": small(nxt(), (L, D)),
        "ln1_g": ones((L, D)) + small(nxt(), (L, D)), "ln1_b": small(nxt(), (L, D)),
        "ln2_g": ones((L, D)) + small(nxt(), (L, D)), "ln2_b": small(nxt(), (L, D)),
        "wff1": xavier(nxt(), (L, D, F)), "bff1": small(nxt(), (L, F)),
        "wff2": xavier(nxt(), (L, F, D)), "bff2": small(nxt(), (L, D)),
        "pool_w": xavier(nxt(), (1, D))[0], "pool_b": small(nxt(), ()),
        "mu_w1": xavier(nxt(), (D, O)), "mu_b1": small(nxt(), (O,)),
        "mu_ln1_g": ones((O,)) + small(nxt(), (O,)), "mu_ln1_b": small(nxt(), (O,)),
        "mu_w2": xavier(nxt(), (O, O)), "mu_b2": small(nxt(), (O,)),
        "mu_ln2_g": ones((O,)) + small(nxt(), (O,)), "mu_ln2_b": small(nxt(), (O,)),
        "sig_w1": xavier(nxt(), (D, O)), "sig_b1": small(nxt(), (O,)),
        "sig_ln1_g": ones((O,)) + small(nxt(), (O,)), "sig_ln1_b": small(nxt(), (O,)),
        "sig_w2": xavier(nxt(), (O, O)), "sig_b2": small(nxt(), (O,)),
    }


def reference_forward(x, p, *, n_heads=4):
    """Pure-JAX f32 reference of the same forward pass (eval mode)."""
    hi = jax.lax.Precision.HIGHEST

    def ln(v, g, b):
        mu = v.mean(-1, keepdims=True)
        var = ((v - mu) ** 2).mean(-1, keepdims=True)
        return (v - mu) * jax.lax.rsqrt(var + LN_EPS) * g + b

    B, S, C = x.shape
    D = p["w_in"].shape[1]
    L = p["wqkv"].shape[0]
    Dh = D // n_heads

    h = jnp.einsum("bsc,cd->bsd", x, p["w_in"], precision=hi) + p["b_in"]
    h = h + p["pe"][None, :S, :]
    for l in range(L):
        n1 = ln(h, p["ln1_g"][l], p["ln1_b"][l])
        qkv = jnp.einsum("bsd,de->bse", n1, p["wqkv"][l], precision=hi) + p["bqkv"][l]
        q, k, v = qkv[..., :D], qkv[..., D:2 * D], qkv[..., 2 * D:]
        split = lambda t: t.reshape(B, S, n_heads, Dh).transpose(0, 2, 1, 3)
        qh, kh, vh = split(q), split(k), split(v)
        s = jnp.einsum("bhqd,bhkd->bhqk", qh, kh, precision=hi) / math.sqrt(Dh)
        a = jax.nn.softmax(s, axis=-1)
        ctx = jnp.einsum("bhqk,bhkd->bhqd", a, vh, precision=hi)
        ctx = ctx.transpose(0, 2, 1, 3).reshape(B, S, D)
        attn_out = jnp.einsum("bsd,de->bse", ctx, p["wo"][l], precision=hi) + p["bo"][l]
        h = h + attn_out
        n2 = ln(h, p["ln2_g"][l], p["ln2_b"][l])
        f = _gelu_tanh(jnp.einsum("bsd,df->bsf", n2, p["wff1"][l], precision=hi) + p["bff1"][l])
        f = jnp.einsum("bsf,fd->bsd", f, p["wff2"][l], precision=hi) + p["bff2"][l]
        h = h + f

    logits = jnp.einsum("bsd,d->bs", h, p["pool_w"], precision=hi) + p["pool_b"]
    aw = jax.nn.softmax(logits, axis=-1)               # softmax over the sequence
    pooled = jnp.einsum("bsd,bs->bd", h, aw, precision=hi)

    zmu = _gelu_tanh(ln(jnp.dot(pooled, p["mu_w1"], precision=hi) + p["mu_b1"],
                        p["mu_ln1_g"], p["mu_ln1_b"]))
    mu = ln(jnp.dot(zmu, p["mu_w2"], precision=hi) + p["mu_b2"],
            p["mu_ln2_g"], p["mu_ln2_b"])
    zs = _gelu_tanh(ln(jnp.dot(pooled, p["sig_w1"], precision=hi) + p["sig_b1"],
                       p["sig_ln1_g"], p["sig_ln1_b"]))
    sp = jnp.dot(zs, p["sig_w2"], precision=hi) + p["sig_b2"]
    sigma = jnp.maximum(sp, 0.0) + jnp.log(1.0 + jnp.exp(-jnp.abs(sp))) + 1e-6
    return mu, sigma


if __name__ == "__main__":
    key = jax.random.PRNGKey(0)
    kx, kp = jax.random.split(key)

    B, S, C = 4, 48, 8                  # batch, seq_len, input_channels
    D, H, L, F, O = 128, 4, 3, 512, 64  # d_model, heads, layers, d_ff, output_dim

    x = jax.random.normal(kx, (B, S, C), jnp.float32)
    params = init_params(kp, C=C, D=D, L=L, F=F, O=O, S=S)

    mu, sigma = structure_embedder_forward(x, params, n_heads=H)
    mu, sigma = jax.block_until_ready((mu, sigma))

    mu_ref, sigma_ref = reference_forward(x, params, n_heads=H)

    assert mu.shape == (B, O) and sigma.shape == (B, O)
    assert bool(jnp.all(sigma > 0.0)), "sigma must be strictly positive"
    # kernel uses bf16 MXU operands (f32 accumulation) -> slightly looser tol
    assert jnp.allclose(mu, mu_ref, atol=5e-2, rtol=5e-2), \
        f"mu mismatch vs reference (max err {jnp.max(jnp.abs(mu - mu_ref)):.4f})"
    assert jnp.allclose(sigma, sigma_ref, atol=5e-2, rtol=5e-2), \
        f"sigma mismatch vs reference (max err {jnp.max(jnp.abs(sigma - sigma_ref)):.4f})"

    print("KERNEL_OK")
</pallas_src>

<mosaic_0001>
module attributes {stable_mosaic.version = 11 : i64} {
  func.func @structure_embedder_kernel(%arg0: i32, %arg1: memref<2x48x8xf32, #tpu.memory_space<vmem>>, %arg2: memref<48x128xf32, #tpu.memory_space<vmem>>, %arg3: memref<8x128xf32, #tpu.memory_space<vmem>>, %arg4: memref<3x128x384xbf16, #tpu.memory_space<vmem>>, %arg5: memref<3x1x384xf32, #tpu.memory_space<vmem>>, %arg6: memref<3x128x128xbf16, #tpu.memory_space<vmem>>, %arg7: memref<3x128x512xbf16, #tpu.memory_space<vmem>>, %arg8: memref<3x1x512xf32, #tpu.memory_space<vmem>>, %arg9: memref<3x512x128xbf16, #tpu.memory_space<vmem>>, %arg10: memref<3x8x128xf32, #tpu.memory_space<vmem>>, %arg11: memref<2x128xf32, #tpu.memory_space<vmem>>, %arg12: memref<128x128xf32, #tpu.memory_space<vmem>>, %arg13: memref<2x64x64xf32, #tpu.memory_space<vmem>>, %arg14: memref<5x128xf32, #tpu.memory_space<vmem>>, %arg15: memref<2x1x128xf32, #tpu.memory_space<vmem>>) attributes {dimension_semantics = [#tpu.dimension_semantics<parallel>], iteration_bounds = array<i64: 2>, scalar_prefetch = 0 : i64, scratch_operands = 0 : i64, tpu.core_type = #tpu.core_type<tc>, window_params = [{transform_indices = @transform_0, window_bounds = array<i64: 2, 48, 8>}, {pipeline_mode = #tpu.pipeline_mode<synchronous>, transform_indices = @transform_1, window_bounds = array<i64: 48, 128>}, {pipeline_mode = #tpu.pipeline_mode<synchronous>, transform_indices = @transform_2, window_bounds = array<i64: 8, 128>}, {pipeline_mode = #tpu.pipeline_mode<synchronous>, transform_indices = @transform_3, window_bounds = array<i64: 3, 128, 384>}, {pipeline_mode = #tpu.pipeline_mode<synchronous>, transform_indices = @transform_4, window_bounds = array<i64: 3, 1, 384>}, {pipeline_mode = #tpu.pipeline_mode<synchronous>, transform_indices = @transform_5, window_bounds = array<i64: 3, 128, 128>}, {pipeline_mode = #tpu.pipeline_mode<synchronous>, transform_indices = @transform_6, window_bounds = array<i64: 3, 128, 512>}, {pipeline_mode = #tpu.pipeline_mode<synchronous>, transform_indices = @transform_7, window_bounds = array<i64: 3, 1, 512>}, {pipeline_mode = #tpu.pipeline_mode<synchronous>, transform_indices = @transform_8, window_bounds = array<i64: 3, 512, 128>}, {pipeline_mode = #tpu.pipeline_mode<synchronous>, transform_indices = @transform_9, window_bounds = array<i64: 3, 8, 128>}, {pipeline_mode = #tpu.pipeline_mode<synchronous>, transform_indices = @transform_10, window_bounds = array<i64: 2, 128>}, {pipeline_mode = #tpu.pipeline_mode<synchronous>, transform_indices = @transform_11, window_bounds = array<i64: 128, 128>}, {pipeline_mode = #tpu.pipeline_mode<synchronous>, transform_indices = @transform_12, window_bounds = array<i64: 2, 64, 64>}, {pipeline_mode = #tpu.pipeline_mode<synchronous>, transform_indices = @transform_13, window_bounds = array<i64: 5, 128>}, {transform_indices = @transform_14, window_bounds = array<i64: 2, 1, 128>}]} {
    %c0 = arith.constant 0 : index
    %c0_0 = arith.constant 0 : index
    %c0_1 = arith.constant 0 : index
    %0 = vector.load %arg1[%c0, %c0_0, %c0_1] : memref<2x48x8xf32, #tpu.memory_space<vmem>>, vector<2x48x8xf32>
    %1 = vector.shape_cast %0 : vector<2x48x8xf32> to vector<96x8xf32>
    %c0_2 = arith.constant 0 : index
    %c0_3 = arith.constant 0 : index
    %2 = vector.load %arg3[%c0_2, %c0_3] : memref<8x128xf32, #tpu.memory_space<vmem>>, vector<8x128xf32>
    %cst = arith.constant dense<0.000000e+00> : vector<96x128xf32>
    %3 = tpu.matmul %1, %2, %cst {dimension_numbers = #tpu.dot_dimension_numbers<[1], [0], [0], [1], [0, 0, 1, 1], [], []>} : vector<96x8xf32>, vector<8x128xf32>, vector<96x128xf32> -> vector<96x128xf32>
    %4 = vector.shape_cast %3 : vector<96x128xf32> to vector<2x48x128xf32>
    %c0_4 = arith.constant 0 : index
    %c0_5 = arith.constant 0 : index
    %5 = vector.load %arg2[%c0_4, %c0_5] : memref<48x128xf32, #tpu.memory_space<vmem>>, vector<48x128xf32>
    %6 = vector.shape_cast %5 : vector<48x128xf32> to vector<1x48x128xf32>
    %7 = vector.broadcast %6 : vector<1x48x128xf32> to vector<2x48x128xf32>
    %8 = arith.addf %4, %7 : vector<2x48x128xf32>
    %9 = vector.shape_cast %8 : vector<2x48x128xf32> to vector<96x128xf32>
    %c0_i32 = arith.constant 0 : i32
    %c3_i32 = arith.constant 3 : i32
    %10 = arith.addi %c0_i32, %c3_i32 : i32
    %c1_i32 = arith.constant 1 : i32
    %11 = scf.for %arg16 = %c0_i32 to %10 step %c1_i32 iter_args(%arg17 = %9) -> (vector<96x128xf32>)  : i32 {
      %174 = arith.index_cast %arg16 : i32 to index
      %c0_60 = arith.constant 0 : index
      %c0_61 = arith.constant 0 : index
      %175 = vector.load %arg10[%174, %c0_60, %c0_61] : memref<3x8x128xf32, #tpu.memory_space<vmem>>, vector<1x8x128xf32>
      %176 = vector.shape_cast %175 : vector<1x8x128xf32> to vector<8x128xf32>
      %177 = vector.extract_strided_slice %176 {offsets = [0, 0], sizes = [1, 128], strides = [1, 1]} : vector<8x128xf32> to vector<1x128xf32>
      %178 = vector.extract_strided_slice %176 {offsets = [1, 0], sizes = [1, 128], strides = [1, 1]} : vector<8x128xf32> to vector<1x128xf32>
      %179 = vector.extract_strided_slice %176 {offsets = [2, 0], sizes = [1, 128], strides = [1, 1]} : vector<8x128xf32> to vector<1x128xf32>
      %180 = vector.extract_strided_slice %176 {offsets = [3, 0], sizes = [1, 128], strides = [1, 1]} : vector<8x128xf32> to vector<1x128xf32>
      %181 = vector.extract_strided_slice %176 {offsets = [4, 0], sizes = [1, 128], strides = [1, 1]} : vector<8x128xf32> to vector<1x128xf32>
      %182 = vector.extract_strided_slice %176 {offsets = [5, 0], sizes = [1, 128], strides = [1, 1]} : vector<8x128xf32> to vector<1x128xf32>
      %cst_62 = arith.constant dense<0.000000e+00> : vector<96xf32>
      %183 = vector.multi_reduction <add>, %arg17, %cst_62 [1] : vector<96x128xf32> to vector<96xf32>
      %184 = vector.shape_cast %183 : vector<96xf32> to vector<96x1xf32>
      %185 = arith.mulf %arg17, %arg17 : vector<96x128xf32>
      %cst_63 = arith.constant dense<0.000000e+00> : vector<96xf32>
      %186 = vector.multi_reduction <add>, %185, %cst_63 [1] : vector<96x128xf32> to vector<96xf32>
      %187 = vector.shape_cast %186 : vector<96xf32> to vector<96x1xf32>
      %cst_64 = arith.constant 7.812500e-03 : f32
      %188 = vector.broadcast %cst_64 : f32 to vector<96x1xf32>
      %189 = arith.mulf %184, %188 : vector<96x1xf32>
      %cst_65 = arith.constant 7.812500e-03 : f32
      %190 = vector.broadcast %cst_65 : f32 to vector<96x1xf32>
      %191 = arith.mulf %187, %190 : vector<96x1xf32>
      %192 = arith.mulf %189, %189 : vector<96x1xf32>
      %193 = arith.subf %191, %192 : vector<96x1xf32>
      %cst_66 = arith.constant 0.000000e+00 : f32
      %194 = vector.broadcast %cst_66 : f32 to vector<96x1xf32>
      %195 = arith.maximumf %193, %194 : vector<96x1xf32>
      %196 = vector.broadcast %189 : vector<96x1xf32> to vector<96x128xf32>
      %197 = arith.subf %arg17, %196 : vector<96x128xf32>
      %cst_67 = arith.constant 9.99999974E-6 : f32
      %198 = vector.broadcast %cst_67 : f32 to vector<96x1xf32>
      %199 = arith.addf %195, %198 : vector<96x1xf32>
      %200 = math.rsqrt %199 : vector<96x1xf32>
      %201 = vector.broadcast %200 : vector<96x1xf32> to vector<96x128xf32>
      %202 = arith.mulf %197, %201 : vector<96x128xf32>
      %203 = vector.broadcast %177 : vector<1x128xf32> to vector<96x128xf32>
      %204 = arith.mulf %202, %203 : vector<96x128xf32>
      %205 = vector.broadcast %178 : vector<1x128xf32> to vector<96x128xf32>
      %206 = arith.addf %204, %205 : vector<96x128xf32>
      %207 = arith.truncf %206 : vector<96x128xf32> to vector<96x128xbf16>
      %208 = arith.index_cast %arg16 : i32 to index
      %c0_68 = arith.constant 0 : index
      %c0_69 = arith.constant 0 : index
      %209 = vector.load %arg4[%208, %c0_68, %c0_69] : memref<3x128x384xbf16, #tpu.memory_space<vmem>>, vector<1x128x384xbf16>
      %210 = vector.shape_cast %209 : vector<1x128x384xbf16> to vector<128x384xbf16>
      %cst_70 = arith.constant dense<0.000000e+00> : vector<96x384xf32>
      %211 = tpu.matmul %207, %210, %cst_70 {dimension_numbers = #tpu.dot_dimension_numbers<[1], [0], [0], [1], [0, 0, 1, 1], [], []>} : vector<96x128xbf16>, vector<128x384xbf16>, vector<96x384xf32> -> vector<96x384xf32>
      %212 = arith.index_cast %arg16 : i32 to index
      %c0_71 = arith.constant 0 : index
      %c0_72 = arith.constant 0 : index
      %213 = vector.load %arg5[%212, %c0_71, %c0_72] : memref<3x1x384xf32, #tpu.memory_space<vmem>>, vector<1x1x384xf32>
      %214 = vector.shape_cast %213 : vector<1x1x384xf32> to vector<1x384xf32>
      %215 = vector.broadcast %214 : vector<1x384xf32> to vector<96x384xf32>
      %216 = arith.addf %211, %215 : vector<96x384xf32>
      %217 = vector.extract_strided_slice %216 {offsets = [0, 0], sizes = [96, 128], strides = [1, 1]} : vector<96x384xf32> to vector<96x128xf32>
      %cst_73 = arith.constant 0.176776692 : f32
      %218 = vector.broadcast %cst_73 : f32 to vector<96x128xf32>
      %219 = arith.mulf %217, %218 : vector<96x128xf32>
      %220 = arith.truncf %219 : vector<96x128xf32> to vector<96x128xbf16>
      %221 = vector.extract_strided_slice %216 {offsets = [0, 128], sizes = [96, 128], strides = [1, 1]} : vector<96x384xf32> to vector<96x128xf32>
      %222 = arith.truncf %221 : vector<96x128xf32> to vector<96x128xbf16>
      %223 = vector.extract_strided_slice %216 {offsets = [0, 256], sizes = [96, 128], strides = [1, 1]} : vector<96x384xf32> to vector<96x128xf32>
      %224 = arith.truncf %223 : vector<96x128xf32> to vector<96x128xbf16>
      %225 = vector.extract_strided_slice %220 {offsets = [0, 0], sizes = [48, 32], strides = [1, 1]} : vector<96x128xbf16> to vector<48x32xbf16>
      %226 = vector.extract_strided_slice %222 {offsets = [0, 0], sizes = [48, 32], strides = [1, 1]} : vector<96x128xbf16> to vector<48x32xbf16>
      %227 = vector.extract_strided_slice %224 {offsets = [0, 0], sizes = [48, 32], strides = [1, 1]} : vector<96x128xbf16> to vector<48x32xbf16>
      %cst_74 = arith.constant dense<0.000000e+00> : vector<48x48xf32>
      %228 = tpu.matmul %225, %226, %cst_74 {dimension_numbers = #tpu.dot_dimension_numbers<[1], [1], [0], [0], [0, 0, 1, 0], [], []>} : vector<48x32xbf16>, vector<48x32xbf16>, vector<48x48xf32> -> vector<48x48xf32>
      %cst_75 = arith.constant dense<0xFF800000> : vector<48xf32>
      %229 = vector.multi_reduction <maximumf>, %228, %cst_75 [1] : vector<48x48xf32> to vector<48xf32>
      %230 = vector.shape_cast %229 : vector<48xf32> to vector<48x1xf32>
      %231 = vector.broadcast %230 : vector<48x1xf32> to vector<48x48xf32>
      %232 = arith.subf %228, %231 : vector<48x48xf32>
      %233 = math.exp %232 : vector<48x48xf32>
      %cst_76 = arith.constant dense<0.000000e+00> : vector<48xf32>
      %234 = vector.multi_reduction <add>, %233, %cst_76 [1] : vector<48x48xf32> to vector<48xf32>
      %235 = vector.shape_cast %234 : vector<48xf32> to vector<48x1xf32>
      %236 = tpu.reciprocal %235 {approx = true} : vector<48x1xf32> -> vector<48x1xf32>
      %237 = vector.broadcast %236 : vector<48x1xf32> to vector<48x48xf32>
      %238 = arith.mulf %233, %237 : vector<48x48xf32>
      %239 = arith.truncf %238 : vector<48x48xf32> to vector<48x48xbf16>
      %cst_77 = arith.constant dense<0.000000e+00> : vector<48x32xf32>
      %240 = tpu.matmul %239, %227, %cst_77 {dimension_numbers = #tpu.dot_dimension_numbers<[1], [0], [0], [1], [0, 0, 1, 1], [], []>} : vector<48x48xbf16>, vector<48x32xbf16>, vector<48x32xf32> -> vector<48x32xf32>
      %241 = vector.extract_strided_slice %220 {offsets = [0, 32], sizes = [48, 32], strides = [1, 1]} : vector<96x128xbf16> to vector<48x32xbf16>
      %242 = vector.extract_strided_slice %222 {offsets = [0, 32], sizes = [48, 32], strides = [1, 1]} : vector<96x128xbf16> to vector<48x32xbf16>
      %243 = vector.extract_strided_slice %224 {offsets = [0, 32], sizes = [48, 32], strides = [1, 1]} : vector<96x128xbf16> to vector<48x32xbf16>
      %cst_78 = arith.constant dense<0.000000e+00> : vector<48x48xf32>
      %244 = tpu.matmul %241, %242, %cst_78 {dimension_numbers = #tpu.dot_dimension_numbers<[1], [1], [0], [0], [0, 0, 1, 0], [], []>} : vector<48x32xbf16>, vector<48x32xbf16>, vector<48x48xf32> -> vector<48x48xf32>
      %cst_79 = arith.constant dense<0xFF800000> : vector<48xf32>
      %245 = vector.multi_reduction <maximumf>, %244, %cst_79 [1] : vector<48x48xf32> to vector<48xf32>
      %246 = vector.shape_cast %245 : vector<48xf32> to vector<48x1xf32>
      %247 = vector.broadcast %246 : vector<48x1xf32> to vector<48x48xf32>
      %248 = arith.subf %244, %247 : vector<48x48xf32>
      %249 = math.exp %248 : vector<48x48xf32>
      %cst_80 = arith.constant dense<0.000000e+00> : vector<48xf32>
      %250 = vector.multi_reduction <add>, %249, %cst_80 [1] : vector<48x48xf32> to vector<48xf32>
      %251 = vector.shape_cast %250 : vector<48xf32> to vector<48x1xf32>
      %252 = tpu.reciprocal %251 {approx = true} : vector<48x1xf32> -> vector<48x1xf32>
      %253 = vector.broadcast %252 : vector<48x1xf32> to vector<48x48xf32>
      %254 = arith.mulf %249, %253 : vector<48x48xf32>
      %255 = arith.truncf %254 : vector<48x48xf32> to vector<48x48xbf16>
      %cst_81 = arith.constant dense<0.000000e+00> : vector<48x32xf32>
      %256 = tpu.matmul %255, %243, %cst_81 {dimension_numbers = #tpu.dot_dimension_numbers<[1], [0], [0], [1], [0, 0, 1, 1], [], []>} : vector<48x48xbf16>, vector<48x32xbf16>, vector<48x32xf32> -> vector<48x32xf32>
      %257 = vector.extract_strided_slice %220 {offsets = [0, 64], sizes = [48, 32], strides = [1, 1]} : vector<96x128xbf16> to vector<48x32xbf16>
      %258 = vector.extract_strided_slice %222 {offsets = [0, 64], sizes = [48, 32], strides = [1, 1]} : vector<96x128xbf16> to vector<48x32xbf16>
      %259 = vector.extract_strided_slice %224 {offsets = [0, 64], sizes = [48, 32], strides = [1, 1]} : vector<96x128xbf16> to vector<48x32xbf16>
      %cst_82 = arith.constant dense<0.000000e+00> : vector<48x48xf32>
      %260 = tpu.matmul %257, %258, %cst_82 {dimension_numbers = #tpu.dot_dimension_numbers<[1], [1], [0], [0], [0, 0, 1, 0], [], []>} : vector<48x32xbf16>, vector<48x32xbf16>, vector<48x48xf32> -> vector<48x48xf32>
      %cst_83 = arith.constant dense<0xFF800000> : vector<48xf32>
      %261 = vector.multi_reduction <maximumf>, %260, %cst_83 [1] : vector<48x48xf32> to vector<48xf32>
      %262 = vector.shape_cast %261 : vector<48xf32> to vector<48x1xf32>
      %263 = vector.broadcast %262 : vector<48x1xf32> to vector<48x48xf32>
      %264 = arith.subf %260, %263 : vector<48x48xf32>
      %265 = math.exp %264 : vector<48x48xf32>
      %cst_84 = arith.constant dense<0.000000e+00> : vector<48xf32>
      %266 = vector.multi_reduction <add>, %265, %cst_84 [1] : vector<48x48xf32> to vector<48xf32>
      %267 = vector.shape_cast %266 : vector<48xf32> to vector<48x1xf32>
      %268 = tpu.reciprocal %267 {approx = true} : vector<48x1xf32> -> vector<48x1xf32>
      %269 = vector.broadcast %268 : vector<48x1xf32> to vector<48x48xf32>
      %270 = arith.mulf %265, %269 : vector<48x48xf32>
      %271 = arith.truncf %270 : vector<48x48xf32> to vector<48x48xbf16>
      %cst_85 = arith.constant dense<0.000000e+00> : vector<48x32xf32>
      %272 = tpu.matmul %271, %259, %cst_85 {dimension_numbers = #tpu.dot_dimension_numbers<[1], [0], [0], [1], [0, 0, 1, 1], [], []>} : vector<48x48xbf16>, vector<48x32xbf16>, vector<48x32xf32> -> vector<48x32xf32>
      %273 = vector.extract_strided_slice %220 {offsets = [0, 96], sizes = [48, 32], strides = [1, 1]} : vector<96x128xbf16> to vector<48x32xbf16>
      %274 = vector.extract_strided_slice %222 {offsets = [0, 96], sizes = [48, 32], strides = [1, 1]} : vector<96x128xbf16> to vector<48x32xbf16>
      %275 = vector.extract_strided_slice %224 {offsets = [0, 96], sizes = [48, 32], strides = [1, 1]} : vector<96x128xbf16> to vector<48x32xbf16>
      %cst_86 = arith.constant dense<0.000000e+00> : vector<48x48xf32>
      %276 = tpu.matmul %273, %274, %cst_86 {dimension_numbers = #tpu.dot_dimension_numbers<[1], [1], [0], [0], [0, 0, 1, 0], [], []>} : vector<48x32xbf16>, vector<48x32xbf16>, vector<48x48xf32> -> vector<48x48xf32>
      %cst_87 = arith.constant dense<0xFF800000> : vector<48xf32>
      %277 = vector.multi_reduction <maximumf>, %276, %cst_87 [1] : vector<48x48xf32> to vector<48xf32>
      %278 = vector.shape_cast %277 : vector<48xf32> to vector<48x1xf32>
      %279 = vector.broadcast %278 : vector<48x1xf32> to vector<48x48xf32>
      %280 = arith.subf %276, %279 : vector<48x48xf32>
      %281 = math.exp %280 : vector<48x48xf32>
      %cst_88 = arith.constant dense<0.000000e+00> : vector<48xf32>
      %282 = vector.multi_reduction <add>, %281, %cst_88 [1] : vector<48x48xf32> to vector<48xf32>
      %283 = vector.shape_cast %282 : vector<48xf32> to vector<48x1xf32>
      %284 = tpu.reciprocal %283 {approx = true} : vector<48x1xf32> -> vector<48x1xf32>
      %285 = vector.broadcast %284 : vector<48x1xf32> to vector<48x48xf32>
      %286 = arith.mulf %281, %285 : vector<48x48xf32>
      %287 = arith.truncf %286 : vector<48x48xf32> to vector<48x48xbf16>
      %cst_89 = arith.constant dense<0.000000e+00> : vector<48x32xf32>
      %288 = tpu.matmul %287, %275, %cst_89 {dimension_numbers = #tpu.dot_dimension_numbers<[1], [0], [0], [1], [0, 0, 1, 1], [], []>} : vector<48x48xbf16>, vector<48x32xbf16>, vector<48x32xf32> -> vector<48x32xf32>
      %289 = tpu.concatenate %240, %256, %272, %288 in 1 : vector<48x32xf32>, vector<48x32xf32>, vector<48x32xf32>, vector<48x32xf32> -> vector<48x128xf32>
      %290 = vector.extract_strided_slice %220 {offsets = [48, 0], sizes = [48, 32], strides = [1, 1]} : vector<96x128xbf16> to vector<48x32xbf16>
      %291 = vector.extract_strided_slice %222 {offsets = [48, 0], sizes = [48, 32], strides = [1, 1]} : vector<96x128xbf16> to vector<48x32xbf16>
      %292 = vector.extract_strided_slice %224 {offsets = [48, 0], sizes = [48, 32], strides = [1, 1]} : vector<96x128xbf16> to vector<48x32xbf16>
      %cst_90 = arith.constant dense<0.000000e+00> : vector<48x48xf32>
      %293 = tpu.matmul %290, %291, %cst_90 {dimension_numbers = #tpu.dot_dimension_numbers<[1], [1], [0], [0], [0, 0, 1, 0], [], []>} : vector<48x32xbf16>, vector<48x32xbf16>, vector<48x48xf32> -> vector<48x48xf32>
      %cst_91 = arith.constant dense<0xFF800000> : vector<48xf32>
      %294 = vector.multi_reduction <maximumf>, %293, %cst_91 [1] : vector<48x48xf32> to vector<48xf32>
      %295 = vector.shape_cast %294 : vector<48xf32> to vector<48x1xf32>
      %296 = vector.broadcast %295 : vector<48x1xf32> to vector<48x48xf32>
      %297 = arith.subf %293, %296 : vector<48x48xf32>
      %298 = math.exp %297 : vector<48x48xf32>
      %cst_92 = arith.constant dense<0.000000e+00> : vector<48xf32>
      %299 = vector.multi_reduction <add>, %298, %cst_92 [1] : vector<48x48xf32> to vector<48xf32>
      %300 = vector.shape_cast %299 : vector<48xf32> to vector<48x1xf32>
      %301 = tpu.reciprocal %300 {approx = true} : vector<48x1xf32> -> vector<48x1xf32>
      %302 = vector.broadcast %301 : vector<48x1xf32> to vector<48x48xf32>
      %303 = arith.mulf %298, %302 : vector<48x48xf32>
      %304 = arith.truncf %303 : vector<48x48xf32> to vector<48x48xbf16>
      %cst_93 = arith.constant dense<0.000000e+00> : vector<48x32xf32>
      %305 = tpu.matmul %304, %292, %cst_93 {dimension_numbers = #tpu.dot_dimension_numbers<[1], [0], [0], [1], [0, 0, 1, 1], [], []>} : vector<48x48xbf16>, vector<48x32xbf16>, vector<48x32xf32> -> vector<48x32xf32>
      %306 = vector.extract_strided_slice %220 {offsets = [48, 32], sizes = [48, 32], strides = [1, 1]} : vector<96x128xbf16> to vector<48x32xbf16>
      %307 = vector.extract_strided_slice %222 {offsets = [48, 32], sizes = [48, 32], strides = [1, 1]} : vector<96x128xbf16> to vector<48x32xbf16>
      %308 = vector.extract_strided_slice %224 {offsets = [48, 32], sizes = [48, 32], strides = [1, 1]} : vector<96x128xbf16> to vector<48x32xbf16>
      %cst_94 = arith.constant dense<0.000000e+00> : vector<48x48xf32>
      %309 = tpu.matmul %306, %307, %cst_94 {dimension_numbers = #tpu.dot_dimension_numbers<[1], [1], [0], [0], [0, 0, 1, 0], [], []>} : vector<48x32xbf16>, vector<48x32xbf16>, vector<48x48xf32> -> vector<48x48xf32>
      %cst_95 = arith.constant dense<0xFF800000> : vector<48xf32>
      %310 = vector.multi_reduction <maximumf>, %309, %cst_95 [1] : vector<48x48xf32> to vector<48xf32>
      %311 = vector.shape_cast %310 : vector<48xf32> to vector<48x1xf32>
      %312 = vector.broadcast %311 : vector<48x1xf32> to vector<48x48xf32>
      %313 = arith.subf %309, %312 : vector<48x48xf32>
      %314 = math.exp %313 : vector<48x48xf32>
      %cst_96 = arith.constant dense<0.000000e+00> : vector<48xf32>
      %315 = vector.multi_reduction <add>, %314, %cst_96 [1] : vector<48x48xf32> to vector<48xf32>
      %316 = vector.shape_cast %315 : vector<48xf32> to vector<48x1xf32>
      %317 = tpu.reciprocal %316 {approx = true} : vector<48x1xf32> -> vector<48x1xf32>
      %318 = vector.broadcast %317 : vector<48x1xf32> to vector<48x48xf32>
      %319 = arith.mulf %314, %318 : vector<48x48xf32>
      %320 = arith.truncf %319 : vector<48x48xf32> to vector<48x48xbf16>
      %cst_97 = arith.constant dense<0.000000e+00> : vector<48x32xf32>
      %321 = tpu.matmul %320, %308, %cst_97 {dimension_numbers = #tpu.dot_dimension_numbers<[1], [0], [0], [1], [0, 0, 1, 1], [], []>} : vector<48x48xbf16>, vector<48x32xbf16>, vector<48x32xf32> -> vector<48x32xf32>
      %322 = vector.extract_strided_slice %220 {offsets = [48, 64], sizes = [48, 32], strides = [1, 1]} : vector<96x128xbf16> to vector<48x32xbf16>
      %323 = vector.extract_strided_slice %222 {offsets = [48, 64], sizes = [48, 32], strides = [1, 1]} : vector<96x128xbf16> to vector<48x32xbf16>
      %324 = vector.extract_strided_slice %224 {offsets = [48, 64], sizes = [48, 32], strides = [1, 1]} : vector<96x128xbf16> to vector<48x32xbf16>
      %cst_98 = arith.constant dense<0.000000e+00> : vector<48x48xf32>
      %325 = tpu.matmul %322, %323, %cst_98 {dimension_numbers = #tpu.dot_dimension_numbers<[1], [1], [0], [0], [0, 0, 1, 0], [], []>} : vector<48x32xbf16>, vector<48x32xbf16>, vector<48x48xf32> -> vector<48x48xf32>
      %cst_99 = arith.constant dense<0xFF800000> : vector<48xf32>
      %326 = vector.multi_reduction <maximumf>, %325, %cst_99 [1] : vector<48x48xf32> to vector<48xf32>
      %327 = vector.shape_cast %326 : vector<48xf32> to vector<48x1xf32>
      %328 = vector.broadcast %327 : vector<48x1xf32> to vector<48x48xf32>
      %329 = arith.subf %325, %328 : vector<48x48xf32>
      %330 = math.exp %329 : vector<48x48xf32>
      %cst_100 = arith.constant dense<0.000000e+00> : vector<48xf32>
      %331 = vector.multi_reduction <add>, %330, %cst_100 [1] : vector<48x48xf32> to vector<48xf32>
      %332 = vector.shape_cast %331 : vector<48xf32> to vector<48x1xf32>
      %333 = tpu.reciprocal %332 {approx = true} : vector<48x1xf32> -> vector<48x1xf32>
      %334 = vector.broadcast %333 : vector<48x1xf32> to vector<48x48xf32>
      %335 = arith.mulf %330, %334 : vector<48x48xf32>
      %336 = arith.truncf %335 : vector<48x48xf32> to vector<48x48xbf16>
      %cst_101 = arith.constant dense<0.000000e+00> : vector<48x32xf32>
      %337 = tpu.matmul %336, %324, %cst_101 {dimension_numbers = #tpu.dot_dimension_numbers<[1], [0], [0], [1], [0, 0, 1, 1], [], []>} : vector<48x48xbf16>, vector<48x32xbf16>, vector<48x32xf32> -> vector<48x32xf32>
      %338 = vector.extract_strided_slice %220 {offsets = [48, 96], sizes = [48, 32], strides = [1, 1]} : vector<96x128xbf16> to vector<48x32xbf16>
      %339 = vector.extract_strided_slice %222 {offsets = [48, 96], sizes = [48, 32], strides = [1, 1]} : vector<96x128xbf16> to vector<48x32xbf16>
      %340 = vector.extract_strided_slice %224 {offsets = [48, 96], sizes = [48, 32], strides = [1, 1]} : vector<96x128xbf16> to vector<48x32xbf16>
      %cst_102 = arith.constant dense<0.000000e+00> : vector<48x48xf32>
      %341 = tpu.matmul %338, %339, %cst_102 {dimension_numbers = #tpu.dot_dimension_numbers<[1], [1], [0], [0], [0, 0, 1, 0], [], []>} : vector<48x32xbf16>, vector<48x32xbf16>, vector<48x48xf32> -> vector<48x48xf32>
      %cst_103 = arith.constant dense<0xFF800000> : vector<48xf32>
      %342 = vector.multi_reduction <maximumf>, %341, %cst_103 [1] : vector<48x48xf32> to vector<48xf32>
      %343 = vector.shape_cast %342 : vector<48xf32> to vector<48x1xf32>
      %344 = vector.broadcast %343 : vector<48x1xf32> to vector<48x48xf32>
      %345 = arith.subf %341, %344 : vector<48x48xf32>
      %346 = math.exp %345 : vector<48x48xf32>
      %cst_104 = arith.constant dense<0.000000e+00> : vector<48xf32>
      %347 = vector.multi_reduction <add>, %346, %cst_104 [1] : vector<48x48xf32> to vector<48xf32>
      %348 = vector.shape_cast %347 : vector<48xf32> to vector<48x1xf32>
      %349 = tpu.reciprocal %348 {approx = true} : vector<48x1xf32> -> vector<48x1xf32>
      %350 = vector.broadcast %349 : vector<48x1xf32> to vector<48x48xf32>
      %351 = arith.mulf %346, %350 : vector<48x48xf32>
      %352 = arith.truncf %351 : vector<48x48xf32> to vector<48x48xbf16>
      %cst_105 = arith.constant dense<0.000000e+00> : vector<48x32xf32>
      %353 = tpu.matmul %352, %340, %cst_105 {dimension_numbers = #tpu.dot_dimension_numbers<[1], [0], [0], [1], [0, 0, 1, 1], [], []>} : vector<48x48xbf16>, vector<48x32xbf16>, vector<48x32xf32> -> vector<48x32xf32>
      %354 = tpu.concatenate %305, %321, %337, %353 in 1 : vector<48x32xf32>, vector<48x32xf32>, vector<48x32xf32>, vector<48x32xf32> -> vector<48x128xf32>
      %355 = tpu.concatenate %289, %354 in 0 : vector<48x128xf32>, vector<48x128xf32> -> vector<96x128xf32>
      %356 = arith.truncf %355 : vector<96x128xf32> to vector<96x128xbf16>
      %357 = arith.index_cast %arg16 : i32 to index
      %c0_106 = arith.constant 0 : index
      %c0_107 = arith.constant 0 : index
      %358 = vector.load %arg6[%357, %c0_106, %c0_107] : memref<3x128x128xbf16, #tpu.memory_space<vmem>>, vector<1x128x128xbf16>
      %359 = vector.shape_cast %358 : vector<1x128x128xbf16> to vector<128x128xbf16>
      %cst_108 = arith.constant dense<0.000000e+00> : vector<96x128xf32>
      %360 = tpu.matmul %356, %359, %cst_108 {dimension_numbers = #tpu.dot_dimension_numbers<[1], [0], [0], [1], [0, 0, 1, 1], [], []>} : vector<96x128xbf16>, vector<128x128xbf16>, vector<96x128xf32> -> vector<96x128xf32>
      %361 = vector.broadcast %179 : vector<1x128xf32> to vector<96x128xf32>
      %362 = arith.addf %360, %361 : vector<96x128xf32>
      %363 = arith.addf %arg17, %362 : vector<96x128xf32>
      %cst_109 = arith.constant dense<0.000000e+00> : vector<96xf32>
      %364 = vector.multi_reduction <add>, %363, %cst_109 [1] : vector<96x128xf32> to vector<96xf32>
      %365 = vector.shape_cast %364 : vector<96xf32> to vector<96x1xf32>
      %366 = arith.mulf %363, %363 : vector<96x128xf32>
      %cst_110 = arith.constant dense<0.000000e+00> : vector<96xf32>
      %367 = vector.multi_reduction <add>, %366, %cst_110 [1] : vector<96x128xf32> to vector<96xf32>
      %368 = vector.shape_cast %367 : vector<96xf32> to vector<96x1xf32>
      %cst_111 = arith.constant 7.812500e-03 : f32
      %369 = vector.broadcast %cst_111 : f32 to vector<96x1xf32>
      %370 = arith.mulf %365, %369 : vector<96x1xf32>
      %cst_112 = arith.constant 7.812500e-03 : f32
      %371 = vector.broadcast %cst_112 : f32 to vector<96x1xf32>
      %372 = arith.mulf %368, %371 : vector<96x1xf32>
      %373 = arith.mulf %370, %370 : vector<96x1xf32>
      %374 = arith.subf %372, %373 : vector<96x1xf32>
      %cst_113 = arith.constant 0.000000e+00 : f32
      %375 = vector.broadcast %cst_113 : f32 to vector<96x1xf32>
      %376 = arith.maximumf %374, %375 : vector<96x1xf32>
      %377 = vector.broadcast %370 : vector<96x1xf32> to vector<96x128xf32>
      %378 = arith.subf %363, %377 : vector<96x128xf32>
      %cst_114 = arith.constant 9.99999974E-6 : f32
      %379 = vector.broadcast %cst_114 : f32 to vector<96x1xf32>
      %380 = arith.addf %376, %379 : vector<96x1xf32>
      %381 = math.rsqrt %380 : vector<96x1xf32>
      %382 = vector.broadcast %381 : vector<96x1xf32> to vector<96x128xf32>
      %383 = arith.mulf %378, %382 : vector<96x128xf32>
      %384 = vector.broadcast %180 : vector<1x128xf32> to vector<96x128xf32>
      %385 = arith.mulf %383, %384 : vector<96x128xf32>
      %386 = vector.broadcast %181 : vector<1x128xf32> to vector<96x128xf32>
      %387 = arith.addf %385, %386 : vector<96x128xf32>
      %388 = arith.truncf %387 : vector<96x128xf32> to vector<96x128xbf16>
      %389 = arith.index_cast %arg16 : i32 to index
      %c0_115 = arith.constant 0 : index
      %c0_116 = arith.constant 0 : index
      %390 = vector.load %arg7[%389, %c0_115, %c0_116] : memref<3x128x512xbf16, #tpu.memory_space<vmem>>, vector<1x128x512xbf16>
      %391 = vector.shape_cast %390 : vector<1x128x512xbf16> to vector<128x512xbf16>
      %cst_117 = arith.constant dense<0.000000e+00> : vector<96x512xf32>
      %392 = tpu.matmul %388, %391, %cst_117 {dimension_numbers = #tpu.dot_dimension_numbers<[1], [0], [0], [1], [0, 0, 1, 1], [], []>} : vector<96x128xbf16>, vector<128x512xbf16>, vector<96x512xf32> -> vector<96x512xf32>
      %393 = arith.index_cast %arg16 : i32 to index
      %c0_118 = arith.constant 0 : index
      %c0_119 = arith.constant 0 : index
      %394 = vector.load %arg8[%393, %c0_118, %c0_119] : memref<3x1x512xf32, #tpu.memory_space<vmem>>, vector<1x1x512xf32>
      %395 = vector.shape_cast %394 : vector<1x1x512xf32> to vector<1x512xf32>
      %396 = vector.broadcast %395 : vector<1x512xf32> to vector<96x512xf32>
      %397 = arith.addf %392, %396 : vector<96x512xf32>
      %cst_120 = arith.constant 5.000000e-01 : f32
      %398 = vector.broadcast %cst_120 : f32 to vector<96x512xf32>
      %399 = arith.mulf %398, %397 : vector<96x512xf32>
      %cst_121 = arith.constant 4.471500e-02 : f32
      %400 = vector.broadcast %cst_121 : f32 to vector<96x512xf32>
      %401 = arith.mulf %400, %397 : vector<96x512xf32>
      %402 = arith.mulf %401, %397 : vector<96x512xf32>
      %403 = arith.mulf %402, %397 : vector<96x512xf32>
      %404 = arith.addf %397, %403 : vector<96x512xf32>
      %cst_122 = arith.constant 0.797884583 : f32
      %405 = vector.broadcast %cst_122 : f32 to vector<96x512xf32>
      %406 = arith.mulf %405, %404 : vector<96x512xf32>
      %407 = math.tanh %406 : vector<96x512xf32>
      %cst_123 = arith.constant 1.000000e+00 : f32
      %408 = vector.broadcast %cst_123 : f32 to vector<96x512xf32>
      %409 = arith.addf %408, %407 : vector<96x512xf32>
      %410 = arith.mulf %399, %409 : vector<96x512xf32>
      %411 = arith.truncf %410 : vector<96x512xf32> to vector<96x512xbf16>
      %412 = arith.index_cast %arg16 : i32 to index
      %c0_124 = arith.constant 0 : index
      %c0_125 = arith.constant 0 : index
      %413 = vector.load %arg9[%412, %c0_124, %c0_125] : memref<3x512x128xbf16, #tpu.memory_space<vmem>>, vector<1x512x128xbf16>
      %414 = vector.shape_cast %413 : vector<1x512x128xbf16> to vector<512x128xbf16>
      %cst_126 = arith.constant dense<0.000000e+00> : vector<96x128xf32>
      %415 = tpu.matmul %411, %414, %cst_126 {dimension_numbers = #tpu.dot_dimension_numbers<[1], [0], [0], [1], [0, 0, 1, 1], [], []>} : vector<96x512xbf16>, vector<512x128xbf16>, vector<96x128xf32> -> vector<96x128xf32>
      %416 = vector.broadcast %182 : vector<1x128xf32> to vector<96x128xf32>
      %417 = arith.addf %415, %416 : vector<96x128xf32>
      %418 = arith.addf %363, %417 : vector<96x128xf32>
      scf.yield %418 : vector<96x128xf32>
    }
    %c3_i32_6 = arith.constant 3 : i32
    %c0_7 = arith.constant 0 : index
    %c0_8 = arith.constant 0 : index
    %12 = vector.load %arg11[%c0_7, %c0_8] : memref<2x128xf32, #tpu.memory_space<vmem>>, vector<1x128xf32>
    %c1 = arith.constant 1 : index
    %c0_9 = arith.constant 0 : index
    %13 = vector.load %arg11[%c1, %c0_9] : memref<2x128xf32, #tpu.memory_space<vmem>>, vector<1x1xf32>
    %14 = vector.broadcast %12 : vector<1x128xf32> to vector<96x128xf32>
    %15 = arith.mulf %11, %14 : vector<96x128xf32>
    %cst_10 = arith.constant dense<0.000000e+00> : vector<96xf32>
    %16 = vector.multi_reduction <add>, %15, %cst_10 [1] : vector<96x128xf32> to vector<96xf32>
    %17 = vector.shape_cast %16 : vector<96xf32> to vector<96x1xf32>
    %18 = vector.broadcast %13 : vector<1x1xf32> to vector<96x1xf32>
    %19 = arith.addf %17, %18 : vector<96x1xf32>
    %20 = vector.shape_cast %19 : vector<96x1xf32> to vector<2x48x1xf32>
    %cst_11 = arith.constant dense<0xFF800000> : vector<2x1xf32>
    %21 = vector.multi_reduction <maximumf>, %20, %cst_11 [1] : vector<2x48x1xf32> to vector<2x1xf32>
    %22 = vector.shape_cast %21 : vector<2x1xf32> to vector<2x1x1xf32>
    %23 = vector.broadcast %22 : vector<2x1x1xf32> to vector<2x48x1xf32>
    %24 = arith.subf %20, %23 : vector<2x48x1xf32>
    %25 = math.exp %24 : vector<2x48x1xf32>
    %cst_12 = arith.constant dense<0.000000e+00> : vector<2x1xf32>
    %26 = vector.multi_reduction <add>, %25, %cst_12 [1] : vector<2x48x1xf32> to vector<2x1xf32>
    %27 = vector.shape_cast %26 : vector<2x1xf32> to vector<2x1x1xf32>
    %28 = tpu.reciprocal %27 {approx = true} : vector<2x1x1xf32> -> vector<2x1x1xf32>
    %29 = vector.broadcast %28 : vector<2x1x1xf32> to vector<2x48x1xf32>
    %30 = arith.mulf %25, %29 : vector<2x48x1xf32>
    %31 = vector.shape_cast %11 : vector<96x128xf32> to vector<2x48x128xf32>
    %32 = vector.broadcast %30 : vector<2x48x1xf32> to vector<2x48x128xf32>
    %33 = arith.mulf %31, %32 : vector<2x48x128xf32>
    %cst_13 = arith.constant dense<0.000000e+00> : vector<2x128xf32>
    %34 = vector.multi_reduction <add>, %33, %cst_13 [1] : vector<2x48x128xf32> to vector<2x128xf32>
    %c0_14 = arith.constant 0 : index
    %c0_15 = arith.constant 0 : index
    %35 = vector.load %arg14[%c0_14, %c0_15] : memref<5x128xf32, #tpu.memory_space<vmem>>, vector<5x128xf32>
    %c0_16 = arith.constant 0 : index
    %c0_17 = arith.constant 0 : index
    %36 = vector.load %arg12[%c0_16, %c0_17] : memref<128x128xf32, #tpu.memory_space<vmem>>, vector<128x128xf32>
    %cst_18 = arith.constant dense<0.000000e+00> : vector<2x128xf32>
    %37 = tpu.matmul %34, %36, %cst_18 {dimension_numbers = #tpu.dot_dimension_numbers<[1], [0], [0], [1], [0, 0, 1, 1], [], []>} : vector<2x128xf32>, vector<128x128xf32>, vector<2x128xf32> -> vector<2x128xf32>
    %38 = vector.extract_strided_slice %35 {offsets = [0, 0], sizes = [1, 128], strides = [1, 1]} : vector<5x128xf32> to vector<1x128xf32>
    %39 = vector.broadcast %38 : vector<1x128xf32> to vector<2x128xf32>
    %40 = arith.addf %37, %39 : vector<2x128xf32>
    %41 = vector.extract_strided_slice %40 {offsets = [0, 0], sizes = [2, 64], strides = [1, 1]} : vector<2x128xf32> to vector<2x64xf32>
    %42 = vector.extract_strided_slice %35 {offsets = [1, 0], sizes = [1, 64], strides = [1, 1]} : vector<5x128xf32> to vector<1x64xf32>
    %43 = vector.extract_strided_slice %35 {offsets = [2, 0], sizes = [1, 64], strides = [1, 1]} : vector<5x128xf32> to vector<1x64xf32>
    %cst_19 = arith.constant dense<0.000000e+00> : vector<2xf32>
    %44 = vector.multi_reduction <add>, %41, %cst_19 [1] : vector<2x64xf32> to vector<2xf32>
    %45 = vector.shape_cast %44 : vector<2xf32> to vector<2x1xf32>
    %46 = arith.mulf %41, %41 : vector<2x64xf32>
    %cst_20 = arith.constant dense<0.000000e+00> : vector<2xf32>
    %47 = vector.multi_reduction <add>, %46, %cst_20 [1] : vector<2x64xf32> to vector<2xf32>
    %48 = vector.shape_cast %47 : vector<2xf32> to vector<2x1xf32>
    %cst_21 = arith.constant 1.562500e-02 : f32
    %49 = vector.broadcast %cst_21 : f32 to vector<2x1xf32>
    %50 = arith.mulf %45, %49 : vector<2x1xf32>
    %cst_22 = arith.constant 1.562500e-02 : f32
    %51 = vector.broadcast %cst_22 : f32 to vector<2x1xf32>
    %52 = arith.mulf %48, %51 : vector<2x1xf32>
    %53 = arith.mulf %50, %50 : vector<2x1xf32>
    %54 = arith.subf %52, %53 : vector<2x1xf32>
    %cst_23 = arith.constant 0.000000e+00 : f32
    %55 = vector.broadcast %cst_23 : f32 to vector<2x1xf32>
    %56 = arith.maximumf %54, %55 : vector<2x1xf32>
    %57 = vector.broadcast %50 : vector<2x1xf32> to vector<2x64xf32>
    %58 = arith.subf %41, %57 : vector<2x64xf32>
    %cst_24 = arith.constant 9.99999974E-6 : f32
    %59 = vector.broadcast %cst_24 : f32 to vector<2x1xf32>
    %60 = arith.addf %56, %59 : vector<2x1xf32>
    %61 = math.rsqrt %60 : vector<2x1xf32>
    %62 = vector.broadcast %61 : vector<2x1xf32> to vector<2x64xf32>
    %63 = arith.mulf %58, %62 : vector<2x64xf32>
    %64 = vector.broadcast %42 : vector<1x64xf32> to vector<2x64xf32>
    %65 = arith.mulf %63, %64 : vector<2x64xf32>
    %66 = vector.broadcast %43 : vector<1x64xf32> to vector<2x64xf32>
    %67 = arith.addf %65, %66 : vector<2x64xf32>
    %cst_25 = arith.constant 5.000000e-01 : f32
    %68 = vector.broadcast %cst_25 : f32 to vector<2x64xf32>
    %69 = arith.mulf %68, %67 : vector<2x64xf32>
    %cst_26 = arith.constant 4.471500e-02 : f32
    %70 = vector.broadcast %cst_26 : f32 to vector<2x64xf32>
    %71 = arith.mulf %70, %67 : vector<2x64xf32>
    %72 = arith.mulf %71, %67 : vector<2x64xf32>
    %73 = arith.mulf %72, %67 : vector<2x64xf32>
    %74 = arith.addf %67, %73 : vector<2x64xf32>
    %cst_27 = arith.constant 0.797884583 : f32
    %75 = vector.broadcast %cst_27 : f32 to vector<2x64xf32>
    %76 = arith.mulf %75, %74 : vector<2x64xf32>
    %77 = math.tanh %76 : vector<2x64xf32>
    %cst_28 = arith.constant 1.000000e+00 : f32
    %78 = vector.broadcast %cst_28 : f32 to vector<2x64xf32>
    %79 = arith.addf %78, %77 : vector<2x64xf32>
    %80 = arith.mulf %69, %79 : vector<2x64xf32>
    %c0_29 = arith.constant 0 : index
    %c0_30 = arith.constant 0 : index
    %c0_31 = arith.constant 0 : index
    %81 = vector.load %arg13[%c0_29, %c0_30, %c0_31] : memref<2x64x64xf32, #tpu.memory_space<vmem>>, vector<1x64x64xf32>
    %82 = vector.shape_cast %81 : vector<1x64x64xf32> to vector<64x64xf32>
    %cst_32 = arith.constant dense<0.000000e+00> : vector<2x64xf32>
    %83 = tpu.matmul %80, %82, %cst_32 {dimension_numbers = #tpu.dot_dimension_numbers<[1], [0], [0], [1], [0, 0, 1, 1], [], []>} : vector<2x64xf32>, vector<64x64xf32>, vector<2x64xf32> -> vector<2x64xf32>
    %84 = vector.extract_strided_slice %35 {offsets = [3, 0], sizes = [1, 64], strides = [1, 1]} : vector<5x128xf32> to vector<1x64xf32>
    %85 = vector.broadcast %84 : vector<1x64xf32> to vector<2x64xf32>
    %86 = arith.addf %83, %85 : vector<2x64xf32>
    %87 = vector.extract_strided_slice %35 {offsets = [4, 0], sizes = [1, 64], strides = [1, 1]} : vector<5x128xf32> to vector<1x64xf32>
    %88 = vector.extract_strided_slice %35 {offsets = [4, 64], sizes = [1, 64], strides = [1, 1]} : vector<5x128xf32> to vector<1x64xf32>
    %cst_33 = arith.constant dense<0.000000e+00> : vector<2xf32>
    %89 = vector.multi_reduction <add>, %86, %cst_33 [1] : vector<2x64xf32> to vector<2xf32>
    %90 = vector.shape_cast %89 : vector<2xf32> to vector<2x1xf32>
    %91 = arith.mulf %86, %86 : vector<2x64xf32>
    %cst_34 = arith.constant dense<0.000000e+00> : vector<2xf32>
    %92 = vector.multi_reduction <add>, %91, %cst_34 [1] : vector<2x64xf32> to vector<2xf32>
    %93 = vector.shape_cast %92 : vector<2xf32> to vector<2x1xf32>
    %cst_35 = arith.constant 1.562500e-02 : f32
    %94 = vector.broadcast %cst_35 : f32 to vector<2x1xf32>
    %95 = arith.mulf %90, %94 : vector<2x1xf32>
    %cst_36 = arith.constant 1.562500e-02 : f32
    %96 = vector.broadcast %cst_36 : f32 to vector<2x1xf32>
    %97 = arith.mulf %93, %96 : vector<2x1xf32>
    %98 = arith.mulf %95, %95 : vector<2x1xf32>
    %99 = arith.subf %97, %98 : vector<2x1xf32>
    %cst_37 = arith.constant 0.000000e+00 : f32
    %100 = vector.broadcast %cst_37 : f32 to vector<2x1xf32>
    %101 = arith.maximumf %99, %100 : vector<2x1xf32>
    %102 = vector.broadcast %95 : vector<2x1xf32> to vector<2x64xf32>
    %103 = arith.subf %86, %102 : vector<2x64xf32>
    %cst_38 = arith.constant 9.99999974E-6 : f32
    %104 = vector.broadcast %cst_38 : f32 to vector<2x1xf32>
    %105 = arith.addf %101, %104 : vector<2x1xf32>
    %106 = math.rsqrt %105 : vector<2x1xf32>
    %107 = vector.broadcast %106 : vector<2x1xf32> to vector<2x64xf32>
    %108 = arith.mulf %103, %107 : vector<2x64xf32>
    %109 = vector.broadcast %87 : vector<1x64xf32> to vector<2x64xf32>
    %110 = arith.mulf %108, %109 : vector<2x64xf32>
    %111 = vector.broadcast %88 : vector<1x64xf32> to vector<2x64xf32>
    %112 = arith.addf %110, %111 : vector<2x64xf32>
    %113 = vector.extract_strided_slice %40 {offsets = [0, 64], sizes = [2, 64], strides = [1, 1]} : vector<2x128xf32> to vector<2x64xf32>
    %114 = vector.extract_strided_slice %35 {offsets = [1, 64], sizes = [1, 64], strides = [1, 1]} : vector<5x128xf32> to vector<1x64xf32>
    %115 = vector.extract_strided_slice %35 {offsets = [2, 64], sizes = [1, 64], strides = [1, 1]} : vector<5x128xf32> to vector<1x64xf32>
    %cst_39 = arith.constant dense<0.000000e+00> : vector<2xf32>
    %116 = vector.multi_reduction <add>, %113, %cst_39 [1] : vector<2x64xf32> to vector<2xf32>
    %117 = vector.shape_cast %116 : vector<2xf32> to vector<2x1xf32>
    %118 = arith.mulf %113, %113 : vector<2x64xf32>
    %cst_40 = arith.constant dense<0.000000e+00> : vector<2xf32>
    %119 = vector.multi_reduction <add>, %118, %cst_40 [1] : vector<2x64xf32> to vector<2xf32>
    %120 = vector.shape_cast %119 : vector<2xf32> to vector<2x1xf32>
    %cst_41 = arith.constant 1.562500e-02 : f32
    %121 = vector.broadcast %cst_41 : f32 to vector<2x1xf32>
    %122 = arith.mulf %117, %121 : vector<2x1xf32>
    %cst_42 = arith.constant 1.562500e-02 : f32
    %123 = vector.broadcast %cst_42 : f32 to vector<2x1xf32>
    %124 = arith.mulf %120, %123 : vector<2x1xf32>
    %125 = arith.mulf %122, %122 : vector<2x1xf32>
    %126 = arith.subf %124, %125 : vector<2x1xf32>
    %cst_43 = arith.constant 0.000000e+00 : f32
    %127 = vector.broadcast %cst_43 : f32 to vector<2x1xf32>
    %128 = arith.maximumf %126, %127 : vector<2x1xf32>
    %129 = vector.broadcast %122 : vector<2x1xf32> to vector<2x64xf32>
    %130 = arith.subf %113, %129 : vector<2x64xf32>
    %cst_44 = arith.constant 9.99999974E-6 : f32
    %131 = vector.broadcast %cst_44 : f32 to vector<2x1xf32>
    %132 = arith.addf %128, %131 : vector<2x1xf32>
    %133 = math.rsqrt %132 : vector<2x1xf32>
    %134 = vector.broadcast %133 : vector<2x1xf32> to vector<2x64xf32>
    %135 = arith.mulf %130, %134 : vector<2x64xf32>
    %136 = vector.broadcast %114 : vector<1x64xf32> to vector<2x64xf32>
    %137 = arith.mulf %135, %136 : vector<2x64xf32>
    %138 = vector.broadcast %115 : vector<1x64xf32> to vector<2x64xf32>
    %139 = arith.addf %137, %138 : vector<2x64xf32>
    %cst_45 = arith.constant 5.000000e-01 : f32
    %140 = vector.broadcast %cst_45 : f32 to vector<2x64xf32>
    %141 = arith.mulf %140, %139 : vector<2x64xf32>
    %cst_46 = arith.constant 4.471500e-02 : f32
    %142 = vector.broadcast %cst_46 : f32 to vector<2x64xf32>
    %143 = arith.mulf %142, %139 : vector<2x64xf32>
    %144 = arith.mulf %143, %139 : vector<2x64xf32>
    %145 = arith.mulf %144, %139 : vector<2x64xf32>
    %146 = arith.addf %139, %145 : vector<2x64xf32>
    %cst_47 = arith.constant 0.797884583 : f32
    %147 = vector.broadcast %cst_47 : f32 to vector<2x64xf32>
    %148 = arith.mulf %147, %146 : vector<2x64xf32>
    %149 = math.tanh %148 : vector<2x64xf32>
    %cst_48 = arith.constant 1.000000e+00 : f32
    %150 = vector.broadcast %cst_48 : f32 to vector<2x64xf32>
    %151 = arith.addf %150, %149 : vector<2x64xf32>
    %152 = arith.mulf %141, %151 : vector<2x64xf32>
    %c1_49 = arith.constant 1 : index
    %c0_50 = arith.constant 0 : index
    %c0_51 = arith.constant 0 : index
    %153 = vector.load %arg13[%c1_49, %c0_50, %c0_51] : memref<2x64x64xf32, #tpu.memory_space<vmem>>, vector<1x64x64xf32>
    %154 = vector.shape_cast %153 : vector<1x64x64xf32> to vector<64x64xf32>
    %cst_52 = arith.constant dense<0.000000e+00> : vector<2x64xf32>
    %155 = tpu.matmul %152, %154, %cst_52 {dimension_numbers = #tpu.dot_dimension_numbers<[1], [0], [0], [1], [0, 0, 1, 1], [], []>} : vector<2x64xf32>, vector<64x64xf32>, vector<2x64xf32> -> vector<2x64xf32>
    %156 = vector.extract_strided_slice %35 {offsets = [3, 64], sizes = [1, 64], strides = [1, 1]} : vector<5x128xf32> to vector<1x64xf32>
    %157 = vector.broadcast %156 : vector<1x64xf32> to vector<2x64xf32>
    %158 = arith.addf %155, %157 : vector<2x64xf32>
    %cst_53 = arith.constant 0.000000e+00 : f32
    %159 = vector.broadcast %cst_53 : f32 to vector<2x64xf32>
    %160 = arith.maximumf %158, %159 : vector<2x64xf32>
    %161 = math.absf %158 : vector<2x64xf32>
    %cst_54 = arith.constant 0.000000e+00 : f32
    %162 = vector.broadcast %cst_54 : f32 to vector<2x64xf32>
    %163 = arith.subf %162, %161 : vector<2x64xf32>
    %164 = math.exp %163 : vector<2x64xf32>
    %cst_55 = arith.constant 1.000000e+00 : f32
    %165 = vector.broadcast %cst_55 : f32 to vector<2x64xf32>
    %166 = arith.addf %165, %164 : vector<2x64xf32>
    %167 = math.log %166 : vector<2x64xf32>
    %168 = arith.addf %160, %167 : vector<2x64xf32>
    %cst_56 = arith.constant 9.99999997E-7 : f32
    %169 = vector.broadcast %cst_56 : f32 to vector<2x64xf32>
    %170 = arith.addf %168, %169 : vector<2x64xf32>
    %171 = tpu.concatenate %112, %170 in 1 : vector<2x64xf32>, vector<2x64xf32> -> vector<2x128xf32>
    %172 = vector.shape_cast %171 : vector<2x128xf32> to vector<2x1x128xf32>
    %c0_57 = arith.constant 0 : index
    %c0_58 = arith.constant 0 : index
    %c0_59 = arith.constant 0 : index
    %173 = vector.load %arg15[%c0_57, %c0_58, %c0_59] : memref<2x1x128xf32, #tpu.memory_space<vmem>>, vector<2x1x128xf32>
    tpu.vector_store %arg15[%c0_57, %c0_58, %c0_59], %172 {strides = array<i32>} : memref<2x1x128xf32, #tpu.memory_space<vmem>>, vector<2x1x128xf32>,
    return
  }
  func.func @transform_0(%arg0: i32) -> (i32, i32, i32) {
    %c0_i32 = arith.constant 0 : i32
    %c0_i32_0 = arith.constant 0 : i32
    %c0_i32_1 = arith.constant 0 : i32
    return %arg0, %c0_i32, %c0_i32_0 : i32, i32, i32
  }
  func.func @transform_1(%arg0: i32) -> (i32, i32) {
    %c0_i32 = arith.constant 0 : i32
    %c0_i32_0 = arith.constant 0 : i32
    %c0_i32_1 = arith.constant 0 : i32
    return %c0_i32, %c0_i32_0 : i32, i32
  }
  func.func @transform_2(%arg0: i32) -> (i32, i32) {
    %c0_i32 = arith.constant 0 : i32
    %c0_i32_0 = arith.constant 0 : i32
    %c0_i32_1 = arith.constant 0 : i32
    return %c0_i32, %c0_i32_0 : i32, i32
  }
  func.func @transform_3(%arg0: i32) -> (i32, i32, i32) {
    %c0_i32 = arith.constant 0 : i32
    %c0_i32_0 = arith.constant 0 : i32
    %c0_i32_1 = arith.constant 0 : i32
    %c0_i32_2 = arith.constant 0 : i32
    return %c0_i32, %c0_i32_0, %c0_i32_1 : i32, i32, i32
  }
  func.func @transform_4(%arg0: i32) -> (i32, i32, i32) {
    %c0_i32 = arith.constant 0 : i32
    %c0_i32_0 = arith.constant 0 : i32
    %c0_i32_1 = arith.constant 0 : i32
    %c0_i32_2 = arith.constant 0 : i32
    return %c0_i32, %c0_i32_0, %c0_i32_1 : i32, i32, i32
  }
  func.func @transform_5(%arg0: i32) -> (i32, i32, i32) {
    %c0_i32 = arith.constant 0 : i32
    %c0_i32_0 = arith.constant 0 : i32
    %c0_i32_1 = arith.constant 0 : i32
    %c0_i32_2 = arith.constant 0 : i32
    return %c0_i32, %c0_i32_0, %c0_i32_1 : i32, i32, i32
  }
  func.func @transform_6(%arg0: i32) -> (i32, i32, i32) {
    %c0_i32 = arith.constant 0 : i32
    %c0_i32_0 = arith.constant 0 : i32
    %c0_i32_1 = arith.constant 0 : i32
    %c0_i32_2 = arith.constant 0 : i32
    return %c0_i32, %c0_i32_0, %c0_i32_1 : i32, i32, i32
  }
  func.func @transform_7(%arg0: i32) -> (i32, i32, i32) {
    %c0_i32 = arith.constant 0 : i32
    %c0_i32_0 = arith.constant 0 : i32
    %c0_i32_1 = arith.constant 0 : i32
    %c0_i32_2 = arith.constant 0 : i32
    return %c0_i32, %c0_i32_0, %c0_i32_1 : i32, i32, i32
  }
  func.func @transform_8(%arg0: i32) -> (i32, i32, i32) {
    %c0_i32 = arith.constant 0 : i32
    %c0_i32_0 = arith.constant 0 : i32
    %c0_i32_1 = arith.constant 0 : i32
    %c0_i32_2 = arith.constant 0 : i32
    return %c0_i32, %c0_i32_0, %c0_i32_1 : i32, i32, i32
  }
  func.func @transform_9(%arg0: i32) -> (i32, i32, i32) {
    %c0_i32 = arith.constant 0 : i32
    %c0_i32_0 = arith.constant 0 : i32
    %c0_i32_1 = arith.constant 0 : i32
    %c0_i32_2 = arith.constant 0 : i32
    return %c0_i32, %c0_i32_0, %c0_i32_1 : i32, i32, i32
  }
  func.func @transform_10(%arg0: i32) -> (i32, i32) {
    %c0_i32 = arith.constant 0 : i32
    %c0_i32_0 = arith.constant 0 : i32
    %c0_i32_1 = arith.constant 0 : i32
    return %c0_i32, %c0_i32_0 : i32, i32
  }
  func.func @transform_11(%arg0: i32) -> (i32, i32) {
    %c0_i32 = arith.constant 0 : i32
    %c0_i32_0 = arith.constant 0 : i32
    %c0_i32_1 = arith.constant 0 : i32
    return %c0_i32, %c0_i32_0 : i32, i32
  }
  func.func @transform_12(%arg0: i32) -> (i32, i32, i32) {
    %c0_i32 = arith.constant 0 : i32
    %c0_i32_0 = arith.constant 0 : i32
    %c0_i32_1 = arith.constant 0 : i32
    %c0_i32_2 = arith.constant 0 : i32
    return %c0_i32, %c0_i32_0, %c0_i32_1 : i32, i32, i32
  }
  func.func @transform_13(%arg0: i32) -> (i32, i32) {
    %c0_i32 = arith.constant 0 : i32
    %c0_i32_0 = arith.constant 0 : i32
    %c0_i32_1 = arith.constant 0 : i32
    return %c0_i32, %c0_i32_0 : i32, i32
  }
  func.func @transform_14(%arg0: i32) -> (i32, i32, i32) {
    %c0_i32 = arith.constant 0 : i32
    %c0_i32_0 = arith.constant 0 : i32
    %c0_i32_1 = arith.constant 0 : i32
    return %arg0, %c0_i32, %c0_i32_0 : i32, i32, i32
  }
}

</mosaic_0001>

<bundles_post_ra>
// kernel: structure_embedder_forward.1
= control target key start
LH: loop header
LB: loop body
LE: loop exit
PB: predicated region body
PF: predicated region fallthrough
CT: control target
= control target key end

     0   :  { %s7615_s29 = smov 0   ;;  %s10071_s0 = inlined_call_operand.vmem [shape: f32[4,48,8], index: 0, kind: input, shape index: {}]   ;;  %s10072_s1 = inlined_call_operand.vmem [shape: f32[48,128], index: 1, kind: input, shape index: {}]   ;;  %s10073_s2 = inlined_call_operand.vmem [shape: f32[8,128], index: 2, kind: input, shape index: {}]   ;;  %s10074_s3 = inlined_call_operand.vmem [shape: bf16[3,128,384], index: 3, kind: input, shape index: {}]   ;;  %s10075_s4 = inlined_call_operand.vmem [shape: f32[3,1,384], index: 4, kind: input, shape index: {}]   ;;  %s10076_s5 = inlined_call_operand.vmem [shape: bf16[3,128,128], index: 5, kind: input, shape index: {}]   ;;  %s10077_s6 = inlined_call_operand.vmem [shape: bf16[3,128,512], index: 6, kind: input, shape index: {}]   ;;  %s10078_s7 = inlined_call_operand.vmem [shape: f32[3,1,512], index: 7, kind: input, shape index: {}]   ;;  %s10079_s8 = inlined_call_operand.vmem [shape: bf16[3,512,128], index: 8, kind: input, shape index: {}]   ;;  %s10080_s9 = inlined_call_operand.vmem [shape: f32[3,8,128], index: 9, kind: input, shape index: {}]   ;;  %s10081_s10 = inlined_call_operand.vmem [shape: f32[2,128], index: 10, kind: input, shape index: {}]   ;;  %s10082_s11 = inlined_call_operand.vmem [shape: f32[128,128], index: 11, kind: input, shape index: {}]   ;;  %s10083_s12 = inlined_call_operand.vmem [shape: f32[2,64,64], index: 12, kind: input, shape index: {}]   ;;  %s10084_s13 = inlined_call_operand.vmem [shape: f32[5,128], index: 13, kind: input, shape index: {}]   ;;  %s10085_s14 = inlined_call_operand.vmem [shape: f32[4,1,128], index: 14, kind: output, shape index: {}]  }
   0x1 LB: > { %s5744_s30 = sadd.s32 4294967295, %s7474_s29   ;;  %p5748_p0 = scmp.ge.s32.totalorder %s7474_s29, 1  ;;  %s7474_s29 = sphi %s7615_s29, %s24_s29  }
   0x2   : > { %p414_p1 = scmp.lt.s32.totalorder %s7474_s29, 3 }
   0x4   : > { %p415_p2 = pnand %p5748_p0, %p414_p1 }
   0x6   : > { %418 = sbr.rel (%p415_p2) target bundleno = 4177 (0x1051), region = 76 }
   0xd   : > { %v485_v0 = vld [vmem:[%s10073_s2] sm:$0xff]  ;;  %s5749_s17 = sshll.u32 %s5744_s30, 1  ;;  %vm486_vm0 = vcmask 64512   ;;  %v649_v13 = vld [vmem:[%s10072_s1 + $0x8] sm:$0xff]  ;;  %v651_v23 = vld [vmem:[%s10072_s1 + $0x18] sm:$0xff]  ;;  %s7688_s23 = smov 0  }
   0xe   : > { %6212 = vmatprep.subr.mxu0 %v485_v0  ;;  %6697 = vmatprep.subr.mxu1 %v485_v0  ;;  %p461_p3 = scmp.lt.s32.totalorder %s5749_s17, 3  ;;  %v648_v14 = vld [vmem:[%s10072_s1] sm:$0xff]  ;;  %v650_v24 = vld [vmem:[%s10072_s1 + $0x10] sm:$0xff]  ;;  %v653_v33 = vld [vmem:[%s10072_s1 + $0x28] sm:$0xff] }
   0xf   : > { %6213 = vmatpush3.msra.mxu0 %v485_v0  ;;  %6698 = vmatpush3.msra.mxu1 %v485_v0  ;;  %v652_v34 = vld [vmem:[%s10072_s1 + $0x20] sm:$0xff] }
  0x10   : > { %s10280_s17 = smov (!%p461_p3, %s5749_s17), 3 }
  0x11   : > { %s6699_s18 = smul.u32 48, %s10280_s17  ;;  %s7629_s21 = scalar_lea.vmem %s10085_s14, %s10280_s17 }
  0x13   : > { %s465_s24 = scalar_lea.vmem %s10071_s0, %s6699_s18 }
  0x14   : > { %v473_v1 = vld [vmem:[%s465_s24] sm:$0xff]  ;;  %v479_v2 = vld [vmem:[%s465_s24 + $0x30] sm:$0xff]  ;;  %v474_v3 = vld [vmem:[%s465_s24 + $0x8] sm:$0xff] }
  0x15   : > { %6214 = vmatprep.mubr.msk.f32.mxu0 %vm486_vm0, %v473_v1  ;;  %6223 = vmatprep.mubr.msk.f32.mxu1 %vm486_vm0, %v479_v2  ;;  %v480_v4 = vld [vmem:[%s465_s24 + $0x38] sm:$0xff]  ;;  %v475_v5 = vld [vmem:[%s465_s24 + $0x10] sm:$0xff]  ;;  %v481_v6 = vld [vmem:[%s465_s24 + $0x40] sm:$0xff] }
  0x16   : > { %6215 = vmatmul.mubr.msk.f32.vlgmr.msra.gmra.mrb[0].mxu0 %vm486_vm0, %v474_v3  ;;  %6224 = vmatmul.mubr.msk.f32.vlgmr.msra.gmra.mrb[0].mxu1 %vm486_vm0, %v480_v4  ;;  %v476_v7 = vld [vmem:[%s465_s24 + $0x18] sm:$0xff]  ;;  %v482_v8 = vld [vmem:[%s465_s24 + $0x48] sm:$0xff]  ;;  %v477_v9 = vld [vmem:[%s465_s24 + $0x20] sm:$0xff] }
  0x17   : > { %6217 = vmatprep.mubr.msk.f32.mxu0 %vm486_vm0, %v475_v5  ;;  %6226 = vmatprep.mubr.msk.f32.mxu1 %vm486_vm0, %v481_v6  ;;  %v483_v10 = vld [vmem:[%s465_s24 + $0x50] sm:$0xff]  ;;  %v478_v11 = vld [vmem:[%s465_s24 + $0x28] sm:$0xff]  ;;  %v484_v12 = vld [vmem:[%s465_s24 + $0x58] sm:$0xff] }
  0x1a   : > { %6218 = vmatmul.mubr.msk.f32.gmra.mrb[2].mxu0 %vm486_vm0, %v476_v7  ;;  %6227 = vmatmul.mubr.msk.f32.gmra.mrb[2].mxu1 %vm486_vm0, %v482_v8 }
  0x1b   : > { %6220 = vmatprep.mubr.msk.f32.mxu0 %vm486_vm0, %v477_v9  ;;  %6229 = vmatprep.mubr.msk.f32.mxu1 %vm486_vm0, %v483_v10 }
  0x1e   : > { %6221 = vmatmul.mubr.msk.f32.gmra.mrb[4].mxu0 %vm486_vm0, %v478_v11  ;;  %6230 = vmatmul.mubr.msk.f32.gmra.mrb[4].mxu1 %vm486_vm0, %v484_v12 }
  0xe9   : > { %v6216_v15 = vpop.f32.mrb[0].mxu0  ;;  %v6225_v16 = vpop.f32.mrb[0].mxu1 }
  0xea   : > { %v655_v17 = vadd.f32 %v6216_v15, %v649_v13   ;;  %v661_v18 = vadd.f32 %v6225_v16, %v649_v13   ;;  %v589_v19 = vpop.f32.mrb[1].mxu0  ;;  %v619_v20 = vpop.f32.mrb[1].mxu1 }
  0xeb   : > { %v654_v21 = vadd.f32 %v648_v14, %v589_v19   ;;  %v660_v22 = vadd.f32 %v648_v14, %v619_v20  }
  0xed   : > { %v6219_v25 = vpop.f32.mrb[2].mxu0  ;;  %v6228_v26 = vpop.f32.mrb[2].mxu1 }
  0xee   : > { %v657_v27 = vadd.f32 %v6219_v25, %v651_v23   ;;  %v663_v28 = vadd.f32 %v6228_v26, %v651_v23   ;;  %v599_v29 = vpop.f32.mrb[3].mxu0  ;;  %v629_v30 = vpop.f32.mrb[3].mxu1 }
  0xef   : > { %v656_v31 = vadd.f32 %v650_v24, %v599_v29   ;;  %v662_v32 = vadd.f32 %v650_v24, %v629_v30  }
  0xf1   : > { %v6222_v35 = vpop.f32.mrb[4].mxu0  ;;  %v6231_v36 = vpop.f32.mrb[4].mxu1 }
  0xf2   : > { %v659_v37 = vadd.f32 %v6222_v35, %v653_v33   ;;  %v665_v38 = vadd.f32 %v6231_v36, %v653_v33   ;;  %v609_v39 = vpop.f32.mrb[5].mxu0  ;;  %v639_v40 = vpop.f32.mrb[5].mxu1 }
  0xf3   : > { %v658_v41 = vadd.f32 %v652_v34, %v609_v39   ;;  %v664_v42 = vadd.f32 %v652_v34, %v639_v40  }
  0xf4 LB: >> { %10138 = vst [vmem:[#allocation2_spill] sm:$0xff] %v7478_v38  ;;  %10139 = vst [vmem:[#allocation3_spill] sm:$0xff] %v7482_v42  ;;  %687 = vadd.xlane.f32.xlu0 %v7522_v21  ;;  %v711_v43 = vmul.f32 %v7522_v21, %v7522_v21  ;;  %v712_v44 = vmul.f32 %v7518_v17, %v7518_v17  ;;  %v713_v45 = vmul.f32 %v7514_v31, %v7514_v31  ;;  %s5932_s24 = smul.u32 192, %s7526_s23  ;;  %v10086_v14 = vmov 0   ;;  %s5764_s28 = sshll.u32 %s7526_s23, 3  ;;  %s7526_s23 = sphi %s7688_s23, %s671_s23   ;;  %v7522_v21 = vphi %v654_v21, %v10272_v21   ;;  %v7518_v17 = vphi %v655_v17, %v10271_v17   ;;  %v7514_v31 = vphi %v656_v31, %v10270_v31   ;;  %v7510_v27 = vphi %v657_v27, %v10269_v27   ;;  %v7506_v41 = vphi %v658_v41, %v10268_v41   ;;  %v7502_v37 = vphi %v659_v37, %v10267_v37   ;;  %v7498_v22 = vphi %v660_v22, %v10266_v22   ;;  %v7494_v18 = vphi %v661_v18, %v10265_v18   ;;  %v7490_v32 = vphi %v662_v32, %v10264_v32   ;;  %v7486_v28 = vphi %v663_v28, %v10263_v28   ;;  %v7482_v42 = vphi %v664_v42, %v10262_v42   ;;  %v7478_v38 = vphi %v665_v38, %v10261_v38  }
  0xf5   : >> { %10140 = vst [vmem:[#allocation4_spill] sm:$0xff] %v7486_v28  ;;  %10141 = vst [vmem:[#allocation5_spill] sm:$0xff] %v7490_v32  ;;  %v714_v46 = vmul.f32 %v7510_v27, %v7510_v27  ;;  %v715_v49 = vmul.f32 %v7506_v41, %v7506_v41  ;;  %v716_v51 = vmul.f32 %v7502_v37, %v7502_v37  ;;  %1107 = vmatprep.mubr.bf16.mxu0 %v10086_v14  ;;  %s7810_s16 = scalar_lea.vmem %s10080_s9, %s5764_s28  ;;  %vm7530_vm1 = vmmov 0   ;;  %s928_s17 = smul.u32 3, %s7526_s23 }
  0xf6   : >> { %10142 = vst [vmem:[#allocation6_spill] sm:$0xff] %v7494_v18  ;;  %10143 = vst [vmem:[#allocation7_spill] sm:$0xff] %v7498_v22  ;;  %723 = vadd.xlane.f32.xlu1 %v711_v43  ;;  %s7745_s27 = scalar_lea.vmem %s10074_s3, %s5932_s24  ;;  %v717_v56 = vmul.f32 %v7498_v22, %v7498_v22  ;;  %v718_v57 = vmul.f32 %v7494_v18, %v7494_v18  ;;  %v719_v0 = vmul.f32 %v7490_v32, %v7490_v32  ;;  %vm1279_vm2 = vcmask 261120   ;;  %s7531_s22 = smov 96  }
  0xf7   : >> { %10144 = vst [vmem:[#allocation8_spill] sm:$0xff] %v7502_v37  ;;  %10145 = vst [vmem:[#allocation9_spill] sm:$0xff] %v7506_v41  ;;  %v6914_v47 = vld [vmem:[%s7745_s27 + $0x4] ss:$12 sps:$4 sm:$0xff]   ;;  %v6916_v48 = vld [vmem:[%s7745_s27] ss:$12 sps:$4 sm:$0xff]   ;;  %v720_v1 = vmul.f32 %v7486_v28, %v7486_v28  ;;  %v721_v8 = vmul.f32 %v7482_v42, %v7482_v42  ;;  %v722_v9 = vmul.f32 %v7478_v38, %v7478_v38  ;;  %s929_s20 = scalar_lea.vmem %s10075_s4, %s928_s17 }
  0xf8   : >> { %10146 = vst [vmem:[#allocation10_spill] sm:$0xff] %v7510_v27  ;;  %10147 = vst [vmem:[#allocation11_spill] sm:$0xff] %v7514_v31  ;;  %689 = vadd.xlane.f32.xlu0 %v7518_v17  ;;  %1075 = vmatprep.subr.bf16.mxu0 %v6914_v47  ;;  %v6917_v50 = vld [vmem:[%s7745_s27 + $0x1c] ss:$12 sps:$4 sm:$0xff]   ;;  %v6919_v52 = vld [vmem:[%s7745_s27 + $0x18] ss:$12 sps:$4 sm:$0xff]  }
  0xf9   : >> { %10148 = vst [vmem:[#allocation12_spill] sm:$0xff] %v7518_v17  ;;  %10149 = vst [vmem:[#allocation13_spill] sm:$0xff] %v7522_v21  ;;  %1076 = vmatpush1.bf16.msra.mxu0 %v6916_v48  ;;  %v6920_v53 = vld [vmem:[%s7745_s27 + $0x34] ss:$12 sps:$4 sm:$0xff]   ;;  %v6923_v55 = vld [vmem:[%s7745_s27 + $0x30] ss:$12 sps:$4 sm:$0xff]  }
  0xfa   : >> { %725 = vadd.xlane.f32.xlu1 %v712_v44  ;;  %1077 = vmatprep.subr.bf16.mxu0 %v6917_v50  ;;  %v6922_v54 = vld [vmem:[%s7745_s27 + $0x8] ss:$12 sps:$4 sm:$0xff]   ;;  %v6924_v58 = vld [vmem:[%s7745_s27 + $0x4c] ss:$12 sps:$4 sm:$0xff]   ;;  %v6928_v61 = vld [vmem:[%s7745_s27 + $0x64] ss:$12 sps:$4 sm:$0xff]  }
  0xfb   : >> { %6232 = vmatprep.subr.bf16.mxu1 %v6922_v54  ;;  %v6926_v59 = vld [vmem:[%s7745_s27 + $0x20] ss:$12 sps:$4 sm:$0xff]   ;;  %v6927_v60 = vld [vmem:[%s7745_s27 + $0x48] ss:$12 sps:$4 sm:$0xff]   ;;  %v6930_v62 = vld [vmem:[%s7745_s27 + $0x38] ss:$12 sps:$4 sm:$0xff]  }
  0xfc   : >> { %691 = vadd.xlane.f32.xlu0 %v7514_v31  ;;  %6233 = vmatpush3.bf16.msra.mxu1 %v6922_v54  ;;  %v6931_v63 = vld [vmem:[%s7745_s27 + $0x60] ss:$12 sps:$4 sm:$0xff]   ;;  %v6932_v2 = vld [vmem:[%s7745_s27 + $0x7c] ss:$12 sps:$4 sm:$0xff]   ;;  %v6935_v4 = vld [vmem:[%s7745_s27 + $0x78] ss:$12 sps:$4 sm:$0xff]  }
  0xfd   : >> { %1078 = vmatpush1.bf16.msra.mxu0 %v6919_v52  ;;  %6234 = vmatprep.subr.bf16.mxu1 %v6926_v59  ;;  %v6934_v3 = vld [vmem:[%s7745_s27 + $0x50] ss:$12 sps:$4 sm:$0xff]   ;;  %v6936_v5 = vld [vmem:[%s7745_s27 + $0x94] ss:$12 sps:$4 sm:$0xff]   ;;  %v6940_v10 = vld [vmem:[%s7745_s27 + $0xac] ss:$12 sps:$4 sm:$0xff]  }
  0xfe   : >> { %693 = vadd.xlane.f32.xlu1 %v7510_v27  ;;  %1079 = vmatprep.subr.bf16.mxu0 %v6920_v53  ;;  %v6938_v6 = vld [vmem:[%s7745_s27 + $0x68] ss:$12 sps:$4 sm:$0xff]   ;;  %v6939_v7 = vld [vmem:[%s7745_s27 + $0x90] ss:$12 sps:$4 sm:$0xff]   ;;  %v6942_v11 = vld [vmem:[%s7745_s27 + $0x80] ss:$12 sps:$4 sm:$0xff]  }
  0xff   : >> { %v6943_v12 = vld [vmem:[%s7745_s27 + $0xa8] ss:$12 sps:$4 sm:$0xff]   ;;  %v6944_v13 = vld [vmem:[%s7745_s27 + $0x98] ss:$12 sps:$4 sm:$0xff]   ;;  %v6945_v15 = vld [vmem:[%s7745_s27 + $0xb0] ss:$12 sps:$4 sm:$0xff]  }
 0x100   : >> { %727 = vadd.xlane.f32.xlu0 %v713_v45  ;;  %6235 = vmatpush3.bf16.msra.mxu1 %v6926_v59  ;;  %v855_v45 = vlaneseq  ;;  %s7532_s24 = smov 64   ;;  %s7533_s25 = smov 32   ;;  %vm1355_vm3 = vcmask 392192   ;;  %vm2271_vm4 = vcmask 523264   ;;  %vm2278_vm5 = vcmask 785408  }
 0x101   : >> { %1080 = vmatpush1.bf16.msra.mxu0 %v6923_v55  ;;  %6236 = vmatprep.subr.bf16.mxu1 %v6930_v62  ;;  %s5933_s26 = sshll.u32 %s7526_s23, 6  ;;  %s5934_s15 = sshll.u32 %s7526_s23, 8 }
 0x102   : >> { %729 = vadd.xlane.f32.xlu1 %v714_v46  ;;  %1081 = vmatprep.subr.bf16.mxu0 %v6924_v58  ;;  %v7803_v53 = vshrl.u32 %v855_v45, 7  ;;  %s3295_s30 = scalar_lea.vmem %s10076_s5, %s5933_s26  ;;  %s8986_s19 = scalar_lea.vmem %s10077_s6, %s5934_s15 }
 0x104   : >> { %695 = vadd.xlane.f32.xlu0 %v7506_v41  ;;  %6237 = vmatpush3.bf16.msra.mxu1 %v6930_v62  ;;  %10150 = vst [vmem:[#allocation14_spill] sm:$0xff] %v7803_v53  ;;  %v7815_v62 = vsub.s32 0, %v7803_v53 }
 0x105   : >> { %1082 = vmatpush1.bf16.msra.mxu0 %v6927_v60  ;;  %6238 = vmatprep.subr.bf16.mxu1 %v6934_v3 }
 0x106   : >> { %697 = vadd.xlane.f32.xlu1 %v7502_v37  ;;  %1083 = vmatprep.subr.bf16.mxu0 %v6928_v61  ;;  %10151 = vst [vmem:[#allocation15_spill] sm:$0xff] %v7815_v62 }
 0x108   : >> { %731 = vadd.xlane.f32.xlu0 %v715_v49  ;;  %6239 = vmatpush3.bf16.msra.mxu1 %v6934_v3 }
 0x109   : >> { %1084 = vmatpush1.bf16.msra.mxu0 %v6931_v63  ;;  %6240 = vmatprep.subr.bf16.mxu1 %v6938_v6 }
 0x10a   : >> { %733 = vadd.xlane.f32.xlu1 %v716_v51  ;;  %1085 = vmatprep.subr.bf16.mxu0 %v6932_v2  ;;  %v686_v2 = vld [vmem:[%s7810_s16] sm:$0xff] }
 0x10c   : >> { %699 = vadd.xlane.f32.xlu0 %v7498_v22  ;;  %6241 = vmatpush3.bf16.msra.mxu1 %v6938_v6 }
 0x10d   : >> { %1086 = vmatpush1.bf16.msra.mxu0 %v6935_v4  ;;  %6242 = vmatprep.subr.bf16.mxu1 %v6942_v11 }
 0x10e   : >> { %701 = vadd.xlane.f32.xlu1 %v7494_v18  ;;  %1087 = vmatprep.subr.bf16.mxu0 %v6936_v5 }
 0x110   : >> { %735 = vadd.xlane.f32.xlu0 %v717_v56  ;;  %6243 = vmatpush3.bf16.msra.mxu1 %v6942_v11  ;;  %v7824_v11 = vrot.slane %v686_v2, %v7815_v62 }
 0x111   : >> { %1088 = vmatpush1.bf16.msra.mxu0 %v6939_v7  ;;  %6244 = vmatprep.subr.bf16.mxu1 %v6944_v13 }
 0x112   : >> { %737 = vadd.xlane.f32.xlu1 %v718_v57  ;;  %1089 = vmatprep.subr.bf16.mxu0 %v6940_v10 }
 0x114   : >> { %703 = vadd.xlane.f32.xlu0 %v7490_v32  ;;  %6245 = vmatpush3.bf16.msra.mxu1 %v6944_v13 }
 0x115   : >> { %1090 = vmatpush1.bf16.msra.mxu0 %v6943_v12  ;;  %6246 = vmatprep.subr.bf16.mxu1 %v6945_v15  ;;  %v7827_v12 = vsub.s32 1, %v7803_v53 }
 0x116   : >> { %705 = vadd.xlane.f32.xlu1 %v7486_v28 }
 0x117   : >> { %10152 = vst [vmem:[#allocation16_spill] sm:$0xff] %v7827_v12 }
 0x118   : >> { %739 = vadd.xlane.f32.xlu0 %v719_v0  ;;  %6247 = vmatpush3.bf16.msra.mxu1 %v6945_v15 }
 0x11a   : >> { %741 = vadd.xlane.f32.xlu1 %v720_v1 }
 0x11c   : >> { %707 = vadd.xlane.f32.xlu0 %v7482_v42 }
 0x11e   : >> { %709 = vadd.xlane.f32.xlu1 %v7478_v38 }
 0x120   : >> { %743 = vadd.xlane.f32.xlu0 %v721_v8 }
 0x122   : >> { %745 = vadd.xlane.f32.xlu1 %v722_v9 }
 0x181   : >> { %v688_v16 = vpop.xlane.xlu0 %687 }
 0x182   : >> { %v747_v19 = vmul.f32 0.0078125, %v688_v16 }
 0x183   : >> { %v724_v20 = vpop.xlane.xlu1 %723 }
 0x184   : >> { %v771_v23 = vmul.f32 %v747_v19, %v747_v19  ;;  %v759_v24 = vmul.f32 0.0078125, %v724_v20  ;;  %v807_v3 = vsub.f32 %v7522_v21, %v747_v19 }
 0x185   : >> { %v690_v25 = vpop.xlane.xlu0 %689 }
 0x186   : >> { %v783_v26 = vsub.f32 %v759_v24, %v771_v23  ;;  %v748_v29 = vmul.f32 0.0078125, %v690_v25 }
 0x187   : >> { %v726_v30 = vpop.xlane.xlu1 %725 }
 0x188   : >> { %v795_v33 = vmax.f32 %v783_v26, 0.0  ;;  %v772_v34 = vmul.f32 %v748_v29, %v748_v29  ;;  %v760_v35 = vmul.f32 0.0078125, %v726_v30  ;;  %v808_v19 = vsub.f32 %v7518_v17, %v748_v29 }
 0x189   : >> { %v692_v36 = vpop.xlane.xlu0 %691 }
 0x18a   : >> { %v819_v39 = vadd.f32 1e-05, %v795_v33  ;;  %v784_v40 = vsub.f32 %v760_v35, %v772_v34  ;;  %v7796_v43 = vmul.f32 0.0078125, %v692_v36  ;;  %v7836_v35 = vrot.slane %v686_v2, %v7827_v12 }
 0x18b   : >> { %v694_v44 = vpop.xlane.xlu1 %693 }
 0x18c   : >> { %7034 = vrsqrt.f32 %v819_v39  ;;  %v796_v46 = vmax.f32 %v784_v40, 0.0  ;;  %v773_v47 = vmul.f32 %v7796_v43, %v7796_v43  ;;  %v7800_v48 = vmul.f32 0.0078125, %v694_v44 }
 0x18d   : >> { %v728_v49 = vpop.xlane.xlu0 %727 }
 0x18e   : >> { %v820_v50 = vadd.f32 1e-05, %v796_v46  ;;  %v761_v51 = vmul.f32 0.0078125, %v728_v49  ;;  %v774_v54 = vmul.f32 %v7800_v48, %v7800_v48  ;;  %v809_v49 = vsub.f32 %v7514_v31, %v7796_v43 }
 0x18f   : >> { %v730_v52 = vpop.xlane.xlu1 %729 }
 0x190   : >> { %7036 = vrsqrt.f32 %v820_v50  ;;  %v785_v55 = vsub.f32 %v761_v51, %v773_v47  ;;  %v762_v56 = vmul.f32 0.0078125, %v730_v52 }
 0x191   : >> { %v696_v57 = vpop.xlane.xlu0 %695 }
 0x192   : >> { %v797_v58 = vmax.f32 %v785_v55, 0.0  ;;  %v786_v59 = vsub.f32 %v762_v56, %v774_v54  ;;  %v7812_v60 = vmul.f32 0.0078125, %v696_v57 }
 0x193   : >> { %v698_v61 = vpop.xlane.xlu1 %697 }
 0x194   : >> { %v821_v63 = vadd.f32 1e-05, %v797_v58  ;;  %v798_v0 = vmax.f32 %v786_v59, 0.0  ;;  %v775_v1 = vmul.f32 %v7812_v60, %v7812_v60  ;;  %v7821_v4 = vmul.f32 0.0078125, %v698_v61 }
 0x195   : >> { %v732_v5 = vpop.xlane.xlu0 %731  ;;  %v810_v58 = vsub.f32 %v7510_v27, %v7800_v48 }
 0x196   : >> { %v7035_v6 = vpop.eup %7034  ;;  %7038 = vrsqrt.f32 %v821_v63  ;;  %v822_v7 = vadd.f32 1e-05, %v798_v0  ;;  %v763_v8 = vmul.f32 0.0078125, %v732_v5  ;;  %v776_v13 = vmul.f32 %v7821_v4, %v7821_v4 }
 0x197   : >> { %v734_v9 = vpop.xlane.xlu1 %733  ;;  %v843_v10 = vmul.f32 %v7035_v6, %v807_v3 }
 0x198   : >> { %7040 = vrsqrt.f32 %v822_v7  ;;  %v787_v15 = vsub.f32 %v763_v8, %v775_v1  ;;  %v764_v16 = vmul.f32 0.0078125, %v734_v9 }
 0x199   : >> { %v700_v20 = vpop.xlane.xlu0 %699  ;;  %v859_v34 = vmul.f32 %v7824_v11, %v843_v10 }
 0x19a   : >> { %v7037_v23 = vpop.eup %7036  ;;  %v799_v24 = vmax.f32 %v787_v15, 0.0  ;;  %v788_v25 = vsub.f32 %v764_v16, %v776_v13  ;;  %v7832_v26 = vmul.f32 0.0078125, %v700_v20 }
 0x19b   : >> { %v702_v30 = vpop.xlane.xlu1 %701  ;;  %v844_v33 = vmul.f32 %v7037_v23, %v808_v19  ;;  %v875_v52 = vadd.f32 %v7836_v35, %v859_v34  ;;  %v811_v19 = vsub.f32 %v7506_v41, %v7812_v60 }
 0x19c   : >> { %v823_v36 = vadd.f32 1e-05, %v799_v24  ;;  %v800_v39 = vmax.f32 %v788_v25, 0.0  ;;  %v777_v40 = vmul.f32 %v7832_v26, %v7832_v26  ;;  %v7840_v44 = vmul.f32 0.0078125, %v702_v30 }
 0x19d   : >> { %v736_v29 = vpop.xlane.xlu0 %735  ;;  %v860_v45 = vmul.f32 %v7824_v11, %v844_v33 }
 0x19e   : >> { %7042 = vrsqrt.f32 %v823_v36  ;;  %v824_v46 = vadd.f32 1e-05, %v800_v39  ;;  %v765_v47 = vmul.f32 0.0078125, %v736_v29  ;;  %v778_v50 = vmul.f32 %v7840_v44, %v7840_v44 }
 0x19f   : >> { %v738_v51 = vpop.xlane.xlu1 %737  ;;  %v876_v54 = vadd.f32 %v7836_v35, %v860_v45  ;;  %v812_v36 = vsub.f32 %v7502_v37, %v7821_v4  ;;  %v813_v4 = vsub.f32 %v7498_v22, %v7832_v26 }
 0x1a0   : >> { %v7039_v55 = vpop.eup %7038  ;;  %7044 = vrsqrt.f32 %v824_v46  ;;  %v789_v56 = vsub.f32 %v765_v47, %v777_v40  ;;  %v766_v57 = vmul.f32 0.0078125, %v738_v51 }
 0x1a1   : >> { %v887_v59 = vpack.c.bf16 %v876_v54, %v875_v52  ;;  %v704_v61 = vpop.xlane.xlu0 %703  ;;  %v845_v63 = vmul.f32 %v7039_v55, %v809_v49 }
 0x1a2   : >> { %v7041_v0 = vpop.eup %7040  ;;  %v801_v43 = vmax.f32 %v789_v56, 0.0  ;;  %v790_v1 = vsub.f32 %v766_v57, %v778_v50  ;;  %v7851_v2 = vmul.f32 0.0078125, %v704_v61 }
 0x1a3   : >> { %1108 = vmatmul.mubr.bf16.vlgmr.msra.gmra.mrb[0].mxu0 %v887_v59  ;;  %6248 = vmatprep.mubr.bf16.mxu1 %v887_v59  ;;  %v706_v3 = vpop.xlane.xlu1 %705  ;;  %v846_v5 = vmul.f32 %v7041_v0, %v810_v58  ;;  %v861_v6 = vmul.f32 %v7824_v11, %v845_v63  ;;  %v814_v63 = vsub.f32 %v7494_v18, %v7840_v44 }
 0x1a4   : >> { %v825_v7 = vadd.f32 1e-05, %v801_v43  ;;  %v802_v8 = vmax.f32 %v790_v1, 0.0  ;;  %v779_v9 = vmul.f32 %v7851_v2, %v7851_v2  ;;  %1117 = vmatprep.mubr.bf16.mxu0 %v10086_v14  ;;  %v7857_v48 = vmul.f32 0.0078125, %v706_v3 }
 0x1a5   : >> { %v740_v10 = vpop.xlane.xlu0 %739  ;;  %v862_v13 = vmul.f32 %v7824_v11, %v846_v5  ;;  %v877_v24 = vadd.f32 %v7836_v35, %v861_v6 }
 0x1a6   : >> { %7046 = vrsqrt.f32 %v825_v7  ;;  %v826_v15 = vadd.f32 1e-05, %v802_v8  ;;  %v767_v16 = vmul.f32 0.0078125, %v740_v10  ;;  %v780_v20 = vmul.f32 %v7857_v48, %v7857_v48 }
 0x1a7   : >> { %v742_v23 = vpop.xlane.xlu1 %741  ;;  %v878_v25 = vadd.f32 %v7836_v35, %v862_v13 }
 0x1a8   : >> { %v7043_v30 = vpop.eup %7042  ;;  %7048 = vrsqrt.f32 %v826_v15  ;;  %v791_v33 = vsub.f32 %v767_v16, %v779_v9  ;;  %v768_v34 = vmul.f32 0.0078125, %v742_v23 }
 0x1a9   : >> { %v888_v39 = vpack.c.bf16 %v878_v25, %v877_v24  ;;  %v708_v40 = vpop.xlane.xlu0 %707  ;;  %v847_v29 = vmul.f32 %v7043_v30, %v811_v19  ;;  %v816_v30 = vsub.f32 %v7486_v28, %v7857_v48 }
 0x1aa   : >> { %v7045_v45 = vpop.eup %7044  ;;  %v803_v60 = vmax.f32 %v791_v33, 0.0  ;;  %v792_v46 = vsub.f32 %v768_v34, %v780_v20  ;;  %v7868_v47 = vmul.f32 0.0078125, %v708_v40  ;;  %v815_v20 = vsub.f32 %v7490_v32, %v7851_v2 }
 0x1ab   : >> { %1118 = vmatmul.mubr.bf16.gmra.mrb[4].mxu0 %v888_v39  ;;  %6249 = vmatmul.mubr.bf16.vlgmr.msra.gmra.mrb[0].mxu1 %v888_v39  ;;  %v710_v49 = vpop.xlane.xlu1 %709  ;;  %v848_v50 = vmul.f32 %v7045_v45, %v812_v36  ;;  %v863_v51 = vmul.f32 %v7824_v11, %v847_v29 }
 0x1ac   : >> { %v827_v52 = vadd.f32 1e-05, %v803_v60  ;;  %v804_v54 = vmax.f32 %v792_v46, 0.0  ;;  %v781_v55 = vmul.f32 %v7868_v47, %v7868_v47  ;;  %1127 = vmatprep.mubr.bf16.mxu0 %v10086_v14  ;;  %v758_v56 = vmul.f32 0.0078125, %v710_v49 }
 0x1ad   : >> { %v744_v57 = vpop.xlane.xlu0 %743  ;;  %v864_v58 = vmul.f32 %v7824_v11, %v848_v50  ;;  %v879_v1 = vadd.f32 %v7836_v35, %v863_v51  ;;  %v817_v45 = vsub.f32 %v7482_v42, %v7868_v47 }
 0x1ae   : >> { %7050 = vrsqrt.f32 %v827_v52  ;;  %v828_v59 = vadd.f32 1e-05, %v804_v54  ;;  %v769_v61 = vmul.f32 0.0078125, %v744_v57  ;;  %v782_v0 = vmul.f32 %v758_v56, %v758_v56 }
 0x1af   : >> { %v746_v43 = vpop.xlane.xlu1 %745  ;;  %v880_v3 = vadd.f32 %v7836_v35, %v864_v58  ;;  %v818_v46 = vsub.f32 %v7478_v38, %v758_v56 }
 0x1b0   : >> { %v7047_v5 = vpop.eup %7046  ;;  %7052 = vrsqrt.f32 %v828_v59  ;;  %v793_v6 = vsub.f32 %v769_v61, %v781_v55  ;;  %v770_v26 = vmul.f32 0.0078125, %v746_v43  ;;  %v10088_v59 = vmov 0.0  }
 0x1b1   : >> { %v889_v7 = vpack.c.bf16 %v880_v3, %v879_v1  ;;  %v849_v8 = vmul.f32 %v7047_v5, %v813_v4  ;;  %6260 = vmatprep.subr.bf16.mxu1 %v10088_v59  ;;  %6278 = vmatprep.subr.bf16.mxu0 %v10088_v59 }
 0x1b2   : >> { %v7049_v9 = vpop.eup %7048  ;;  %v805_v10 = vmax.f32 %v793_v6, 0.0  ;;  %v794_v13 = vsub.f32 %v770_v26, %v782_v0  ;;  %v7922_v6 = vsub.s32 2, %v7803_v53 }
 0x1b3   : >> { %1128 = vmatmul.mubr.bf16.gmra.mrb[8].mxu0 %v889_v7  ;;  %6252 = vmatprep.mubr.bf16.mxu1 %v889_v7  ;;  %v850_v15 = vmul.f32 %v7049_v9, %v814_v63  ;;  %v865_v44 = vmul.f32 %v7824_v11, %v849_v8 }
 0x1b4   : >> { %v829_v16 = vadd.f32 1e-05, %v805_v10  ;;  %v806_v19 = vmax.f32 %v794_v13, 0.0  ;;  %1137 = vmatprep.mubr.bf16.mxu0 %v10086_v14  ;;  %10153 = vst [vmem:[#allocation17_spill] sm:$0xff] %v7922_v6 }
 0x1b5   : >> { %v866_v23 = vmul.f32 %v7824_v11, %v850_v15  ;;  %v881_v24 = vadd.f32 %v7836_v35, %v865_v44 }
 0x1b6   : >> { %7054 = vrsqrt.f32 %v829_v16  ;;  %v830_v25 = vadd.f32 1e-05, %v806_v19 }
 0x1b7   : >> { %v882_v33 = vadd.f32 %v7836_v35, %v866_v23 }
 0x1b8   : >> { %v7051_v34 = vpop.eup %7050  ;;  %7056 = vrsqrt.f32 %v830_v25 }
 0x1b9   : >> { %v890_v36 = vpack.c.bf16 %v882_v33, %v881_v24  ;;  %v851_v39 = vmul.f32 %v7051_v34, %v815_v20 }
 0x1ba   : >> { %v7053_v40 = vpop.eup %7052 }
 0x1bb   : >> { %1138 = vmatmul.mubr.bf16.gmra.mrb[12].mxu0 %v890_v36  ;;  %v852_v29 = vmul.f32 %v7053_v40, %v816_v30  ;;  %v867_v2 = vmul.f32 %v7824_v11, %v851_v39  ;;  %6253 = vmatmul.mubr.bf16.gmra.mrb[4].mxu1 %v890_v36 }
 0x1bc   : >> { %1147 = vmatprep.mubr.bf16.mxu0 %v10086_v14 }
 0x1bd   : >> { %v868_v60 = vmul.f32 %v7824_v11, %v852_v29  ;;  %v883_v48 = vadd.f32 %v7836_v35, %v867_v2 }
 0x1bf   : >> { %v884_v49 = vadd.f32 %v7836_v35, %v868_v60 }
 0x1c0   : >> { %v7055_v50 = vpop.eup %7054 }
 0x1c1   : >> { %v891_v51 = vpack.c.bf16 %v884_v49, %v883_v48  ;;  %v853_v52 = vmul.f32 %v7055_v50, %v817_v45 }
 0x1c2   : >> { %v7057_v54 = vpop.eup %7056 }
 0x1c3   : >> { %1148 = vmatmul.mubr.bf16.gmra.mrb[16].mxu0 %v891_v51  ;;  %v854_v55 = vmul.f32 %v7057_v54, %v818_v46  ;;  %v869_v4 = vmul.f32 %v7824_v11, %v853_v52  ;;  %6256 = vmatprep.mubr.bf16.mxu1 %v891_v51 }
 0x1c4   : >> { %1157 = vmatprep.mubr.bf16.mxu0 %v10086_v14 }
 0x1c5   : >> { %v870_v47 = vmul.f32 %v7824_v11, %v854_v55  ;;  %v885_v57 = vadd.f32 %v7836_v35, %v869_v4  ;;  %v930_v11 = vld [vmem:[%s929_s20] sm:$0x7] }
 0x1c6   : >> { %v7917_v63 = vrot.slane %v930_v11, %v7827_v12  ;;  %v7931_v15 = vrot.slane %v930_v11, %v7922_v6 }
 0x1c7   : >> { %v886_v56 = vadd.f32 %v7836_v35, %v870_v47  ;;  %v7914_v35 = vrot.slane %v930_v11, %v7815_v62 }
 0x1c9   : >> { %v892_v58 = vpack.c.bf16 %v886_v56, %v885_v57 }
 0x1cb   : >> { %1158 = vmatmul.mubr.bf16.gmra.mrb[20].mxu0 %v892_v58  ;;  %6257 = vmatmul.mubr.bf16.gmra.mrb[8].mxu1 %v892_v58 }
 0x1cc   : >> { %6266 = vmatprep.mubr.msk.bf16.mxu1 %vm7530_vm1, %v10088_v59  ;;  %6284 = vmatprep.mubr.msk.bf16.mxu0 %vm7530_vm1, %v10088_v59 }
 0x276   : >> { %v1109_v61 = vpop.f32.mrb[0].mxu0 }
 0x277   : >> { %v1110_v0 = vadd.f32 %v1109_v61, %v7914_v35  ;;  %v1111_v43 = vpop.f32.mrb[1].mxu0 }
 0x278   : >> { %v1113_v1 = vpop.f32.mrb[2].mxu0  ;;  %v1112_v26 = vadd.f32 %v1111_v43, %v7917_v63 }
 0x279   : >> { %v1114_v3 = vadd.f32 %v1113_v1, %v7914_v35  ;;  %v1115_v5 = vpop.f32.mrb[3].mxu0  ;;  %v1249_v8 = vmul.f32 0.17677669, %v1110_v0 }
 0x27a   : >> { %v1116_v7 = vadd.f32 %v1115_v5, %v7917_v63 }
 0x27b   : >> { %v1250_v9 = vmul.f32 0.17677669, %v1114_v3 }
 0x27c   : >> { %v7926_v10 = vpack.c.bf16 %v1116_v7, %v1112_v26 }
 0x27d   : >> { %v7928_v13 = vpack.c.bf16 %v1250_v9, %v1249_v8 }
 0x27e   : >> { %v1119_v44 = vpop.f32.mrb[4].mxu0  ;;  %v6250_v16 = vpop.f32.mrb[0].mxu1  ;;  %1503 = vrot.lane.b32.xlu0 %v7926_v10, %s7531_s22  ;;  %v1290_v19 = vsel %vm1279_vm2, %v7926_v10, 0 }
 0x27f   : >> { %v1120_v20 = vadd.f32 %v1119_v44, %v7914_v35  ;;  %v1121_v23 = vpop.f32.mrb[5].mxu0  ;;  %v1202_v24 = vpop.f32.mrb[1].mxu1  ;;  %6261 = vmatpush3.bf16.xpose.msra.mxu1 %v1290_v19  ;;  %v1211_v33 = vadd.f32 %v6250_v16, %v7931_v15 }
 0x280   : >> { %v1123_v25 = vpop.f32.mrb[6].mxu0  ;;  %v6251_v30 = vpop.f32.mrb[2].mxu1  ;;  %6262 = vmatprep.subr.bf16.mxu1 %v10088_v59  ;;  %v1122_v29 = vadd.f32 %v1121_v23, %v7917_v63  ;;  %v1203_v2 = vadd.f32 %v1202_v24, %v7931_v15 }
 0x281   : >> { %v1124_v34 = vadd.f32 %v1123_v25, %v7914_v35  ;;  %v1214_v36 = vadd.f32 %v6251_v30, %v7931_v15  ;;  %v1125_v39 = vpop.f32.mrb[7].mxu0  ;;  %v1205_v40 = vpop.f32.mrb[3].mxu1  ;;  %v1251_v48 = vmul.f32 0.17677669, %v1120_v20 }
 0x282   : >> { %v1126_v45 = vadd.f32 %v1125_v39, %v7917_v63  ;;  %v1206_v60 = vadd.f32 %v1205_v40, %v7931_v15  ;;  %1737 = vrot.lane.b32.xlu0 %v7926_v10, %s7532_s24 }
 0x283   : >> { %v1252_v46 = vmul.f32 0.17677669, %v1124_v34  ;;  %v7948_v49 = vpack.c.bf16 %v1214_v36, %v1211_v33 }
 0x284   : >> { %v1268_v50 = vpack.c.bf16 %v1126_v45, %v1122_v29  ;;  %v7950_v51 = vpack.c.bf16 %v1206_v60, %v1203_v2 }
 0x285   : >> { %v7952_v52 = vpack.c.bf16 %v1252_v46, %v1251_v48 }
 0x286   : >> { %v1129_v54 = vpop.f32.mrb[8].mxu0  ;;  %6279 = vmatpush3.bf16.msra.mxu0 %v7950_v51  ;;  %1739 = vrot.lane.b32.xlu0 %v1268_v50, %s7532_s24  ;;  %v1293_v55 = vsel %vm1279_vm2, %v1268_v50, 0 }
 0x287   : >> { %v1130_v4 = vadd.f32 %v1129_v54, %v7914_v35  ;;  %1505 = vrot.lane.b32.xlu1 %v1268_v50, %s7531_s22  ;;  %v1131_v47 = vpop.f32.mrb[9].mxu0  ;;  %6263 = vmatpush3.bf16.xpose.msra.mxu1 %v1293_v55 }
 0x288   : >> { %v1133_v57 = vpop.f32.mrb[10].mxu0  ;;  %6280 = vmatprep.subr.bf16.mxu0 %v10088_v59  ;;  %6264 = vmatprep.subr.bf16.mxu1 %v10088_v59  ;;  %v1132_v11 = vadd.f32 %v1131_v47, %v7917_v63 }
 0x289   : >> { %v1134_v56 = vadd.f32 %v1133_v57, %v7914_v35  ;;  %v1135_v58 = vpop.f32.mrb[11].mxu0  ;;  %v1253_v0 = vmul.f32 0.17677669, %v1130_v4 }
 0x28a   : >> { %v1136_v61 = vadd.f32 %v1135_v58, %v7917_v63  ;;  %6281 = vmatpush3.bf16.msra.mxu0 %v7948_v49 }
 0x28b   : >> { %v1254_v43 = vmul.f32 0.17677669, %v1134_v56  ;;  %6282 = vmatprep.subr.bf16.mxu0 %v10088_v59 }
 0x28c   : >> { %v1269_v1 = vpack.c.bf16 %v1136_v61, %v1132_v11 }
 0x28d   : >> { %v7966_v3 = vpack.c.bf16 %v1254_v43, %v1253_v0 }
 0x28e   : >> { %1741 = vrot.lane.b32.xlu0 %v1269_v1, %s7532_s24  ;;  %1507 = vrot.lane.b32.xlu1 %v1269_v1, %s7531_s22  ;;  %v1296_v5 = vsel %vm1279_vm2, %v1269_v1, 0  ;;  %v1139_v26 = vpop.f32.mrb[12].mxu0  ;;  %v6254_v7 = vpop.f32.mrb[4].mxu1 }
 0x28f   : >> { %6265 = vmatpush3.bf16.xpose.msra.mxu1 %v1296_v5  ;;  %v1140_v8 = vadd.f32 %v1139_v26, %v7914_v35  ;;  %v1141_v9 = vpop.f32.mrb[13].mxu0  ;;  %v1227_v44 = vadd.f32 %v6254_v7, %v7931_v15  ;;  %v1218_v16 = vpop.f32.mrb[5].mxu1 }
 0x290   : >> { %v1142_v19 = vadd.f32 %v1141_v9, %v7917_v63  ;;  %v1143_v20 = vpop.f32.mrb[14].mxu0  ;;  %v1219_v23 = vadd.f32 %v1218_v16, %v7931_v15  ;;  %v6255_v24 = vpop.f32.mrb[6].mxu1  ;;  %6296 = vmatprep.subr.bf16.mxu1 %v10088_v59 }
 0x291   : >> { %v1255_v25 = vmul.f32 0.17677669, %v1140_v8  ;;  %v1144_v30 = vadd.f32 %v1143_v20, %v7914_v35  ;;  %v1145_v33 = vpop.f32.mrb[15].mxu0  ;;  %v1230_v34 = vadd.f32 %v6255_v24, %v7931_v15  ;;  %v1221_v36 = vpop.f32.mrb[7].mxu1 }
 0x292   : >> { %1968 = vrot.lane.b32.xlu0 %v7926_v10, %s7533_s25  ;;  %1494 = vrot.lane.b32.xlu1 %v7928_v13, %s7531_s22  ;;  %v1146_v39 = vadd.f32 %v1145_v33, %v7917_v63  ;;  %v1222_v40 = vadd.f32 %v1221_v36, %v7931_v15 }
 0x293   : >> { %v1256_v29 = vmul.f32 0.17677669, %v1144_v30  ;;  %v7984_v2 = vpack.c.bf16 %v1230_v34, %v1227_v44 }
 0x294   : >> { %v7986_v45 = vpack.c.bf16 %v1146_v39, %v1142_v19  ;;  %v7988_v60 = vpack.c.bf16 %v1222_v40, %v1219_v23 }
 0x295   : >> { %v7990_v48 = vpack.c.bf16 %v1256_v29, %v1255_v25 }
 0x296   : >> { %1970 = vrot.lane.b32.xlu0 %v1268_v50, %s7533_s25  ;;  %1496 = vrot.lane.b32.xlu1 %v7952_v52, %s7531_s22  ;;  %v1149_v10 = vpop.f32.mrb[16].mxu0 }
 0x297   : >> { %6267 = vmatmul.mubr.msk.bf16.vlgmr.msra.gmra.mrb[12].mxu1 %vm1279_vm2, %v7928_v13  ;;  %v1150_v46 = vadd.f32 %v1149_v10, %v7914_v35  ;;  %v1151_v54 = vpop.f32.mrb[17].mxu0  ;;  %6283 = vmatpush3.bf16.msra.mxu0 %v7988_v60 }
 0x298   : >> { %v1152_v55 = vadd.f32 %v1151_v54, %v7917_v63  ;;  %v1153_v4 = vpop.f32.mrb[18].mxu0  ;;  %6270 = vmatprep.mubr.msk.bf16.mxu1 %vm7530_vm1, %v10088_v59  ;;  %6314 = vmatprep.subr.bf16.mxu0 %v10088_v59 }
 0x299   : >> { %v1257_v50 = vmul.f32 0.17677669, %v1150_v46  ;;  %v1154_v47 = vadd.f32 %v1153_v4, %v7914_v35  ;;  %v1155_v57 = vpop.f32.mrb[19].mxu0 }
 0x29a   : >> { %1972 = vrot.lane.b32.xlu0 %v1269_v1, %s7533_s25  ;;  %1498 = vrot.lane.b32.xlu1 %v7966_v3, %s7531_s22  ;;  %v1156_v56 = vadd.f32 %v1155_v57, %v7917_v63 }
 0x29b   : >> { %v1258_v58 = vmul.f32 0.17677669, %v1154_v47 }
 0x29c   : >> { %v8008_v11 = vpack.c.bf16 %v1156_v56, %v1152_v55 }
 0x29d   : >> { %v8010_v61 = vpack.c.bf16 %v1258_v58, %v1257_v50 }
 0x29e   : >> { %1964 = vrot.lane.b32.xlu0 %v7952_v52, %s7533_s25  ;;  %1731 = vrot.lane.b32.xlu1 %v7928_v13, %s7532_s24  ;;  %v1159_v0 = vpop.f32.mrb[20].mxu0  ;;  %v6258_v43 = vpop.f32.mrb[8].mxu1 }
 0x29f   : >> { %v1160_v1 = vadd.f32 %v1159_v0, %v7914_v35  ;;  %6271 = vmatmul.mubr.msk.bf16.gmra.mrb[16].mxu1 %vm1279_vm2, %v7952_v52  ;;  %v1161_v5 = vpop.f32.mrb[21].mxu0  ;;  %v1243_v26 = vadd.f32 %v6258_v43, %v7931_v15  ;;  %v1234_v7 = vpop.f32.mrb[9].mxu1 }
 0x2a0   : >> { %v1162_v8 = vadd.f32 %v1161_v5, %v7917_v63  ;;  %v1163_v9 = vpop.f32.mrb[22].mxu0  ;;  %6274 = vmatprep.mubr.msk.bf16.mxu1 %vm7530_vm1, %v10088_v59  ;;  %v1235_v44 = vadd.f32 %v1234_v7, %v7931_v15  ;;  %v6259_v16 = vpop.f32.mrb[10].mxu1 }
 0x2a1   : >> { %v1259_v19 = vmul.f32 0.17677669, %v1160_v1  ;;  %v1164_v20 = vadd.f32 %v1163_v9, %v7914_v35  ;;  %v1165_v23 = vpop.f32.mrb[23].mxu0  ;;  %v1246_v24 = vadd.f32 %v6259_v16, %v7931_v15  ;;  %v1237_v25 = vpop.f32.mrb[11].mxu1 }
 0x2a2   : >> { %v1166_v30 = vadd.f32 %v1165_v23, %v7917_v63  ;;  %2507 = vrot.lane.b32.xlu0 %v7986_v45, %s7531_s22  ;;  %1733 = vrot.lane.b32.xlu1 %v7952_v52, %s7532_s24  ;;  %v1238_v33 = vadd.f32 %v1237_v25, %v7931_v15 }
 0x2a3   : >> { %v1260_v34 = vmul.f32 0.17677669, %v1164_v20  ;;  %v8032_v36 = vpack.c.bf16 %v1246_v24, %v1243_v26 }
 0x2a4   : >> { %v8034_v39 = vpack.c.bf16 %v1166_v30, %v1162_v8  ;;  %v8036_v35 = vpack.c.bf16 %v1238_v33, %v1235_v44  ;;  %v2295_v8 = vsel %vm1279_vm2, %v7986_v45, 0  ;;  %v2298_v44 = vsel %vm1279_vm2, %v8008_v11, 0 }
 0x2a5   : >> { %v8038_v40 = vpack.c.bf16 %v1260_v34, %v1259_v19 }
 0x2a6   : >> { %1735 = vrot.lane.b32.xlu1 %v7966_v3, %s7532_s24  ;;  %2511 = vrot.lane.b32.xlu0 %v8034_v39, %s7531_s22 }
 0x2a7   : >> { %6275 = vmatmul.mubr.msk.bf16.gmra.mrb[20].mxu1 %vm1279_vm2, %v7966_v3 }
 0x2a8   : >> { %6302 = vmatprep.mubr.msk.bf16.mxu1 %vm7530_vm1, %v10088_v59 }
 0x2aa   : >> { %1962 = vrot.lane.b32.xlu1 %v7928_v13, %s7533_s25  ;;  %2741 = vrot.lane.b32.xlu0 %v7986_v45, %s7532_s24 }
 0x2ae   : >> { %1966 = vrot.lane.b32.xlu1 %v7966_v3, %s7533_s25  ;;  %2743 = vrot.lane.b32.xlu0 %v8008_v11, %s7532_s24 }
 0x2b2   : >> { %2509 = vrot.lane.b32.xlu1 %v8008_v11, %s7531_s22  ;;  %2745 = vrot.lane.b32.xlu0 %v8034_v39, %s7532_s24 }
 0x2b6   : >> { %2498 = vrot.lane.b32.xlu1 %v7990_v48, %s7531_s22  ;;  %2972 = vrot.lane.b32.xlu0 %v7986_v45, %s7533_s25  ;;  %v2301_v45 = vsel %vm1279_vm2, %v8034_v39, 0 }
 0x2ba   : >> { %2500 = vrot.lane.b32.xlu1 %v8010_v61, %s7531_s22  ;;  %2974 = vrot.lane.b32.xlu0 %v8008_v11, %s7533_s25 }
 0x2be   : >> { %2976 = vrot.lane.b32.xlu0 %v8034_v39, %s7533_s25  ;;  %2502 = vrot.lane.b32.xlu1 %v8038_v40, %s7531_s22 }
 0x2c2   : >> { %2968 = vrot.lane.b32.xlu0 %v8010_v61, %s7533_s25  ;;  %2735 = vrot.lane.b32.xlu1 %v7990_v48, %s7532_s24 }
 0x2c6   : >> { %1656 = vrot.lane.b32.xlu0 %v7950_v51, %s7531_s22  ;;  %2737 = vrot.lane.b32.xlu1 %v8010_v61, %s7532_s24 }
 0x2ca   : >> { %1660 = vrot.lane.b32.xlu0 %v7988_v60, %s7531_s22  ;;  %2739 = vrot.lane.b32.xlu1 %v8038_v40, %s7532_s24 }
 0x2ce   : >> { %1891 = vrot.lane.b32.xlu0 %v7988_v60, %s7532_s24  ;;  %2966 = vrot.lane.b32.xlu1 %v7990_v48, %s7533_s25 }
 0x2d2   : >> { %2120 = vrot.lane.b32.xlu0 %v7948_v49, %s7533_s25  ;;  %2970 = vrot.lane.b32.xlu1 %v8038_v40, %s7533_s25 }
 0x2d6   : >> { %2122 = vrot.lane.b32.xlu0 %v7988_v60, %s7533_s25  ;;  %1658 = vrot.lane.b32.xlu1 %v7948_v49, %s7531_s22 }
 0x2da   : >> { %2662 = vrot.lane.b32.xlu0 %v8036_v35, %s7531_s22  ;;  %1887 = vrot.lane.b32.xlu1 %v7950_v51, %s7532_s24 }
 0x2de   : >> { %2891 = vrot.lane.b32.xlu0 %v7984_v2, %s7532_s24  ;;  %1889 = vrot.lane.b32.xlu1 %v7948_v49, %s7532_s24 }
 0x2e2   : >> { %2118 = vrot.lane.b32.xlu1 %v7950_v51, %s7533_s25 }
 0x2e6   : >> { %2660 = vrot.lane.b32.xlu1 %v7984_v2, %s7531_s22 }
 0x2ea   : >> { %2664 = vrot.lane.b32.xlu1 %v8032_v36, %s7531_s22 }
 0x2f0   : >> { %v1504_v63 = vpop.permute.xlu0 %1503 }
 0x2f1   : >> { %v1519_v13 = vsel %vm1279_vm2, %v1504_v63, 0 }
 0x2f2   : >> { %6297 = vmatpush3.bf16.xpose.msra.mxu1 %v1519_v13 }
 0x2f3   : >> { %6298 = vmatprep.subr.bf16.mxu1 %v10088_v59 }
 0x2f4   : >> { %v1738_v3 = vpop.permute.xlu0 %1737 }
 0x2f5   : >> { %v1753_v60 = vsel %vm1279_vm2, %v1738_v3, 0 }
 0x2f8   : >> { %v1740_v10 = vpop.permute.xlu0 %1739 }
 0x2f9   : >> { %v1506_v15 = vpop.permute.xlu1 %1505  ;;  %v1756_v54 = vsel %vm1279_vm2, %v1740_v10, 0 }
 0x2fa   : >> { %v1522_v52 = vsel %vm1279_vm2, %v1506_v15, 0 }
 0x2fb   : >> { %6299 = vmatpush3.bf16.xpose.msra.mxu1 %v1522_v52 }
 0x2fc   : >> { %6300 = vmatprep.subr.bf16.mxu1 %v10088_v59 }
 0x300   : >> { %v1508_v49 = vpop.permute.xlu1 %1507  ;;  %v1742_v55 = vpop.permute.xlu0 %1741 }
 0x301   : >> { %v1525_v51 = vsel %vm1279_vm2, %v1508_v49, 0  ;;  %v1759_v50 = vsel %vm1279_vm2, %v1742_v55, 0 }
 0x303   : >> { %6301 = vmatpush3.bf16.xpose.msra.mxu1 %v1525_v51 }
 0x304   : >> { %6332 = vmatprep.subr.bf16.mxu1 %v10088_v59  ;;  %v1495_v29 = vpop.permute.xlu1 %1494  ;;  %v1969_v47 = vpop.permute.xlu0 %1968 }
 0x305   : >> { %v1984_v56 = vsel %vm1279_vm2, %v1969_v47, 0 }
 0x308   : >> { %v1497_v46 = vpop.permute.xlu1 %1496  ;;  %v1971_v58 = vpop.permute.xlu0 %1970 }
 0x309   : >> { %v1987_v43 = vsel %vm1279_vm2, %v1971_v58, 0 }
 0x30a   : >> { %6303 = vmatmul.mubr.msk.bf16.vlgmr.msra.gmra.mrb[24].mxu1 %vm1279_vm2, %v1495_v29 }
 0x30b   : >> { %6333 = vmatpush3.bf16.xpose.msra.mxu1 %v1753_v60  ;;  %6306 = vmatprep.mubr.msk.bf16.mxu1 %vm7530_vm1, %v10088_v59 }
 0x30c   : >> { %6334 = vmatprep.subr.bf16.mxu1 %v10088_v59  ;;  %v1499_v4 = vpop.permute.xlu1 %1498  ;;  %v1973_v1 = vpop.permute.xlu0 %1972 }
 0x30d   : >> { %v1990_v26 = vsel %vm1279_vm2, %v1973_v1, 0 }
 0x310   : >> { %v1732_v57 = vpop.permute.xlu1 %1731  ;;  %v1965_v9 = vpop.permute.xlu0 %1964 }
 0x312   : >> { %6307 = vmatmul.mubr.msk.bf16.gmra.mrb[28].mxu1 %vm1279_vm2, %v1497_v46 }
 0x313   : >> { %6335 = vmatpush3.bf16.xpose.msra.mxu1 %v1756_v54  ;;  %6310 = vmatprep.mubr.msk.bf16.mxu1 %vm7530_vm1, %v10088_v59 }
 0x314   : >> { %6336 = vmatprep.subr.bf16.mxu1 %v10088_v59  ;;  %v1734_v0 = vpop.permute.xlu1 %1733  ;;  %v2508_v19 = vpop.permute.xlu0 %2507 }
 0x315   : >> { %v2523_v11 = vsel %vm1279_vm2, %v2508_v19, 0 }
 0x318   : >> { %v1736_v5 = vpop.permute.xlu1 %1735  ;;  %v2512_v24 = vpop.permute.xlu0 %2511 }
 0x31a   : >> { %6311 = vmatmul.mubr.msk.bf16.gmra.mrb[32].mxu1 %vm1279_vm2, %v1499_v4 }
 0x31b   : >> { %6337 = vmatpush3.bf16.xpose.msra.mxu1 %v1759_v50  ;;  %6338 = vmatprep.mubr.msk.bf16.mxu1 %vm7530_vm1, %v10088_v59 }
 0x31c   : >> { %6368 = vmatprep.subr.bf16.mxu1 %v10088_v59  ;;  %v1963_v7 = vpop.permute.xlu1 %1962 }
 0x320   : >> { %v1967_v16 = vpop.permute.xlu1 %1966 }
 0x322   : >> { %6339 = vmatmul.mubr.msk.bf16.vlgmr.msra.gmra.mrb[36].mxu1 %vm1279_vm2, %v1732_v57 }
 0x323   : >> { %6369 = vmatpush3.bf16.xpose.msra.mxu1 %v1984_v56  ;;  %6342 = vmatprep.mubr.msk.bf16.mxu1 %vm7530_vm1, %v10088_v59 }
 0x324   : >> { %6370 = vmatprep.subr.bf16.mxu1 %v10088_v59  ;;  %v2510_v20 = vpop.permute.xlu1 %2509 }
 0x325   : >> { %v2526_v23 = vsel %vm1279_vm2, %v2510_v20, 0 }
 0x328   : >> { %v2499_v25 = vpop.permute.xlu1 %2498 }
 0x32a   : >> { %6343 = vmatmul.mubr.msk.bf16.gmra.mrb[40].mxu1 %vm1279_vm2, %v1734_v0 }
 0x32b   : >> { %6371 = vmatpush3.bf16.xpose.msra.mxu1 %v1987_v43  ;;  %6346 = vmatprep.mubr.msk.bf16.mxu1 %vm7530_vm1, %v10088_v59 }
 0x32c   : >> { %6372 = vmatprep.subr.bf16.mxu1 %v10088_v59  ;;  %v2501_v52 = vpop.permute.xlu1 %2500 }
 0x330   : >> { %v2503_v55 = vpop.permute.xlu1 %2502 }
 0x332   : >> { %6347 = vmatmul.mubr.msk.bf16.gmra.mrb[44].mxu1 %vm1279_vm2, %v1736_v5 }
 0x333   : >> { %6373 = vmatpush3.bf16.xpose.msra.mxu1 %v1990_v26  ;;  %6374 = vmatprep.mubr.msk.bf16.mxu1 %vm7530_vm1, %v10088_v59 }
 0x334   : >> { %6404 = vmatprep.subr.bf16.mxu1 %v10088_v59  ;;  %v2736_v1 = vpop.permute.xlu1 %2735 }
 0x33a   : >> { %6375 = vmatmul.mubr.msk.bf16.vlgmr.msra.gmra.mrb[48].mxu1 %vm1279_vm2, %v1963_v7  ;;  %v2738_v7 = vpop.permute.xlu1 %2737 }
 0x33b   : >> { %6405 = vmatpush3.bf16.xpose.msra.mxu1 %v2295_v8  ;;  %6378 = vmatprep.mubr.msk.bf16.mxu1 %vm7530_vm1, %v10088_v59 }
 0x33c   : >> { %6406 = vmatprep.subr.bf16.mxu1 %v10088_v59 }
 0x342   : >> { %6379 = vmatmul.mubr.msk.bf16.gmra.mrb[52].mxu1 %vm1279_vm2, %v1965_v9 }
 0x343   : >> { %6407 = vmatpush3.bf16.xpose.msra.mxu1 %v2298_v44  ;;  %6382 = vmatprep.mubr.msk.bf16.mxu1 %vm7530_vm1, %v10088_v59  ;;  %v2740_v44 = vpop.permute.xlu1 %2739 }
 0x344   : >> { %6408 = vmatprep.subr.bf16.mxu1 %v10088_v59 }
 0x34a   : >> { %6383 = vmatmul.mubr.msk.bf16.gmra.mrb[56].mxu1 %vm1279_vm2, %v1967_v16 }
 0x34b   : >> { %6409 = vmatpush3.bf16.xpose.msra.mxu1 %v2301_v45  ;;  %6410 = vmatprep.mubr.msk.bf16.mxu1 %vm7530_vm1, %v10088_v59  ;;  %v2967_v45 = vpop.permute.xlu1 %2966 }
 0x34c   : >> { %6440 = vmatprep.subr.bf16.mxu1 %v10088_v59 }
 0x352   : >> { %6411 = vmatmul.mubr.msk.bf16.vlgmr.msra.gmra.mrb[60].mxu1 %vm1279_vm2, %v7990_v48  ;;  %v2529_v48 = vsel %vm1279_vm2, %v2512_v24, 0 }
 0x353   : >> { %6441 = vmatpush3.bf16.xpose.msra.mxu1 %v2523_v11  ;;  %6414 = vmatprep.mubr.msk.bf16.mxu1 %vm7530_vm1, %v10088_v59  ;;  %v2971_v11 = vpop.permute.xlu1 %2970 }
 0x354   : >> { %6442 = vmatprep.subr.bf16.mxu1 %v10088_v59 }
 0x357   : >> { %v8246_v24 = vpop.permute.xlu1 %1658 }
 0x35a   : >> { %6415 = vmatmul.mubr.msk.bf16.gmra.mrb[64].mxu1 %vm1279_vm2, %v8010_v61  ;;  %v2742_v61 = vpop.permute.xlu0 %2741 }
 0x35b   : >> { %6443 = vmatpush3.bf16.xpose.msra.mxu1 %v2526_v23  ;;  %6418 = vmatprep.mubr.msk.bf16.mxu1 %vm7530_vm1, %v10088_v59  ;;  %v2757_v30 = vsel %vm1279_vm2, %v2742_v61, 0 }
 0x35c   : >> { %6444 = vmatprep.subr.bf16.mxu1 %v10088_v59 }
 0x35e   : >> { %v2744_v15 = vpop.permute.xlu0 %2743 }
 0x35f   : >> { %v2760_v49 = vsel %vm1279_vm2, %v2744_v15, 0 }
 0x362   : >> { %6419 = vmatmul.mubr.msk.bf16.gmra.mrb[68].mxu1 %vm1279_vm2, %v8038_v40  ;;  %v2746_v54 = vpop.permute.xlu0 %2745 }
 0x363   : >> { %6445 = vmatpush3.bf16.xpose.msra.mxu1 %v2529_v48  ;;  %6446 = vmatprep.mubr.msk.bf16.mxu1 %vm7530_vm1, %v10088_v59  ;;  %v2763_v4 = vsel %vm1279_vm2, %v2746_v54, 0 }
 0x364   : >> { %6476 = vmatprep.subr.bf16.mxu1 %v10088_v59 }
 0x366   : >> { %v2973_v43 = vpop.permute.xlu0 %2972 }
 0x367   : >> { %v2988_v5 = vsel %vm1279_vm2, %v2973_v43, 0 }
 0x36a   : >> { %v8183_v33 = vpop.f32.mrb[12].mxu1  ;;  %6447 = vmatmul.mubr.msk.bf16.vlgmr.msra.gmra.mrb[72].mxu1 %vm1279_vm2, %v2499_v25  ;;  %v2975_v26 = vpop.permute.xlu0 %2974 }
 0x36b   : >> { %v6268_v34 = vpop.f32.mrb[13].mxu1  ;;  %6477 = vmatpush3.bf16.xpose.msra.mxu1 %v2757_v30  ;;  %v1356_v39 = vsel %vm1355_vm3, %v8183_v33, -inf  ;;  %6450 = vmatprep.mubr.msk.bf16.mxu1 %vm7530_vm1, %v10088_v59  ;;  %v2991_v8 = vsel %vm1279_vm2, %v2975_v26, 0 }
 0x36c   : >> { %v8190_v40 = vpop.f32.mrb[14].mxu1  ;;  %1357 = vmax.xlane.f32.xlu0 %v1356_v39  ;;  %6478 = vmatprep.subr.bf16.mxu1 %v10088_v59  ;;  %v8254_v34 = vpop.permute.xlu1 %1887 }
 0x36d   : >> { %v6269_v63 = vpop.f32.mrb[15].mxu1  ;;  %v1359_v13 = vsel %vm1355_vm3, %v8190_v40, -inf }
 0x36e   : >> { %1360 = vmax.xlane.f32.xlu1 %v1359_v13  ;;  %v2977_v9 = vpop.permute.xlu0 %2976 }
 0x36f   : >> { %v2994_v16 = vsel %vm1279_vm2, %v2977_v9, 0 }
 0x372   : >> { %v8196_v51 = vpop.f32.mrb[16].mxu1  ;;  %6451 = vmatmul.mubr.msk.bf16.gmra.mrb[76].mxu1 %vm1279_vm2, %v2501_v52  ;;  %v2969_v19 = vpop.permute.xlu0 %2968 }
 0x373   : >> { %v6272_v3 = vpop.f32.mrb[17].mxu1  ;;  %6479 = vmatpush3.bf16.xpose.msra.mxu1 %v2760_v49  ;;  %v1362_v29 = vsel %vm1355_vm3, %v8196_v51, -inf  ;;  %6454 = vmatprep.mubr.msk.bf16.mxu1 %vm7530_vm1, %v10088_v59  ;;  %v8262_v52 = vpop.permute.xlu1 %1889 }
 0x374   : >> { %v8203_v60 = vpop.f32.mrb[18].mxu1  ;;  %1363 = vmax.xlane.f32.xlu0 %v1362_v29  ;;  %6480 = vmatprep.subr.bf16.mxu1 %v10088_v59  ;;  %10156 = vst [vmem:[#allocation20_spill] sm:$0xff] %v8262_v52 }
 0x375   : >> { %v6273_v10 = vpop.f32.mrb[19].mxu1  ;;  %v1365_v46 = vsel %vm1355_vm3, %v8203_v60, -inf }
 0x376   : >> { %v8242_v20 = vpop.permute.xlu0 %1656 }
 0x378   : >> { %1366 = vmax.xlane.f32.xlu0 %v1365_v46 }
 0x37a   : >> { %v8209_v50 = vpop.f32.mrb[20].mxu1  ;;  %6455 = vmatmul.mubr.msk.bf16.gmra.mrb[80].mxu1 %vm1279_vm2, %v2503_v55  ;;  %v8244_v23 = vpop.permute.xlu0 %1660 }
 0x37b   : >> { %v6276_v47 = vpop.f32.mrb[21].mxu1  ;;  %6481 = vmatpush3.bf16.xpose.msra.mxu1 %v2763_v4  ;;  %v1368_v57 = vsel %vm1355_vm3, %v8209_v50, -inf  ;;  %6482 = vmatprep.mubr.msk.bf16.mxu1 %vm7530_vm1, %v10088_v59  ;;  %v8274_v4 = vpop.permute.xlu1 %2118 }
 0x37c   : >> { %v8216_v56 = vpop.f32.mrb[22].mxu1  ;;  %1369 = vmax.xlane.f32.xlu0 %v1368_v57  ;;  %6512 = vmatprep.subr.bf16.mxu1 %v10088_v59  ;;  %10158 = vst [vmem:[#allocation22_spill] sm:$0xff] %v8274_v4 }
 0x37d   : >> { %v6277_v58 = vpop.f32.mrb[23].mxu1  ;;  %v1371_v0 = vsel %vm1355_vm3, %v8216_v56, -inf }
 0x37e   : >> { %1372 = vmax.xlane.f32.xlu1 %v1371_v0  ;;  %v8248_v48 = vpop.permute.xlu0 %1891 }
 0x37f   : >> { %10154 = vst [vmem:[#allocation18_spill] sm:$0xff] %v8248_v48  ;;  %v8286_v26 = vpop.permute.xlu1 %2660 }
 0x380   : >> { %10160 = vst [vmem:[#allocation24_spill] sm:$0xff] %v8286_v26 }
 0x382   : >> { %6483 = vmatmul.mubr.msk.bf16.vlgmr.msra.gmra.mrb[84].mxu1 %vm1279_vm2, %v2736_v1  ;;  %v8260_v15 = vpop.permute.xlu0 %2120 }
 0x383   : >> { %6513 = vmatpush3.bf16.xpose.msra.mxu1 %v2988_v5  ;;  %6486 = vmatprep.mubr.msk.bf16.mxu1 %vm7530_vm1, %v10088_v59  ;;  %10155 = vst [vmem:[#allocation19_spill] sm:$0xff] %v8260_v15 }
 0x384   : >> { %6514 = vmatprep.subr.bf16.mxu1 %v10088_v59 }
 0x386   : >> { %v8272_v55 = vpop.permute.xlu0 %2122 }
 0x387   : >> { %10157 = vst [vmem:[#allocation21_spill] sm:$0xff] %v8272_v55 }
 0x38a   : >> { %6487 = vmatmul.mubr.msk.bf16.gmra.mrb[88].mxu1 %vm1279_vm2, %v2738_v7  ;;  %v8280_v0 = vpop.permute.xlu0 %2662 }
 0x38b   : >> { %6515 = vmatpush3.bf16.xpose.msra.mxu1 %v2991_v8  ;;  %6490 = vmatprep.mubr.msk.bf16.mxu1 %vm7530_vm1, %v10088_v59  ;;  %10159 = vst [vmem:[#allocation23_spill] sm:$0xff] %v8280_v0 }
 0x38c   : >> { %6516 = vmatprep.subr.bf16.mxu1 %v10088_v59 }
 0x38e   : >> { %v8288_v7 = vpop.permute.xlu0 %2891 }
 0x38f   : >> { %10161 = vst [vmem:[#allocation25_spill] sm:$0xff] %v8288_v7 }
 0x392   : >> { %6491 = vmatmul.mubr.msk.bf16.gmra.mrb[92].mxu1 %vm1279_vm2, %v2740_v44 }
 0x393   : >> { %6517 = vmatpush3.bf16.xpose.msra.mxu1 %v2994_v16  ;;  %6518 = vmatprep.mubr.msk.bf16.mxu1 %vm7530_vm1, %v10088_v59  ;;  %v8294_v16 = vpop.permute.xlu1 %2664 }
 0x394   : >> { %10162 = vst [vmem:[#allocation26_spill] sm:$0xff] %v8294_v16 }
 0x39a   : >> { %6519 = vmatmul.mubr.msk.bf16.vlgmr.msra.gmra.mrb[96].mxu1 %vm1279_vm2, %v2967_v45 }
 0x39b   : >> { %6522 = vmatprep.mubr.msk.bf16.mxu1 %vm7530_vm1, %v10088_v59 }
 0x3a2   : >> { %6523 = vmatmul.mubr.msk.bf16.gmra.mrb[100].mxu1 %vm1279_vm2, %v2969_v19 }
 0x3a3   : >> { %6526 = vmatprep.mubr.msk.bf16.mxu1 %vm7530_vm1, %v10088_v59 }
 0x3aa   : >> { %6527 = vmatmul.mubr.msk.bf16.gmra.mrb[104].mxu1 %vm1279_vm2, %v2971_v11 }
 0x3dd   : >> { %v8250_v61 = vpop.f32.mrb[24].mxu1 }
 0x3de   : >> { %v6304_v25 = vpop.f32.mrb[25].mxu1  ;;  %v1584_v30 = vsel %vm1355_vm3, %v8250_v61, -inf }
 0x3df   : >> { %1585 = vmax.xlane.f32.xlu0 %v1584_v30  ;;  %v8256_v39 = vpop.f32.mrb[26].mxu1 }
 0x3e0   : >> { %v6305_v63 = vpop.f32.mrb[27].mxu1  ;;  %v1587_v13 = vsel %vm1355_vm3, %v8256_v39, -inf }
 0x3e1   : >> { %1588 = vmax.xlane.f32.xlu1 %v1587_v13 }
 0x3e5   : >> { %v8264_v49 = vpop.f32.mrb[28].mxu1 }
 0x3e6   : >> { %v6308_v3 = vpop.f32.mrb[29].mxu1  ;;  %v1590_v29 = vsel %vm1355_vm3, %v8264_v49, -inf }
 0x3e7   : >> { %1591 = vmax.xlane.f32.xlu0 %v1590_v29  ;;  %v8268_v10 = vpop.f32.mrb[30].mxu1 }
 0x3e8   : >> { %v6309_v46 = vpop.f32.mrb[31].mxu1  ;;  %v1593_v54 = vsel %vm1355_vm3, %v8268_v10, -inf }
 0x3e9   : >> { %1594 = vmax.xlane.f32.xlu1 %v1593_v54 }
 0x3ed   : >> { %v8276_v47 = vpop.f32.mrb[32].mxu1 }
 0x3ee   : >> { %v6312_v57 = vpop.f32.mrb[33].mxu1  ;;  %v1596_v58 = vsel %vm1355_vm3, %v8276_v47, -inf }
 0x3ef   : >> { %1597 = vmax.xlane.f32.xlu0 %v1596_v58  ;;  %v8282_v43 = vpop.f32.mrb[34].mxu1 }
 0x3f0   : >> { %v6313_v1 = vpop.f32.mrb[35].mxu1  ;;  %v1599_v5 = vsel %vm1355_vm3, %v8282_v43, -inf }
 0x3f1   : >> { %1600 = vmax.xlane.f32.xlu1 %v1599_v5 }
 0x3f5   : >> { %v8290_v8 = vpop.f32.mrb[36].mxu1 }
 0x3f6   : >> { %v6340_v9 = vpop.f32.mrb[37].mxu1  ;;  %v1818_v44 = vsel %vm1355_vm3, %v8290_v8, -inf }
 0x3f7   : >> { %1819 = vmax.xlane.f32.xlu0 %v1818_v44  ;;  %v8296_v45 = vpop.f32.mrb[38].mxu1 }
 0x3f8   : >> { %v6341_v19 = vpop.f32.mrb[39].mxu1  ;;  %v1821_v11 = vsel %vm1355_vm3, %v8296_v45, -inf }
 0x3f9   : >> { %v1358_v25 = vpop.xlane.xlu0 %1357  ;;  %1822 = vmax.xlane.f32.xlu1 %v1821_v11 }
 0x3fa   : >> { %v1374_v30 = vsub.f32 %v8183_v33, %v1358_v25 }
 0x3fb   : >> { %v1361_v63 = vpop.xlane.xlu1 %1360 }
 0x3fc   : >> { %v1380_v13 = vmul.f32 1.442695, %v1374_v30  ;;  %v1375_v3 = vsub.f32 %v8190_v40, %v1361_v63 }
 0x3fd   : >> { %v8302_v29 = vpop.f32.mrb[40].mxu1 }
 0x3fe   : >> { %7058 = vpow2.f32 %v1380_v13  ;;  %v1382_v46 = vmul.f32 1.442695, %v1375_v3  ;;  %v6344_v54 = vpop.f32.mrb[41].mxu1  ;;  %v1824_v57 = vsel %vm1355_vm3, %v8302_v29, -inf }
 0x3ff   : >> { %1825 = vmax.xlane.f32.xlu0 %v1824_v57  ;;  %v8306_v58 = vpop.f32.mrb[42].mxu1 }
 0x400   : >> { %7060 = vpow2.f32 %v1382_v46  ;;  %v6345_v1 = vpop.f32.mrb[43].mxu1  ;;  %v1827_v33 = vsel %vm1355_vm3, %v8306_v58, -inf }
 0x401   : >> { %v1364_v5 = vpop.xlane.xlu0 %1363  ;;  %1828 = vmax.xlane.f32.xlu1 %v1827_v33 }
 0x402   : >> { %v1376_v40 = vsub.f32 %v8196_v51, %v1364_v5 }
 0x404   : >> { %v1384_v9 = vmul.f32 1.442695, %v1376_v40 }
 0x405   : >> { %v1367_v44 = vpop.xlane.xlu0 %1366  ;;  %v8311_v19 = vpop.f32.mrb[44].mxu1 }
 0x406   : >> { %7062 = vpow2.f32 %v1384_v9  ;;  %v1377_v11 = vsub.f32 %v8203_v60, %v1367_v44  ;;  %v6348_v25 = vpop.f32.mrb[45].mxu1  ;;  %v1830_v30 = vsel %vm1355_vm3, %v8311_v19, -inf }
 0x407   : >> { %1831 = vmax.xlane.f32.xlu0 %v1830_v30  ;;  %v8316_v63 = vpop.f32.mrb[46].mxu1 }
 0x408   : >> { %v8318_v13 = vpop.eup %7058  ;;  %v1386_v3 = vmul.f32 1.442695, %v1377_v11  ;;  %v6349_v46 = vpop.f32.mrb[47].mxu1  ;;  %v1833_v51 = vsel %vm1355_vm3, %v8316_v63, -inf }
 0x409   : >> { %v1370_v54 = vpop.xlane.xlu0 %1369  ;;  %1834 = vmax.xlane.f32.xlu1 %v1833_v51  ;;  %v1392_v57 = vsel %vm1355_vm3, %v8318_v13, 0.0 }
 0x40a   : >> { %v8324_v60 = vpop.eup %7060  ;;  %7064 = vpow2.f32 %v1386_v3  ;;  %v1378_v1 = vsub.f32 %v8209_v50, %v1370_v54 }
 0x40b   : >> { %1393 = vadd.xlane.f32.xlu0 %v1392_v57  ;;  %v1373_v33 = vpop.xlane.xlu1 %1372  ;;  %v1395_v5 = vsel %vm1355_vm3, %v8324_v60, 0.0 }
 0x40c   : >> { %v1388_v40 = vmul.f32 1.442695, %v1378_v1  ;;  %v1379_v9 = vsub.f32 %v8216_v56, %v1373_v33 }
 0x40d   : >> { %v8330_v44 = vpop.f32.mrb[48].mxu1  ;;  %1396 = vadd.xlane.f32.xlu1 %v1395_v5 }
 0x40e   : >> { %7066 = vpow2.f32 %v1388_v40  ;;  %v1390_v11 = vmul.f32 1.442695, %v1379_v9  ;;  %v6376_v25 = vpop.f32.mrb[49].mxu1  ;;  %v2049_v30 = vsel %vm1355_vm3, %v8330_v44, -inf }
 0x40f   : >> { %2050 = vmax.xlane.f32.xlu0 %v2049_v30  ;;  %v8334_v3 = vpop.f32.mrb[50].mxu1 }
 0x410   : >> { %v8336_v50 = vpop.eup %7062  ;;  %7068 = vpow2.f32 %v1390_v11  ;;  %v6377_v46 = vpop.f32.mrb[51].mxu1  ;;  %v2052_v51 = vsel %vm1355_vm3, %v8334_v3, -inf }
 0x411   : >> { %2053 = vmax.xlane.f32.xlu1 %v2052_v51  ;;  %v1398_v56 = vsel %vm1355_vm3, %v8336_v50, 0.0 }
 0x413   : >> { %1399 = vadd.xlane.f32.xlu0 %v1398_v56 }
 0x414   : >> { %v8342_v54 = vpop.eup %7064 }
 0x415   : >> { %v8344_v57 = vpop.f32.mrb[52].mxu1  ;;  %v1401_v1 = vsel %vm1355_vm3, %v8342_v54, 0.0 }
 0x416   : >> { %v6380_v33 = vpop.f32.mrb[53].mxu1  ;;  %1402 = vadd.xlane.f32.xlu1 %v1401_v1  ;;  %v2055_v5 = vsel %vm1355_vm3, %v8344_v57, -inf }
 0x417   : >> { %2056 = vmax.xlane.f32.xlu0 %v2055_v5  ;;  %v8350_v40 = vpop.f32.mrb[54].mxu1 }
 0x418   : >> { %v8352_v9 = vpop.eup %7066  ;;  %v6381_v11 = vpop.f32.mrb[55].mxu1  ;;  %v2058_v25 = vsel %vm1355_vm3, %v8350_v40, -inf }
 0x419   : >> { %v1404_v30 = vsel %vm1355_vm3, %v8352_v9, 0.0 }
 0x41a   : >> { %v8358_v46 = vpop.eup %7068  ;;  %2059 = vmax.xlane.f32.xlu1 %v2058_v25 }
 0x41b   : >> { %1405 = vadd.xlane.f32.xlu0 %v1404_v30  ;;  %v1407_v56 = vsel %vm1355_vm3, %v8358_v46, 0.0 }
 0x41d   : >> { %v8360_v51 = vpop.f32.mrb[56].mxu1 }
 0x41e   : >> { %v6384_v1 = vpop.f32.mrb[57].mxu1  ;;  %1408 = vadd.xlane.f32.xlu1 %v1407_v56  ;;  %v2061_v33 = vsel %vm1355_vm3, %v8360_v51, -inf }
 0x41f   : >> { %2062 = vmax.xlane.f32.xlu0 %v2061_v33  ;;  %v8366_v5 = vpop.f32.mrb[58].mxu1 }
 0x420   : >> { %v6385_v11 = vpop.f32.mrb[59].mxu1  ;;  %v2064_v14 = vsel %vm1355_vm3, %v8366_v5, -inf }
 0x422   : >> { %2065 = vmax.xlane.f32.xlu1 %v2064_v14 }
 0x425   : >> { %v8370_v25 = vpop.f32.mrb[60].mxu1 }
 0x426   : >> { %v6412_v30 = vpop.f32.mrb[61].mxu1  ;;  %v2360_v59 = vsel %vm1355_vm3, %v8370_v25, -inf }
 0x427   : >> { %2361 = vmax.xlane.f32.xlu0 %v2360_v59  ;;  %v8374_v1 = vpop.f32.mrb[62].mxu1 }
 0x428   : >> { %v6413_v56 = vpop.f32.mrb[63].mxu1  ;;  %v2363_v33 = vsel %vm1355_vm3, %v8374_v1, -inf }
 0x429   : >> { %2364 = vmax.xlane.f32.xlu1 %v2363_v33 }
 0x42d   : >> { %v8378_v12 = vpop.f32.mrb[64].mxu1 }
 0x42e   : >> { %v6416_v11 = vpop.f32.mrb[65].mxu1  ;;  %v2366_v14 = vsel %vm1355_vm3, %v8378_v12, -inf }
 0x42f   : >> { %2367 = vmax.xlane.f32.xlu0 %v2366_v14  ;;  %v8382_v62 = vpop.f32.mrb[66].mxu1 }
 0x430   : >> { %v6417_v30 = vpop.f32.mrb[67].mxu1  ;;  %v2369_v59 = vsel %vm1355_vm3, %v8382_v62, -inf }
 0x431   : >> { %2370 = vmax.xlane.f32.xlu1 %v2369_v59 }
 0x435   : >> { %v8386_v53 = vpop.f32.mrb[68].mxu1 }
 0x436   : >> { %v6420_v56 = vpop.f32.mrb[69].mxu1  ;;  %v2372_v33 = vsel %vm1355_vm3, %v8386_v53, -inf }
 0x437   : >> { %2373 = vmax.xlane.f32.xlu0 %v2372_v33  ;;  %v8390_v38 = vpop.f32.mrb[70].mxu1 }
 0x438   : >> { %v6421_v11 = vpop.f32.mrb[71].mxu1  ;;  %v2375_v14 = vsel %vm1355_vm3, %v8390_v38, -inf }
 0x439   : >> { %2376 = vmax.xlane.f32.xlu1 %v2375_v14 }
 0x43d   : >> { %v8394_v42 = vpop.f32.mrb[72].mxu1 }
 0x43e   : >> { %v6448_v30 = vpop.f32.mrb[73].mxu1  ;;  %v2588_v59 = vsel %vm1355_vm3, %v8394_v42, -inf }
 0x43f   : >> { %2589 = vmax.xlane.f32.xlu0 %v2588_v59  ;;  %v8398_v28 = vpop.f32.mrb[74].mxu1 }
 0x440   : >> { %v6449_v56 = vpop.f32.mrb[75].mxu1  ;;  %v2591_v33 = vsel %vm1355_vm3, %v8398_v28, -inf }
 0x441   : >> { %2592 = vmax.xlane.f32.xlu1 %v2591_v33 }
 0x445   : >> { %v8402_v32 = vpop.f32.mrb[76].mxu1 }
 0x446   : >> { %v6452_v11 = vpop.f32.mrb[77].mxu1  ;;  %v2594_v14 = vsel %vm1355_vm3, %v8402_v32, -inf }
 0x447   : >> { %2595 = vmax.xlane.f32.xlu0 %v2594_v14  ;;  %v8406_v18 = vpop.f32.mrb[78].mxu1 }
 0x448   : >> { %v6453_v30 = vpop.f32.mrb[79].mxu1  ;;  %v2597_v59 = vsel %vm1355_vm3, %v8406_v18, -inf }
 0x449   : >> { %2598 = vmax.xlane.f32.xlu1 %v2597_v59 }
 0x44d   : >> { %v8410_v22 = vpop.f32.mrb[80].mxu1 }
 0x44e   : >> { %v6456_v56 = vpop.f32.mrb[81].mxu1  ;;  %v2600_v33 = vsel %vm1355_vm3, %v8410_v22, -inf }
 0x44f   : >> { %2601 = vmax.xlane.f32.xlu0 %v2600_v33  ;;  %v8414_v37 = vpop.f32.mrb[82].mxu1 }
 0x450   : >> { %v6457_v11 = vpop.f32.mrb[83].mxu1  ;;  %v2603_v14 = vsel %vm1355_vm3, %v8414_v37, -inf }
 0x451   : >> { %2604 = vmax.xlane.f32.xlu1 %v2603_v14 }
 0x455   : >> { %v8418_v41 = vpop.f32.mrb[84].mxu1 }
 0x456   : >> { %v6484_v30 = vpop.f32.mrb[85].mxu1  ;;  %v2822_v59 = vsel %vm1355_vm3, %v8418_v41, -inf }
 0x457   : >> { %v8422_v31 = vpop.f32.mrb[86].mxu1  ;;  %2823 = vmax.xlane.f32.xlu1 %v2822_v59 }
 0x458   : >> { %v6485_v56 = vpop.f32.mrb[87].mxu1  ;;  %v2825_v33 = vsel %vm1355_vm3, %v8422_v31, -inf }
 0x45b   : >> { %2826 = vmax.xlane.f32.xlu1 %v2825_v33 }
 0x45d   : >> { %v8426_v27 = vpop.f32.mrb[88].mxu1 }
 0x45e   : >> { %v6488_v11 = vpop.f32.mrb[89].mxu1  ;;  %v2828_v14 = vsel %vm1355_vm3, %v8426_v27, -inf }
 0x45f   : >> { %2829 = vmax.xlane.f32.xlu0 %v2828_v14  ;;  %v8430_v17 = vpop.f32.mrb[90].mxu1 }
 0x460   : >> { %v6489_v30 = vpop.f32.mrb[91].mxu1  ;;  %v2831_v21 = vsel %vm1355_vm3, %v8430_v17, -inf }
 0x461   : >> { %2832 = vmax.xlane.f32.xlu1 %v2831_v21 }
 0x465   : >> { %v8434_v59 = vpop.f32.mrb[92].mxu1 }
 0x466   : >> { %v6492_v56 = vpop.f32.mrb[93].mxu1  ;;  %v2834_v33 = vsel %vm1355_vm3, %v8434_v59, -inf }
 0x467   : >> { %2835 = vmax.xlane.f32.xlu0 %v2834_v33  ;;  %v8438_v6 = vpop.f32.mrb[94].mxu1 }
 0x468   : >> { %v6493_v11 = vpop.f32.mrb[95].mxu1  ;;  %v2837_v14 = vsel %vm1355_vm3, %v8438_v6, -inf }
 0x46b   : >> { %2838 = vmax.xlane.f32.xlu0 %v2837_v14 }
 0x46c   : >> { %v1586_v7 = vpop.xlane.xlu0 %1585 }
 0x46d   : >> { %v1602_v30 = vsub.f32 %v8250_v61, %v1586_v7  ;;  %v8443_v16 = vpop.f32.mrb[96].mxu1 }
 0x46e   : >> { %v6520_v21 = vpop.f32.mrb[97].mxu1  ;;  %v1589_v0 = vpop.xlane.xlu1 %1588  ;;  %v3053_v56 = vsel %vm1355_vm3, %v8443_v16, -inf }
 0x46f   : >> { %v1608_v26 = vmul.f32 1.442695, %v1602_v30  ;;  %v1603_v33 = vsub.f32 %v8256_v39, %v1589_v0  ;;  %v8448_v55 = vpop.f32.mrb[98].mxu1  ;;  %3054 = vmax.xlane.f32.xlu1 %v3053_v56 }
 0x470   : >> { %v6521_v11 = vpop.f32.mrb[99].mxu1  ;;  %v3056_v14 = vsel %vm1355_vm3, %v8448_v55, -inf }
 0x471   : >> { %7070 = vpow2.f32 %v1608_v26  ;;  %v1610_v15 = vmul.f32 1.442695, %v1603_v33 }
 0x473   : >> { %7072 = vpow2.f32 %v1610_v15  ;;  %3057 = vmax.xlane.f32.xlu1 %v3056_v14 }
 0x474   : >> { %v1592_v61 = vpop.xlane.xlu0 %1591 }
 0x475   : >> { %v1604_v7 = vsub.f32 %v8264_v49, %v1592_v61  ;;  %v8453_v21 = vpop.f32.mrb[100].mxu1 }
 0x476   : >> { %v6524_v4 = vpop.f32.mrb[101].mxu1  ;;  %v1595_v30 = vpop.xlane.xlu1 %1594  ;;  %v3059_v39 = vsel %vm1355_vm3, %v8453_v21, -inf }
 0x477   : >> { %v1612_v0 = vmul.f32 1.442695, %v1604_v7  ;;  %v1605_v56 = vsub.f32 %v8268_v10, %v1595_v30  ;;  %v8458_v26 = vpop.f32.mrb[102].mxu1  ;;  %3060 = vmax.xlane.f32.xlu1 %v3059_v39 }
 0x478   : >> { %v6525_v33 = vpop.f32.mrb[103].mxu1  ;;  %v3062_v11 = vsel %vm1355_vm3, %v8458_v26, -inf }
 0x479   : >> { %7074 = vpow2.f32 %v1612_v0  ;;  %v1614_v15 = vmul.f32 1.442695, %v1605_v56 }
 0x47b   : >> { %v8462_v49 = vpop.eup %7070  ;;  %3063 = vmax.xlane.f32.xlu1 %v3062_v11  ;;  %7076 = vpow2.f32 %v1614_v15 }
 0x47c   : >> { %v1598_v4 = vpop.xlane.xlu0 %1597  ;;  %v1620_v14 = vsel %vm1355_vm3, %v8462_v49, 0.0 }
 0x47d   : >> { %v8466_v61 = vpop.eup %7072  ;;  %v1606_v10 = vsub.f32 %v8276_v47, %v1598_v4  ;;  %1621 = vadd.xlane.f32.xlu0 %v1620_v14  ;;  %v8469_v7 = vpop.f32.mrb[104].mxu1 }
 0x47e   : >> { %v6528_v30 = vpop.f32.mrb[105].mxu1  ;;  %v1601_v39 = vpop.xlane.xlu1 %1600  ;;  %v1623_v0 = vsel %vm1355_vm3, %v8466_v61, 0.0  ;;  %v3065_v47 = vsel %vm1355_vm3, %v8469_v7, -inf }
 0x47f   : >> { %v1616_v56 = vmul.f32 1.442695, %v1606_v10  ;;  %v1607_v33 = vsub.f32 %v8282_v43, %v1601_v39  ;;  %v8474_v11 = vpop.f32.mrb[106].mxu1  ;;  %1624 = vadd.xlane.f32.xlu1 %v1623_v0 }
 0x480   : >> { %v6529_v48 = vpop.f32.mrb[107].mxu1 }
 0x481   : >> { %7078 = vpow2.f32 %v1616_v56  ;;  %v1618_v52 = vmul.f32 1.442695, %v1607_v33  ;;  %v3068_v48 = vsel %vm1355_vm3, %v8474_v11, -inf }
 0x483   : >> { %v8478_v15 = vpop.eup %7074  ;;  %7080 = vpow2.f32 %v1618_v52  ;;  %3066 = vmax.xlane.f32.xlu1 %v3065_v47 }
 0x484   : >> { %v1820_v4 = vpop.xlane.xlu0 %1819  ;;  %v1626_v14 = vsel %vm1355_vm3, %v8478_v15, 0.0 }
 0x485   : >> { %v1836_v10 = vsub.f32 %v8290_v8, %v1820_v4  ;;  %1627 = vadd.xlane.f32.xlu0 %v1626_v14  ;;  %v8485_v30 = vpop.eup %7076 }
 0x486   : >> { %v1823_v43 = vpop.xlane.xlu1 %1822  ;;  %v1629_v56 = vsel %vm1355_vm3, %v8485_v30, 0.0 }
 0x487   : >> { %v1842_v39 = vmul.f32 1.442695, %v1836_v10  ;;  %v1837_v0 = vsub.f32 %v8296_v45, %v1823_v43  ;;  %3069 = vmax.xlane.f32.xlu1 %v3068_v48 }
 0x489   : >> { %7082 = vpow2.f32 %v1842_v39  ;;  %v1844_v52 = vmul.f32 1.442695, %v1837_v0 }
 0x48b   : >> { %v8490_v33 = vpop.eup %7078  ;;  %7084 = vpow2.f32 %v1844_v52  ;;  %1630 = vadd.xlane.f32.xlu1 %v1629_v56 }
 0x48c   : >> { %10163 = vst [vmem:[#allocation27_spill] sm:$0xff] %v8490_v33  ;;  %v1826_v8 = vpop.xlane.xlu0 %1825  ;;  %v1632_v47 = vsel %vm1355_vm3, %v8490_v33, 0.0 }
 0x48d   : >> { %v8494_v4 = vpop.eup %7080  ;;  %v1838_v14 = vsub.f32 %v8302_v29, %v1826_v8  ;;  %1633 = vadd.xlane.f32.xlu0 %v1632_v47 }
 0x48e   : >> { %v1829_v45 = vpop.xlane.xlu1 %1828  ;;  %v1635_v10 = vsel %vm1355_vm3, %v8494_v4, 0.0 }
 0x48f   : >> { %v1846_v43 = vmul.f32 1.442695, %v1838_v14  ;;  %v1839_v48 = vsub.f32 %v8306_v58, %v1829_v45  ;;  %1636 = vadd.xlane.f32.xlu1 %v1635_v10 }
 0x491   : >> { %7086 = vpow2.f32 %v1846_v43  ;;  %v1848_v39 = vmul.f32 1.442695, %v1839_v48 }
 0x493   : >> { %v8500_v0 = vpop.eup %7082  ;;  %7088 = vpow2.f32 %v1848_v39 }
 0x494   : >> { %v1832_v52 = vpop.xlane.xlu0 %1831  ;;  %v1854_v56 = vsel %vm1355_vm3, %v8500_v0, 0.0 }
 0x495   : >> { %v8504_v33 = vpop.eup %7084  ;;  %v1840_v29 = vsub.f32 %v8311_v19, %v1832_v52  ;;  %1855 = vadd.xlane.f32.xlu1 %v1854_v56 }
 0x496   : >> { %v1835_v8 = vpop.xlane.xlu1 %1834  ;;  %v1857_v47 = vsel %vm1355_vm3, %v8504_v33, 0.0 }
 0x497   : >> { %v1850_v58 = vmul.f32 1.442695, %v1840_v29  ;;  %v1841_v14 = vsub.f32 %v8316_v63, %v1835_v8  ;;  %1858 = vadd.xlane.f32.xlu0 %v1857_v47 }
 0x498   : >> { %v1394_v45 = vpop.xlane.xlu0 %1393 }
 0x499   : >> { %7090 = vpow2.f32 %v1850_v58  ;;  %v1852_v10 = vmul.f32 1.442695, %v1841_v14 }
 0x49a   : >> { %7092 = vrcp.f32 %v1394_v45  ;;  %v1397_v43 = vpop.xlane.xlu1 %1396 }
 0x49b   : >> { %v8510_v48 = vpop.eup %7086  ;;  %7094 = vpow2.f32 %v1852_v10 }
 0x49c   : >> { %10164 = vst [vmem:[#allocation28_spill] sm:$0xff] %v8510_v48  ;;  %7096 = vrcp.f32 %v1397_v43  ;;  %v2051_v39 = vpop.xlane.xlu0 %2050  ;;  %v1860_v19 = vsel %vm1355_vm3, %v8510_v48, 0.0 }
 0x49d   : >> { %v8514_v52 = vpop.eup %7088  ;;  %v2067_v56 = vsub.f32 %v8330_v44, %v2051_v39  ;;  %1861 = vadd.xlane.f32.xlu1 %v1860_v19 }
 0x49e   : >> { %10165 = vst [vmem:[#allocation29_spill] sm:$0xff] %v8514_v52  ;;  %v8517_v63 = vpop.xlane.xlu1 %2053  ;;  %v1863_v47 = vsel %vm1355_vm3, %v8514_v52, 0.0 }
 0x49f   : >> { %v2073_v29 = vmul.f32 1.442695, %v2067_v56 }
 0x4a0   : >> { %v1400_v8 = vpop.xlane.xlu0 %1399 }
 0x4a1   : >> { %7098 = vpow2.f32 %v2073_v29  ;;  %1864 = vadd.xlane.f32.xlu1 %v1863_v47 }
 0x4a2   : >> { %7100 = vrcp.f32 %v1400_v8 }
 0x4a3   : >> { %v8521_v58 = vpop.eup %7090  ;;  %v1403_v14 = vpop.xlane.xlu1 %1402 }
 0x4a4   : >> { %10166 = vst [vmem:[#allocation30_spill] sm:$0xff] %v8521_v58  ;;  %v7093_v45 = vpop.eup %7092  ;;  %7102 = vrcp.f32 %v1403_v14  ;;  %v2057_v10 = vpop.xlane.xlu0 %2056  ;;  %v1866_v44 = vsel %vm1355_vm3, %v8521_v58, 0.0 }
 0x4a5   : >> { %v8525_v43 = vpop.eup %7094  ;;  %v2069_v39 = vsub.f32 %v8344_v57, %v2057_v10  ;;  %1867 = vadd.xlane.f32.xlu1 %v1866_v44  ;;  %v1416_v56 = vmul.f32 %v7093_v45, %v8318_v13  ;;  %v10167_v45 = vmov 0.0  }
 0x4a6   : >> { %v7097_v19 = vpop.eup %7096  ;;  %v1869_v14 = vsel %vm1355_vm3, %v8525_v43, 0.0 }
 0x4a7   : >> { %v1417_v29 = vmul.f32 %v7097_v19, %v8324_v60  ;;  %v2077_v8 = vmul.f32 1.442695, %v2069_v39  ;;  %v2060_v47 = vpop.xlane.xlu1 %2059 }
 0x4a8   : >> { %v1406_v48 = vpop.xlane.xlu0 %1405 }
 0x4a9   : >> { %v1422_v52 = vpack.c.bf16 %v1417_v29, %v1416_v56  ;;  %7104 = vpow2.f32 %v2077_v8  ;;  %1870 = vadd.xlane.f32.xlu1 %v1869_v14 }
 0x4aa   : >> { %7106 = vrcp.f32 %v1406_v48 }
 0x4ab   : >> { %v8532_v58 = vpop.eup %7098  ;;  %6285 = vmatmul.mubr.msk.bf16.vlgmr.msra.gmra.mrb[24].mxu0 %vm1355_vm3, %v1422_v52  ;;  %v1409_v57 = vpop.xlane.xlu1 %1408 }
 0x4ac   : >> { %v7101_v10 = vpop.eup %7100  ;;  %6315 = vmatpush3.bf16.msra.mxu0 %v8242_v20  ;;  %v2063_v13 = vpop.xlane.xlu0 %2062  ;;  %v2085_v60 = vsel %vm1355_vm3, %v8532_v58, 0.0  ;;  %6288 = vmatprep.mubr.msk.bf16.mxu0 %vm7530_vm1, %v10167_v45  ;;  %7108 = vrcp.f32 %v1409_v57 }
 0x4ad   : >> { %v2071_v44 = vsub.f32 %v8360_v51, %v2063_v13  ;;  %2893 = vrot.lane.b32.xlu0 %v8036_v35, %s7532_s24  ;;  %2086 = vadd.xlane.f32.xlu1 %v2085_v60  ;;  %v1418_v20 = vmul.f32 %v7101_v10, %v8336_v50 }
 0x4ae   : >> { %v7103_v48 = vpop.eup %7102  ;;  %6316 = vmatprep.subr.bf16.mxu0 %v10167_v45 }
 0x4af   : >> { %v2081_v52 = vmul.f32 1.442695, %v2071_v44  ;;  %v2066_v39 = vpop.xlane.xlu1 %2065  ;;  %v1419_v19 = vmul.f32 %v7103_v48, %v8342_v54  ;;  %v2070_v44 = vsub.f32 %v8350_v40, %v2060_v47 }
 0x4b0   : >> { %6317 = vmatpush3.bf16.msra.mxu0 %v8246_v24  ;;  %v2072_v56 = vsub.f32 %v8366_v5, %v2066_v39  ;;  %v2068_v5 = vsub.f32 %v8334_v3, %v8517_v63 }
 0x4b1   : >> { %7110 = vpow2.f32 %v2081_v52  ;;  %6318 = vmatprep.subr.bf16.mxu0 %v10167_v45  ;;  %v1423_v51 = vpack.c.bf16 %v1419_v19, %v1418_v20  ;;  %v2079_v40 = vmul.f32 1.442695, %v2070_v44 }
 0x4b2   : >> { %v2083_v29 = vmul.f32 1.442695, %v2072_v56  ;;  %v2075_v60 = vmul.f32 1.442695, %v2068_v5 }
 0x4b3   : >> { %v8549_v8 = vpop.eup %7104  ;;  %6289 = vmatmul.mubr.msk.bf16.gmra.mrb[28].mxu0 %vm1355_vm3, %v1423_v51 }
 0x4b4   : >> { %7112 = vpow2.f32 %v2083_v29  ;;  %6319 = vmatpush3.bf16.msra.mxu0 %v8244_v23  ;;  %v2362_v14 = vpop.xlane.xlu0 %2361  ;;  %v2091_v50 = vsel %vm1355_vm3, %v8549_v8, 0.0  ;;  %6292 = vmatprep.mubr.msk.bf16.mxu0 %vm7530_vm1, %v10167_v45  ;;  %v7107_v24 = vpop.eup %7106 }
 0x4b5   : >> { %v2378_v54 = vsub.f32 %v8370_v25, %v2362_v14  ;;  %2092 = vadd.xlane.f32.xlu1 %v2091_v50  ;;  %6350 = vmatprep.subr.bf16.mxu0 %v10167_v45  ;;  %v1420_v23 = vmul.f32 %v7107_v24, %v8352_v9 }
 0x4b6   : >> { %v7109_v57 = vpop.eup %7108  ;;  %v2365_v48 = vpop.xlane.xlu1 %2364 }
 0x4b7   : >> { %v2384_v10 = vmul.f32 1.442695, %v2378_v54  ;;  %v1421_v13 = vmul.f32 %v7109_v57, %v8358_v46  ;;  %v2379_v46 = vsub.f32 %v8374_v1, %v2365_v48 }
 0x4b9   : >> { %7114 = vpow2.f32 %v2384_v10  ;;  %v1424_v52 = vpack.c.bf16 %v1421_v13, %v1420_v23 }
 0x4ba   : >> { %7116 = vpow2.f32 %v2075_v60 }
 0x4bb   : >> { %v8564_v39 = vpop.eup %7110  ;;  %6293 = vmatmul.mubr.msk.bf16.gmra.mrb[32].mxu0 %vm1355_vm3, %v1424_v52 }
 0x4bc   : >> { %v2368_v25 = vpop.xlane.xlu0 %2367  ;;  %v2097_v3 = vsel %vm1355_vm3, %v8564_v39, 0.0  ;;  %6320 = vmatprep.mubr.msk.bf16.mxu0 %vm7530_vm1, %v10167_v45 }
 0x4bd   : >> { %v2380_v63 = vsub.f32 %v8378_v12, %v2368_v25  ;;  %2098 = vadd.xlane.f32.xlu1 %v2097_v3  ;;  %v2386_v12 = vmul.f32 1.442695, %v2379_v46 }
 0x4be   : >> { %v8572_v9 = vpop.eup %7112  ;;  %v2371_v47 = vpop.xlane.xlu1 %2370 }
 0x4bf   : >> { %v2388_v20 = vmul.f32 1.442695, %v2380_v63  ;;  %v2381_v19 = vsub.f32 %v8382_v62, %v2371_v47  ;;  %v2100_v56 = vsel %vm1355_vm3, %v8572_v9, 0.0 }
 0x4c1   : >> { %7118 = vpow2.f32 %v2388_v20  ;;  %v2390_v51 = vmul.f32 1.442695, %v2381_v19  ;;  %2101 = vadd.xlane.f32.xlu1 %v2100_v56 }
 0x4c2   : >> { %7120 = vpow2.f32 %v2079_v40 }
 0x4c3   : >> { %v8578_v29 = vpop.eup %7114  ;;  %7122 = vpow2.f32 %v2390_v51 }
 0x4c4   : >> { %v2374_v14 = vpop.xlane.xlu0 %2373  ;;  %v2396_v50 = vsel %vm1355_vm3, %v8578_v29, 0.0  ;;  %7124 = vpow2.f32 %v2386_v12  ;;  %v8584_v5 = vpop.eup %7116 }
 0x4c5   : >> { %v2382_v1 = vsub.f32 %v8386_v53, %v2374_v14  ;;  %2397 = vadd.xlane.f32.xlu1 %v2396_v50  ;;  %v2088_v23 = vsel %vm1355_vm3, %v8584_v5, 0.0 }
 0x4c6   : >> { %v2377_v62 = vpop.xlane.xlu1 %2376 }
 0x4c7   : >> { %v2392_v24 = vmul.f32 1.442695, %v2382_v1  ;;  %v2383_v54 = vsub.f32 %v8390_v38, %v2377_v62 }
 0x4c9   : >> { %7126 = vpow2.f32 %v2392_v24  ;;  %v2394_v57 = vmul.f32 1.442695, %v2383_v54 }
 0x4cb   : >> { %v8586_v10 = vpop.eup %7118  ;;  %7128 = vpow2.f32 %v2394_v57 }
 0x4cc   : >> { %v8590_v13 = vpop.eup %7120  ;;  %v2590_v60 = vpop.xlane.xlu0 %2589  ;;  %2089 = vadd.xlane.f32.xlu0 %v2088_v23  ;;  %v2402_v53 = vsel %vm1355_vm3, %v8586_v10, 0.0 }
 0x4cd   : >> { %v8594_v44 = vpop.eup %7122  ;;  %v2606_v38 = vsub.f32 %v8394_v42, %v2590_v60  ;;  %2403 = vadd.xlane.f32.xlu1 %v2402_v53  ;;  %v2094_v3 = vsel %vm1355_vm3, %v8590_v13, 0.0 }
 0x4ce   : >> { %v2593_v48 = vpop.xlane.xlu1 %2592  ;;  %v8600_v63 = vpop.eup %7124  ;;  %v2405_v40 = vsel %vm1355_vm3, %v8594_v44, 0.0 }
 0x4cf   : >> { %v2612_v52 = vmul.f32 1.442695, %v2606_v38  ;;  %v2607_v25 = vsub.f32 %v8398_v28, %v2593_v48  ;;  %v2399_v42 = vsel %vm1355_vm3, %v8600_v63, 0.0 }
 0x4d0   : >> { %2095 = vadd.xlane.f32.xlu0 %v2094_v3 }
 0x4d1   : >> { %7130 = vpow2.f32 %v2612_v52  ;;  %v2614_v46 = vmul.f32 1.442695, %v2607_v25  ;;  %2406 = vadd.xlane.f32.xlu1 %v2405_v40 }
 0x4d3   : >> { %v8604_v47 = vpop.eup %7126  ;;  %7132 = vpow2.f32 %v2614_v46 }
 0x4d4   : >> { %v2596_v20 = vpop.xlane.xlu0 %2595  ;;  %2400 = vadd.xlane.f32.xlu0 %v2399_v42  ;;  %v2408_v28 = vsel %vm1355_vm3, %v8604_v47, 0.0 }
 0x4d5   : >> { %v8610_v19 = vpop.eup %7128  ;;  %v2608_v56 = vsub.f32 %v8402_v32, %v2596_v20  ;;  %2409 = vadd.xlane.f32.xlu1 %v2408_v28 }
 0x4d6   : >> { %v2599_v51 = vpop.xlane.xlu1 %2598  ;;  %v2411_v50 = vsel %vm1355_vm3, %v8610_v19, 0.0 }
 0x4d7   : >> { %v2616_v12 = vmul.f32 1.442695, %v2608_v56  ;;  %v2609_v14 = vsub.f32 %v8406_v18, %v2599_v51 }
 0x4d9   : >> { %7134 = vpow2.f32 %v2616_v12  ;;  %v2618_v1 = vmul.f32 1.442695, %v2609_v14  ;;  %2412 = vadd.xlane.f32.xlu1 %v2411_v50 }
 0x4db   : >> { %v8616_v62 = vpop.eup %7130  ;;  %7136 = vpow2.f32 %v2618_v1 }
 0x4dc   : >> { %v2602_v24 = vpop.xlane.xlu0 %2601  ;;  %v2624_v54 = vsel %vm1355_vm3, %v8616_v62, 0.0 }
 0x4dd   : >> { %v8620_v57 = vpop.eup %7132  ;;  %v2610_v32 = vsub.f32 %v8410_v22, %v2602_v24  ;;  %2625 = vadd.xlane.f32.xlu1 %v2624_v54 }
 0x4de   : >> { %v2605_v23 = vpop.xlane.xlu1 %2604  ;;  %v2627_v18 = vsel %vm1355_vm3, %v8620_v57, 0.0 }
 0x4df   : >> { %v2620_v60 = vmul.f32 1.442695, %v2610_v32  ;;  %v2611_v53 = vsub.f32 %v8414_v37, %v2605_v23  ;;  %2628 = vadd.xlane.f32.xlu0 %v2627_v18 }
 0x4e1   : >> { %7138 = vpow2.f32 %v2620_v60  ;;  %v2622_v38 = vmul.f32 1.442695, %v2611_v53 }
 0x4e3   : >> { %v8626_v48 = vpop.eup %7134  ;;  %7140 = vpow2.f32 %v2622_v38 }
 0x4e4   : >> { %v2630_v52 = vsel %vm1355_vm3, %v8626_v48, 0.0  ;;  %v2824_v46 = vpop.xlane.xlu1 %2823 }
 0x4e5   : >> { %v8630_v25 = vpop.eup %7136  ;;  %2631 = vadd.xlane.f32.xlu1 %v2630_v52 }
 0x4e6   : >> { %v2633_v22 = vsel %vm1355_vm3, %v8630_v25, 0.0 }
 0x4e8   : >> { %v2827_v20 = vpop.xlane.xlu1 %2826 }
 0x4e9   : >> { %2634 = vadd.xlane.f32.xlu1 %v2633_v22  ;;  %v2841_v12 = vsub.f32 %v8422_v31, %v2827_v20 }
 0x4eb   : >> { %v8634_v3 = vpop.eup %7138  ;;  %v2848_v1 = vmul.f32 1.442695, %v2841_v12 }
 0x4ec   : >> { %v2636_v37 = vsel %vm1355_vm3, %v8634_v3, 0.0  ;;  %v2830_v56 = vpop.xlane.xlu0 %2829 }
 0x4ed   : >> { %v8638_v40 = vpop.eup %7140  ;;  %2637 = vadd.xlane.f32.xlu1 %v2636_v37  ;;  %v2842_v24 = vsub.f32 %v8426_v27, %v2830_v56  ;;  %7142 = vpow2.f32 %v2848_v1  ;;  %v2840_v37 = vsub.f32 %v8418_v41, %v2824_v46 }
 0x4ee   : >> { %v2639_v42 = vsel %vm1355_vm3, %v8638_v40, 0.0  ;;  %v2833_v28 = vpop.xlane.xlu1 %2832 }
 0x4ef   : >> { %v2850_v23 = vmul.f32 1.442695, %v2842_v24  ;;  %v2846_v12 = vmul.f32 1.442695, %v2840_v37  ;;  %v2843_v1 = vsub.f32 %v8430_v17, %v2833_v28 }
 0x4f1   : >> { %2640 = vadd.xlane.f32.xlu1 %v2639_v42  ;;  %7144 = vpow2.f32 %v2850_v23 }
 0x4f4   : >> { %v2836_v14 = vpop.xlane.xlu0 %2835 }
 0x4f5   : >> { %3122 = vrot.lane.b32.xlu0 %v7984_v2, %s7533_s25  ;;  %v2844_v32 = vsub.f32 %v8434_v59, %v2836_v14 }
 0x4f7   : >> { %v2854_v53 = vmul.f32 1.442695, %v2844_v32  ;;  %v8654_v42 = vpop.eup %7142 }
 0x4f8   : >> { %v2839_v18 = vpop.xlane.xlu0 %2838 }
 0x4f9   : >> { %v2845_v31 = vsub.f32 %v8438_v6, %v2839_v18  ;;  %v2861_v6 = vsel %vm1355_vm3, %v8654_v42, 0.0 }
 0x4fb   : >> { %v2856_v27 = vmul.f32 1.442695, %v2845_v31  ;;  %v8659_v14 = vpop.eup %7144 }
 0x4fc   : >> { %v3055_v51 = vpop.xlane.xlu1 %3054  ;;  %v2864_v23 = vsel %vm1355_vm3, %v8659_v14, 0.0 }
 0x4fd   : >> { %v3071_v22 = vsub.f32 %v8443_v16, %v3055_v51 }
 0x4ff   : >> { %v3077_v56 = vmul.f32 1.442695, %v3071_v22 }
 0x500   : >> { %v3058_v50 = vpop.xlane.xlu1 %3057 }
 0x502   : >> { %2895 = vrot.lane.b32.xlu1 %v8032_v36, %s7532_s24 }
 0x504   : >> { %v8648_v54 = vpop.xlane.xlu1 %3060 }
 0x508   : >> { %v3064_v60 = vpop.xlane.xlu1 %3063 }
 0x509   : >> { %v3074_v20 = vsub.f32 %v8458_v26, %v3064_v60  ;;  %v3072_v26 = vsub.f32 %v8448_v55, %v3058_v50  ;;  %v2852_v60 = vmul.f32 1.442695, %v2843_v1 }
 0x50a   : >> { %v1622_v38 = vpop.xlane.xlu0 %1621 }
 0x50b   : >> { %7146 = vrcp.f32 %v1622_v38  ;;  %v3083_v51 = vmul.f32 1.442695, %v3074_v20  ;;  %v3079_v38 = vmul.f32 1.442695, %v3072_v26 }
 0x50c   : >> { %v1625_v52 = vpop.xlane.xlu1 %1624  ;;  %7148 = vpow2.f32 %v2854_v53 }
 0x50d   : >> { %7150 = vrcp.f32 %v1625_v52 }
 0x50e   : >> { %7152 = vpow2.f32 %v2856_v27  ;;  %v3073_v27 = vsub.f32 %v8453_v21, %v8648_v54 }
 0x50f   : >> { %7154 = vpow2.f32 %v3077_v56 }
 0x510   : >> { %v3067_v59 = vpop.xlane.xlu1 %3066  ;;  %7156 = vpow2.f32 %v2846_v12  ;;  %v3081_v54 = vmul.f32 1.442695, %v3073_v27 }
 0x511   : >> { %v3075_v41 = vsub.f32 %v8469_v7, %v3067_v59 }
 0x512   : >> { %v1628_v46 = vpop.xlane.xlu0 %1627 }
 0x513   : >> { %7158 = vrcp.f32 %v1628_v46  ;;  %v3085_v53 = vmul.f32 1.442695, %v3075_v41 }
 0x514   : >> { %2862 = vadd.xlane.f32.xlu0 %v2861_v6  ;;  %v3070_v16 = vpop.xlane.xlu1 %3069  ;;  %7160 = vpow2.f32 %v3083_v51 }
 0x515   : >> { %v7147_v24 = vpop.eup %7146  ;;  %v3076_v31 = vsub.f32 %v8474_v11, %v3070_v16 }
 0x516   : >> { %v8663_v32 = vpop.eup %7148  ;;  %v1644_v28 = vmul.f32 %v7147_v24, %v8462_v49  ;;  %v10169_v24 = vld [vmem:[#allocation18_spill] sm:$0xff] }
 0x517   : >> { %v7151_v18 = vpop.eup %7150  ;;  %v2870_v55 = vsel %vm1355_vm3, %v8663_v32, 0.0 }
 0x518   : >> { %2865 = vadd.xlane.f32.xlu0 %v2864_v23  ;;  %v1631_v17 = vpop.xlane.xlu1 %1630  ;;  %v1645_v7 = vmul.f32 %v7151_v18, %v8466_v61  ;;  %v8673_v50 = vpop.eup %7152  ;;  %v3087_v61 = vmul.f32 1.442695, %v3076_v31 }
 0x519   : >> { %7162 = vrcp.f32 %v1631_v17  ;;  %v2873_v11 = vsel %vm1355_vm3, %v8673_v50, 0.0  ;;  %v8684_v21 = vpop.eup %7154 }
 0x51a   : >> { %v1650_v52 = vpack.c.bf16 %v1645_v7, %v1644_v28  ;;  %7164 = vpow2.f32 %v2852_v60  ;;  %v1634_v49 = vpop.xlane.xlu0 %1633  ;;  %v8686_v37 = vpop.eup %7156  ;;  %v3089_v56 = vsel %vm1355_vm3, %v8684_v21, 0.0 }
 0x51b   : >> { %7166 = vpow2.f32 %v3085_v53  ;;  %v2858_v16 = vsel %vm1355_vm3, %v8686_v37, 0.0 }
 0x51c   : >> { %2871 = vadd.xlane.f32.xlu0 %v2870_v55  ;;  %v1637_v22 = vpop.xlane.xlu1 %1636  ;;  %6321 = vmatmul.mubr.msk.bf16.vlgmr.msra.gmra.mrb[36].mxu0 %vm1355_vm3, %v1650_v52  ;;  %v10170_v52 = vld [vmem:[#allocation27_spill] sm:$0xff] }
 0x51d   : >> { %6351 = vmatpush3.bf16.msra.mxu0 %v8254_v34  ;;  %7168 = vrcp.f32 %v1637_v22  ;;  %6324 = vmatprep.mubr.msk.bf16.mxu0 %vm7530_vm1, %v10167_v45  ;;  %v7159_v59 = vpop.eup %7158  ;;  %v10168_v34 = vld [vmem:[#allocation20_spill] sm:$0xff] }
 0x51e   : >> { %7170 = vpow2.f32 %v3079_v38  ;;  %6352 = vmatprep.subr.bf16.mxu0 %v10167_v45  ;;  %v8689_v20 = vpop.eup %7160  ;;  %v1646_v51 = vmul.f32 %v7159_v59, %v8478_v15 }
 0x51f   : >> { %7172 = vrcp.f32 %v1634_v49  ;;  %v3098_v23 = vsel %vm1355_vm3, %v8689_v20, 0.0 }
 0x520   : >> { %2874 = vadd.xlane.f32.xlu0 %v2873_v11  ;;  %7174 = vpow2.f32 %v3087_v61 }
 0x521   : >> { %6353 = vmatpush3.bf16.msra.mxu0 %v10168_v34  ;;  %7176 = vpow2.f32 %v3081_v54 }
 0x522   : >> { %6354 = vmatprep.subr.bf16.mxu0 %v10167_v45  ;;  %v1856_v1 = vpop.xlane.xlu1 %1855 }
 0x523   : >> { %v7163_v12 = vpop.eup %7162 }
 0x524   : >> { %v1859_v6 = vpop.xlane.xlu0 %1858  ;;  %3090 = vadd.xlane.f32.xlu0 %v3089_v56  ;;  %v1647_v41 = vmul.f32 %v7163_v12, %v8485_v30  ;;  %v8698_v46 = vpop.eup %7164 }
 0x525   : >> { %7178 = vrcp.f32 %v1859_v6  ;;  %6355 = vmatpush3.bf16.msra.mxu0 %v10169_v24  ;;  %v8701_v26 = vpop.eup %7166  ;;  %v2867_v30 = vsel %vm1355_vm3, %v8698_v46, 0.0 }
 0x526   : >> { %2859 = vadd.xlane.f32.xlu1 %v2858_v16  ;;  %v1651_v18 = vpack.c.bf16 %v1647_v41, %v1646_v51  ;;  %6386 = vmatprep.subr.bf16.mxu0 %v10167_v45  ;;  %7180 = vrcp.f32 %v1856_v1  ;;  %v3101_v7 = vsel %vm1355_vm3, %v8701_v26, 0.0  ;;  %v10171_v51 = vld [vmem:[#allocation22_spill] sm:$0xff]  ;;  %v10172_v41 = vld [vmem:[#allocation29_spill] sm:$0xff] }
 0x527   : >> { %v7169_v60 = vpop.eup %7168 }
 0x528   : >> { %3099 = vadd.xlane.f32.xlu0 %v3098_v23  ;;  %v8706_v15 = vpop.eup %7170  ;;  %6325 = vmatmul.mubr.msk.bf16.gmra.mrb[40].mxu0 %vm1355_vm3, %v1651_v18  ;;  %v1649_v53 = vmul.f32 %v7169_v60, %v8494_v4 }
 0x529   : >> { %v7173_v17 = vpop.eup %7172  ;;  %6328 = vmatprep.mubr.msk.bf16.mxu0 %vm7530_vm1, %v10167_v45  ;;  %v3092_v38 = vsel %vm1355_vm3, %v8706_v15, 0.0 }
 0x52a   : >> { %2868 = vadd.xlane.f32.xlu1 %v2867_v30  ;;  %v1862_v28 = vpop.xlane.xlu1 %1861  ;;  %v8716_v31 = vpop.eup %7174  ;;  %v1648_v55 = vmul.f32 %v7173_v17, %v10170_v52  ;;  %v10175_v17 = vld [vmem:[#allocation21_spill] sm:$0xff] }
 0x52b   : >> { %v8721_v27 = vpop.eup %7176  ;;  %v3104_v49 = vsel %vm1355_vm3, %v8716_v31, 0.0 }
 0x52c   : >> { %3102 = vadd.xlane.f32.xlu0 %v3101_v7  ;;  %v1652_v61 = vpack.c.bf16 %v1649_v53, %v1648_v55  ;;  %v3095_v4 = vsel %vm1355_vm3, %v8721_v27, 0.0  ;;  %v10176_v7 = vld [vmem:[#allocation30_spill] sm:$0xff] }
 0x52e   : >> { %3093 = vadd.xlane.f32.xlu1 %v3092_v38  ;;  %v1865_v22 = vpop.xlane.xlu1 %1864 }
 0x52f   : >> { %7182 = vrcp.f32 %v1865_v22  ;;  %v7179_v11 = vpop.eup %7178  ;;  %v8755_v22 = vpop.permute.xlu0 %2893 }
 0x530   : >> { %7184 = vrcp.f32 %v1862_v28  ;;  %3105 = vadd.xlane.f32.xlu0 %v3104_v49  ;;  %6329 = vmatmul.mubr.msk.bf16.gmra.mrb[44].mxu0 %vm1355_vm3, %v1652_v61  ;;  %v7181_v54 = vpop.eup %7180  ;;  %v1879_v34 = vmul.f32 %v7179_v11, %v8504_v33  ;;  %v10173_v33 = vld [vmem:[#allocation28_spill] sm:$0xff] }
 0x531   : >> { %6356 = vmatprep.mubr.msk.bf16.mxu0 %vm7530_vm1, %v10167_v45  ;;  %v1878_v56 = vmul.f32 %v7181_v54, %v8500_v0  ;;  %v10174_v0 = vld [vmem:[#allocation19_spill] sm:$0xff] }
 0x532   : >> { %3096 = vadd.xlane.f32.xlu1 %v3095_v4  ;;  %v1868_v59 = vpop.xlane.xlu1 %1867 }
 0x533   : >> { %v1884_v6 = vpack.c.bf16 %v1879_v34, %v1878_v56 }
 0x536   : >> { %v1871_v12 = vpop.xlane.xlu1 %1870 }
 0x537   : >> { %7186 = vrcp.f32 %v1871_v12 }
 0x538   : >> { %7188 = vrcp.f32 %v1868_v59  ;;  %6357 = vmatmul.mubr.msk.bf16.vlgmr.msra.gmra.mrb[48].mxu0 %vm1355_vm3, %v1884_v6 }
 0x539   : >> { %v7183_v1 = vpop.eup %7182  ;;  %6387 = vmatpush3.bf16.msra.mxu0 %v10171_v51  ;;  %6360 = vmatprep.mubr.msk.bf16.mxu0 %vm7530_vm1, %v10167_v45 }
 0x53a   : >> { %v7185_v16 = vpop.eup %7184  ;;  %6388 = vmatprep.subr.bf16.mxu0 %v10167_v45  ;;  %v1881_v24 = vmul.f32 %v7183_v1, %v10172_v41  ;;  %v2087_v52 = vpop.xlane.xlu1 %2086 }
 0x53b   : >> { %v1880_v23 = vmul.f32 %v7185_v16, %v10173_v33  ;;  %7190 = vrcp.f32 %v2087_v52 }
 0x53d   : >> { %6389 = vmatpush3.bf16.msra.mxu0 %v10174_v0  ;;  %v1885_v18 = vpack.c.bf16 %v1881_v24, %v1880_v23 }
 0x53e   : >> { %6390 = vmatprep.subr.bf16.mxu0 %v10167_v45 }
 0x540   : >> { %6361 = vmatmul.mubr.msk.bf16.gmra.mrb[52].mxu0 %vm1355_vm3, %v1885_v18 }
 0x541   : >> { %v7187_v60 = vpop.eup %7186  ;;  %6391 = vmatpush3.bf16.msra.mxu0 %v10175_v17  ;;  %6364 = vmatprep.mubr.msk.bf16.mxu0 %vm7530_vm1, %v10167_v45 }
 0x542   : >> { %v7189_v30 = vpop.eup %7188  ;;  %v1883_v28 = vmul.f32 %v7187_v60, %v8525_v43  ;;  %6422 = vmatprep.subr.bf16.mxu0 %v10167_v45  ;;  %v2093_v55 = vpop.xlane.xlu1 %2092 }
 0x543   : >> { %3124 = vrot.lane.b32.xlu1 %v8036_v35, %s7533_s25  ;;  %v1882_v53 = vmul.f32 %v7189_v30, %v10176_v7 }
 0x545   : >> { %v1886_v38 = vpack.c.bf16 %v1883_v28, %v1882_v53  ;;  %v7191_v54 = vpop.eup %7190 }
 0x546   : >> { %3126 = vrot.lane.b32.xlu0 %v8032_v36, %s7533_s25  ;;  %v2109_v34 = vmul.f32 %v7191_v54, %v8532_v58 }
 0x548   : >> { %6365 = vmatmul.mubr.msk.bf16.gmra.mrb[56].mxu0 %vm1355_vm3, %v1886_v38 }
 0x549   : >> { %6392 = vmatprep.mubr.msk.bf16.mxu0 %vm7530_vm1, %v10167_v45 }
 0x54a   : >> { %v2099_v49 = vpop.xlane.xlu1 %2098 }
 0x54e   : >> { %v2102_v61 = vpop.xlane.xlu1 %2101 }
 0x552   : >> { %v2398_v4 = vpop.xlane.xlu1 %2397 }
 0x559   : >> { %v2090_v43 = vpop.xlane.xlu0 %2089 }
 0x55a   : >> { %7192 = vrcp.f32 %v2090_v43  ;;  %v2404_v12 = vpop.xlane.xlu1 %2403 }
 0x55d   : >> { %v2096_v11 = vpop.xlane.xlu0 %2095 }
 0x55e   : >> { %7194 = vrcp.f32 %v2096_v11  ;;  %v2407_v51 = vpop.xlane.xlu1 %2406 }
 0x55f   : >> { %7196 = vrcp.f32 %v2093_v55 }
 0x560   : >> { %7198 = vrcp.f32 %v2102_v61  ;;  %v10178_v61 = vld [vmem:[#allocation23_spill] sm:$0xff] }
 0x561   : >> { %7200 = vrcp.f32 %v2099_v49  ;;  %v2401_v41 = vpop.xlane.xlu0 %2400  ;;  %v10177_v49 = vld [vmem:[#allocation24_spill] sm:$0xff] }
 0x562   : >> { %7202 = vrcp.f32 %v2401_v41 }
 0x563   : >> { %7204 = vrcp.f32 %v2398_v4 }
 0x564   : >> { %v7193_v59 = vpop.eup %7192  ;;  %7206 = vrcp.f32 %v2407_v51 }
 0x565   : >> { %v2110_v56 = vmul.f32 %v7193_v59, %v8584_v5  ;;  %7208 = vrcp.f32 %v2404_v12 }
 0x567   : >> { %v2115_v6 = vpack.c.bf16 %v2110_v56, %v2109_v34 }
 0x568   : >> { %v7195_v1 = vpop.eup %7194 }
 0x569   : >> { %6393 = vmatmul.mubr.msk.bf16.vlgmr.msra.gmra.mrb[60].mxu0 %vm1355_vm3, %v2115_v6  ;;  %v7197_v16 = vpop.eup %7196  ;;  %v2112_v58 = vmul.f32 %v7195_v1, %v8590_v13  ;;  %v10179_v6 = vld [vmem:[#allocation26_spill] sm:$0xff] }
 0x56a   : >> { %6423 = vmatpush3.bf16.msra.mxu0 %v7984_v2  ;;  %6396 = vmatprep.mubr.msk.bf16.mxu0 %vm7530_vm1, %v10167_v45  ;;  %v2111_v5 = vmul.f32 %v7197_v16, %v8549_v8  ;;  %v7199_v33 = vpop.eup %7198  ;;  %v2410_v2 = vpop.xlane.xlu1 %2409 }
 0x56b   : >> { %6424 = vmatprep.subr.bf16.mxu0 %v10167_v45  ;;  %v7201_v23 = vpop.eup %7200  ;;  %v2114_v13 = vmul.f32 %v7199_v33, %v8572_v9 }
 0x56c   : >> { %v2116_v24 = vpack.c.bf16 %v2112_v58, %v2111_v5  ;;  %v7203_v18 = vpop.eup %7202 }
 0x56d   : >> { %v7205_v60 = vpop.eup %7204 }
 0x56e   : >> { %6425 = vmatpush3.bf16.msra.mxu0 %v8036_v35  ;;  %v2113_v35 = vmul.f32 %v7201_v23, %v8564_v39  ;;  %v2413_v8 = vpop.xlane.xlu1 %2412  ;;  %v2420_v30 = vmul.f32 %v7205_v60, %v8578_v29  ;;  %v7207_v7 = vpop.eup %7206 }
 0x56f   : >> { %6426 = vmatprep.subr.bf16.mxu0 %v10167_v45  ;;  %7210 = vrcp.f32 %v2413_v8  ;;  %v7209_v55 = vpop.eup %7208  ;;  %v2629_v29 = vpop.xlane.xlu0 %2628 }
 0x570   : >> { %v2117_v0 = vpack.c.bf16 %v2114_v13, %v2113_v35  ;;  %7212 = vrcp.f32 %v2410_v2  ;;  %v2422_v43 = vmul.f32 %v7209_v55, %v8586_v10 }
 0x571   : >> { %6397 = vmatmul.mubr.msk.bf16.gmra.mrb[64].mxu0 %vm1355_vm3, %v2116_v24  ;;  %7214 = vrcp.f32 %v2629_v29 }
 0x572   : >> { %6427 = vmatpush3.bf16.msra.mxu0 %v8032_v36  ;;  %6400 = vmatprep.mubr.msk.bf16.mxu0 %vm7530_vm1, %v10167_v45  ;;  %v2421_v36 = vmul.f32 %v7203_v18, %v8600_v63  ;;  %v2626_v9 = vpop.xlane.xlu1 %2625  ;;  %v2423_v63 = vmul.f32 %v7207_v7, %v8594_v44 }
 0x573   : >> { %6458 = vmatprep.subr.bf16.mxu0 %v10167_v45  ;;  %7216 = vrcp.f32 %v2626_v9 }
 0x574   : >> { %v2426_v39 = vpack.c.bf16 %v2421_v36, %v2420_v30  ;;  %v2427_v59 = vpack.c.bf16 %v2423_v63, %v2422_v43 }
 0x576   : >> { %v2632_v38 = vpop.xlane.xlu1 %2631 }
 0x579   : >> { %6401 = vmatmul.mubr.msk.bf16.gmra.mrb[68].mxu0 %vm1355_vm3, %v2117_v0  ;;  %v7211_v34 = vpop.eup %7210  ;;  %v10180_v0 = vld [vmem:[#allocation25_spill] sm:$0xff] }
 0x57a   : >> { %6428 = vmatprep.mubr.msk.bf16.mxu0 %vm7530_vm1, %v10167_v45  ;;  %v2635_v4 = vpop.xlane.xlu1 %2634  ;;  %v7213_v44 = vpop.eup %7212  ;;  %v2425_v10 = vmul.f32 %v7211_v34, %v8610_v19 }
 0x57b   : >> { %v2424_v16 = vmul.f32 %v7213_v44, %v8604_v47  ;;  %7218 = vrcp.f32 %v2635_v4  ;;  %v7215_v58 = vpop.eup %7214 }
 0x57c   : >> { %7220 = vrcp.f32 %v2632_v38  ;;  %v2649_v19 = vmul.f32 %v7215_v58, %v8620_v57  ;;  %v3123_v57 = vpop.permute.xlu0 %3122 }
 0x57d   : >> { %v2428_v41 = vpack.c.bf16 %v2425_v10, %v2424_v16  ;;  %v7217_v33 = vpop.eup %7216 }
 0x57e   : >> { %v8780_v17 = vpop.f32.mrb[24].mxu0  ;;  %v2638_v1 = vpop.xlane.xlu1 %2637  ;;  %v2648_v47 = vmul.f32 %v7217_v33, %v8616_v62 }
 0x57f   : >> { %v6286_v28 = vpop.f32.mrb[25].mxu0 }
 0x580   : >> { %v8782_v53 = vpop.f32.mrb[26].mxu0  ;;  %v2654_v13 = vpack.c.bf16 %v2649_v19, %v2648_v47 }
 0x581   : >> { %v6287_v52 = vpop.f32.mrb[27].mxu0  ;;  %6429 = vmatmul.mubr.msk.bf16.vlgmr.msra.gmra.mrb[72].mxu0 %vm1355_vm3, %v2426_v39 }
 0x582   : >> { %6459 = vmatpush3.bf16.msra.mxu0 %v10177_v49  ;;  %6432 = vmatprep.mubr.msk.bf16.mxu0 %vm7530_vm1, %v10167_v45  ;;  %v2641_v23 = vpop.xlane.xlu1 %2640 }
 0x583   : >> { %6460 = vmatprep.subr.bf16.mxu0 %v10167_v45  ;;  %7222 = vrcp.f32 %v2641_v23 }
 0x584   : >> { %7224 = vrcp.f32 %v2638_v1 }
 0x585   : >> { %v7219_v35 = vpop.eup %7218 }
 0x586   : >> { %6461 = vmatpush3.bf16.msra.mxu0 %v10178_v61  ;;  %v8792_v11 = vpop.f32.mrb[28].mxu0  ;;  %v7221_v8 = vpop.eup %7220  ;;  %v2651_v18 = vmul.f32 %v7219_v35, %v8630_v25 }
 0x587   : >> { %v6290_v54 = vpop.f32.mrb[29].mxu0  ;;  %6462 = vmatprep.subr.bf16.mxu0 %v10167_v45  ;;  %v2650_v60 = vmul.f32 %v7221_v8, %v8626_v48  ;;  %v2896_v30 = vpop.permute.xlu1 %2895 }
 0x588   : >> { %v8795_v56 = vpop.f32.mrb[30].mxu0 }
 0x589   : >> { %v6291_v12 = vpop.f32.mrb[31].mxu0  ;;  %6433 = vmatmul.mubr.msk.bf16.gmra.mrb[76].mxu0 %vm1355_vm3, %v2427_v59  ;;  %v2655_v62 = vpack.c.bf16 %v2651_v18, %v2650_v60 }
 0x58a   : >> { %6463 = vmatpush3.bf16.msra.mxu0 %v10179_v6  ;;  %6436 = vmatprep.mubr.msk.bf16.mxu0 %vm7530_vm1, %v10167_v45 }
 0x58b   : >> { %6494 = vmatprep.subr.bf16.mxu0 %v10167_v45 }
 0x58d   : >> { %v7223_v36 = vpop.eup %7222 }
 0x58e   : >> { %v8804_v51 = vpop.f32.mrb[32].mxu0  ;;  %v7225_v39 = vpop.eup %7224  ;;  %v2653_v25 = vmul.f32 %v7223_v36, %v8638_v40 }
 0x58f   : >> { %v6294_v5 = vpop.f32.mrb[33].mxu0 }
 0x590   : >> { %v8806_v24 = vpop.f32.mrb[34].mxu0 }
 0x591   : >> { %6437 = vmatmul.mubr.msk.bf16.gmra.mrb[80].mxu0 %vm1355_vm3, %v2428_v41  ;;  %v6295_v2 = vpop.f32.mrb[35].mxu0 }
 0x592   : >> { %6464 = vmatprep.mubr.msk.bf16.mxu0 %vm7530_vm1, %v10167_v45 }
 0x599   : >> { %6465 = vmatmul.mubr.msk.bf16.vlgmr.msra.gmra.mrb[84].mxu0 %vm1355_vm3, %v2654_v13 }
 0x59a   : >> { %6495 = vmatpush3.bf16.msra.mxu0 %v10180_v0  ;;  %6468 = vmatprep.mubr.msk.bf16.mxu0 %vm7530_vm1, %v10167_v45 }
 0x59b   : >> { %6496 = vmatprep.subr.bf16.mxu0 %v10167_v45 }
 0x59e   : >> { %6497 = vmatpush3.bf16.msra.mxu0 %v8755_v22  ;;  %v2652_v22 = vmul.f32 %v7225_v39, %v8634_v3 }
 0x59f   : >> { %6498 = vmatprep.subr.bf16.mxu0 %v10167_v45 }
 0x5a0   : >> { %v2656_v28 = vpack.c.bf16 %v2653_v25, %v2652_v22 }
 0x5a1   : >> { %v2863_v9 = vpop.xlane.xlu0 %2862  ;;  %6469 = vmatmul.mubr.msk.bf16.gmra.mrb[88].mxu0 %vm1355_vm3, %v2655_v62 }
 0x5a2   : >> { %6499 = vmatpush3.bf16.msra.mxu0 %v2896_v30  ;;  %6472 = vmatprep.mubr.msk.bf16.mxu0 %vm7530_vm1, %v10167_v45  ;;  %7226 = vrcp.f32 %v2863_v9 }
 0x5a3   : >> { %6530 = vmatprep.subr.bf16.mxu0 %v10167_v45 }
 0x5a5   : >> { %v2866_v48 = vpop.xlane.xlu0 %2865 }
 0x5a9   : >> { %v2872_v7 = vpop.xlane.xlu0 %2871  ;;  %6473 = vmatmul.mubr.msk.bf16.gmra.mrb[92].mxu0 %vm1355_vm3, %v2656_v28 }
 0x5aa   : >> { %6500 = vmatprep.mubr.msk.bf16.mxu0 %vm7530_vm1, %v10167_v45 }
 0x5ac   : >> { %v7227_v63 = vpop.eup %7226 }
 0x5ad   : >> { %v2875_v38 = vpop.xlane.xlu0 %2874  ;;  %v2883_v3 = vmul.f32 %v7227_v63, %v8654_v42 }
 0x5b1   : >> { %v3091_v52 = vpop.xlane.xlu0 %3090 }
 0x5b3   : >> { %v2860_v55 = vpop.xlane.xlu1 %2859 }
 0x5b4   : >> { %7228 = vrcp.f32 %v2860_v55 }
 0x5b5   : >> { %v3100_v40 = vpop.xlane.xlu0 %3099 }
 0x5b7   : >> { %v2869_v49 = vpop.xlane.xlu1 %2868 }
 0x5b8   : >> { %7230 = vrcp.f32 %v2869_v49 }
 0x5b9   : >> { %7232 = vrcp.f32 %v2866_v48  ;;  %v3103_v4 = vpop.xlane.xlu0 %3102 }
 0x5ba   : >> { %7234 = vrcp.f32 %v2875_v38 }
 0x5bb   : >> { %v3094_v29 = vpop.xlane.xlu1 %3093  ;;  %7236 = vrcp.f32 %v2872_v7 }
 0x5bc   : >> { %7238 = vrcp.f32 %v3094_v29 }
 0x5bd   : >> { %v3106_v44 = vpop.xlane.xlu0 %3105  ;;  %7240 = vrcp.f32 %v3091_v52 }
 0x5be   : >> { %v7229_v43 = vpop.eup %7228 }
 0x5bf   : >> { %v2882_v61 = vmul.f32 %v7229_v43, %v8686_v37  ;;  %v3097_v59 = vpop.xlane.xlu1 %3096 }
 0x5c0   : >> { %7242 = vrcp.f32 %v3097_v59 }
 0x5c1   : >> { %v2888_v54 = vpack.c.bf16 %v2883_v3, %v2882_v61  ;;  %v3127_v16 = vpop.permute.xlu0 %3126  ;;  %7244 = vrcp.f32 %v3100_v40 }
 0x5c2   : >> { %v7231_v34 = vpop.eup %7230  ;;  %7246 = vrcp.f32 %v3106_v44  ;;  %v6947_v44 = vld [vmem:[%s3295_s30 + $0x8] sm:$0xff]  }
 0x5c3   : >> { %6501 = vmatmul.mubr.msk.bf16.vlgmr.msra.gmra.mrb[96].mxu0 %vm1355_vm3, %v2888_v54  ;;  %v7233_v12 = vpop.eup %7232  ;;  %v2885_v42 = vmul.f32 %v7231_v34, %v8698_v46  ;;  %v3125_v6 = vpop.permute.xlu1 %3124  ;;  %7248 = vrcp.f32 %v3103_v4 }
 0x5c4   : >> { %6531 = vmatpush3.bf16.msra.mxu0 %v3123_v57  ;;  %6504 = vmatprep.mubr.msk.bf16.mxu0 %vm7530_vm1, %v10167_v45  ;;  %v2884_v37 = vmul.f32 %v7233_v12, %v8659_v14  ;;  %v7235_v1 = vpop.eup %7234  ;;  %v10181_v57 = vmov 0   ;;  %v6946_v12 = vld [vmem:[%s3295_s30] sm:$0xff]  }
 0x5c5   : >> { %6532 = vmatprep.subr.bf16.mxu0 %v10167_v45  ;;  %v7237_v41 = vpop.eup %7236  ;;  %v2887_v46 = vmul.f32 %v7235_v1, %v8673_v50  ;;  %6548 = vmatprep.subr.bf16.mxu1 %v6946_v12  ;;  %v6952_v1 = vld [vmem:[%s3295_s30 + $0x30] sm:$0xff]  }
 0x5c6   : >> { %v2889_v10 = vpack.c.bf16 %v2885_v42, %v2884_v37  ;;  %v2886_v58 = vmul.f32 %v7237_v41, %v8663_v32  ;;  %v7239_v5 = vpop.eup %7238  ;;  %6549 = vmatpush3.bf16.msra.mxu1 %v6946_v12  ;;  %v6948_v42 = vld [vmem:[%s3295_s30 + $0x10] sm:$0xff]   ;;  %v6950_v37 = vld [vmem:[%s3295_s30 + $0x20] sm:$0xff]  }
 0x5c7   : >> { %v7241_v33 = vpop.eup %7240  ;;  %v3114_v2 = vmul.f32 %v7239_v5, %v8706_v15  ;;  %6550 = vmatprep.subr.bf16.mxu1 %v6947_v44 }
 0x5c8   : >> { %6533 = vmatpush3.bf16.msra.mxu0 %v3125_v6  ;;  %v2890_v14 = vpack.c.bf16 %v2887_v46, %v2886_v58  ;;  %v3113_v19 = vmul.f32 %v7241_v33, %v8684_v21  ;;  %v6949_v6 = vld [vmem:[%s3295_s30 + $0x18] sm:$0xff]  }
 0x5c9   : >> { %6534 = vmatprep.subr.bf16.mxu0 %v10167_v45  ;;  %v6953_v46 = vld [vmem:[%s3295_s30 + $0x38] sm:$0xff]  }
 0x5ca   : >> { %v3119_v23 = vpack.c.bf16 %v3114_v2, %v3113_v19  ;;  %v7243_v47 = vpop.eup %7242  ;;  %6551 = vmatpush3.bf16.msra.mxu1 %v6947_v44 }
 0x5cb   : >> { %6505 = vmatmul.mubr.msk.bf16.gmra.mrb[100].mxu0 %vm1355_vm3, %v2889_v10  ;;  %v7245_v32 = vpop.eup %7244  ;;  %v3115_v50 = vmul.f32 %v7243_v47, %v8721_v27  ;;  %6552 = vmatprep.subr.bf16.mxu1 %v6948_v42  ;;  %v6951_v10 = vld [vmem:[%s3295_s30 + $0x28] sm:$0xff]  }
 0x5cc   : >> { %6535 = vmatpush3.bf16.msra.mxu0 %v3127_v16  ;;  %6508 = vmatprep.mubr.msk.bf16.mxu0 %vm7530_vm1, %v10167_v45  ;;  %v3116_v13 = vmul.f32 %v7245_v32, %v8689_v20  ;;  %v7247_v8 = vpop.eup %7246 }
 0x5cd   : >> { %v7249_v15 = vpop.eup %7248  ;;  %v3118_v21 = vmul.f32 %v7247_v8, %v8716_v31 }
 0x5ce   : >> { %v3120_v35 = vpack.c.bf16 %v3116_v13, %v3115_v50  ;;  %v3117_v0 = vmul.f32 %v7249_v15, %v8701_v26  ;;  %6553 = vmatpush3.bf16.msra.mxu1 %v6948_v42 }
 0x5cf   : >> { %6554 = vmatprep.subr.bf16.mxu1 %v6949_v6 }
 0x5d0   : >> { %v3121_v18 = vpack.c.bf16 %v3118_v21, %v3117_v0 }
 0x5d2   : >> { %6555 = vmatpush3.bf16.msra.mxu1 %v6949_v6 }
 0x5d3   : >> { %6509 = vmatmul.mubr.msk.bf16.gmra.mrb[104].mxu0 %vm1355_vm3, %v2890_v14  ;;  %6556 = vmatprep.subr.bf16.mxu1 %v6950_v37 }
 0x5d4   : >> { %6536 = vmatprep.mubr.msk.bf16.mxu0 %vm7530_vm1, %v10167_v45 }
 0x5d6   : >> { %6557 = vmatpush3.bf16.msra.mxu1 %v6950_v37 }
 0x5d7   : >> { %6558 = vmatprep.subr.bf16.mxu1 %v6951_v10 }
 0x5da   : >> { %6559 = vmatpush3.bf16.msra.mxu1 %v6951_v10 }
 0x5db   : >> { %6537 = vmatmul.mubr.msk.bf16.vlgmr.msra.gmra.mrb[108].mxu0 %vm1355_vm3, %v3119_v23  ;;  %6560 = vmatprep.subr.bf16.mxu1 %v6952_v1 }
 0x5dc   : >> { %6540 = vmatprep.mubr.msk.bf16.mxu0 %vm7530_vm1, %v10167_v45 }
 0x5de   : >> { %6561 = vmatpush3.bf16.msra.mxu1 %v6952_v1 }
 0x5df   : >> { %6562 = vmatprep.subr.bf16.mxu1 %v6953_v46 }
 0x5e2   : >> { %6563 = vmatpush3.bf16.msra.mxu1 %v6953_v46 }
 0x5e3   : >> { %6541 = vmatmul.mubr.msk.bf16.gmra.mrb[112].mxu0 %vm1355_vm3, %v3120_v35 }
 0x5e4   : >> { %6544 = vmatprep.mubr.msk.bf16.mxu0 %vm7530_vm1, %v10167_v45 }
 0x5eb   : >> { %6545 = vmatmul.mubr.msk.bf16.gmra.mrb[116].mxu0 %vm1355_vm3, %v3121_v18 }
 0x5ec   : >> { %3914 = vmatprep.mubr.bf16.mxu0 %v10181_v57 }
 0x5ef   : >> { %v1708_v27 = vpop.f32.mrb[36].mxu0 }
 0x5f0   : >> { %v6322_v60 = vpop.f32.mrb[37].mxu0 }
 0x5f1   : >> { %v1711_v20 = vpop.f32.mrb[38].mxu0 }
 0x5f2   : >> { %v6824_v62 = vpack.i.bf16 %v1711_v20, %v1708_v27  ;;  %v6323_v36 = vpop.f32.mrb[39].mxu0 }
 0x5f4   : >> { %6825 = vrot.lane.b32.xlu0 %v6824_v62, %s7533_s25 }
 0x5fb   : >> { %v1716_v30 = vpop.f32.mrb[40].mxu0 }
 0x5fc   : >> { %v6326_v9 = vpop.f32.mrb[41].mxu0 }
 0x5fd   : >> { %v1719_v39 = vpop.f32.mrb[42].mxu0 }
 0x5fe   : >> { %v6829_v45 = vpack.i.bf16 %v1719_v39, %v1716_v30  ;;  %v6327_v25 = vpop.f32.mrb[43].mxu0 }
 0x600   : >> { %6830 = vrot.lane.b32.xlu0 %v6829_v45, %s7533_s25 }
 0x603   : >> { %v1724_v26 = vpop.f32.mrb[44].mxu0 }
 0x604   : >> { %v6330_v31 = vpop.f32.mrb[45].mxu0 }
 0x605   : >> { %v1727_v48 = vpop.f32.mrb[46].mxu0 }
 0x606   : >> { %v6854_v22 = vpack.i.bf16 %v1727_v48, %v1724_v26  ;;  %v6331_v28 = vpop.f32.mrb[47].mxu0 }
 0x60b   : >> { %v1939_v7 = vpop.f32.mrb[48].mxu0 }
 0x60c   : >> { %v6358_v38 = vpop.f32.mrb[49].mxu0 }
 0x60d   : >> { %v1942_v52 = vpop.f32.mrb[50].mxu0 }
 0x60e   : >> { %v6834_v55 = vpack.i.bf16 %v1942_v52, %v1939_v7  ;;  %v6359_v49 = vpop.f32.mrb[51].mxu0 }
 0x610   : >> { %6835 = vrot.lane.b32.xlu1 %v6834_v55, %s7532_s24 }
 0x613   : >> { %v1947_v40 = vpop.f32.mrb[52].mxu0 }
 0x614   : >> { %v6362_v29 = vpop.f32.mrb[53].mxu0 }
 0x615   : >> { %v1950_v63 = vpop.f32.mrb[54].mxu0 }
 0x616   : >> { %v6839_v43 = vpack.i.bf16 %v1950_v63, %v1947_v40  ;;  %v6363_v3 = vpop.f32.mrb[55].mxu0 }
 0x618   : >> { %6840 = vrot.lane.b32.xlu0 %v6839_v43, %s7532_s24 }
 0x61b   : >> { %v1955_v61 = vpop.f32.mrb[56].mxu0 }
 0x61c   : >> { %v6366_v4 = vpop.f32.mrb[57].mxu0 }
 0x61d   : >> { %v1958_v54 = vpop.f32.mrb[58].mxu0 }
 0x61e   : >> { %v6859_v59 = vpack.i.bf16 %v1958_v54, %v1955_v61  ;;  %v6367_v34 = vpop.f32.mrb[59].mxu0 }
 0x63c   : >> { %v2170_v16 = vpop.f32.mrb[60].mxu0 }
 0x63d   : >> { %v6394_v41 = vpop.f32.mrb[61].mxu0 }
 0x63e   : >> { %v2173_v58 = vpop.f32.mrb[62].mxu0 }
 0x63f   : >> { %v6844_v14 = vpack.i.bf16 %v2173_v58, %v2170_v16  ;;  %v6395_v5 = vpop.f32.mrb[63].mxu0 }
 0x641   : >> { %6845 = vrot.lane.b32.xlu1 %v6844_v14, %s7531_s22 }
 0x644   : >> { %v2178_v33 = vpop.f32.mrb[64].mxu0 }
 0x645   : >> { %6855 = vrot.lane.b32.xlu1 %v6854_v22, %s7533_s25  ;;  %v6398_v2 = vpop.f32.mrb[65].mxu0 }
 0x646   : >> { %v2181_v19 = vpop.f32.mrb[66].mxu0 }
 0x647   : >> { %v6849_v23 = vpack.i.bf16 %v2181_v19, %v2178_v33  ;;  %v6399_v47 = vpop.f32.mrb[67].mxu0 }
 0x649   : >> { %6850 = vrot.lane.b32.xlu0 %v6849_v23, %s7531_s22 }
 0x64c   : >> { %v2186_v32 = vpop.f32.mrb[68].mxu0 }
 0x64d   : >> { %6860 = vrot.lane.b32.xlu0 %v6859_v59, %s7532_s24  ;;  %v6402_v50 = vpop.f32.mrb[69].mxu0 }
 0x64e   : >> { %v2189_v13 = vpop.f32.mrb[70].mxu0 }
 0x64f   : >> { %v6864_v35 = vpack.i.bf16 %v2189_v13, %v2186_v32  ;;  %v6403_v8 = vpop.f32.mrb[71].mxu0 }
 0x651   : >> { %6865 = vrot.lane.b32.xlu0 %v6864_v35, %s7531_s22 }
 0x654   : >> { %v8875_v15 = vpop.f32.mrb[72].mxu0 }
 0x655   : >> { %v6430_v21 = vpop.f32.mrb[73].mxu0 }
 0x656   : >> { %v8877_v0 = vpop.f32.mrb[74].mxu0 }
 0x657   : >> { %v6431_v18 = vpop.f32.mrb[75].mxu0 }
 0x65c   : >> { %v8879_v27 = vpop.f32.mrb[76].mxu0 }
 0x65d   : >> { %v6434_v60 = vpop.f32.mrb[77].mxu0 }
 0x65e   : >> { %v8881_v20 = vpop.f32.mrb[78].mxu0 }
 0x65f   : >> { %v6435_v62 = vpop.f32.mrb[79].mxu0 }
 0x664   : >> { %v8883_v36 = vpop.f32.mrb[80].mxu0 }
 0x665   : >> { %v6438_v30 = vpop.f32.mrb[81].mxu0 }
 0x666   : >> { %v8885_v9 = vpop.f32.mrb[82].mxu0  ;;  %v6826_v41 = vpop.permute.xlu0 %6825 }
 0x667   : >> { %v6439_v39 = vpop.f32.mrb[83].mxu0  ;;  %v6828_v5 = vunpack.i.h.bf16 %v6826_v41  ;;  %v6827_v33 = vunpack.i.l.bf16 %v6826_v41 }
 0x669   : >> { %v2266_v35 = vsel %vm1279_vm2, %v8782_v53, %v6828_v5  ;;  %v2265_v8 = vsel %vm1279_vm2, %v8780_v17, %v6827_v33 }
 0x66c   : >> { %v2712_v45 = vpop.f32.mrb[84].mxu0 }
 0x66d   : >> { %v6466_v25 = vpop.f32.mrb[85].mxu0 }
 0x66e   : >> { %v2715_v26 = vpop.f32.mrb[86].mxu0 }
 0x66f   : >> { %v6869_v31 = vpack.i.bf16 %v2715_v26, %v2712_v45  ;;  %v6467_v48 = vpop.f32.mrb[87].mxu0 }
 0x671   : >> { %6870 = vrot.lane.b32.xlu1 %v6869_v31, %s7533_s25 }
 0x672   : >> { %v6831_v50 = vpop.permute.xlu0 %6830 }
 0x673   : >> { %v6833_v53 = vunpack.i.h.bf16 %v6831_v50  ;;  %v6832_v48 = vunpack.i.l.bf16 %v6831_v50 }
 0x674   : >> { %v2720_v22 = vpop.f32.mrb[88].mxu0 }
 0x675   : >> { %v6470_v28 = vpop.f32.mrb[89].mxu0 }
 0x676   : >> { %v2723_v7 = vpop.f32.mrb[90].mxu0 }
 0x677   : >> { %v6884_v38 = vpack.i.bf16 %v2723_v7, %v2720_v22  ;;  %v6471_v52 = vpop.f32.mrb[91].mxu0 }
 0x67c   : >> { %v2728_v55 = vpop.f32.mrb[92].mxu0 }
 0x67d   : >> { %v6474_v49 = vpop.f32.mrb[93].mxu0 }
 0x67e   : >> { %v2731_v40 = vpop.f32.mrb[94].mxu0  ;;  %v2267_v49 = vsel %vm1279_vm2, %v8792_v11, %v6832_v48 }
 0x67f   : >> { %v6889_v29 = vpack.i.bf16 %v2731_v40, %v2728_v55  ;;  %v6475_v63 = vpop.f32.mrb[95].mxu0  ;;  %v2268_v55 = vsel %vm1279_vm2, %v8795_v56, %v6833_v53 }
 0x682   : >> { %v6836_v46 = vpop.permute.xlu1 %6835 }
 0x683   : >> { %v6838_v19 = vunpack.i.h.bf16 %v6836_v46  ;;  %v6837_v23 = vunpack.i.l.bf16 %v6836_v46 }
 0x685   : >> { %v2273_v60 = vsel %vm2271_vm4, %v2266_v35, %v6838_v19  ;;  %v2272_v62 = vsel %vm2271_vm4, %v2265_v8, %v6837_v23 }
 0x68a   : >> { %v6841_v30 = vpop.permute.xlu0 %6840 }
 0x68b   : >> { %v6843_v17 = vunpack.i.h.bf16 %v6841_v30  ;;  %v6842_v28 = vunpack.i.l.bf16 %v6841_v30 }
 0x68d   : >> { %v2275_v63 = vsel %vm2271_vm4, %v2268_v55, %v6843_v17 }
 0x696   : >> { %v2943_v43 = vpop.f32.mrb[96].mxu0 }
 0x697   : >> { %v6502_v3 = vpop.f32.mrb[97].mxu0 }
 0x698   : >> { %v2946_v61 = vpop.f32.mrb[98].mxu0 }
 0x699   : >> { %v6874_v4 = vpack.i.bf16 %v2946_v61, %v2943_v43  ;;  %v6503_v54 = vpop.f32.mrb[99].mxu0  ;;  %v2274_v43 = vsel %vm2271_vm4, %v2267_v49, %v6842_v28 }
 0x69b   : >> { %6875 = vrot.lane.b32.xlu1 %v6874_v4, %s7532_s24 }
 0x69e   : >> { %v2951_v59 = vpop.f32.mrb[100].mxu0 }
 0x69f   : >> { %6885 = vrot.lane.b32.xlu1 %v6884_v38, %s7533_s25  ;;  %v6506_v34 = vpop.f32.mrb[101].mxu0 }
 0x6a0   : >> { %v2954_v12 = vpop.f32.mrb[102].mxu0 }
 0x6a1   : >> { %v6894_v44 = vpack.i.bf16 %v2954_v12, %v2951_v59  ;;  %v6507_v42 = vpop.f32.mrb[103].mxu0 }
 0x6a3   : >> { %6895 = vrot.lane.b32.xlu1 %v6894_v44, %s7532_s24 }
 0x6a6   : >> { %v2959_v6 = vpop.f32.mrb[104].mxu0 }
 0x6a7   : >> { %v6510_v37 = vpop.f32.mrb[105].mxu0 }
 0x6a8   : >> { %v2962_v10 = vpop.f32.mrb[106].mxu0 }
 0x6a9   : >> { %v6899_v1 = vpack.i.bf16 %v2962_v10, %v2959_v6  ;;  %v6511_v16 = vpop.f32.mrb[107].mxu0 }
 0x6ae   : >> { %v3174_v58 = vpop.f32.mrb[108].mxu0 }
 0x6af   : >> { %v6538_v14 = vpop.f32.mrb[109].mxu0 }
 0x6b0   : >> { %v3177_v2 = vpop.f32.mrb[110].mxu0 }
 0x6b1   : >> { %v6879_v47 = vpack.i.bf16 %v3177_v2, %v3174_v58  ;;  %v6539_v32 = vpop.f32.mrb[111].mxu0 }
 0x6b3   : >> { %6880 = vrot.lane.b32.xlu0 %v6879_v47, %s7531_s22  ;;  %v6846_v13 = vpop.permute.xlu1 %6845 }
 0x6b4   : >> { %v6848_v21 = vunpack.i.h.bf16 %v6846_v13  ;;  %v6847_v18 = vunpack.i.l.bf16 %v6846_v13 }
 0x6b6   : >> { %v3182_v39 = vpop.f32.mrb[112].mxu0  ;;  %v2279_v45 = vsel %vm2278_vm5, %v2272_v62, %v6847_v18  ;;  %v2280_v25 = vsel %vm2278_vm5, %v2273_v60, %v6848_v21 }
 0x6b7   : >> { %6890 = vrot.lane.b32.xlu0 %v6889_v29, %s7533_s25  ;;  %v6542_v26 = vpop.f32.mrb[113].mxu0  ;;  %v3287_v31 = vpack.c.bf16 %v2280_v25, %v2279_v45  ;;  %v6856_v3 = vpop.permute.xlu1 %6855  ;;  %s5850_s25 = sshll.u32 %s7526_s23, 2  ;;  %s671_s23 = sadd.s32 1, %s7526_s23  }
 0x6b8   : >> { %v3185_v22 = vpop.f32.mrb[114].mxu0  ;;  %v6858_v44 = vunpack.i.h.bf16 %v6856_v3  ;;  %v6857_v56 = vunpack.i.l.bf16 %v6856_v3  ;;  %s3699_s28 = scalar_lea.vmem %s10078_s7, %s5850_s25  ;;  %p9778_p4 = scmp.ge.s32.totalorder %s671_s23, 3  }
 0x6b9   : >> { %v6904_v7 = vpack.i.bf16 %v3185_v22, %v3182_v39  ;;  %v6543_v38 = vpop.f32.mrb[115].mxu0  ;;  %6564 = vmatprep.mubr.bf16.mxu1 %v3287_v31  ;;  %vm5018_vm6 = vcmask (%p9778_p4), 7168   ;;  %vm7536_vm7 = vmmov (%p9778_p4), 0   ;;  %vm5254_vm8 = vcmask (%p9778_p4), 1041409   ;;  %s7538_s26 = smov (%p9778_p4), 64  }
 0x6ba   : >> { %v2270_v16 = vsel %vm1279_vm2, %v8806_v24, %v6858_v44  ;;  %v2269_v41 = vsel %vm1279_vm2, %v8804_v51, %v6857_v56  ;;  %vm5327_vm9 = vcmask (%p9778_p4), 517120  }
 0x6bb   : >> { %v6851_v52 = vpop.permute.xlu0 %6850  ;;  %6900 = vrot.lane.b32.xlu0 %v6899_v1, %s7532_s24  ;;  %6905 = vrot.lane.b32.xlu1 %v6904_v7, %s7531_s22  ;;  %s9009_s24 = scalar_lea.vmem %s10079_s8, %s5934_s15 }
 0x6bc   : >> { %v6853_v40 = vunpack.i.h.bf16 %v6851_v52  ;;  %v6852_v29 = vunpack.i.l.bf16 %v6851_v52 }
 0x6be   : >> { %v2282_v61 = vsel %vm2278_vm5, %v2275_v63, %v6853_v40  ;;  %v2281_v4 = vsel %vm2278_vm5, %v2274_v43, %v6852_v29  ;;  %v3190_v54 = vpop.f32.mrb[116].mxu0 }
 0x6bf   : >> { %v3288_v59 = vpack.c.bf16 %v2282_v61, %v2281_v4  ;;  %v6861_v34 = vpop.permute.xlu0 %6860  ;;  %v6546_v12 = vpop.f32.mrb[117].mxu0 }
 0x6c0   : >> { %v3193_v42 = vpop.f32.mrb[118].mxu0  ;;  %v6863_v6 = vunpack.i.h.bf16 %v6861_v34  ;;  %v6862_v11 = vunpack.i.l.bf16 %v6861_v34 }
 0x6c1   : >> { %v6909_v37 = vpack.i.bf16 %v3193_v42, %v3190_v54  ;;  %v6547_v10 = vpop.f32.mrb[119].mxu0  ;;  %6565 = vmatmul.mubr.bf16.vlgmr.msra.gmra.mrb[108].mxu1 %v3288_v59 }
 0x6c2   : >> { %v2276_v14 = vsel %vm2271_vm4, %v2269_v41, %v6862_v11  ;;  %v2277_v5 = vsel %vm2271_vm4, %v2270_v16, %v6863_v6  ;;  %v8946_v11 = vld [vmem:[%s7810_s16] sm:$0xff] }
 0x6c3   : >> { %v6866_v1 = vpop.permute.xlu0 %6865  ;;  %6910 = vrot.lane.b32.xlu0 %v6909_v37, %s7531_s22 }
 0x6c4   : >> { %v6868_v46 = vunpack.i.h.bf16 %v6866_v1  ;;  %v6867_v58 = vunpack.i.l.bf16 %v6866_v1 }
 0x6c6   : >> { %v2283_v33 = vsel %vm2278_vm5, %v2276_v14, %v6867_v58  ;;  %v2284_v2 = vsel %vm2278_vm5, %v2277_v5, %v6868_v46  ;;  %v10183_v46 = vld [vmem:[#allocation13_spill] sm:$0xff]  ;;  %v10185_v5 = vld [vmem:[#allocation12_spill] sm:$0xff] }
 0x6c7   : >> { %v3289_v19 = vpack.c.bf16 %v2284_v2, %v2283_v33 }
 0x6c9   : >> { %6568 = vmatprep.mubr.bf16.mxu1 %v3289_v19 }
 0x6e3   : >> { %v6871_v23 = vpop.permute.xlu1 %6870 }
 0x6e4   : >> { %v6873_v32 = vunpack.i.h.bf16 %v6871_v23  ;;  %v6872_v50 = vunpack.i.l.bf16 %v6871_v23 }
 0x6e6   : >> { %v3270_v8 = vsel %vm1279_vm2, %v8877_v0, %v6873_v32  ;;  %v3269_v21 = vsel %vm1279_vm2, %v8875_v15, %v6872_v50  ;;  %v10187_v32 = vld [vmem:[#allocation10_spill] sm:$0xff] }
 0x70d   : >> { %v6876_v47 = vpop.permute.xlu1 %6875 }
 0x70e   : >> { %v6878_v13 = vunpack.i.h.bf16 %v6876_v47  ;;  %v6877_v35 = vunpack.i.l.bf16 %v6876_v47 }
 0x710   : >> { %v3275_v62 = vsel %vm2271_vm4, %v3269_v21, %v6877_v35  ;;  %v3276_v30 = vsel %vm2271_vm4, %v3270_v8, %v6878_v13  ;;  %v6956_v8 = vld [vmem:[%s8986_s19 + $0x4] ss:$16 sps:$4 sm:$0xff]   ;;  %v6954_v21 = vld [vmem:[%s8986_s19] ss:$16 sps:$4 sm:$0xff]  }
 0x711   : >> { %v6886_v24 = vpop.permute.xlu1 %6885  ;;  %3882 = vmatprep.subr.bf16.mxu0 %v6956_v8 }
 0x712   : >> { %v6888_v31 = vunpack.i.h.bf16 %v6886_v24  ;;  %v6887_v53 = vunpack.i.l.bf16 %v6886_v24  ;;  %v10189_v24 = vld [vmem:[#allocation11_spill] sm:$0xff]  ;;  %3883 = vmatpush1.bf16.msra.mxu0 %v6954_v21  ;;  %v10199_v21 = vld [vmem:[#allocation5_spill] sm:$0xff] }
 0x714   : >> { %v3272_v15 = vsel %vm1279_vm2, %v8881_v20, %v6888_v31  ;;  %v3271_v28 = vsel %vm1279_vm2, %v8879_v27, %v6887_v53  ;;  %v6966_v31 = vld [vmem:[%s8986_s19 + $0x40] ss:$16 sps:$4 sm:$0xff]   ;;  %v6969_v53 = vld [vmem:[%s8986_s19 + $0x48] ss:$16 sps:$4 sm:$0xff]  }
 0x715   : >> { %v6896_v39 = vpop.permute.xlu1 %6895 }
 0x716   : >> { %v6898_v22 = vunpack.i.h.bf16 %v6896_v39  ;;  %v6897_v0 = vunpack.i.l.bf16 %v6896_v39  ;;  %v6960_v39 = vld [vmem:[%s8986_s19 + $0x20] ss:$16 sps:$4 sm:$0xff]  }
 0x718   : >> { %v3277_v52 = vsel %vm2271_vm4, %v3271_v28, %v6897_v0  ;;  %v3278_v55 = vsel %vm2271_vm4, %v3272_v15, %v6898_v22  ;;  %v6977_v22 = vld [vmem:[%s8986_s19 + $0x6c] ss:$16 sps:$4 sm:$0xff]   ;;  %v6972_v0 = vld [vmem:[%s8986_s19 + $0x60] ss:$16 sps:$4 sm:$0xff]   ;;  %v6980_v15 = vld [vmem:[%s8986_s19 + $0x84] ss:$16 sps:$4 sm:$0xff]  }
 0x719   : >> { %v6983_v28 = vld [vmem:[%s8986_s19 + $0x8c] ss:$16 sps:$4 sm:$0xff]  }
 0x725   : >> { %v6881_v51 = vpop.permute.xlu0 %6880 }
 0x726   : >> { %v6883_v18 = vunpack.i.h.bf16 %v6881_v51  ;;  %v6882_v60 = vunpack.i.l.bf16 %v6881_v51 }
 0x728   : >> { %v3281_v45 = vsel %vm2278_vm5, %v3275_v62, %v6882_v60  ;;  %v3282_v25 = vsel %vm2278_vm5, %v3276_v30, %v6883_v18  ;;  %v6957_v18 = vld [vmem:[%s8986_s19 + $0x8] ss:$16 sps:$4 sm:$0xff]   ;;  %v6959_v60 = vld [vmem:[%s8986_s19 + $0xc] ss:$16 sps:$4 sm:$0xff]   ;;  %v6962_v62 = vld [vmem:[%s8986_s19 + $0x24] ss:$16 sps:$4 sm:$0xff]  }
 0x729   : >> { %v3290_v26 = vpack.c.bf16 %v3282_v25, %v3281_v45  ;;  %v6891_v48 = vpop.permute.xlu0 %6890  ;;  %3975 = vmatprep.subr.bf16.mxu1 %v6959_v60  ;;  %v6965_v30 = vld [vmem:[%s8986_s19 + $0x2c] ss:$16 sps:$4 sm:$0xff]   ;;  %v6963_v45 = vld [vmem:[%s8986_s19 + $0x28] ss:$16 sps:$4 sm:$0xff]   ;;  %3884 = vmatprep.subr.bf16.mxu0 %v6962_v62  ;;  %v6968_v25 = vld [vmem:[%s8986_s19 + $0x44] ss:$16 sps:$4 sm:$0xff]  }
 0x72a   : >> { %v6893_v43 = vunpack.i.h.bf16 %v6891_v48  ;;  %v6892_v3 = vunpack.i.l.bf16 %v6891_v48  ;;  %3976 = vmatpush1.bf16.msra.mxu1 %v6957_v18  ;;  %3885 = vmatpush1.bf16.msra.mxu0 %v6960_v39  ;;  %v6974_v48 = vld [vmem:[%s8986_s19 + $0x64] ss:$16 sps:$4 sm:$0xff]   ;;  %v10201_v62 = vld [vmem:[#allocation4_spill] sm:$0xff] }
 0x72b   : >> { %6569 = vmatmul.mubr.bf16.gmra.mrb[112].mxu1 %v3290_v26  ;;  %3977 = vmatprep.subr.bf16.mxu1 %v6965_v30  ;;  %v6971_v26 = vld [vmem:[%s8986_s19 + $0x4c] ss:$16 sps:$4 sm:$0xff]  }
 0x72c   : >> { %v3274_v27 = vsel %vm1279_vm2, %v8885_v9, %v6893_v43  ;;  %v3273_v54 = vsel %vm1279_vm2, %v8883_v36, %v6892_v3  ;;  %v10182_v9 = vld [vmem:[#allocation17_spill] sm:$0xff]  ;;  %3886 = vmatprep.subr.bf16.mxu0 %v6968_v25 }
 0x72d   : >> { %v6906_v17 = vpop.permute.xlu1 %6905  ;;  %v6901_v49 = vpop.permute.xlu0 %6900  ;;  %v8950_v37 = vrot.slane %v8946_v11, %v10182_v9  ;;  %v6993_v43 = vld [vmem:[%s8986_s19 + $0xc8] ss:$16 sps:$4 sm:$0xff]   ;;  %v6995_v3 = vld [vmem:[%s8986_s19 + $0xcc] ss:$16 sps:$4 sm:$0xff]  }
 0x72e   : >> { %v6908_v7 = vunpack.i.h.bf16 %v6906_v17  ;;  %v6907_v38 = vunpack.i.l.bf16 %v6906_v17  ;;  %v6903_v61 = vunpack.i.h.bf16 %v6901_v49  ;;  %v6902_v20 = vunpack.i.l.bf16 %v6901_v49  ;;  %3978 = vmatpush1.bf16.msra.mxu1 %v6963_v45  ;;  %3887 = vmatpush1.bf16.msra.mxu0 %v6966_v31  ;;  %v6975_v17 = vld [vmem:[%s8986_s19 + $0x68] ss:$16 sps:$4 sm:$0xff]   ;;  %v6984_v49 = vld [vmem:[%s8986_s19 + $0xa0] ss:$16 sps:$4 sm:$0xff]  }
 0x72f   : >> { %3979 = vmatprep.subr.bf16.mxu1 %v6971_v26  ;;  %3888 = vmatprep.subr.bf16.mxu0 %v6974_v48  ;;  %v10203_v31 = vld [vmem:[#allocation3_spill] sm:$0xff]  ;;  %v10205_v48 = vld [vmem:[#allocation2_spill] sm:$0xff] }
 0x730   : >> { %v3283_v40 = vsel %vm2278_vm5, %v3277_v52, %v6907_v38  ;;  %v3284_v29 = vsel %vm2278_vm5, %v3278_v55, %v6908_v7  ;;  %v3279_v12 = vsel %vm2271_vm4, %v3273_v54, %v6902_v20  ;;  %v3280_v44 = vsel %vm2271_vm4, %v3274_v27, %v6903_v61  ;;  %v6978_v7 = vld [vmem:[%s8986_s19 + $0x80] ss:$16 sps:$4 sm:$0xff]   ;;  %v6981_v38 = vld [vmem:[%s8986_s19 + $0x88] ss:$16 sps:$4 sm:$0xff]   ;;  %v6986_v52 = vld [vmem:[%s8986_s19 + $0xa4] ss:$16 sps:$4 sm:$0xff]  }
 0x731   : >> { %v3291_v63 = vpack.c.bf16 %v3284_v29, %v3283_v40  ;;  %v6989_v55 = vld [vmem:[%s8986_s19 + $0xac] ss:$16 sps:$4 sm:$0xff]   ;;  %v6987_v40 = vld [vmem:[%s8986_s19 + $0xa8] ss:$16 sps:$4 sm:$0xff]   ;;  %v6990_v29 = vld [vmem:[%s8986_s19 + $0xc0] ss:$16 sps:$4 sm:$0xff]  }
 0x732   : >> { %3980 = vmatpush1.bf16.msra.mxu1 %v6969_v53  ;;  %3889 = vmatpush1.bf16.msra.mxu0 %v6972_v0  ;;  %v6998_v61 = vld [vmem:[%s8986_s19 + $0xe4] ss:$16 sps:$4 sm:$0xff]   ;;  %v6996_v20 = vld [vmem:[%s8986_s19 + $0xe0] ss:$16 sps:$4 sm:$0xff]   ;;  %v6999_v27 = vld [vmem:[%s8986_s19 + $0xe8] ss:$16 sps:$4 sm:$0xff]  }
 0x733   : >> { %6572 = vmatprep.mubr.bf16.mxu1 %v3291_v63  ;;  %3981 = vmatprep.subr.bf16.mxu1 %v6977_v22  ;;  %v6992_v63 = vld [vmem:[%s8986_s19 + $0xc4] ss:$16 sps:$4 sm:$0xff]  }
 0x734   : >> { %3890 = vmatprep.subr.bf16.mxu0 %v6980_v15 }
 0x735   : >> { %v6911_v4 = vpop.permute.xlu0 %6910 }
 0x736   : >> { %v6913_v59 = vunpack.i.h.bf16 %v6911_v4  ;;  %v6912_v34 = vunpack.i.l.bf16 %v6911_v4  ;;  %3982 = vmatpush1.bf16.msra.mxu1 %v6975_v17  ;;  %3891 = vmatpush1.bf16.msra.mxu0 %v6978_v7  ;;  %v7001_v4 = vld [vmem:[%s8986_s19 + $0xec] ss:$16 sps:$4 sm:$0xff]  }
 0x737   : >> { %3983 = vmatprep.subr.bf16.mxu1 %v6983_v28  ;;  %3892 = vmatprep.subr.bf16.mxu0 %v6986_v52 }
 0x738   : >> { %v3285_v56 = vsel %vm2278_vm5, %v3279_v12, %v6912_v34  ;;  %v3286_v42 = vsel %vm2278_vm5, %v3280_v44, %v6913_v59 }
 0x739   : >> { %v3292_v6 = vpack.c.bf16 %v3286_v42, %v3285_v56  ;;  %v10191_v56 = vld [vmem:[#allocation9_spill] sm:$0xff] }
 0x73a   : >> { %3984 = vmatpush1.bf16.msra.mxu1 %v6981_v38  ;;  %3893 = vmatpush1.bf16.msra.mxu0 %v6984_v49 }
 0x73b   : >> { %6573 = vmatmul.mubr.bf16.gmra.mrb[116].mxu1 %v3292_v6  ;;  %3985 = vmatprep.subr.bf16.mxu1 %v6989_v55 }
 0x73c   : >> { %4007 = vmatprep.mubr.bf16.mxu1 %v10181_v57  ;;  %3894 = vmatprep.subr.bf16.mxu0 %v6992_v63 }
 0x73e   : >> { %3986 = vmatpush1.bf16.msra.mxu1 %v6987_v40  ;;  %3895 = vmatpush1.bf16.msra.mxu0 %v6990_v29 }
 0x73f   : >> { %3987 = vmatprep.subr.bf16.mxu1 %v6995_v3  ;;  %3896 = vmatprep.subr.bf16.mxu0 %v6998_v61 }
 0x742   : >> { %3988 = vmatpush1.bf16.msra.mxu1 %v6993_v43  ;;  %3897 = vmatpush1.bf16.msra.mxu0 %v6996_v20 }
 0x743   : >> { %3989 = vmatprep.subr.bf16.mxu1 %v7001_v4 }
 0x746   : >> { %3990 = vmatpush1.bf16.msra.mxu1 %v6999_v27 }
 0x794   : >> { %v6566_v36 = vpop.f32.mrb[108].mxu1 }
 0x795   : >> { %v3398_v10 = vpop.f32.mrb[109].mxu1  ;;  %v3407_v23 = vadd.f32 %v6566_v36, %v8950_v37  ;;  %v10193_v36 = vld [vmem:[#allocation8_spill] sm:$0xff] }
 0x796   : >> { %v3399_v1 = vadd.f32 %v3398_v10, %v8950_v37  ;;  %v6567_v16 = vpop.f32.mrb[110].mxu1 }
 0x797   : >> { %v3401_v41 = vpop.f32.mrb[111].mxu1  ;;  %v3410_v2 = vadd.f32 %v6567_v16, %v8950_v37  ;;  %v8972_v13 = vadd.f32 %v10189_v24, %v3407_v23 }
 0x798   : >> { %v8954_v58 = vadd.f32 %v10183_v46, %v3399_v1  ;;  %v3402_v14 = vadd.f32 %v3401_v41, %v8950_v37 }
 0x799   : >> { %v8969_v50 = vadd.f32 %v10187_v32, %v3410_v2  ;;  %10190 = vst [vmem:[#allocation22_spill] sm:$0xff] %v8972_v13  ;;  %v3483_v51 = vmul.f32 %v8972_v13, %v8972_v13  ;;  %v10197_v2 = vld [vmem:[#allocation6_spill] sm:$0xff] }
 0x79a   : >> { %10184 = vst [vmem:[#allocation20_spill] sm:$0xff] %v8954_v58  ;;  %v8958_v33 = vadd.f32 %v10185_v5, %v3402_v14  ;;  %3457 = vadd.xlane.f32.xlu1 %v8954_v58  ;;  %v3481_v47 = vmul.f32 %v8954_v58, %v8954_v58  ;;  %v10195_v14 = vld [vmem:[#allocation7_spill] sm:$0xff] }
 0x79b   : >> { %10188 = vst [vmem:[#allocation27_spill] sm:$0xff] %v8969_v50  ;;  %v3484_v35 = vmul.f32 %v8969_v50, %v8969_v50 }
 0x79c   : >> { %10186 = vst [vmem:[#allocation18_spill] sm:$0xff] %v8958_v33  ;;  %3459 = vadd.xlane.f32.xlu0 %v8958_v33  ;;  %v3482_v19 = vmul.f32 %v8958_v33, %v8958_v33 }
 0x79e   : >> { %3495 = vadd.xlane.f32.xlu1 %v3482_v19 }
 0x7a0   : >> { %3493 = vadd.xlane.f32.xlu0 %v3481_v47 }
 0x7a2   : >> { %3463 = vadd.xlane.f32.xlu1 %v8969_v50 }
 0x7a4   : >> { %3461 = vadd.xlane.f32.xlu0 %v8972_v13 }
 0x7a6   : >> { %3499 = vadd.xlane.f32.xlu1 %v3484_v35 }
 0x7a8   : >> { %3497 = vadd.xlane.f32.xlu0 %v3483_v51 }
 0x7fe   : >> { %v6570_v54 = vpop.f32.mrb[112].mxu1 }
 0x7ff   : >> { %v3414_v59 = vpop.f32.mrb[113].mxu1  ;;  %v3423_v1 = vadd.f32 %v6570_v54, %v8950_v37 }
 0x800   : >> { %v3415_v34 = vadd.f32 %v3414_v59, %v8950_v37  ;;  %v6571_v12 = vpop.f32.mrb[114].mxu1 }
 0x801   : >> { %v3417_v44 = vpop.f32.mrb[115].mxu1  ;;  %v3426_v41 = vadd.f32 %v6571_v12, %v8950_v37  ;;  %v9044_v5 = vadd.f32 %v10195_v14, %v3423_v1  ;;  %v10207_v14 = vld [vmem:[#allocation14_spill] sm:$0xff] }
 0x802   : >> { %v9029_v42 = vadd.f32 %v10191_v56, %v3415_v34  ;;  %v3418_v6 = vadd.f32 %v3417_v44, %v8950_v37 }
 0x803   : >> { %10196 = vst [vmem:[#allocation19_spill] sm:$0xff] %v9044_v5  ;;  %v9047_v19 = vadd.f32 %v10197_v2, %v3426_v41  ;;  %v3487_v47 = vmul.f32 %v9044_v5, %v9044_v5  ;;  %v9084_v2 = vsub.s32 3, %v10207_v14 }
 0x804   : >> { %10192 = vst [vmem:[#allocation29_spill] sm:$0xff] %v9029_v42  ;;  %v9033_v10 = vadd.f32 %v10193_v36, %v3418_v6  ;;  %3465 = vadd.xlane.f32.xlu0 %v9029_v42  ;;  %v3485_v16 = vmul.f32 %v9029_v42, %v9029_v42 }
 0x805   : >> { %10198 = vst [vmem:[#allocation21_spill] sm:$0xff] %v9047_v19  ;;  %v3488_v51 = vmul.f32 %v9047_v19, %v9047_v19  ;;  %10208 = vst [vmem:[#allocation31_spill] sm:$0xff] %v9084_v2 }
 0x806   : >> { %10194 = vst [vmem:[#allocation28_spill] sm:$0xff] %v9033_v10  ;;  %3467 = vadd.xlane.f32.xlu1 %v9033_v10  ;;  %v3486_v46 = vmul.f32 %v9033_v10, %v9033_v10 }
 0x808   : >> { %3501 = vadd.xlane.f32.xlu0 %v3485_v16 }
 0x80a   : >> { %3503 = vadd.xlane.f32.xlu1 %v3486_v46 }
 0x80c   : >> { %3469 = vadd.xlane.f32.xlu0 %v9044_v5 }
 0x80e   : >> { %v6574_v23 = vpop.f32.mrb[116].mxu1  ;;  %3471 = vadd.xlane.f32.xlu1 %v9047_v19 }
 0x80f   : >> { %v3430_v32 = vpop.f32.mrb[117].mxu1  ;;  %v3439_v39 = vadd.f32 %v6574_v23, %v8950_v37 }
 0x810   : >> { %v3431_v24 = vadd.f32 %v3430_v32, %v8950_v37  ;;  %v6575_v35 = vpop.f32.mrb[118].mxu1  ;;  %3505 = vadd.xlane.f32.xlu0 %v3487_v47 }
 0x811   : >> { %v3433_v8 = vpop.f32.mrb[119].mxu1  ;;  %v3442_v25 = vadd.f32 %v6575_v35, %v8950_v37  ;;  %v9072_v53 = vadd.f32 %v10203_v31, %v3439_v39  ;;  %v9089_v35 = vrot.slane %v8946_v11, %v9084_v2 }
 0x812   : >> { %v9057_v18 = vadd.f32 %v10199_v21, %v3431_v24  ;;  %v3434_v60 = vadd.f32 %v3433_v8, %v8950_v37  ;;  %3507 = vadd.xlane.f32.xlu1 %v3488_v51  ;;  %v10113_v51 = vsub.s32 4, %v10207_v14 }
 0x813   : >> { %10204 = vst [vmem:[#allocation23_spill] sm:$0xff] %v9072_v53  ;;  %v9075_v22 = vadd.f32 %v10205_v48, %v3442_v25  ;;  %v3491_v0 = vmul.f32 %v9072_v53, %v9072_v53 }
 0x814   : >> { %10200 = vst [vmem:[#allocation30_spill] sm:$0xff] %v9057_v18  ;;  %v9061_v30 = vadd.f32 %v10201_v62, %v3434_v60  ;;  %3473 = vadd.xlane.f32.xlu0 %v9057_v18  ;;  %v3489_v45 = vmul.f32 %v9057_v18, %v9057_v18  ;;  %v9097_v25 = vrot.slane %v8946_v11, %v10113_v51 }
 0x815   : >> { %10206 = vst [vmem:[#allocation26_spill] sm:$0xff] %v9075_v22  ;;  %v3492_v37 = vmul.f32 %v9075_v22, %v9075_v22 }
 0x816   : >> { %10202 = vst [vmem:[#allocation24_spill] sm:$0xff] %v9061_v30  ;;  %3475 = vadd.xlane.f32.xlu1 %v9061_v30  ;;  %v3490_v26 = vmul.f32 %v9061_v30, %v9061_v30 }
 0x818   : >> { %3509 = vadd.xlane.f32.xlu0 %v3489_v45 }
 0x81a   : >> { %3511 = vadd.xlane.f32.xlu1 %v3490_v26 }
 0x81c   : >> { %3477 = vadd.xlane.f32.xlu0 %v9072_v53 }
 0x81e   : >> { %3479 = vadd.xlane.f32.xlu1 %v9075_v22 }
 0x820   : >> { %3513 = vadd.xlane.f32.xlu0 %v3491_v0 }
 0x822   : >> { %3515 = vadd.xlane.f32.xlu1 %v3492_v37 }
 0x827   : >> { %v3458_v17 = vpop.xlane.xlu1 %3457 }
 0x828   : >> { %v3517_v28 = vmul.f32 0.0078125, %v3458_v17 }
 0x829   : >> { %v3460_v15 = vpop.xlane.xlu0 %3459 }
 0x82a   : >> { %v3518_v7 = vmul.f32 0.0078125, %v3460_v15  ;;  %v3541_v40 = vmul.f32 %v3517_v28, %v3517_v28  ;;  %v3577_v21 = vsub.f32 %v8954_v58, %v3517_v28 }
 0x82b   : >> { %v3496_v38 = vpop.xlane.xlu1 %3495 }
 0x82c   : >> { %v3542_v52 = vmul.f32 %v3518_v7, %v3518_v7  ;;  %v3530_v55 = vmul.f32 0.0078125, %v3496_v38  ;;  %v3578_v24 = vsub.f32 %v8958_v33, %v3518_v7 }
 0x82d   : >> { %v3494_v49 = vpop.xlane.xlu0 %3493 }
 0x82e   : >> { %v3554_v29 = vsub.f32 %v3530_v55, %v3542_v52  ;;  %v3529_v63 = vmul.f32 0.0078125, %v3494_v49 }
 0x82f   : >> { %v3464_v43 = vpop.xlane.xlu1 %3463 }
 0x830   : >> { %v3566_v3 = vmax.f32 %v3554_v29, 0.0  ;;  %v3553_v61 = vsub.f32 %v3529_v63, %v3541_v40  ;;  %v3520_v20 = vmul.f32 0.0078125, %v3464_v43 }
 0x831   : >> { %v3462_v4 = vpop.xlane.xlu0 %3461 }
 0x832   : >> { %v3590_v27 = vadd.f32 1e-05, %v3566_v3  ;;  %v3565_v54 = vmax.f32 %v3553_v61, 0.0  ;;  %v3519_v59 = vmul.f32 0.0078125, %v3462_v4  ;;  %v3544_v44 = vmul.f32 %v3520_v20, %v3520_v20 }
 0x833   : >> { %v3500_v34 = vpop.xlane.xlu1 %3499  ;;  %v3580_v31 = vsub.f32 %v8969_v50, %v3520_v20 }
 0x834   : >> { %7250 = vrsqrt.f32 %v3590_v27  ;;  %v3589_v12 = vadd.f32 1e-05, %v3565_v54  ;;  %v3532_v56 = vmul.f32 0.0078125, %v3500_v34  ;;  %v3543_v36 = vmul.f32 %v3519_v59, %v3519_v59 }
 0x835   : >> { %v3498_v6 = vpop.xlane.xlu0 %3497  ;;  %v3579_v17 = vsub.f32 %v8972_v13, %v3519_v59 }
 0x836   : >> { %7252 = vrsqrt.f32 %v3589_v12  ;;  %v3556_v1 = vsub.f32 %v3532_v56, %v3544_v44  ;;  %v3531_v16 = vmul.f32 0.0078125, %v3498_v6 }
 0x838   : >> { %v3568_v41 = vmax.f32 %v3556_v1, 0.0  ;;  %v3555_v46 = vsub.f32 %v3531_v16, %v3543_v36 }
 0x83a   : >> { %v3592_v23 = vadd.f32 1e-05, %v3568_v41  ;;  %v3567_v47 = vmax.f32 %v3555_v46, 0.0 }
 0x83c   : >> { %7254 = vrsqrt.f32 %v3592_v23  ;;  %v3591_v32 = vadd.f32 1e-05, %v3567_v47 }
 0x83e   : >> { %v7251_v8 = vpop.eup %7250  ;;  %7256 = vrsqrt.f32 %v3591_v32 }
 0x83f   : >> { %v3614_v60 = vmul.f32 %v7251_v8, %v3578_v24  ;;  %v7002_v24 = vld [vmem:[%s9009_s24 + $0x40] sm:$0xff]  }
 0x840   : >> { %v7253_v62 = vpop.eup %7252  ;;  %v7003_v8 = vld [vmem:[%s9009_s24 + $0xc0] sm:$0xff]   ;;  %6073 = vmatprep.subr.bf16.mxu0 %v7002_v24  ;;  %v7012_v24 = vld [vmem:[%s9009_s24 + $0x10] sm:$0xff]  }
 0x841   : >> { %v3613_v39 = vmul.f32 %v7253_v62, %v3577_v21  ;;  %v3630_v45 = vmul.f32 %v9089_v35, %v3614_v60  ;;  %6125 = vmatprep.subr.bf16.mxu1 %v7003_v8  ;;  %v7013_v8 = vld [vmem:[%s9009_s24 + $0x90] sm:$0xff]  }
 0x843   : >> { %v3629_v26 = vmul.f32 %v9089_v35, %v3613_v39  ;;  %v3646_v0 = vadd.f32 %v9097_v25, %v3630_v45  ;;  %v7004_v45 = vld [vmem:[%s9009_s24] sm:$0xff]  }
 0x845   : >> { %v3645_v48 = vadd.f32 %v9097_v25, %v3629_v26  ;;  %v7005_v26 = vld [vmem:[%s9009_s24 + $0x80] sm:$0xff]  }
 0x846   : >> { %v7255_v37 = vpop.eup %7254 }
 0x847   : >> { %v3657_v15 = vpack.c.bf16 %v3646_v0, %v3645_v48  ;;  %v3616_v28 = vmul.f32 %v7255_v37, %v3580_v31 }
 0x848   : >> { %v7257_v7 = vpop.eup %7256 }
 0x849   : >> { %3915 = vmatmul.mubr.bf16.vlgmr.msra.gmra.mrb[120].mxu0 %v3657_v15  ;;  %4008 = vmatmul.mubr.bf16.vlgmr.msra.gmra.mrb[120].mxu1 %v3657_v15  ;;  %v3615_v38 = vmul.f32 %v7257_v7, %v3579_v17  ;;  %v3632_v11 = vmul.f32 %v9089_v35, %v3616_v28  ;;  %v7006_v15 = vld [vmem:[%s9009_s24 + $0x48] sm:$0xff]  }
 0x84a   : >> { %3924 = vmatprep.mubr.bf16.mxu0 %v10181_v57  ;;  %4017 = vmatprep.mubr.bf16.mxu1 %v10181_v57  ;;  %v7007_v28 = vld [vmem:[%s9009_s24 + $0xc8] sm:$0xff]  }
 0x84b   : >> { %v3631_v52 = vmul.f32 %v9089_v35, %v3615_v38  ;;  %v3648_v49 = vadd.f32 %v9097_v25, %v3632_v11  ;;  %6074 = vmatpush3.bf16.msra.mxu0 %v7004_v45  ;;  %6126 = vmatpush3.bf16.msra.mxu1 %v7005_v26  ;;  %v7008_v11 = vld [vmem:[%s9009_s24 + $0x8] sm:$0xff]  }
 0x84c   : >> { %6075 = vmatprep.subr.bf16.mxu0 %v7006_v15  ;;  %6127 = vmatprep.subr.bf16.mxu1 %v7007_v28 }
 0x84d   : >> { %v3647_v55 = vadd.f32 %v9097_v25, %v3631_v52  ;;  %v7009_v52 = vld [vmem:[%s9009_s24 + $0x88] sm:$0xff]  }
 0x84f   : >> { %v3658_v40 = vpack.c.bf16 %v3648_v49, %v3647_v55  ;;  %6076 = vmatpush3.bf16.msra.mxu0 %v7008_v11  ;;  %6128 = vmatpush3.bf16.msra.mxu1 %v7009_v52  ;;  %v7017_v11 = vld [vmem:[%s9009_s24 + $0x98] sm:$0xff]  }
 0x851   : >> { %3925 = vmatmul.mubr.bf16.gmra.mrb[124].mxu0 %v3658_v40  ;;  %4018 = vmatmul.mubr.bf16.gmra.mrb[124].mxu1 %v3658_v40 }
 0x852   : >> { %3934 = vmatprep.mubr.bf16.mxu0 %v10181_v57  ;;  %4027 = vmatprep.mubr.bf16.mxu1 %v10181_v57 }
 0x891   : >> { %v3466_v29 = vpop.xlane.xlu0 %3465 }
 0x892   : >> { %v9112_v63 = vmul.f32 0.0078125, %v3466_v29 }
 0x893   : >> { %v3468_v43 = vpop.xlane.xlu1 %3467 }
 0x894   : >> { %v9114_v3 = vmul.f32 0.0078125, %v3468_v43  ;;  %v3545_v20 = vmul.f32 %v9112_v63, %v9112_v63 }
 0x895   : >> { %v3502_v61 = vpop.xlane.xlu0 %3501 }
 0x896   : >> { %v3533_v4 = vmul.f32 0.0078125, %v3502_v61  ;;  %v3546_v54 = vmul.f32 %v9114_v3, %v9114_v3  ;;  %v3581_v61 = vsub.f32 %v9029_v42, %v9112_v63 }
 0x897   : >> { %v3504_v27 = vpop.xlane.xlu1 %3503 }
 0x898   : >> { %v3557_v59 = vsub.f32 %v3533_v4, %v3545_v20  ;;  %v3534_v34 = vmul.f32 0.0078125, %v3504_v27 }
 0x899   : >> { %v3470_v12 = vpop.xlane.xlu0 %3469 }
 0x89a   : >> { %v3569_v44 = vmax.f32 %v3557_v59, 0.0  ;;  %v3558_v56 = vsub.f32 %v3534_v34, %v3546_v54  ;;  %v9120_v6 = vmul.f32 0.0078125, %v3470_v12  ;;  %v3582_v34 = vsub.f32 %v9033_v10, %v9114_v3 }
 0x89b   : >> { %v3472_v36 = vpop.xlane.xlu1 %3471 }
 0x89c   : >> { %v3593_v1 = vadd.f32 1e-05, %v3569_v44  ;;  %v3570_v16 = vmax.f32 %v3558_v56, 0.0  ;;  %v9122_v41 = vmul.f32 0.0078125, %v3472_v36  ;;  %v3547_v47 = vmul.f32 %v9120_v6, %v9120_v6  ;;  %v7010_v56 = vld [vmem:[%s9009_s24 + $0x50] sm:$0xff]  }
 0x89d   : >> { %v3506_v46 = vpop.xlane.xlu0 %3505  ;;  %v7011_v36 = vld [vmem:[%s9009_s24 + $0xd0] sm:$0xff]   ;;  %6077 = vmatprep.subr.bf16.mxu0 %v7010_v56 }
 0x89e   : >> { %7258 = vrsqrt.f32 %v3593_v1  ;;  %v3594_v23 = vadd.f32 1e-05, %v3570_v16  ;;  %v3535_v32 = vmul.f32 0.0078125, %v3506_v46  ;;  %v3548_v60 = vmul.f32 %v9122_v41, %v9122_v41  ;;  %6129 = vmatprep.subr.bf16.mxu1 %v7011_v36  ;;  %6078 = vmatpush3.bf16.msra.mxu0 %v7012_v24 }
 0x89f   : >> { %v3508_v21 = vpop.xlane.xlu1 %3507  ;;  %6130 = vmatpush3.bf16.msra.mxu1 %v7013_v8 }
 0x8a0   : >> { %7260 = vrsqrt.f32 %v3594_v23  ;;  %v3559_v62 = vsub.f32 %v3535_v32, %v3547_v47  ;;  %v3536_v39 = vmul.f32 0.0078125, %v3508_v21 }
 0x8a1   : >> { %v3474_v31 = vpop.xlane.xlu0 %3473 }
 0x8a2   : >> { %v3571_v48 = vmax.f32 %v3559_v62, 0.0  ;;  %v3560_v0 = vsub.f32 %v3536_v39, %v3548_v60  ;;  %v9132_v37 = vmul.f32 0.0078125, %v3474_v31 }
 0x8a3   : >> { %v3476_v17 = vpop.xlane.xlu1 %3475 }
 0x8a4   : >> { %v3595_v7 = vadd.f32 1e-05, %v3571_v48  ;;  %v3572_v38 = vmax.f32 %v3560_v0, 0.0  ;;  %v9138_v55 = vmul.f32 0.0078125, %v3476_v17  ;;  %v3549_v29 = vmul.f32 %v9132_v37, %v9132_v37  ;;  %v7014_v48 = vld [vmem:[%s9009_s24 + $0x58] sm:$0xff]  }
 0x8a5   : >> { %v3510_v49 = vpop.xlane.xlu0 %3509  ;;  %v7015_v0 = vld [vmem:[%s9009_s24 + $0xd8] sm:$0xff]   ;;  %v3583_v17 = vsub.f32 %v9044_v5, %v9120_v6  ;;  %6079 = vmatprep.subr.bf16.mxu0 %v7014_v48  ;;  %v3584_v6 = vsub.f32 %v9047_v19, %v9122_v41  ;;  %v7021_v41 = vld [vmem:[%s9009_s24 + $0xa0] sm:$0xff]   ;;  %v3585_v24 = vsub.f32 %v9057_v18, %v9132_v37  ;;  %v7028_v37 = vld [vmem:[%s9009_s24 + $0x30] sm:$0xff]  }
 0x8a6   : >> { %7262 = vrsqrt.f32 %v3595_v7  ;;  %v3596_v40 = vadd.f32 1e-05, %v3572_v38  ;;  %v3537_v43 = vmul.f32 0.0078125, %v3510_v49  ;;  %v3550_v27 = vmul.f32 %v9138_v55, %v9138_v55  ;;  %v7016_v38 = vld [vmem:[%s9009_s24 + $0x18] sm:$0xff]   ;;  %6131 = vmatprep.subr.bf16.mxu1 %v7015_v0  ;;  %v7029_v0 = vld [vmem:[%s9009_s24 + $0xb0] sm:$0xff]  }
 0x8a7   : >> { %v3512_v20 = vpop.xlane.xlu1 %3511  ;;  %6080 = vmatpush3.bf16.msra.mxu0 %v7016_v38  ;;  %6132 = vmatpush3.bf16.msra.mxu1 %v7017_v11  ;;  %v7032_v38 = vld [vmem:[%s9009_s24 + $0x38] sm:$0xff]  }
 0x8a8   : >> { %v7259_v4 = vpop.eup %7258  ;;  %7264 = vrsqrt.f32 %v3596_v40  ;;  %v3561_v54 = vsub.f32 %v3537_v43, %v3549_v29  ;;  %v3538_v59 = vmul.f32 0.0078125, %v3512_v20  ;;  %v7033_v11 = vld [vmem:[%s9009_s24 + $0xb8] sm:$0xff]  }
 0x8a9   : >> { %v3478_v12 = vpop.xlane.xlu0 %3477  ;;  %v3617_v44 = vmul.f32 %v7259_v4, %v3581_v61 }
 0x8aa   : >> { %v7261_v1 = vpop.eup %7260  ;;  %v3573_v16 = vmax.f32 %v3561_v54, 0.0  ;;  %v3562_v63 = vsub.f32 %v3538_v59, %v3550_v27  ;;  %v9150_v46 = vmul.f32 0.0078125, %v3478_v12  ;;  %v7018_v54 = vld [vmem:[%s9009_s24 + $0x60] sm:$0xff]  }
 0x8ab   : >> { %v3480_v23 = vpop.xlane.xlu1 %3479  ;;  %v3618_v47 = vmul.f32 %v7261_v1, %v3582_v34  ;;  %v3633_v32 = vmul.f32 %v9089_v35, %v3617_v44  ;;  %v7019_v59 = vld [vmem:[%s9009_s24 + $0xe0] sm:$0xff]   ;;  %v7022_v1 = vld [vmem:[%s9009_s24 + $0x68] sm:$0xff]   ;;  %6081 = vmatprep.subr.bf16.mxu0 %v7018_v54 }
 0x8ac   : >> { %v3597_v3 = vadd.f32 1e-05, %v3573_v16  ;;  %v3574_v21 = vmax.f32 %v3562_v63, 0.0  ;;  %v9155_v60 = vmul.f32 0.0078125, %v3480_v23  ;;  %v3551_v26 = vmul.f32 %v9150_v46, %v9150_v46  ;;  %v7020_v44 = vld [vmem:[%s9009_s24 + $0x20] sm:$0xff]   ;;  %v7023_v16 = vld [vmem:[%s9009_s24 + $0xe8] sm:$0xff]   ;;  %6133 = vmatprep.subr.bf16.mxu1 %v7019_v59 }
 0x8ad   : >> { %v3514_v62 = vpop.xlane.xlu0 %3513  ;;  %v3634_v39 = vmul.f32 %v9089_v35, %v3618_v47  ;;  %v3649_v28 = vadd.f32 %v9097_v25, %v3633_v32  ;;  %6082 = vmatpush3.bf16.msra.mxu0 %v7020_v44  ;;  %6134 = vmatpush3.bf16.msra.mxu1 %v7021_v41  ;;  %v7024_v47 = vld [vmem:[%s9009_s24 + $0x28] sm:$0xff]  }
 0x8ae   : >> { %7266 = vrsqrt.f32 %v3597_v3  ;;  %v3598_v45 = vadd.f32 1e-05, %v3574_v21  ;;  %v3539_v31 = vmul.f32 0.0078125, %v3514_v62  ;;  %v3552_v49 = vmul.f32 %v9155_v60, %v9155_v60  ;;  %v7025_v32 = vld [vmem:[%s9009_s24 + $0xa8] sm:$0xff]   ;;  %6083 = vmatprep.subr.bf16.mxu0 %v7022_v1  ;;  %6135 = vmatprep.subr.bf16.mxu1 %v7023_v16 }
 0x8af   : >> { %v3516_v15 = vpop.xlane.xlu1 %3515  ;;  %v3650_v7 = vadd.f32 %v9097_v25, %v3634_v39  ;;  %v3586_v62 = vsub.f32 %v9061_v30, %v9138_v55 }
 0x8b0   : >> { %v7263_v52 = vpop.eup %7262  ;;  %7268 = vrsqrt.f32 %v3598_v45  ;;  %v3563_v40 = vsub.f32 %v3539_v31, %v3551_v26  ;;  %v3540_v29 = vmul.f32 0.0078125, %v3516_v15  ;;  %v7026_v26 = vld [vmem:[%s9009_s24 + $0x70] sm:$0xff]  }
 0x8b1   : >> { %v3659_v43 = vpack.c.bf16 %v3650_v7, %v3649_v28  ;;  %v3619_v61 = vmul.f32 %v7263_v52, %v3583_v17  ;;  %v7027_v31 = vld [vmem:[%s9009_s24 + $0xf0] sm:$0xff]   ;;  %6084 = vmatpush3.bf16.msra.mxu0 %v7024_v47  ;;  %6136 = vmatpush3.bf16.msra.mxu1 %v7025_v32  ;;  %v7030_v28 = vld [vmem:[%s9009_s24 + $0x78] sm:$0xff]   ;;  %v3587_v52 = vsub.f32 %v9072_v53, %v9150_v46 }
 0x8b2   : >> { %v7265_v20 = vpop.eup %7264  ;;  %v3575_v4 = vmax.f32 %v3563_v40, 0.0  ;;  %v3564_v27 = vsub.f32 %v3540_v29, %v3552_v49  ;;  %v7031_v7 = vld [vmem:[%s9009_s24 + $0xf8] sm:$0xff]   ;;  %6085 = vmatprep.subr.bf16.mxu0 %v7026_v26  ;;  %6137 = vmatprep.subr.bf16.mxu1 %v7027_v31 }
 0x8b3   : >> { %3935 = vmatmul.mubr.bf16.gmra.mrb[128].mxu0 %v3659_v43  ;;  %4028 = vmatmul.mubr.bf16.gmra.mrb[128].mxu1 %v3659_v43  ;;  %v3620_v34 = vmul.f32 %v7265_v20, %v3584_v6  ;;  %v3635_v12 = vmul.f32 %v9089_v35, %v3619_v61  ;;  %v3588_v6 = vsub.f32 %v9075_v22, %v9155_v60 }
 0x8b4   : >> { %v3599_v56 = vadd.f32 1e-05, %v3575_v4  ;;  %v3576_v36 = vmax.f32 %v3564_v27, 0.0  ;;  %3944 = vmatprep.mubr.bf16.mxu0 %v10181_v57  ;;  %4037 = vmatprep.mubr.bf16.mxu1 %v10181_v57 }
 0x8b5   : >> { %v3636_v63 = vmul.f32 %v9089_v35, %v3620_v34  ;;  %v3651_v8 = vadd.f32 %v9097_v25, %v3635_v12  ;;  %6086 = vmatpush3.bf16.msra.mxu0 %v7028_v37  ;;  %6138 = vmatpush3.bf16.msra.mxu1 %v7029_v0  ;;  %v3700_v34 = vld [vmem:[%s3699_s28] sm:$0xf]  ;;  %v10209_v12 = vld [vmem:[#allocation15_spill] sm:$0xff] }
 0x8b6   : >> { %7270 = vrsqrt.f32 %v3599_v56  ;;  %v3600_v23 = vadd.f32 1e-05, %v3576_v36  ;;  %6087 = vmatprep.subr.bf16.mxu0 %v7030_v28  ;;  %6139 = vmatprep.subr.bf16.mxu1 %v7031_v7  ;;  %v9219_v44 = vrot.slane %v3700_v34, %v10209_v12  ;;  %v10210_v56 = vld [vmem:[#allocation16_spill] sm:$0xff] }
 0x8b7   : >> { %v3652_v3 = vadd.f32 %v9097_v25, %v3636_v63  ;;  %v9225_v36 = vrot.slane %v3700_v34, %v10210_v56 }
 0x8b8   : >> { %v7267_v21 = vpop.eup %7266  ;;  %7272 = vrsqrt.f32 %v3600_v23  ;;  %v9230_v23 = vrot.slane %v3700_v34, %v9084_v2 }
 0x8b9   : >> { %v3660_v39 = vpack.c.bf16 %v3652_v3, %v3651_v8  ;;  %v3621_v45 = vmul.f32 %v7267_v21, %v3585_v24  ;;  %6088 = vmatpush3.bf16.msra.mxu0 %v7032_v38  ;;  %6140 = vmatpush3.bf16.msra.mxu1 %v7033_v11 }
 0x8ba   : >> { %v7269_v48 = vpop.eup %7268 }
 0x8bb   : >> { %3945 = vmatmul.mubr.bf16.gmra.mrb[132].mxu0 %v3660_v39  ;;  %4038 = vmatmul.mubr.bf16.gmra.mrb[132].mxu1 %v3660_v39  ;;  %v3622_v17 = vmul.f32 %v7269_v48, %v3586_v62  ;;  %v3637_v15 = vmul.f32 %v9089_v35, %v3621_v45 }
 0x8bc   : >> { %3954 = vmatprep.mubr.bf16.mxu0 %v10181_v57  ;;  %4047 = vmatprep.mubr.bf16.mxu1 %v10181_v57 }
 0x8bd   : >> { %v3638_v55 = vmul.f32 %v9089_v35, %v3622_v17  ;;  %v3653_v49 = vadd.f32 %v9097_v25, %v3637_v15 }
 0x8bf   : >> { %v3654_v40 = vadd.f32 %v9097_v25, %v3638_v55 }
 0x8c0   : >> { %v7271_v29 = vpop.eup %7270 }
 0x8c1   : >> { %v3661_v43 = vpack.c.bf16 %v3654_v40, %v3653_v49  ;;  %v3623_v61 = vmul.f32 %v7271_v29, %v3587_v52 }
 0x8c2   : >> { %v7273_v20 = vpop.eup %7272 }
 0x8c3   : >> { %3955 = vmatmul.mubr.bf16.gmra.mrb[136].mxu0 %v3661_v43  ;;  %4048 = vmatmul.mubr.bf16.gmra.mrb[136].mxu1 %v3661_v43  ;;  %v3624_v4 = vmul.f32 %v7273_v20, %v3588_v6  ;;  %v3639_v46 = vmul.f32 %v9089_v35, %v3623_v61 }
 0x8c4   : >> { %3964 = vmatprep.mubr.bf16.mxu0 %v10181_v57  ;;  %4057 = vmatprep.mubr.bf16.mxu1 %v10181_v57  ;;  %v9222_v57 = vrot.slane %v3700_v34, %v10182_v9 }
 0x8c5   : >> { %v3640_v27 = vmul.f32 %v9089_v35, %v3624_v4  ;;  %v3655_v54 = vadd.f32 %v9097_v25, %v3639_v46 }
 0x8c7   : >> { %v3656_v60 = vadd.f32 %v9097_v25, %v3640_v27 }
 0x8c9   : >> { %v3662_v59 = vpack.c.bf16 %v3656_v60, %v3655_v54 }
 0x8cb   : >> { %3965 = vmatmul.mubr.bf16.gmra.mrb[140].mxu0 %v3662_v59  ;;  %4058 = vmatmul.mubr.bf16.gmra.mrb[140].mxu1 %v3662_v59 }
 0x91c   : >> { %v3916_v35 = vpop.f32.mrb[120].mxu0  ;;  %v4009_v41 = vpop.f32.mrb[120].mxu1 }
 0x91d   : >> { %v3917_v25 = vadd.f32 %v3916_v35, %v9219_v44  ;;  %v4010_v1 = vadd.f32 %v4009_v41, %v9222_v57  ;;  %v3918_v16 = vpop.f32.mrb[121].mxu0  ;;  %v4011_v63 = vpop.f32.mrb[121].mxu1 }
 0x91e   : >> { %v3920_v47 = vpop.f32.mrb[122].mxu0  ;;  %v4013_v32 = vpop.f32.mrb[122].mxu1  ;;  %v9233_v9 = vadd.f32 %v3918_v16, %v9225_v36  ;;  %v9243_v48 = vadd.f32 %v4011_v63, %v9230_v23 }
 0x91f   : >> { %v4116_v24 = vmul.f32 0.044715, %v3917_v25  ;;  %v4118_v8 = vmul.f32 0.044715, %v4010_v1  ;;  %v3921_v3 = vadd.f32 %v3920_v47, %v9219_v44  ;;  %v9237_v21 = vadd.f32 %v4013_v32, %v9222_v57  ;;  %v3922_v62 = vpop.f32.mrb[123].mxu0  ;;  %v4015_v39 = vpop.f32.mrb[123].mxu1 }
 0x920   : >> { %v9240_v31 = vadd.f32 %v3922_v62, %v9225_v36  ;;  %v9246_v0 = vadd.f32 %v4015_v39, %v9230_v23  ;;  %v9248_v17 = vmul.f32 0.5, %v3917_v25  ;;  %v4117_v55 = vmul.f32 0.044715, %v9233_v9 }
 0x921   : >> { %v4164_v45 = vmul.f32 %v4116_v24, %v3917_v25  ;;  %v4166_v26 = vmul.f32 %v4118_v8, %v4010_v1  ;;  %v4120_v37 = vmul.f32 0.044715, %v3921_v3  ;;  %v4122_v7 = vmul.f32 0.044715, %v9237_v21 }
 0x922   : >> { %v4121_v11 = vmul.f32 0.044715, %v9240_v31  ;;  %v9253_v29 = vmul.f32 0.5, %v4010_v1  ;;  %v4119_v4 = vmul.f32 0.044715, %v9243_v48 }
 0x923   : >> { %v4212_v15 = vmul.f32 %v4164_v45, %v3917_v25  ;;  %v4214_v28 = vmul.f32 %v4166_v26, %v4010_v1  ;;  %v4168_v38 = vmul.f32 %v4120_v37, %v3921_v3  ;;  %v4170_v43 = vmul.f32 %v4122_v7, %v9237_v21 }
 0x924   : >> { %v3926_v52 = vpop.f32.mrb[124].mxu0  ;;  %v4019_v49 = vpop.f32.mrb[124].mxu1  ;;  %v4123_v27 = vmul.f32 0.044715, %v9246_v0  ;;  %v4169_v16 = vmul.f32 %v4121_v11, %v9240_v31  ;;  %v4167_v8 = vmul.f32 %v4119_v4, %v9243_v48 }
 0x925   : >> { %v4260_v40 = vadd.f32 %v4212_v15, %v3917_v25  ;;  %v4262_v6 = vadd.f32 %v4214_v28, %v4010_v1  ;;  %v3928_v61 = vpop.f32.mrb[125].mxu0  ;;  %v4021_v20 = vpop.f32.mrb[125].mxu1  ;;  %v4216_v46 = vmul.f32 %v4168_v38, %v3921_v3  ;;  %v9259_v54 = vadd.f32 %v3926_v52, %v9219_v44 }
 0x926   : >> { %v3930_v60 = vpop.f32.mrb[126].mxu0  ;;  %v4023_v59 = vpop.f32.mrb[126].mxu1  ;;  %v4218_v35 = vmul.f32 %v4170_v43, %v9237_v21  ;;  %v4165_v25 = vmul.f32 %v4117_v55, %v9233_v9  ;;  %v9265_v63 = vadd.f32 %v4019_v49, %v9222_v57  ;;  %v9270_v24 = vadd.f32 %v3928_v61, %v9225_v36 }
 0x927   : >> { %v4308_v34 = vmul.f32 0.7978846, %v4260_v40  ;;  %v4310_v12 = vmul.f32 0.7978846, %v4262_v6  ;;  %v3932_v41 = vpop.f32.mrb[127].mxu0  ;;  %v4025_v56 = vpop.f32.mrb[127].mxu1  ;;  %v4264_v1 = vadd.f32 %v4216_v46, %v3921_v3  ;;  %v4171_v39 = vmul.f32 %v4123_v27, %v9246_v0 }
 0x928   : >> { %v4266_v47 = vadd.f32 %v4218_v35, %v9237_v21  ;;  %v4124_v32 = vmul.f32 0.044715, %v9259_v54  ;;  %v4125_v26 = vmul.f32 0.044715, %v9270_v24  ;;  %v9276_v37 = vadd.f32 %v4021_v20, %v9230_v23 }
 0x929   : >> { %7274 = vtanh.f32 %v4308_v34  ;;  %v4312_v62 = vmul.f32 0.7978846, %v4264_v1  ;;  %v9279_v15 = vadd.f32 %v3930_v60, %v9219_v44  ;;  %v4213_v28 = vmul.f32 %v4165_v25, %v9233_v9 }
 0x92a   : >> { %7276 = vtanh.f32 %v4310_v12  ;;  %v4314_v45 = vmul.f32 0.7978846, %v4266_v47  ;;  %v4217_v7 = vmul.f32 %v4169_v16, %v9240_v31  ;;  %v9284_v55 = vadd.f32 %v4023_v59, %v9222_v57 }
 0x92b   : >> { %7278 = vtanh.f32 %v4312_v62  ;;  %v4172_v38 = vmul.f32 %v4124_v32, %v9259_v54  ;;  %v4126_v11 = vmul.f32 0.044715, %v9265_v63  ;;  %v4127_v52 = vmul.f32 0.044715, %v9276_v37 }
 0x92c   : >> { %7280 = vtanh.f32 %v4314_v45  ;;  %v4072_v49 = vmul.f32 0.5, %v3921_v3  ;;  %v4173_v40 = vmul.f32 %v4125_v26, %v9270_v24  ;;  %v9291_v6 = vadd.f32 %v3932_v41, %v9225_v36 }
 0x92d   : >> { %v9294_v43 = vadd.f32 %v4025_v56, %v9230_v23  ;;  %v4215_v61 = vmul.f32 %v4167_v8, %v9243_v48  ;;  %v4219_v20 = vmul.f32 %v4171_v39, %v9246_v0  ;;  %v4128_v4 = vmul.f32 0.044715, %v9279_v15 }
 0x92e   : >> { %v4130_v46 = vmul.f32 0.044715, %v9284_v55  ;;  %v4175_v27 = vmul.f32 %v4127_v52, %v9276_v37  ;;  %v4129_v3 = vmul.f32 0.044715, %v9291_v6  ;;  %v4261_v59 = vadd.f32 %v4213_v28, %v9233_v9 }
 0x92f   : >> { %v4131_v60 = vmul.f32 0.044715, %v9294_v43  ;;  %v4074_v34 = vmul.f32 0.5, %v9237_v21  ;;  %v4220_v12 = vmul.f32 %v4172_v38, %v9259_v54  ;;  %v4174_v35 = vmul.f32 %v4126_v11, %v9265_v63 }
 0x930   : >> { %v4265_v41 = vadd.f32 %v4217_v7, %v9240_v31  ;;  %v4221_v56 = vmul.f32 %v4173_v40, %v9270_v24  ;;  %v4177_v25 = vmul.f32 %v4129_v3, %v9291_v6  ;;  %v4309_v16 = vmul.f32 0.7978846, %v4261_v59 }
 0x931   : >> { %v4179_v1 = vmul.f32 %v4131_v60, %v9294_v43  ;;  %v4176_v32 = vmul.f32 %v4128_v4, %v9279_v15  ;;  %v4263_v62 = vadd.f32 %v4215_v61, %v9243_v48  ;;  %v4267_v21 = vadd.f32 %v4219_v20, %v9246_v0 }
 0x932   : >> { %v4313_v8 = vmul.f32 0.7978846, %v4265_v41  ;;  %v4223_v45 = vmul.f32 %v4175_v27, %v9276_v37  ;;  %v4178_v26 = vmul.f32 %v4130_v46, %v9284_v55  ;;  %v4225_v28 = vmul.f32 %v4177_v25, %v9291_v6 }
 0x933   : >> { %v7275_v47 = vpop.eup %7274  ;;  %7282 = vtanh.f32 %v4309_v16  ;;  %v4311_v7 = vmul.f32 0.7978846, %v4263_v62  ;;  %v4315_v38 = vmul.f32 0.7978846, %v4267_v21  ;;  %v4222_v40 = vmul.f32 %v4174_v35, %v9265_v63 }
 0x934   : >> { %v7277_v39 = vpop.eup %7276  ;;  %7284 = vtanh.f32 %v4313_v8  ;;  %v4404_v11 = vadd.f32 1.0, %v7275_v47  ;;  %v4227_v4 = vmul.f32 %v4179_v1, %v9294_v43  ;;  %v4269_v20 = vadd.f32 %v4221_v56, %v9270_v24 }
 0x935   : >> { %v7279_v52 = vpop.eup %7278  ;;  %v4406_v61 = vadd.f32 1.0, %v7277_v39  ;;  %v4224_v27 = vmul.f32 %v4176_v32, %v9279_v15  ;;  %7286 = vtanh.f32 %v4311_v7  ;;  %v4273_v60 = vadd.f32 %v4225_v28, %v9291_v6 }
 0x936   : >> { %v7281_v3 = vpop.eup %7280  ;;  %v4408_v46 = vadd.f32 1.0, %v7279_v52  ;;  %v4226_v59 = vmul.f32 %v4178_v26, %v9284_v55  ;;  %7288 = vtanh.f32 %v4315_v38  ;;  %v4317_v25 = vmul.f32 0.7978846, %v4269_v20 }
 0x937   : >> { %v4410_v41 = vadd.f32 1.0, %v7281_v3  ;;  %v4452_v16 = vmul.f32 %v4404_v11, %v9248_v17  ;;  %v4321_v47 = vmul.f32 0.7978846, %v4273_v60  ;;  %v4271_v1 = vadd.f32 %v4223_v45, %v9276_v37 }
 0x938   : >> { %v4456_v35 = vmul.f32 %v4408_v46, %v4072_v49  ;;  %v4454_v56 = vmul.f32 %v4406_v61, %v9253_v29  ;;  %7290 = vtanh.f32 %v4317_v25  ;;  %v4275_v32 = vadd.f32 %v4227_v4, %v9294_v43 }
 0x939   : >> { %v4458_v8 = vmul.f32 %v4410_v41, %v4074_v34  ;;  %7292 = vtanh.f32 %v4321_v47  ;;  %v4319_v21 = vmul.f32 0.7978846, %v4271_v1  ;;  %v4268_v28 = vadd.f32 %v4220_v12, %v9259_v54 }
 0x93a   : >> { %v4500_v62 = vpack.c.bf16 %v4456_v35, %v4452_v16  ;;  %v4323_v26 = vmul.f32 0.7978846, %v4275_v32  ;;  %v4272_v7 = vadd.f32 %v4224_v27, %v9279_v15  ;;  %v4270_v17 = vadd.f32 %v4222_v40, %v9265_v63 }
 0x93b   : >> { %v4502_v39 = vpack.c.bf16 %v4458_v8, %v4454_v56  ;;  %7294 = vtanh.f32 %v4319_v21  ;;  %v4316_v45 = vmul.f32 0.7978846, %v4268_v28  ;;  %v4274_v34 = vadd.f32 %v4226_v59, %v9284_v55 }
 0x93c   : >> { %7296 = vtanh.f32 %v4323_v26  ;;  %v4320_v29 = vmul.f32 0.7978846, %v4272_v7  ;;  %v4069_v11 = vmul.f32 0.5, %v9233_v9  ;;  %v4318_v4 = vmul.f32 0.7978846, %v4270_v17 }
 0x93d   : >> { %v7283_v49 = vpop.eup %7282  ;;  %v4073_v61 = vmul.f32 0.5, %v9240_v31  ;;  %7298 = vtanh.f32 %v4316_v45  ;;  %v4322_v12 = vmul.f32 0.7978846, %v4274_v34  ;;  %v4071_v41 = vmul.f32 0.5, %v9243_v48 }
 0x93e   : >> { %v7285_v38 = vpop.eup %7284  ;;  %v4405_v52 = vadd.f32 1.0, %v7283_v49  ;;  %7300 = vtanh.f32 %v4320_v29  ;;  %v4075_v59 = vmul.f32 0.5, %v9246_v0  ;;  %v4077_v56 = vmul.f32 0.5, %v9270_v24 }
 0x93f   : >> { %v4409_v20 = vadd.f32 1.0, %v7285_v38  ;;  %v7287_v3 = vpop.eup %7286  ;;  %7302 = vtanh.f32 %v4318_v4  ;;  %v4081_v8 = vmul.f32 0.5, %v9291_v6  ;;  %v4079_v17 = vmul.f32 0.5, %v9276_v37 }
 0x940   : >> { %v7289_v27 = vpop.eup %7288  ;;  %v4453_v40 = vmul.f32 %v4405_v52, %v4069_v11  ;;  %v4407_v60 = vadd.f32 1.0, %v7287_v3  ;;  %7304 = vtanh.f32 %v4322_v12  ;;  %v4083_v49 = vmul.f32 0.5, %v9294_v43 }
 0x941   : >> { %v4457_v46 = vmul.f32 %v4409_v20, %v4073_v61  ;;  %v4411_v25 = vadd.f32 1.0, %v7289_v27  ;;  %v4080_v4 = vmul.f32 0.5, %v9279_v15  ;;  %v4078_v37 = vmul.f32 0.5, %v9265_v63 }
 0x942   : >> { %v7291_v9 = vpop.eup %7290  ;;  %v4455_v31 = vmul.f32 %v4407_v60, %v4071_v41 }
 0x943   : >> { %v4501_v16 = vpack.c.bf16 %v4457_v46, %v4453_v40  ;;  %v7293_v35 = vpop.eup %7292  ;;  %v4459_v47 = vmul.f32 %v4411_v25, %v4075_v59  ;;  %v4413_v1 = vadd.f32 1.0, %v7291_v9 }
 0x944   : >> { %v4417_v32 = vadd.f32 1.0, %v7293_v35 }
 0x945   : >> { %4818 = vmatprep.mubr.bf16.mxu0 %v4501_v16  ;;  %v7295_v21 = vpop.eup %7294  ;;  %v4503_v26 = vpack.c.bf16 %v4459_v47, %v4455_v31  ;;  %v4461_v28 = vmul.f32 %v4413_v1, %v4077_v56 }
 0x946   : >> { %4819 = vmatmul.mubr.bf16.vlgmr.msra.gmra.mrb[144].mxu0 %v4500_v62  ;;  %v7297_v48 = vpop.eup %7296  ;;  %v4465_v0 = vmul.f32 %v4417_v32, %v4081_v8  ;;  %v4415_v7 = vadd.f32 1.0, %v7295_v21  ;;  %v4076_v62 = vmul.f32 0.5, %v9259_v54 }
 0x947   : >> { %4899 = vmatprep.mubr.bf16.mxu1 %v4503_v26  ;;  %v4419_v45 = vadd.f32 1.0, %v7297_v48  ;;  %v7299_v29 = vpop.eup %7298 }
 0x948   : >> { %4900 = vmatmul.mubr.bf16.vlgmr.msra.gmra.mrb[144].mxu1 %v4502_v39  ;;  %v4505_v34 = vpack.c.bf16 %v4465_v0, %v4461_v28  ;;  %v7301_v24 = vpop.eup %7300  ;;  %v4463_v38 = vmul.f32 %v4415_v7, %v4079_v17  ;;  %v4412_v11 = vadd.f32 1.0, %v7299_v29  ;;  %v4082_v39 = vmul.f32 0.5, %v9284_v55 }
 0x949   : >> { %v4467_v6 = vmul.f32 %v4419_v45, %v4083_v49  ;;  %v7303_v52 = vpop.eup %7302  ;;  %v4416_v61 = vadd.f32 1.0, %v7301_v24 }
 0x94a   : >> { %4826 = vmatprep.mubr.bf16.mxu0 %v4505_v34  ;;  %v7305_v20 = vpop.eup %7304  ;;  %v4414_v43 = vadd.f32 1.0, %v7303_v52  ;;  %v4460_v3 = vmul.f32 %v4412_v11, %v4076_v62 }
 0x94b   : >> { %v4507_v12 = vpack.c.bf16 %v4467_v6, %v4463_v38  ;;  %v4464_v27 = vmul.f32 %v4416_v61, %v4080_v4  ;;  %v4418_v40 = vadd.f32 1.0, %v7305_v20 }
 0x94c   : >> { %v4462_v60 = vmul.f32 %v4414_v43, %v4078_v37 }
 0x94d   : >> { %4907 = vmatprep.mubr.bf16.mxu1 %v4507_v12  ;;  %v4504_v46 = vpack.c.bf16 %v4464_v27, %v4460_v3  ;;  %v4466_v41 = vmul.f32 %v4418_v40, %v4082_v39 }
 0x94f   : >> { %4827 = vmatmul.mubr.bf16.gmra.mrb[148].mxu0 %v4504_v46  ;;  %v4506_v59 = vpack.c.bf16 %v4466_v41, %v4462_v60 }
 0x951   : >> { %4908 = vmatmul.mubr.bf16.gmra.mrb[148].mxu1 %v4506_v59 }
 0x986   : >> { %v3936_v54 = vpop.f32.mrb[128].mxu0  ;;  %v4029_v15 = vpop.f32.mrb[128].mxu1 }
 0x987   : >> { %v9344_v25 = vadd.f32 %v3936_v54, %v9219_v44  ;;  %v9347_v63 = vadd.f32 %v4029_v15, %v9222_v57  ;;  %v3938_v9 = vpop.f32.mrb[129].mxu0  ;;  %v4031_v16 = vpop.f32.mrb[129].mxu1 }
 0x988   : >> { %v9350_v55 = vadd.f32 %v3938_v9, %v9225_v36  ;;  %v9353_v35 = vadd.f32 %v4031_v16, %v9230_v23  ;;  %v3940_v31 = vpop.f32.mrb[130].mxu0  ;;  %v4033_v47 = vpop.f32.mrb[130].mxu1 }
 0x989   : >> { %v4132_v1 = vmul.f32 0.044715, %v9344_v25  ;;  %v9357_v56 = vadd.f32 %v3940_v31, %v9219_v44  ;;  %v9360_v8 = vadd.f32 %v4033_v47, %v9222_v57  ;;  %v3942_v32 = vpop.f32.mrb[131].mxu0  ;;  %v4035_v21 = vpop.f32.mrb[131].mxu1  ;;  %v4134_v26 = vmul.f32 0.044715, %v9347_v63 }
 0x98a   : >> { %v4133_v48 = vmul.f32 0.044715, %v9350_v55  ;;  %v9365_v28 = vadd.f32 %v3942_v32, %v9225_v36  ;;  %v9368_v0 = vadd.f32 %v4035_v21, %v9230_v23  ;;  %v4135_v7 = vmul.f32 0.044715, %v9353_v35 }
 0x98b   : >> { %v4136_v17 = vmul.f32 0.044715, %v9357_v56  ;;  %v4138_v49 = vmul.f32 0.044715, %v9360_v8  ;;  %v4180_v34 = vmul.f32 %v4132_v1, %v9344_v25  ;;  %v4182_v24 = vmul.f32 %v4134_v26, %v9347_v63 }
 0x98c   : >> { %v4137_v45 = vmul.f32 0.044715, %v9365_v28  ;;  %v4139_v29 = vmul.f32 0.044715, %v9368_v0  ;;  %v4181_v38 = vmul.f32 %v4133_v48, %v9350_v55  ;;  %v4183_v52 = vmul.f32 %v4135_v7, %v9353_v35 }
 0x98d   : >> { %v4184_v62 = vmul.f32 %v4136_v17, %v9357_v56  ;;  %v4186_v37 = vmul.f32 %v4138_v49, %v9360_v8  ;;  %v9411_v1 = vmul.f32 %v4180_v34, %v9344_v25  ;;  %v9414_v32 = vmul.f32 %v4182_v24, %v9347_v63 }
 0x98e   : >> { %v3946_v6 = vpop.f32.mrb[132].mxu0  ;;  %v4039_v11 = vpop.f32.mrb[132].mxu1  ;;  %v4185_v43 = vmul.f32 %v4137_v45, %v9365_v28  ;;  %v4187_v46 = vmul.f32 %v4139_v29, %v9368_v0  ;;  %v9419_v48 = vmul.f32 %v4181_v38, %v9350_v55  ;;  %v9422_v7 = vmul.f32 %v4183_v52, %v9353_v35 }
 0x98f   : >> { %v9381_v4 = vadd.f32 %v3946_v6, %v9219_v44  ;;  %v9384_v61 = vadd.f32 %v4039_v11, %v9222_v57  ;;  %v3948_v20 = vpop.f32.mrb[133].mxu0  ;;  %v4041_v12 = vpop.f32.mrb[133].mxu1  ;;  %v9427_v45 = vmul.f32 %v4184_v62, %v9357_v56  ;;  %v9430_v29 = vmul.f32 %v4186_v37, %v9360_v8 }
 0x990   : >> { %v9389_v3 = vadd.f32 %v3948_v20, %v9225_v36  ;;  %v9392_v27 = vadd.f32 %v4041_v12, %v9230_v23  ;;  %v3950_v39 = vpop.f32.mrb[134].mxu0  ;;  %v4043_v40 = vpop.f32.mrb[134].mxu1  ;;  %v9433_v34 = vmul.f32 %v4185_v43, %v9365_v28  ;;  %v9437_v38 = vmul.f32 %v4187_v46, %v9368_v0 }
 0x991   : >> { %10211 = vst [vmem:[#allocation25_spill] sm:$0xff] %v9384_v61  ;;  %v4140_v60 = vmul.f32 0.044715, %v9381_v4  ;;  %v9397_v41 = vadd.f32 %v3950_v39, %v9219_v44  ;;  %v9400_v59 = vadd.f32 %v4043_v40, %v9222_v57  ;;  %v3952_v54 = vpop.f32.mrb[135].mxu0  ;;  %v4045_v15 = vpop.f32.mrb[135].mxu1 }
 0x992   : >> { %v4142_v9 = vmul.f32 0.044715, %v9384_v61  ;;  %v4141_v16 = vmul.f32 0.044715, %v9389_v3  ;;  %v9405_v31 = vadd.f32 %v3952_v54, %v9225_v36  ;;  %v9408_v47 = vadd.f32 %v4045_v15, %v9230_v23 }
 0x993   : >> { %10212 = vst [vmem:[#allocation13_spill] sm:$0xff] %v9397_v41  ;;  %10213 = vst [vmem:[#allocation12_spill] sm:$0xff] %v9400_v59  ;;  %v4143_v21 = vmul.f32 0.044715, %v9392_v27  ;;  %v4144_v26 = vmul.f32 0.044715, %v9397_v41  ;;  %v4188_v6 = vmul.f32 %v4140_v60, %v9381_v4 }
 0x994   : >> { %v4146_v17 = vmul.f32 0.044715, %v9400_v59  ;;  %v4145_v49 = vmul.f32 0.044715, %v9405_v31  ;;  %v4147_v24 = vmul.f32 0.044715, %v9408_v47  ;;  %v4190_v11 = vmul.f32 %v4142_v9, %v9384_v61 }
 0x995   : >> { %v4189_v52 = vmul.f32 %v4141_v16, %v9389_v3  ;;  %v4191_v12 = vmul.f32 %v4143_v21, %v9392_v27  ;;  %v4192_v37 = vmul.f32 %v4144_v26, %v9397_v41 }
 0x996   : >> { %v3956_v20 = vpop.f32.mrb[136].mxu0  ;;  %v4049_v62 = vpop.f32.mrb[136].mxu1  ;;  %v4194_v60 = vmul.f32 %v4146_v17, %v9400_v59  ;;  %v4193_v54 = vmul.f32 %v4145_v49, %v9405_v31  ;;  %v4195_v26 = vmul.f32 %v4147_v24, %v9408_v47  ;;  %v9473_v24 = vmul.f32 %v4188_v6, %v9381_v4 }
 0x997   : >> { %v9445_v43 = vadd.f32 %v3956_v20, %v9219_v44  ;;  %v9448_v39 = vadd.f32 %v4049_v62, %v9222_v57  ;;  %v3958_v40 = vpop.f32.mrb[137].mxu0  ;;  %v4051_v46 = vpop.f32.mrb[137].mxu1  ;;  %v9483_v30 = vmul.f32 %v4189_v52, %v9389_v3  ;;  %v9486_v18 = vmul.f32 %v4191_v12, %v9392_v27 }
 0x998   : >> { %v9453_v15 = vadd.f32 %v3958_v40, %v9225_v36  ;;  %v9456_v9 = vadd.f32 %v4051_v46, %v9230_v23  ;;  %v3960_v16 = vpop.f32.mrb[138].mxu0  ;;  %v4053_v21 = vpop.f32.mrb[138].mxu1  ;;  %v9491_v6 = vmul.f32 %v4192_v37, %v9397_v41  ;;  %v9497_v5 = vmul.f32 %v4193_v54, %v9405_v31 }
 0x999   : >> { %v4148_v20 = vmul.f32 0.044715, %v9445_v43  ;;  %v9461_v62 = vadd.f32 %v3960_v16, %v9219_v44  ;;  %v9464_v51 = vadd.f32 %v4053_v21, %v9222_v57  ;;  %v3962_v17 = vpop.f32.mrb[139].mxu0  ;;  %v4055_v49 = vpop.f32.mrb[139].mxu1  ;;  %v4150_v40 = vmul.f32 0.044715, %v9448_v39 }
 0x99a   : >> { %v4149_v2 = vmul.f32 0.044715, %v9453_v15  ;;  %v4151_v46 = vmul.f32 0.044715, %v9456_v9  ;;  %v9470_v22 = vadd.f32 %v3962_v17, %v9225_v36  ;;  %v9476_v16 = vmul.f32 %v4190_v11, %v9384_v61  ;;  %10215 = vst [vmem:[#allocation11_spill] sm:$0xff] %v9491_v6 }
 0x99b   : >> { %v4152_v21 = vmul.f32 0.044715, %v9461_v62  ;;  %v9480_v53 = vadd.f32 %v4055_v49, %v9230_v23  ;;  %v4154_v17 = vmul.f32 0.044715, %v9464_v51  ;;  %v9494_v11 = vmul.f32 %v4194_v60, %v9400_v59 }
 0x99c   : >> { %10214 = vst [vmem:[#allocation10_spill] sm:$0xff] %v9476_v16  ;;  %v4153_v19 = vmul.f32 0.044715, %v9470_v22  ;;  %v9500_v49 = vmul.f32 %v4195_v26, %v9408_v47  ;;  %v4196_v52 = vmul.f32 %v4148_v20, %v9445_v43  ;;  %v4198_v12 = vmul.f32 %v4150_v40, %v9448_v39 }
 0x99d   : >> { %10216 = vst [vmem:[#allocation9_spill] sm:$0xff] %v9494_v11  ;;  %v4197_v10 = vmul.f32 %v4149_v2, %v9453_v15  ;;  %v4199_v42 = vmul.f32 %v4151_v46, %v9456_v9  ;;  %v4200_v13 = vmul.f32 %v4152_v21, %v9461_v62  ;;  %v4155_v60 = vmul.f32 0.044715, %v9480_v53 }
 0x99e   : >> { %v3966_v50 = vpop.f32.mrb[140].mxu0  ;;  %v4059_v37 = vpop.f32.mrb[140].mxu1  ;;  %v4202_v40 = vmul.f32 %v4154_v17, %v9464_v51  ;;  %v4201_v2 = vmul.f32 %v4153_v19, %v9470_v22  ;;  %v9546_v41 = vmul.f32 %v4198_v12, %v9448_v39 }
 0x99f   : >> { %v9509_v54 = vadd.f32 %v3966_v50, %v9219_v44  ;;  %v9512_v26 = vadd.f32 %v4059_v37, %v9222_v57  ;;  %v3968_v33 = vpop.f32.mrb[141].mxu0  ;;  %v4061_v20 = vpop.f32.mrb[141].mxu1  ;;  %v4203_v6 = vmul.f32 %v4155_v60, %v9480_v53  ;;  %v9554_v60 = vmul.f32 %v4199_v42, %v9456_v9 }
 0x9a0   : >> { %v9517_v46 = vadd.f32 %v3968_v33, %v9225_v36  ;;  %v9520_v58 = vadd.f32 %v4061_v20, %v9230_v23  ;;  %v3970_v21 = vpop.f32.mrb[142].mxu0  ;;  %v4063_v14 = vpop.f32.mrb[142].mxu1  ;;  %10219 = vst [vmem:[#allocation6_spill] sm:$0xff] %v9546_v41  ;;  %v9562_v12 = vmul.f32 %v4202_v40, %v9464_v51 }
 0x9a1   : >> { %10217 = vst [vmem:[#allocation8_spill] sm:$0xff] %v9509_v54  ;;  %10218 = vst [vmem:[#allocation7_spill] sm:$0xff] %v9512_v26  ;;  %v4156_v50 = vmul.f32 0.044715, %v9509_v54  ;;  %v4158_v11 = vmul.f32 0.044715, %v9512_v26  ;;  %v9525_v37 = vadd.f32 %v3970_v21, %v9219_v44  ;;  %v9528_v59 = vadd.f32 %v4063_v14, %v9222_v57 }
 0x9a2   : >> { %v3972_v17 = vpop.f32.mrb[143].mxu0  ;;  %v4065_v19 = vpop.f32.mrb[143].mxu1  ;;  %v4157_v33 = vmul.f32 0.044715, %v9517_v46  ;;  %v4159_v16 = vmul.f32 0.044715, %v9520_v58  ;;  %v9543_v57 = vmul.f32 %v4196_v52, %v9445_v43  ;;  %v9559_v52 = vmul.f32 %v4200_v13, %v9461_v62 }
 0x9a3   : >> { %v9533_v20 = vadd.f32 %v3972_v17, %v9225_v36  ;;  %v9536_v61 = vadd.f32 %v4065_v19, %v9230_v23  ;;  %v4204_v44 = vmul.f32 %v4156_v50, %v9509_v54  ;;  %v4206_v21 = vmul.f32 %v4158_v11, %v9512_v26 }
 0x9a4   : >> { %v4160_v14 = vmul.f32 0.044715, %v9525_v37  ;;  %v4162_v36 = vmul.f32 0.044715, %v9528_v59  ;;  %v9551_v23 = vmul.f32 %v4197_v10, %v9453_v15  ;;  %v4205_v11 = vmul.f32 %v4157_v33, %v9517_v46 }
 0x9a5   : >> { %v4161_v17 = vmul.f32 0.044715, %v9533_v20  ;;  %v4207_v50 = vmul.f32 %v4159_v16, %v9520_v58  ;;  %v9565_v19 = vmul.f32 %v4201_v2, %v9470_v22  ;;  %v4163_v41 = vmul.f32 0.044715, %v9536_v61 }
 0x9a6   : >> { %v9569_v10 = vmul.f32 %v4203_v6, %v9480_v53  ;;  %v9572_v42 = vmul.f32 %v4204_v44, %v9509_v54  ;;  %v9575_v33 = vmul.f32 %v4206_v21, %v9512_v26  ;;  %v9578_v13 = vmul.f32 %v4160_v14, %v9525_v37 }
 0x9a7   : >> { %v9581_v16 = vmul.f32 %v4162_v36, %v9528_v59  ;;  %v4209_v40 = vmul.f32 %v4161_v17, %v9533_v20  ;;  %v4277_v2 = vadd.f32 %v9419_v48, %v9350_v55  ;;  %v4281_v6 = vadd.f32 %v9433_v34, %v9365_v28 }
 0x9a8   : >> { %10220 = vst [vmem:[#allocation5_spill] sm:$0xff] %v9572_v42  ;;  %10221 = vst [vmem:[#allocation4_spill] sm:$0xff] %v9575_v33  ;;  %v9589_v44 = vmul.f32 %v4205_v11, %v9517_v46  ;;  %v9592_v21 = vmul.f32 %v4207_v50, %v9520_v58  ;;  %v4279_v14 = vadd.f32 %v9422_v7, %v9353_v35  ;;  %v9602_v48 = vmul.f32 0.5, %v9350_v55 }
 0x9a9   : >> { %10222 = vst [vmem:[#allocation3_spill] sm:$0xff] %v9581_v16  ;;  %v4283_v36 = vadd.f32 %v9437_v38, %v9368_v0  ;;  %v9599_v17 = vmul.f32 %v4163_v41, %v9536_v61  ;;  %v4325_v33 = vmul.f32 0.7978846, %v4277_v2  ;;  %v4329_v34 = vmul.f32 0.7978846, %v4281_v6 }
 0x9aa   : >> { %v4327_v26 = vmul.f32 0.7978846, %v4279_v14  ;;  %v4276_v50 = vadd.f32 %v9411_v1, %v9344_v25  ;;  %v4280_v42 = vadd.f32 %v9427_v45, %v9357_v56  ;;  %v9609_v7 = vmul.f32 %v4209_v40, %v9533_v20 }
 0x9ab   : >> { %v4331_v11 = vmul.f32 0.7978846, %v4283_v36  ;;  %v4089_v38 = vmul.f32 0.5, %v9365_v28  ;;  %7306 = vtanh.f32 %v4325_v33  ;;  %v4278_v55 = vadd.f32 %v9414_v32, %v9347_v63 }
 0x9ac   : >> { %7308 = vtanh.f32 %v4329_v34  ;;  %v4324_v41 = vmul.f32 0.7978846, %v4276_v50  ;;  %v4328_v2 = vmul.f32 0.7978846, %v4280_v42  ;;  %v4282_v6 = vadd.f32 %v9430_v29, %v9360_v8  ;;  %v10224_v34 = vld [vmem:[#allocation11_spill] sm:$0xff] }
 0x9ad   : >> { %v4087_v1 = vmul.f32 0.5, %v9353_v35  ;;  %v9618_v14 = vmul.f32 0.5, %v9368_v0  ;;  %7310 = vtanh.f32 %v4327_v26  ;;  %v4326_v45 = vmul.f32 0.7978846, %v4278_v55 }
 0x9ae   : >> { %7312 = vtanh.f32 %v4331_v11  ;;  %v4330_v40 = vmul.f32 0.7978846, %v4282_v6  ;;  %v4285_v28 = vadd.f32 %v9483_v30, %v9389_v3  ;;  %v4289_v32 = vadd.f32 %v9497_v5, %v9405_v31  ;;  %v10227_v6 = vld [vmem:[#allocation12_spill] sm:$0xff] }
 0x9af   : >> { %v4084_v42 = vmul.f32 0.5, %v9344_v25  ;;  %v9626_v33 = vmul.f32 0.5, %v9357_v56  ;;  %7314 = vtanh.f32 %v4324_v41  ;;  %v4287_v35 = vadd.f32 %v9486_v18, %v9392_v27  ;;  %v10223_v18 = vld [vmem:[#allocation13_spill] sm:$0xff] }
 0x9b0   : >> { %7316 = vtanh.f32 %v4328_v2  ;;  %v4333_v0 = vmul.f32 0.7978846, %v4285_v28  ;;  %v4337_v29 = vmul.f32 0.7978846, %v4289_v32  ;;  %v4291_v26 = vadd.f32 %v9500_v49, %v9408_v47 }
 0x9b1   : >> { %v9633_v30 = vmul.f32 0.5, %v9347_v63  ;;  %v9636_v5 = vmul.f32 0.5, %v9360_v8  ;;  %7318 = vtanh.f32 %v4326_v45  ;;  %v4335_v25 = vmul.f32 0.7978846, %v4287_v35  ;;  %v10225_v63 = vld [vmem:[#allocation25_spill] sm:$0xff]  ;;  %v10226_v8 = vld [vmem:[#allocation10_spill] sm:$0xff] }
 0x9b2   : >> { %7320 = vtanh.f32 %v4330_v40  ;;  %v4339_v56 = vmul.f32 0.7978846, %v4291_v26  ;;  %v4284_v36 = vadd.f32 %v9473_v24, %v9381_v4  ;;  %v4288_v11 = vadd.f32 %v10224_v34, %v10223_v18  ;;  %v10228_v45 = vld [vmem:[#allocation9_spill] sm:$0xff] }
 0x9b3   : >> { %v9643_v50 = vmul.f32 0.5, %v9389_v3  ;;  %v9646_v49 = vmul.f32 0.5, %v9405_v31  ;;  %7322 = vtanh.f32 %v4333_v0  ;;  %v4286_v55 = vadd.f32 %v10226_v8, %v10225_v63 }
 0x9b4   : >> { %7324 = vtanh.f32 %v4337_v29  ;;  %v4332_v41 = vmul.f32 0.7978846, %v4284_v36  ;;  %v4336_v2 = vmul.f32 0.7978846, %v4288_v11  ;;  %v4290_v40 = vadd.f32 %v10228_v45, %v10227_v6 }
 0x9b5   : >> { %v7307_v24 = vpop.eup %7306  ;;  %v9653_v28 = vmul.f32 0.5, %v9392_v27  ;;  %v9656_v3 = vmul.f32 0.5, %v9408_v47  ;;  %7326 = vtanh.f32 %v4335_v25  ;;  %v4334_v31 = vmul.f32 0.7978846, %v4286_v55 }
 0x9b6   : >> { %v7309_v32 = vpop.eup %7308  ;;  %v4421_v35 = vadd.f32 1.0, %v7307_v24  ;;  %7328 = vtanh.f32 %v4339_v56  ;;  %v4338_v0 = vmul.f32 0.7978846, %v4290_v40  ;;  %v4293_v29 = vadd.f32 %v9551_v23, %v9453_v15 }
 0x9b7   : >> { %v7311_v26 = vpop.eup %7310  ;;  %v4425_v36 = vadd.f32 1.0, %v7309_v32  ;;  %v9661_v34 = vmul.f32 0.5, %v9381_v4  ;;  %7330 = vtanh.f32 %v4332_v41  ;;  %v4297_v27 = vadd.f32 %v9565_v19, %v9470_v22 }
 0x9b8   : >> { %v7313_v47 = vpop.eup %7312  ;;  %v4469_v25 = vmul.f32 %v4421_v35, %v9602_v48  ;;  %v4423_v11 = vadd.f32 1.0, %v7311_v26  ;;  %7332 = vtanh.f32 %v4336_v2  ;;  %v4341_v8 = vmul.f32 0.7978846, %v4293_v29 }
 0x9b9   : >> { %v7315_v56 = vpop.eup %7314  ;;  %v4473_v55 = vmul.f32 %v4425_v36, %v4089_v38  ;;  %v4427_v45 = vadd.f32 1.0, %v7313_v47  ;;  %7334 = vtanh.f32 %v4334_v31  ;;  %v4345_v23 = vmul.f32 0.7978846, %v4297_v27 }
 0x9ba   : >> { %v7317_v40 = vpop.eup %7316  ;;  %v4471_v24 = vmul.f32 %v4423_v11, %v4087_v1  ;;  %v4420_v32 = vadd.f32 1.0, %v7315_v56  ;;  %v4096_v4 = vmul.f32 0.5, %v10223_v18  ;;  %7336 = vtanh.f32 %v4338_v0 }
 0x9bb   : >> { %v7319_v41 = vpop.eup %7318  ;;  %v4509_v54 = vpack.c.bf16 %v4473_v55, %v4469_v25  ;;  %v4475_v19 = vmul.f32 %v4427_v45, %v9618_v14  ;;  %v4424_v16 = vadd.f32 1.0, %v7317_v40  ;;  %7338 = vtanh.f32 %v4341_v8 }
 0x9bc   : >> { %v7321_v48 = vpop.eup %7320  ;;  %v4468_v2 = vmul.f32 %v4420_v32, %v4084_v42  ;;  %v4422_v35 = vadd.f32 1.0, %v7319_v41  ;;  %7340 = vtanh.f32 %v4345_v23  ;;  %v4295_v38 = vadd.f32 %v9554_v60, %v9456_v9 }
 0x9bd   : >> { %v7323_v31 = vpop.eup %7322  ;;  %4834 = vmatprep.mubr.bf16.mxu0 %v4509_v54  ;;  %v4511_v1 = vpack.c.bf16 %v4475_v19, %v4471_v24  ;;  %v4472_v29 = vmul.f32 %v4424_v16, %v9626_v33  ;;  %v4426_v18 = vadd.f32 1.0, %v7321_v48  ;;  %v4299_v0 = vadd.f32 %v9569_v10, %v9480_v53 }
 0x9be   : >> { %v7325_v26 = vpop.eup %7324  ;;  %v4470_v14 = vmul.f32 %v4422_v35, %v9633_v30  ;;  %v4429_v36 = vadd.f32 1.0, %v7323_v31  ;;  %v4094_v42 = vmul.f32 0.5, %v10225_v63  ;;  %v4343_v27 = vmul.f32 0.7978846, %v4295_v38 }
 0x9bf   : >> { %v7327_v47 = vpop.eup %7326  ;;  %4915 = vmatprep.mubr.bf16.mxu1 %v4511_v1  ;;  %v4508_v25 = vpack.c.bf16 %v4472_v29, %v4468_v2  ;;  %v4474_v60 = vmul.f32 %v4426_v18, %v9636_v5  ;;  %v4433_v54 = vadd.f32 1.0, %v7325_v26  ;;  %v4347_v11 = vmul.f32 0.7978846, %v4299_v0 }
 0x9c0   : >> { %v7329_v8 = vpop.eup %7328  ;;  %v4477_v16 = vmul.f32 %v4429_v36, %v9643_v50  ;;  %v4431_v33 = vadd.f32 1.0, %v7327_v47  ;;  %v4098_v10 = vmul.f32 0.5, %v10227_v6  ;;  %7342 = vtanh.f32 %v4343_v27 }
 0x9c1   : >> { %v7331_v56 = vpop.eup %7330  ;;  %4835 = vmatmul.mubr.bf16.gmra.mrb[152].mxu0 %v4508_v25  ;;  %v4510_v30 = vpack.c.bf16 %v4474_v60, %v4470_v14  ;;  %v4481_v63 = vmul.f32 %v4433_v54, %v9646_v49  ;;  %v4435_v55 = vadd.f32 1.0, %v7329_v8  ;;  %7344 = vtanh.f32 %v4347_v11 }
 0x9c2   : >> { %v7333_v45 = vpop.eup %7332  ;;  %v4428_v23 = vadd.f32 1.0, %v7331_v56  ;;  %v4101_v5 = vmul.f32 0.5, %v9453_v15  ;;  %v4292_v40 = vadd.f32 %v9543_v57, %v9445_v43  ;;  %v4296_v50 = vadd.f32 %v9559_v52, %v9461_v62 }
 0x9c3   : >> { %v7335_v24 = vpop.eup %7334  ;;  %4916 = vmatmul.mubr.bf16.gmra.mrb[152].mxu1 %v4510_v30  ;;  %v4513_v6 = vpack.c.bf16 %v4481_v63, %v4477_v16  ;;  %v4479_v32 = vmul.f32 %v4431_v33, %v9653_v28  ;;  %v4483_v41 = vmul.f32 %v4435_v55, %v9656_v3  ;;  %v4432_v49 = vadd.f32 1.0, %v7333_v45  ;;  %v10229_v28 = vld [vmem:[#allocation6_spill] sm:$0xff] }
 0x9c4   : >> { %v7337_v19 = vpop.eup %7336  ;;  %v4430_v48 = vadd.f32 1.0, %v7335_v24  ;;  %v4105_v2 = vmul.f32 0.5, %v9470_v22  ;;  %v4340_v35 = vmul.f32 0.7978846, %v4292_v40  ;;  %v4344_v15 = vmul.f32 0.7978846, %v4296_v50 }
 0x9c5   : >> { %v7339_v38 = vpop.eup %7338  ;;  %4842 = vmatprep.mubr.bf16.mxu0 %v4513_v6  ;;  %v4515_v57 = vpack.c.bf16 %v4483_v41, %v4479_v32  ;;  %v4476_v31 = vmul.f32 %v4428_v23, %v9661_v34  ;;  %v4480_v52 = vmul.f32 %v4432_v49, %v4096_v4  ;;  %v4434_v1 = vadd.f32 1.0, %v7337_v19  ;;  %v10232_v40 = vld [vmem:[#allocation5_spill] sm:$0xff]  ;;  %v10233_v41 = vld [vmem:[#allocation7_spill] sm:$0xff]  ;;  %v10234_v49 = vld [vmem:[#allocation4_spill] sm:$0xff] }
 0x9c6   : >> { %v7341_v29 = vpop.eup %7340  ;;  %v4478_v18 = vmul.f32 %v4430_v48, %v4094_v42  ;;  %v4437_v0 = vadd.f32 1.0, %v7339_v38  ;;  %7346 = vtanh.f32 %v4340_v35  ;;  %v4294_v3 = vadd.f32 %v10229_v28, %v9448_v39 }
 0x9c7   : >> { %4923 = vmatprep.mubr.bf16.mxu1 %v4515_v57  ;;  %v4512_v26 = vpack.c.bf16 %v4480_v52, %v4476_v31  ;;  %v4482_v14 = vmul.f32 %v4434_v1, %v4098_v10  ;;  %v4441_v22 = vadd.f32 1.0, %v7341_v29  ;;  %7348 = vtanh.f32 %v4344_v15 }
 0x9c8   : >> { %v4256_v36 = vmul.f32 %v9578_v13, %v9525_v37  ;;  %v4259_v34 = vmul.f32 %v9599_v17, %v9536_v61  ;;  %v4298_v4 = vadd.f32 %v9562_v12, %v9464_v51  ;;  %v4342_v42 = vmul.f32 0.7978846, %v4294_v3 }
 0x9c9   : >> { %4843 = vmatmul.mubr.bf16.gmra.mrb[156].mxu0 %v4512_v26  ;;  %v4514_v27 = vpack.c.bf16 %v4482_v14, %v4478_v18  ;;  %v4485_v47 = vmul.f32 %v4437_v0, %v4101_v5  ;;  %v4489_v25 = vmul.f32 %v4441_v22, %v4105_v2  ;;  %v4301_v60 = vadd.f32 %v9589_v44, %v9517_v46  ;;  %v10231_v5 = vld [vmem:[#allocation8_spill] sm:$0xff] }
 0x9ca   : >> { %v7343_v54 = vpop.eup %7342  ;;  %v4103_v11 = vmul.f32 0.5, %v9456_v9  ;;  %v4346_v8 = vmul.f32 0.7978846, %v4298_v4  ;;  %7350 = vtanh.f32 %v4342_v42  ;;  %v4305_v13 = vadd.f32 %v9609_v7, %v9533_v20  ;;  %v10230_v9 = vld [vmem:[#allocation3_spill] sm:$0xff] }
 0x9cb   : >> { %v7345_v17 = vpop.eup %7344  ;;  %4924 = vmatmul.mubr.bf16.gmra.mrb[156].mxu1 %v4514_v27  ;;  %v4517_v16 = vpack.c.bf16 %v4489_v25, %v4485_v47  ;;  %v4107_v12 = vmul.f32 0.5, %v9480_v53  ;;  %v4439_v33 = vadd.f32 1.0, %v7343_v54  ;;  %v4349_v10 = vmul.f32 0.7978846, %v4301_v60 }
 0x9cc   : >> { %v4443_v56 = vadd.f32 1.0, %v7345_v17  ;;  %7352 = vtanh.f32 %v4346_v8  ;;  %v4353_v30 = vmul.f32 0.7978846, %v4305_v13  ;;  %v4303_v44 = vadd.f32 %v9592_v21, %v9520_v58 }
 0x9cd   : >> { %v4258_v63 = vmul.f32 %v10230_v9, %v9528_v59  ;;  %4850 = vmatprep.mubr.bf16.mxu0 %v4517_v16  ;;  %7354 = vtanh.f32 %v4349_v10  ;;  %v4307_v7 = vadd.f32 %v4259_v34, %v9536_v61  ;;  %v4487_v55 = vmul.f32 %v4439_v33, %v4103_v11 }
 0x9ce   : >> { %v4491_v45 = vmul.f32 %v4443_v56, %v4107_v12  ;;  %7356 = vtanh.f32 %v4353_v30  ;;  %v4351_v23 = vmul.f32 0.7978846, %v4303_v44  ;;  %v4300_v50 = vadd.f32 %v10232_v40, %v10231_v5 }
 0x9cf   : >> { %v4355_v53 = vmul.f32 0.7978846, %v4307_v7  ;;  %v4304_v24 = vadd.f32 %v4256_v36, %v9525_v37  ;;  %v4100_v21 = vmul.f32 0.5, %v9445_v43  ;;  %v4302_v19 = vadd.f32 %v10234_v49, %v10233_v41  ;;  %v7371_v49 = vld [vmem:[%s7810_s16] sm:$0xff] }
 0x9d0   : >> { %v7347_v6 = vpop.eup %7346  ;;  %v4519_v32 = vpack.c.bf16 %v4491_v45, %v4487_v55  ;;  %7358 = vtanh.f32 %v4351_v23  ;;  %v4348_v35 = vmul.f32 0.7978846, %v4300_v50  ;;  %v4104_v38 = vmul.f32 0.5, %v9461_v62 }
 0x9d1   : >> { %v7349_v48 = vpop.eup %7348  ;;  %v4436_v2 = vadd.f32 1.0, %v7347_v6  ;;  %7360 = vtanh.f32 %v4355_v53  ;;  %v4352_v15 = vmul.f32 0.7978846, %v4304_v24  ;;  %v4306_v31 = vadd.f32 %v4258_v63, %v9528_v59 }
 0x9d2   : >> { %4931 = vmatprep.mubr.bf16.mxu1 %v4519_v32  ;;  %v4440_v57 = vadd.f32 1.0, %v7349_v48  ;;  %v4350_v52 = vmul.f32 0.7978846, %v4302_v19  ;;  %7362 = vtanh.f32 %v4348_v35  ;;  %v4102_v14 = vmul.f32 0.5, %v9448_v39 }
 0x9d3   : >> { %v4484_v29 = vmul.f32 %v4436_v2, %v4100_v21  ;;  %7364 = vtanh.f32 %v4352_v15  ;;  %v4354_v18 = vmul.f32 0.7978846, %v4306_v31  ;;  %v4106_v62 = vmul.f32 0.5, %v9464_v51 }
 0x9d4   : >> { %v7351_v1 = vpop.eup %7350  ;;  %v4488_v43 = vmul.f32 %v4440_v57, %v4104_v38  ;;  %7366 = vtanh.f32 %v4350_v52  ;;  %v4109_v34 = vmul.f32 0.5, %v9517_v46  ;;  %v4113_v47 = vmul.f32 0.5, %v9533_v20 }
 0x9d5   : >> { %v4438_v0 = vadd.f32 1.0, %v7351_v1  ;;  %7368 = vtanh.f32 %v4354_v18  ;;  %v4111_v39 = vmul.f32 0.5, %v9520_v58  ;;  %v4115_v51 = vmul.f32 0.5, %v9536_v61 }
 0x9d6   : >> { %v7353_v28 = vpop.eup %7352  ;;  %v4516_v3 = vpack.c.bf16 %v4488_v43, %v4484_v29  ;;  %v4108_v44 = vmul.f32 0.5, %v10231_v5  ;;  %v4112_v9 = vmul.f32 0.5, %v9525_v37  ;;  %v4110_v58 = vmul.f32 0.5, %v10233_v41  ;;  %v10235_v37 = vld [vmem:[#allocation14_spill] sm:$0xff] }
 0x9d7   : >> { %v7355_v26 = vpop.eup %7354  ;;  %v4442_v22 = vadd.f32 1.0, %v7353_v28  ;;  %v4486_v42 = vmul.f32 %v4438_v0, %v4102_v14  ;;  %v4114_v53 = vmul.f32 0.5, %v9528_v59  ;;  %v4592_v32 = vsub.s32 5, %v10235_v37  ;;  %v10236_v0 = vld [vmem:[#allocation20_spill] sm:$0xff] }
 0x9d8   : >> { %v7357_v36 = vpop.eup %7356  ;;  %4851 = vmatmul.mubr.bf16.gmra.mrb[160].mxu0 %v4516_v3  ;;  %v4445_v4 = vadd.f32 1.0, %v7355_v26  ;;  %v10238_v26 = vld [vmem:[#allocation18_spill] sm:$0xff]  ;;  %v10246_v37 = vld [vmem:[#allocation28_spill] sm:$0xff] }
 0x9d9   : >> { %v4490_v27 = vmul.f32 %v4442_v22, %v4106_v62  ;;  %v4449_v25 = vadd.f32 1.0, %v7357_v36  ;;  %v9727_v19 = vrot.slane %v7371_v49, %v4592_v32 }
 0x9da   : >> { %v7359_v60 = vpop.eup %7358  ;;  %v4493_v8 = vmul.f32 %v4445_v4, %v4109_v34 }
 0x9db   : >> { %v7361_v54 = vpop.eup %7360  ;;  %v4518_v11 = vpack.c.bf16 %v4490_v27, %v4486_v42  ;;  %v4497_v13 = vmul.f32 %v4449_v25, %v4113_v47  ;;  %v4447_v17 = vadd.f32 1.0, %v7359_v60 }
 0x9dc   : >> { %v4451_v16 = vadd.f32 1.0, %v7361_v54  ;;  %v7363_v12 = vpop.eup %7362 }
 0x9dd   : >> { %4932 = vmatmul.mubr.bf16.gmra.mrb[160].mxu1 %v4518_v11  ;;  %v4521_v46 = vpack.c.bf16 %v4497_v13, %v4493_v8  ;;  %v7365_v33 = vpop.eup %7364  ;;  %v4495_v10 = vmul.f32 %v4447_v17, %v4111_v39  ;;  %v4444_v30 = vadd.f32 1.0, %v7363_v12  ;;  %v10242_v12 = vld [vmem:[#allocation27_spill] sm:$0xff] }
 0x9de   : >> { %v4499_v56 = vmul.f32 %v4451_v16, %v4115_v51  ;;  %v7367_v20 = vpop.eup %7366  ;;  %v4448_v63 = vadd.f32 1.0, %v7365_v33  ;;  %v10240_v51 = vld [vmem:[#allocation22_spill] sm:$0xff] }
 0x9df   : >> { %4858 = vmatprep.mubr.bf16.mxu0 %v4521_v46  ;;  %v7369_v7 = vpop.eup %7368  ;;  %v4446_v61 = vadd.f32 1.0, %v7367_v20  ;;  %v4492_v45 = vmul.f32 %v4444_v30, %v4108_v44 }
 0x9e0   : >> { %v4523_v55 = vpack.c.bf16 %v4499_v56, %v4495_v10  ;;  %v4496_v23 = vmul.f32 %v4448_v63, %v4112_v9  ;;  %v4450_v40 = vadd.f32 1.0, %v7369_v7 }
 0x9e1   : >> { %v4494_v24 = vmul.f32 %v4446_v61, %v4110_v58 }
 0x9e2   : >> { %4939 = vmatprep.mubr.bf16.mxu1 %v4523_v55  ;;  %v4520_v50 = vpack.c.bf16 %v4496_v23, %v4492_v45  ;;  %v4498_v6 = vmul.f32 %v4450_v40, %v4114_v53  ;;  %v10244_v40 = vld [vmem:[#allocation29_spill] sm:$0xff] }
 0x9e4   : >> { %4859 = vmatmul.mubr.bf16.gmra.mrb[164].mxu0 %v4520_v50  ;;  %v4522_v5 = vpack.c.bf16 %v4498_v6, %v4494_v24 }
 0x9e6   : >> { %4940 = vmatmul.mubr.bf16.gmra.mrb[164].mxu1 %v4522_v5 }
 0xa19   : >> { %v6089_v21 = vpop.f32.mrb[144].mxu0 }
 0xa1a   : >> { %v6090_v41 = vpop.f32.mrb[145].mxu0 }
 0xa1b   : >> { %v6091_v48 = vadd.f32 %v6090_v41, %v6089_v21  ;;  %v6092_v2 = vpop.f32.mrb[146].mxu0  ;;  %v6141_v35 = vpop.f32.mrb[144].mxu1 }
 0xa1c   : >> { %v6093_v15 = vpop.f32.mrb[147].mxu0  ;;  %v6142_v38 = vpop.f32.mrb[145].mxu1 }
 0xa1d   : >> { %v4821_v59 = vadd.f32 %v6091_v48, %v9727_v19  ;;  %v6094_v57 = vadd.f32 %v6093_v15, %v6092_v2  ;;  %v6143_v31 = vadd.f32 %v6142_v38, %v6141_v35  ;;  %v6144_v52 = vpop.f32.mrb[146].mxu1 }
 0xa1e   : >> { %v6145_v29 = vpop.f32.mrb[147].mxu1 }
 0xa1f   : >> { %v4824_v1 = vadd.f32 %v6094_v57, %v9727_v19  ;;  %v4902_v43 = vadd.f32 %v6143_v31, %v4821_v59  ;;  %v6146_v18 = vadd.f32 %v6145_v29, %v6144_v52  ;;  %v10248_v29 = vld [vmem:[#allocation19_spill] sm:$0xff] }
 0xa21   : >> { %v9732_v21 = vadd.f32 %v4902_v43, %v10236_v0   ;;  %v4905_v28 = vadd.f32 %v6146_v18, %v4824_v1  ;;  %v10250_v0 = vld [vmem:[#allocation21_spill] sm:$0xff] }
 0xa22   : >> { %v6095_v62 = vpop.f32.mrb[148].mxu0 }
 0xa23   : >> { %v10237_v3 = vmov %v9732_v21  ;;  %v9735_v17 = vadd.f32 %v4905_v28, %v10238_v26   ;;  %v6096_v22 = vpop.f32.mrb[149].mxu0 }
 0xa24   : >> { %v6147_v36 = vpop.f32.mrb[148].mxu1  ;;  %v6097_v34 = vadd.f32 %v6096_v22, %v6095_v62  ;;  %v6098_v4 = vpop.f32.mrb[150].mxu0 }
 0xa25   : >> { %v10239_v14 = vmov %v9735_v17  ;;  %v6148_v42 = vpop.f32.mrb[149].mxu1  ;;  %v6099_v27 = vpop.f32.mrb[151].mxu0 }
 0xa26   : >> { %v4829_v47 = vadd.f32 %v6097_v34, %v9727_v19  ;;  %v6149_v25 = vadd.f32 %v6148_v42, %v6147_v36  ;;  %v6150_v60 = vpop.f32.mrb[150].mxu1  ;;  %v6100_v54 = vadd.f32 %v6099_v27, %v6098_v4 }
 0xa27   : >> { %v6151_v11 = vpop.f32.mrb[151].mxu1 }
 0xa28   : >> { %v4910_v8 = vadd.f32 %v6149_v25, %v4829_v47  ;;  %v4832_v13 = vadd.f32 %v6100_v54, %v9727_v19  ;;  %v6152_v39 = vadd.f32 %v6151_v11, %v6150_v60 }
 0xa2a   : >> { %v9740_v31 = vadd.f32 %v4910_v8, %v10240_v51   ;;  %v4913_v17 = vadd.f32 %v6152_v39, %v4832_v13  ;;  %v10252_v39 = vld [vmem:[#allocation30_spill] sm:$0xff] }
 0xa2c   : >> { %v10241_v16 = vmov %v9740_v31  ;;  %v9743_v27 = vadd.f32 %v4913_v17, %v10242_v12   ;;  %v10254_v12 = vld [vmem:[#allocation24_spill] sm:$0xff] }
 0xa2e   : >> { %v10243_v46 = vmov %v9743_v27 }
 0xa94   : >> { %v6101_v33 = vpop.f32.mrb[152].mxu0 }
 0xa95   : >> { %v6102_v10 = vpop.f32.mrb[153].mxu0 }
 0xa96   : >> { %v6153_v56 = vpop.f32.mrb[152].mxu1  ;;  %v6103_v30 = vadd.f32 %v6102_v10, %v6101_v33  ;;  %v6104_v20 = vpop.f32.mrb[154].mxu0 }
 0xa97   : >> { %v6154_v44 = vpop.f32.mrb[153].mxu1  ;;  %v6105_v9 = vpop.f32.mrb[155].mxu0 }
 0xa98   : >> { %v4837_v63 = vadd.f32 %v6103_v30, %v9727_v19  ;;  %v6155_v7 = vadd.f32 %v6154_v44, %v6153_v56  ;;  %v6156_v55 = vpop.f32.mrb[154].mxu1  ;;  %v6106_v58 = vadd.f32 %v6105_v9, %v6104_v20 }
 0xa99   : >> { %v6157_v61 = vpop.f32.mrb[155].mxu1 }
 0xa9a   : >> { %v4918_v45 = vadd.f32 %v6155_v7, %v4837_v63  ;;  %v4840_v23 = vadd.f32 %v6106_v58, %v9727_v19  ;;  %v6158_v53 = vadd.f32 %v6157_v61, %v6156_v55 }
 0xa9c   : >> { %v9748_v41 = vadd.f32 %v4918_v45, %v10244_v40   ;;  %v4921_v24 = vadd.f32 %v6158_v53, %v4840_v23  ;;  %v6107_v6 = vpop.f32.mrb[156].mxu0 }
 0xa9d   : >> { %v6108_v5 = vpop.f32.mrb[157].mxu0 }
 0xa9e   : >> { %v10245_v50 = vmov %v9748_v41  ;;  %v9751_v37 = vadd.f32 %v4921_v24, %v10246_v37   ;;  %v6159_v32 = vpop.f32.mrb[156].mxu1  ;;  %v6109_v21 = vadd.f32 %v6108_v5, %v6107_v6  ;;  %v6110_v48 = vpop.f32.mrb[158].mxu0  ;;  %v10256_v24 = vld [vmem:[#allocation23_spill] sm:$0xff] }
 0xa9f   : >> { %v6160_v2 = vpop.f32.mrb[157].mxu1  ;;  %v6111_v35 = vpop.f32.mrb[159].mxu0 }
 0xaa0   : >> { %v10247_v49 = vmov %v9751_v37  ;;  %v4845_v15 = vadd.f32 %v6109_v21, %v9727_v19  ;;  %v6161_v59 = vadd.f32 %v6160_v2, %v6159_v32  ;;  %v6162_v38 = vpop.f32.mrb[158].mxu1  ;;  %v6112_v57 = vadd.f32 %v6111_v35, %v6110_v48  ;;  %v10258_v37 = vld [vmem:[#allocation26_spill] sm:$0xff] }
 0xaa1   : >> { %v6163_v31 = vpop.f32.mrb[159].mxu1  ;;  %v10272_v21 = vmov %v10237_v3 }
 0xaa2   : >> { %v4926_v52 = vadd.f32 %v6161_v59, %v4845_v15  ;;  %v4848_v41 = vadd.f32 %v6112_v57, %v9727_v19  ;;  %v6164_v1 = vadd.f32 %v6163_v31, %v6162_v38  ;;  %v10270_v31 = vmov %v10241_v16 }
 0xaa4   : >> { %v9756_v22 = vadd.f32 %v4926_v52, %v10248_v29   ;;  %v4929_v18 = vadd.f32 %v6164_v1, %v4848_v41  ;;  %v10268_v41 = vmov %v10245_v50  ;;  %v7534_v29 = vmov (%p9778_p4), 0  }
 0xaa5   : > { %7373 = vset.pattern.permute.xlu1 (%p9778_p4), %v7534_v29  ;;  %7372 = vset.pattern.permute.xlu0 (%p9778_p4), %v7534_v29 }
 0xaa6   : >> { %v10249_v43 = vmov %v9756_v22  ;;  %v9759_v18 = vadd.f32 %v4929_v18, %v10250_v0  }
 0xaa8   : >> { %v10251_v26 = vmov %v9759_v18 }
 0xaa9   : >> { %v10265_v18 = vmov %v10251_v26 }
 0xaab   : >> { %v6113_v28 = vpop.f32.mrb[160].mxu0 }
 0xaac   : >> { %v6114_v62 = vpop.f32.mrb[161].mxu0 }
 0xaad   : >> { %v6115_v36 = vadd.f32 %v6114_v62, %v6113_v28  ;;  %v6116_v34 = vpop.f32.mrb[162].mxu0 }
 0xaae   : >> { %v6117_v4 = vpop.f32.mrb[163].mxu0 }
 0xaaf   : >> { %v6118_v42 = vadd.f32 %v6117_v4, %v6116_v34  ;;  %v4853_v47 = vadd.f32 %v6115_v36, %v9727_v19  ;;  %v5917_v36 = vld [vmem:[%s10081_s10 + $0x1] ss:$0 sm:$0xff] (%p9778_p4) }
 0xab0   : >> { %v6165_v27 = vpop.f32.mrb[160].mxu1 }
 0xab1   : >> { %v6166_v25 = vpop.f32.mrb[161].mxu1  ;;  %v4856_v11 = vadd.f32 %v6118_v42, %v9727_v19 }
 0xab2   : >> { %v6167_v60 = vadd.f32 %v6166_v25, %v6165_v27  ;;  %v6168_v54 = vpop.f32.mrb[162].mxu1  ;;  %v10269_v27 = vmov %v10243_v46 }
 0xab3   : >> { %v6169_v8 = vpop.f32.mrb[163].mxu1 }
 0xab4   : >> { %v4934_v22 = vadd.f32 %v6167_v60, %v4853_v47  ;;  %v6170_v13 = vadd.f32 %v6169_v8, %v6168_v54 }
 0xab6   : >> { %v9764_v32 = vadd.f32 %v4934_v22, %v10252_v39   ;;  %v4937_v17 = vadd.f32 %v6170_v13, %v4856_v11  ;;  %v10266_v22 = vmov %v10249_v43 }
 0xab7   : >> { %v6119_v10 = vpop.f32.mrb[164].mxu0 }
 0xab8   : >> { %v10253_v51 = vmov %v9764_v32  ;;  %v9767_v28 = vadd.f32 %v4937_v17, %v10254_v12   ;;  %v6120_v56 = vpop.f32.mrb[165].mxu0  ;;  %v10271_v17 = vmov %v10239_v14 }
 0xab9   : >> { %v6171_v30 = vpop.f32.mrb[164].mxu1  ;;  %v6121_v20 = vadd.f32 %v6120_v56, %v6119_v10  ;;  %v6122_v44 = vpop.f32.mrb[166].mxu0  ;;  %v10264_v32 = vmov %v10253_v51 }
 0xaba   : >> { %v10255_v33 = vmov %v9767_v28  ;;  %v6172_v9 = vpop.f32.mrb[165].mxu1  ;;  %v6123_v63 = vpop.f32.mrb[167].mxu0 }
 0xabb   : >> { %v4861_v7 = vadd.f32 %v6121_v20, %v9727_v19  ;;  %v6173_v55 = vadd.f32 %v6172_v9, %v6171_v30  ;;  %v6174_v58 = vpop.f32.mrb[166].mxu1  ;;  %v6124_v61 = vadd.f32 %v6123_v63, %v6122_v44  ;;  %v10263_v28 = vmov %v10255_v33 }
 0xabc   : >> { %v6175_v45 = vpop.f32.mrb[167].mxu1 }
 0xabd   : >> { %v4942_v23 = vadd.f32 %v6173_v55, %v4861_v7  ;;  %v4864_v53 = vadd.f32 %v6124_v61, %v9727_v19  ;;  %v6176_v40 = vadd.f32 %v6175_v45, %v6174_v58  ;;  %v5916_v19 = vld [vmem:[%s10081_s10] ss:$0 sm:$0xff] (%p9778_p4) }
 0xabe   : > { %670 = sbr.rel (!%p9778_p4) target bundleno = 244 (0xf4), region = 121  ;;  %v4968_v21 = vmul.f32 (%p9778_p4), %v5916_v19, %v10241_v16  ;;  %v4966_v2 = vmul.f32 (%p9778_p4), %v5916_v19, %v10237_v3  ;;  %v4969_v35 = vmul.f32 (%p9778_p4), %v5916_v19, %v10243_v46  ;;  %v4967_v15 = vmul.f32 (%p9778_p4), %v5916_v19, %v10239_v14 }
 0xabf   : >> { %v9772_v42 = vadd.f32 %v4942_v23, %v10256_v24   ;;  %v4945_v5 = vadd.f32 %v6176_v40, %v4864_v53  ;;  %v4973_v59 = vmul.f32 (%p9778_p4), %v5916_v19, %v10251_v26  ;;  %v4972_v57 = vmul.f32 (%p9778_p4), %v5916_v19, %v10249_v43 }
 0xac0   : > { %4982 = vadd.xlane.f32.xlu1 (%p9778_p4), %v4968_v21  ;;  %4978 = vadd.xlane.f32.xlu0 (%p9778_p4), %v4966_v2  ;;  %v4975_v32 = vmul.f32 (%p9778_p4), %v5916_v19, %v10255_v33  ;;  %v4971_v31 = vmul.f32 (%p9778_p4), %v5916_v19, %v10247_v49  ;;  %v4970_v52 = vmul.f32 (%p9778_p4), %v5916_v19, %v10245_v50 }
 0xac1   : >> { %v10257_v6 = vmov %v9772_v42  ;;  %v9775_v38 = vadd.f32 %v4945_v5, %v10258_v37   ;;  %v10267_v37 = vmov %v10247_v49 }
 0xac2   : >> { %v10262_v42 = vmov %v10257_v6  ;;  %v4976_v1 = vmul.f32 (%p9778_p4), %v5916_v19, %v10257_v6 }
 0xac3   : >> { %v10259_v48 = vmov %v9775_v38 }
 0xac4   : >> { %v10261_v38 = vmov %v10259_v48  ;;  %4984 = vadd.xlane.f32.xlu1 (%p9778_p4), %v4969_v35  ;;  %4980 = vadd.xlane.f32.xlu0 (%p9778_p4), %v4967_v15  ;;  %v4977_v41 = vmul.f32 (%p9778_p4), %v5916_v19, %v10259_v48 }
 0xac5   : > { %v4974_v38 = vmul.f32 %v5916_v19, %v10253_v51 }
 0xac8   : > { %4992 = vadd.xlane.f32.xlu1 %v4973_v59  ;;  %4990 = vadd.xlane.f32.xlu0 %v4972_v57 }
 0xacc   : > { %4996 = vadd.xlane.f32.xlu1 %v4975_v32  ;;  %4994 = vadd.xlane.f32.xlu0 %v4974_v38 }
 0xad0   : > { %4988 = vadd.xlane.f32.xlu1 %v4971_v31  ;;  %4986 = vadd.xlane.f32.xlu0 %v4970_v52 }
 0xad4   : > { %5000 = vadd.xlane.f32.xlu1 %v4977_v41  ;;  %4998 = vadd.xlane.f32.xlu0 %v4976_v1 }
 0xb4d   : > { %v4983_v18 = vpop.xlane.xlu1 %4982  ;;  %v4979_v0 = vpop.xlane.xlu0 %4978 }
 0xb4e   : > { %v9840_v42 = vadd.f32 %v5917_v36, %v4983_v18  ;;  %v5006_v27 = vadd.f32 %v5917_v36, %v4979_v0 }
 0xb50   : > { %v5021_v11 = vsel %vm5018_vm6, %v9840_v42, -inf  ;;  %v5019_v8 = vsel %vm5018_vm6, %v5006_v27, -inf }
 0xb51   : > { %v4985_v28 = vpop.xlane.xlu1 %4984  ;;  %v4981_v62 = vpop.xlane.xlu0 %4980  ;;  %v5022_v9 = vmax.f32 %v5019_v8, %v5021_v11 }
 0xb52   : > { %v9842_v47 = vadd.f32 %v5917_v36, %v4985_v28  ;;  %v9844_v25 = vadd.f32 %v5917_v36, %v4981_v62 }
 0xb54   : > { %v5023_v22 = vsel %vm5018_vm6, %v9842_v47, -inf  ;;  %v5020_v13 = vsel %vm5018_vm6, %v9844_v25, -inf }
 0xb55   : > { %v4993_v34 = vpop.xlane.xlu1 %4992  ;;  %v4991_v4 = vpop.xlane.xlu0 %4990  ;;  %v5024_v63 = vmax.f32 %v5020_v13, %v5023_v22 }
 0xb56   : > { %v5013_v56 = vadd.f32 %v5917_v36, %v4993_v34  ;;  %v5012_v30 = vadd.f32 %v5917_v36, %v4991_v4 }
 0xb58   : > { %v5037_v24 = vsel %vm5018_vm6, %v5013_v56, -inf  ;;  %v5036_v5 = vsel %vm5018_vm6, %v5012_v30, -inf }
 0xb59   : > { %v4997_v60 = vpop.xlane.xlu1 %4996  ;;  %v4995_v54 = vpop.xlane.xlu0 %4994 }
 0xb5a   : > { %v5015_v39 = vadd.f32 %v5917_v36, %v4997_v60  ;;  %v5014_v17 = vadd.f32 %v5917_v36, %v4995_v54 }
 0xb5c   : > { %v5040_v7 = vsel %vm5018_vm6, %v5015_v39, -inf  ;;  %v5038_v55 = vsel %vm5018_vm6, %v5014_v17, -inf }
 0xb5d   : > { %v4989_v12 = vpop.xlane.xlu1 %4988  ;;  %v4987_v10 = vpop.xlane.xlu0 %4986  ;;  %v5041_v21 = vmax.f32 %v5037_v24, %v5040_v7  ;;  %v5039_v2 = vmax.f32 %v5036_v5, %v5038_v55 }
 0xb5e   : > { %v9853_v20 = vadd.f32 %v5917_v36, %v4989_v12  ;;  %v9855_v44 = vadd.f32 %v5917_v36, %v4987_v10 }
 0xb60   : > { %v5027_v58 = vsel %vm5018_vm6, %v9853_v20, -inf  ;;  %v5025_v61 = vsel %vm5018_vm6, %v9855_v44, -inf }
 0xb61   : > { %v5028_v45 = vmax.f32 %v5024_v63, %v5027_v58  ;;  %v5026_v23 = vmax.f32 %v5022_v9, %v5025_v61  ;;  %v5001_v53 = vpop.xlane.xlu1 %5000  ;;  %v4999_v40 = vpop.xlane.xlu0 %4998 }
 0xb62   : > { %v5017_v37 = vadd.f32 %v5917_v36, %v5001_v53  ;;  %v5016_v19 = vadd.f32 %v5917_v36, %v4999_v40 }
 0xb63   : > { %v5029_v35 = vmax.f32 %v5026_v23, %v5028_v45 }
 0xb64   : > { %v5044_v15 = vsel %vm5018_vm6, %v5017_v37, -inf  ;;  %v5042_v59 = vsel %vm5018_vm6, %v5016_v19, -inf }
 0xb65   : > { %v5030_v57 = vrot.slane %v5029_v35, 4  ;;  %v5045_v32 = vmax.f32 %v5041_v21, %v5044_v15  ;;  %v5043_v38 = vmax.f32 %v5039_v2, %v5042_v59 }
 0xb67   : > { %v5031_v31 = vmax.f32 %v5029_v35, %v5030_v57  ;;  %v5046_v52 = vmax.f32 %v5043_v38, %v5045_v32 }
 0xb69   : > { %v5032_v41 = vrot.slane %v5031_v31, 2  ;;  %v5047_v1 = vrot.slane %v5046_v52, 4 }
 0xb6b   : > { %v5033_v29 = vmax.f32 %v5031_v31, %v5032_v41  ;;  %v5048_v18 = vmax.f32 %v5046_v52, %v5047_v1 }
 0xb6d   : > { %v5034_v0 = vrot.slane %v5033_v29, 1  ;;  %v5049_v28 = vrot.slane %v5048_v18, 2 }
 0xb6f   : > { %v5035_v62 = vmax.f32 %v5033_v29, %v5034_v0  ;;  %v5050_v36 = vmax.f32 %v5048_v18, %v5049_v28 }
 0xb71   : > { %v5053_v34 = vsub.f32 %v5006_v27, %v5035_v62  ;;  %v5051_v4 = vrot.slane %v5050_v36, 1  ;;  %v5055_v11 = vsub.f32 %v9840_v42, %v5035_v62  ;;  %v5054_v55 = vsub.f32 %v9844_v25, %v5035_v62 }
 0xb72   : > { %v5056_v27 = vsub.f32 %v9842_v47, %v5035_v62  ;;  %v5057_v42 = vsub.f32 %v9855_v44, %v5035_v62 }
 0xb73   : > { %v5052_v60 = vmax.f32 %v5050_v36, %v5051_v4  ;;  %v5065_v54 = vmul.f32 1.442695, %v5053_v34  ;;  %v5069_v45 = vmul.f32 1.442695, %v5055_v11 }
 0xb74   : > { %v5073_v25 = vmul.f32 1.442695, %v5057_v42 }
 0xb75   : > { %v5059_v8 = vsub.f32 %v5012_v30, %v5052_v60  ;;  %v5060_v22 = vsub.f32 %v5013_v56, %v5052_v60  ;;  %v5061_v13 = vsub.f32 %v5014_v17, %v5052_v60  ;;  %v5062_v12 = vsub.f32 %v5015_v39, %v5052_v60 }
 0xb76   : > { %v5063_v10 = vsub.f32 %v5016_v19, %v5052_v60  ;;  %7374 = vpow2.f32 %v5065_v54  ;;  %v5064_v58 = vsub.f32 %v5017_v37, %v5052_v60  ;;  %v5067_v17 = vmul.f32 1.442695, %v5054_v55 }
 0xb77   : > { %v5077_v9 = vmul.f32 1.442695, %v5059_v8  ;;  %v5079_v63 = vmul.f32 1.442695, %v5060_v22  ;;  %v5081_v7 = vmul.f32 1.442695, %v5061_v13  ;;  %v5058_v56 = vsub.f32 %v9853_v20, %v5035_v62 }
 0xb78   : > { %v5083_v61 = vmul.f32 1.442695, %v5062_v12  ;;  %v5085_v23 = vmul.f32 1.442695, %v5063_v10  ;;  %v5087_v39 = vmul.f32 1.442695, %v5064_v58 }
 0xb79   : > { %7376 = vpow2.f32 %v5077_v9  ;;  %v5071_v30 = vmul.f32 1.442695, %v5056_v27  ;;  %v5075_v47 = vmul.f32 1.442695, %v5058_v56 }
 0xb7a   : > { %7378 = vpow2.f32 %v5079_v63 }
 0xb7b   : > { %7380 = vpow2.f32 %v5081_v7 }
 0xb7c   : > { %7382 = vpow2.f32 %v5083_v61 }
 0xb7d   : > { %7384 = vpow2.f32 %v5069_v45 }
 0xb7e   : > { %7386 = vpow2.f32 %v5085_v23 }
 0xb7f   : > { %7388 = vpow2.f32 %v5067_v17 }
 0xb80   : > { %7390 = vpow2.f32 %v5087_v39  ;;  %v7375_v53 = vpop.eup %7374 }
 0xb81   : > { %7392 = vpow2.f32 %v5071_v30  ;;  %v5089_v59 = vsel %vm5018_vm6, %v7375_v53, 0.0 }
 0xb82   : > { %7394 = vpow2.f32 %v5073_v25 }
 0xb83   : > { %v7377_v40 = vpop.eup %7376  ;;  %7396 = vpow2.f32 %v5075_v47 }
 0xb84   : > { %v7379_v24 = vpop.eup %7378  ;;  %v5106_v44 = vsel %vm5018_vm6, %v7377_v40, 0.0 }
 0xb85   : > { %v7381_v5 = vpop.eup %7380  ;;  %v5107_v37 = vsel %vm5018_vm6, %v7379_v24, 0.0 }
 0xb86   : > { %v9874_v19 = vpop.eup %7382  ;;  %v5108_v20 = vadd.f32 %v5107_v37, %v5106_v44  ;;  %v5109_v2 = vsel %vm5018_vm6, %v7381_v5, 0.0 }
 0xb87   : > { %v7385_v21 = vpop.eup %7384  ;;  %v5111_v32 = vsel %vm5018_vm6, %v9874_v19, 0.0 }
 0xb88   : > { %v7387_v35 = vpop.eup %7386  ;;  %v5110_v15 = vadd.f32 %v5109_v2, %v5108_v20  ;;  %v5092_v0 = vsel %vm5018_vm6, %v7385_v21, 0.0 }
 0xb89   : > { %v7389_v57 = vpop.eup %7388  ;;  %v5113_v1 = vsel %vm5018_vm6, %v7387_v35, 0.0 }
 0xb8a   : > { %v7391_v38 = vpop.eup %7390  ;;  %v5112_v31 = vadd.f32 %v5111_v32, %v5110_v15  ;;  %v5090_v52 = vsel %vm5018_vm6, %v7389_v57, 0.0  ;;  %v5232_v15 = vld [vmem:[%s10082_s11] sm:$0xff] }
 0xb8b   : > { %v7393_v41 = vpop.eup %7392  ;;  %v5091_v29 = vadd.f32 %v5090_v52, %v5089_v59  ;;  %v5115_v62 = vsel %vm5018_vm6, %v7391_v38, 0.0  ;;  %v7535_v59 = vmov 0.0|0.0   ;;  %v5236_v32 = vld [vmem:[%s10082_s11 + $0x20] sm:$0xff] }
 0xb8c   : > { %v5114_v18 = vadd.f32 %v5113_v1, %v5112_v31  ;;  %v9883_v28 = vpop.eup %7394  ;;  %v5094_v4 = vsel %vm5018_vm6, %v7393_v41, 0.0  ;;  %6649 = vmatprep.subr.bf16.mxu0 %v7535_v59  ;;  %6673 = vmatprep.subr.bf16.mxu1 %v7535_v59 }
 0xb8d   : > { %v5093_v36 = vadd.f32 %v5092_v0, %v5091_v29  ;;  %v9887_v60 = vpop.eup %7396  ;;  %v5096_v11 = vsel %vm5018_vm6, %v9883_v28, 0.0  ;;  %v5241_v0 = vld [vmem:[%s10082_s11 + $0x48] sm:$0xff] }
 0xb8e   : > { %v5116_v34 = vadd.f32 %v5115_v62, %v5114_v18  ;;  %v5098_v12 = vsel %vm5018_vm6, %v9887_v60, 0.0  ;;  %v5240_v18 = vld [vmem:[%s10082_s11 + $0x40] sm:$0xff]  ;;  %v5242_v62 = vld [vmem:[%s10082_s11 + $0x50] sm:$0xff] }
 0xb8f   : > { %v5095_v54 = vadd.f32 %v5094_v4, %v5093_v36  ;;  %v5243_v36 = vld [vmem:[%s10082_s11 + $0x58] sm:$0xff]  ;;  %v5244_v4 = vld [vmem:[%s10082_s11 + $0x60] sm:$0xff] }
 0xb90   : > { %v5117_v8 = vrot.slane %v5116_v34, 4 }
 0xb91   : > { %v5097_v22 = vadd.f32 %v5096_v11, %v5095_v54  ;;  %v5246_v11 = vld [vmem:[%s10082_s11 + $0x70] sm:$0xff] }
 0xb92   : > { %v5118_v13 = vadd.f32 %v5117_v8, %v5116_v34  ;;  %v6665_v34 = vpack.c.bf16 %v5243_v36, %v5242_v62  ;;  %v5247_v8 = vld [vmem:[%s10082_s11 + $0x78] sm:$0xff] }
 0xb93   : > { %v5099_v10 = vadd.f32 %v5098_v12, %v5097_v22  ;;  %v6671_v22 = vpack.c.bf16 %v5247_v8, %v5246_v11  ;;  %v5363_v8 = vld [vmem:[%s10083_s12] sm:$0xff] }
 0xb94   : > { %v5119_v9 = vrot.slane %v5118_v13, 2 }
 0xb95   : > { %v5100_v63 = vrot.slane %v5099_v10, 4 }
 0xb96   : > { %v5120_v7 = vadd.f32 %v5119_v9, %v5118_v13  ;;  %v7537_v13 = vmov 0.0  }
 0xb97   : > { %v5101_v55 = vadd.f32 %v5100_v63, %v5099_v10  ;;  %6608 = vmatprep.mubr.msk.f32.mxu0 %vm7536_vm7, %v7537_v13  ;;  %6627 = vmatprep.mubr.msk.f32.mxu1 %vm7536_vm7, %v7537_v13 }
 0xb98   : > { %v5121_v58 = vrot.slane %v5120_v7, 1 }
 0xb99   : > { %v5102_v61 = vrot.slane %v5101_v55, 2 }
 0xb9a   : > { %v5122_v45 = vadd.f32 %v5121_v58, %v5120_v7 }
 0xb9b   : > { %v5103_v27 = vadd.f32 %v5102_v61, %v5101_v55 }
 0xb9c   : > { %7398 = vrcp.f32 %v5122_v45 }
 0xb9d   : > { %v5104_v23 = vrot.slane %v5103_v27, 1 }
 0xb9f   : > { %v5105_v42 = vadd.f32 %v5104_v23, %v5103_v27 }
 0xba1   : > { %7400 = vrcp.f32 %v5105_v42 }
 0xba6   : > { %v7399_v17 = vpop.eup %7398 }
 0xba7   : > { %v5135_v25 = vmul.f32 %v7399_v17, %v7387_v35  ;;  %v5131_v47 = vmul.f32 %v7399_v17, %v7377_v40  ;;  %v5136_v44 = vmul.f32 %v7399_v17, %v7391_v38  ;;  %v5132_v37 = vmul.f32 %v7399_v17, %v7379_v24  ;;  %v5234_v24 = vld [vmem:[%s10082_s11 + $0x10] sm:$0xff]  ;;  %v5237_v38 = vld [vmem:[%s10082_s11 + $0x28] sm:$0xff] }
 0xba8   : > { %v5133_v2 = vmul.f32 %v7399_v17, %v7381_v5  ;;  %v5235_v5 = vld [vmem:[%s10082_s11 + $0x18] sm:$0xff]  ;;  %v6656_v31 = vpack.c.bf16 %v5237_v38, %v5236_v32 }
 0xbab   : > { %v7401_v39 = vpop.eup %7400 }
 0xbac   : > { %v5126_v56 = vmul.f32 %v7401_v39, %v7389_v57  ;;  %v5125_v30 = vmul.f32 %v7401_v39, %v7375_v53  ;;  %v5127_v20 = vmul.f32 %v7401_v39, %v7385_v21  ;;  %v5233_v53 = vld [vmem:[%s10082_s11 + $0x8] sm:$0xff]  ;;  %v5128_v40 = vmul.f32 %v7401_v39, %v7393_v41  ;;  %v5239_v41 = vld [vmem:[%s10082_s11 + $0x38] sm:$0xff] }
 0xbad   : > { %v6650_v35 = vpack.c.bf16 %v5233_v53, %v5232_v15  ;;  %v6653_v21 = vpack.c.bf16 %v5235_v5, %v5234_v24  ;;  %v5134_v57 = vmul.f32 %v7399_v17, %v9874_v19  ;;  %v5129_v52 = vmul.f32 %v7401_v39, %v9883_v28  ;;  %v5238_v19 = vld [vmem:[%s10082_s11 + $0x30] sm:$0xff] }
 0xbae   : > { %5144 = vperm.xlu1 %7373, %v5126_v56   ;;  %5139 = vperm.xlu0 %7372, %v5125_v30   ;;  %v6659_v1 = vpack.c.bf16 %v5239_v41, %v5238_v19  ;;  %v5130_v29 = vmul.f32 %v7401_v39, %v9887_v60  ;;  %v6662_v28 = vpack.c.bf16 %v5241_v0, %v5240_v18  ;;  %v5245_v60 = vld [vmem:[%s10082_s11 + $0x68] sm:$0xff] }
 0xbaf   : > { %6651 = vmatpush3.bf16.msra.mxu0 %v6650_v35  ;;  %v6668_v54 = vpack.c.bf16 %v5245_v60, %v5244_v4 }
 0xbb0   : > { %6652 = vmatprep.subr.bf16.mxu0 %v7535_v59 }
 0xbb2   : > { %5189 = vperm.xlu0 %7372, %v5135_v25   ;;  %5169 = vperm.xlu1 %7373, %v5131_v47  }
 0xbb3   : > { %6654 = vmatpush3.bf16.msra.mxu0 %v6653_v21 }
 0xbb4   : > { %6655 = vmatprep.subr.bf16.mxu0 %v7535_v59 }
 0xbb6   : > { %5194 = vperm.xlu0 %7372, %v5136_v44   ;;  %5174 = vperm.xlu1 %7373, %v5132_v37  }
 0xbb7   : > { %6657 = vmatpush3.bf16.msra.mxu0 %v6656_v31 }
 0xbb8   : > { %6658 = vmatprep.subr.bf16.mxu0 %v7535_v59 }
 0xbba   : > { %5149 = vperm.xlu1 %7373, %v5127_v20  }
 0xbbb   : > { %6660 = vmatpush3.bf16.msra.mxu0 %v6659_v1  ;;  %v9972_v1 = vld [vmem:[%s10084_s13] sm:$0x1f] }
 0xbbc   : > { %6661 = vmatprep.subr.bf16.mxu0 %v7535_v59 }
 0xbbe   : > { %5179 = vperm.xlu1 %7373, %v5133_v2  }
 0xbbf   : > { %6663 = vmatpush3.bf16.msra.mxu0 %v6662_v28 }
 0xbc0   : > { %6664 = vmatprep.subr.bf16.mxu0 %v7535_v59 }
 0xbc2   : > { %5154 = vperm.xlu1 %7373, %v5128_v40  }
 0xbc3   : > { %6666 = vmatpush3.bf16.msra.mxu0 %v6665_v34 }
 0xbc4   : > { %6667 = vmatprep.subr.bf16.mxu0 %v7535_v59 }
 0xbc6   : > { %5184 = vperm.xlu1 %7373, %v5134_v57  }
 0xbc7   : > { %6669 = vmatpush3.bf16.msra.mxu0 %v6668_v54 }
 0xbc8   : > { %6670 = vmatprep.subr.bf16.mxu0 %v7535_v59 }
 0xbca   : > { %5159 = vperm.xlu1 %7373, %v5129_v52  }
 0xbcb   : > { %6672 = vmatpush3.bf16.msra.mxu0 %v6671_v22  ;;  %v5364_v22 = vld [vmem:[%s10083_s12 + $0x8] sm:$0xff] }
 0xbce   : > { %5164 = vperm.xlu1 %7373, %v5130_v29  }
 0xc2d   : > { %v5145_v12 = vpop.permute.xlu1 %5144  ;;  %v5140_v7 = vpop.permute.xlu0 %5139 }
 0xc2e   : > { %v5198_v42 = vmul.f32 %v5145_v12, %v10239_v14  ;;  %v5197_v17 = vmul.f32 %v5140_v7, %v10237_v3  ;;  %v5365_v12 = vld [vmem:[%s10083_s12 + $0x10] sm:$0xff]  ;;  %v5367_v7 = vld [vmem:[%s10083_s12 + $0x20] sm:$0xff] }
 0xc30   : > { %v5209_v37 = vadd.f32 %v5198_v42, %v5197_v17 }
 0xc31   : > { %v5170_v10 = vpop.permute.xlu1 %5169  ;;  %v5190_v61 = vpop.permute.xlu0 %5189 }
 0xc32   : > { %v5203_v45 = vmul.f32 %v5170_v10, %v10249_v43  ;;  %v6674_v10 = vpack.c.bf16 %v5364_v22, %v5363_v8 }
 0xc34   : > { %6675 = vmatpush3.bf16.msra.mxu1 %v6674_v10 }
 0xc35   : > { %v5175_v9 = vpop.permute.xlu1 %5174  ;;  %v5195_v44 = vpop.permute.xlu0 %5194  ;;  %6676 = vmatprep.subr.bf16.mxu1 %v7535_v59 }
 0xc36   : > { %v5204_v58 = vmul.f32 %v5175_v9, %v10251_v26  ;;  %v5207_v26 = vmul.f32 %v5190_v61, %v10257_v6  ;;  %v5366_v9 = vld [vmem:[%s10083_s12 + $0x18] sm:$0xff]  ;;  %v5369_v61 = vld [vmem:[%s10083_s12 + $0x30] sm:$0xff] }
 0xc38   : > { %v5220_v39 = vadd.f32 %v5204_v58, %v5203_v45 }
 0xc39   : > { %v5150_v63 = vpop.permute.xlu1 %5149 }
 0xc3a   : > { %v5199_v30 = vmul.f32 %v5150_v63, %v10241_v16  ;;  %v6677_v63 = vpack.c.bf16 %v5366_v9, %v5365_v12  ;;  %v5921_v9 = vld [vmem:[%s10083_s12 + $0x50] sm:$0xff] }
 0xc3c   : > { %v5210_v14 = vadd.f32 %v5209_v37, %v5199_v30  ;;  %6678 = vmatpush3.bf16.msra.mxu1 %v6677_v63  ;;  %v5922_v63 = vld [vmem:[%s10083_s12 + $0x58] sm:$0xff] }
 0xc3d   : > { %v5180_v55 = vpop.permute.xlu1 %5179  ;;  %6679 = vmatprep.subr.bf16.mxu1 %v7535_v59 }
 0xc3e   : > { %v5205_v23 = vmul.f32 %v5180_v55, %v10253_v51  ;;  %v5208_v51 = vmul.f32 %v5195_v44, %v10259_v48  ;;  %v5368_v55 = vld [vmem:[%s10083_s12 + $0x28] sm:$0xff] }
 0xc3f   : > { %v6680_v58 = vpack.c.bf16 %v5368_v55, %v5367_v7  ;;  %v6689_v7 = vpack.c.bf16 %v5922_v63, %v5921_v9  ;;  %v5923_v55 = vld [vmem:[%s10083_s12 + $0x60] sm:$0xff] }
 0xc40   : > { %v5221_v25 = vadd.f32 %v5220_v39, %v5205_v23 }
 0xc41   : > { %v5155_v27 = vpop.permute.xlu1 %5154  ;;  %6681 = vmatpush3.bf16.msra.mxu1 %v6680_v58  ;;  %v5924_v58 = vld [vmem:[%s10083_s12 + $0x68] sm:$0xff] }
 0xc42   : > { %v5200_v20 = vmul.f32 %v5155_v27, %v10243_v46  ;;  %6682 = vmatprep.subr.bf16.mxu1 %v7535_v59  ;;  %v5370_v27 = vld [vmem:[%s10083_s12 + $0x38] sm:$0xff] }
 0xc43   : > { %v6683_v45 = vpack.c.bf16 %v5370_v27, %v5369_v61  ;;  %v6692_v61 = vpack.c.bf16 %v5924_v58, %v5923_v55  ;;  %v5925_v27 = vld [vmem:[%s10083_s12 + $0x70] sm:$0xff] }
 0xc44   : > { %v5211_v53 = vadd.f32 %v5210_v14, %v5200_v20 }
 0xc45   : > { %v5185_v56 = vpop.permute.xlu1 %5184  ;;  %6684 = vmatpush3.bf16.msra.mxu1 %v6683_v45 }
 0xc46   : > { %v5206_v47 = vmul.f32 %v5185_v56, %v10255_v33  ;;  %6685 = vmatprep.subr.bf16.mxu1 %v7535_v59 }
 0xc48   : > { %v5222_v43 = vadd.f32 %v5221_v25, %v5206_v47 }
 0xc49   : > { %v5160_v2 = vpop.permute.xlu1 %5159 }
 0xc4a   : > { %v5223_v15 = vadd.f32 %v5222_v43, %v5207_v26  ;;  %v5201_v3 = vmul.f32 %v5160_v2, %v10245_v50 }
 0xc4c   : > { %v5224_v35 = vadd.f32 %v5223_v15, %v5208_v51  ;;  %v5212_v24 = vadd.f32 %v5211_v53, %v5201_v3  ;;  %v10274_v3 = vld [vmem:[#allocation16_spill] sm:$0xff] }
 0xc4d   : > { %v5165_v16 = vpop.permute.xlu1 %5164  ;;  %v5347_v53 = vrot.slane %v9972_v1, %v10274_v3 }
 0xc4e   : > { %v5225_v40 = vrot.slane %v5224_v35, 4  ;;  %v5202_v33 = vmul.f32 %v5165_v16, %v10247_v49  ;;  %v10273_v49 = vld [vmem:[#allocation15_spill] sm:$0xff]  ;;  %v10275_v16 = vld [vmem:[#allocation17_spill] sm:$0xff] }
 0xc4f   : > { %v5251_v29 = vrot.slane %v9972_v1, %v10273_v49 }
 0xc50   : > { %v5226_v5 = vadd.f32 %v5225_v40, %v5224_v35  ;;  %v5213_v21 = vadd.f32 %v5212_v24, %v5202_v33  ;;  %v5352_v40 = vrot.slane %v9972_v1, %v10275_v16 }
 0xc52   : > { %v5214_v6 = vrot.slane %v5213_v21, 4  ;;  %v5227_v57 = vrot.slane %v5226_v5, 2 }
 0xc54   : > { %v5215_v46 = vadd.f32 %v5214_v6, %v5213_v21  ;;  %v5228_v32 = vadd.f32 %v5227_v57, %v5226_v5 }
 0xc56   : > { %v5216_v38 = vrot.slane %v5215_v46, 2  ;;  %v5229_v48 = vrot.slane %v5228_v32, 1 }
 0xc58   : > { %v5217_v31 = vadd.f32 %v5216_v38, %v5215_v46  ;;  %v5230_v50 = vadd.f32 %v5229_v48, %v5228_v32 }
 0xc5a   : > { %v5218_v52 = vrot.slane %v5217_v31, 1 }
 0xc5c   : > { %v5219_v19 = vadd.f32 %v5218_v52, %v5217_v31 }
 0xc5e   : > { %v5255_v41 = vsel %vm5254_vm8, %v5230_v50, %v5219_v19 }
 0xc5f   : > { %6609 = vmatmul.mubr.f32.vlgmr.msra.gmra.mrb[0].mxu0 %v5255_v41 }
 0xd32   : > { %v5323_v18 = vpop.f32.mrb[0].mxu0 }
 0xd33   : > { %v9976_v0 = vadd.f32 %v5323_v18, %v5251_v29  ;;  %v6610_v28 = vpop.f32.mrb[1].mxu0  ;;  %v10276_v18 = vld [vmem:[#allocation31_spill] sm:$0xff] }
 0xd34   : > { %v5374_v28 = vrot.slane %v9972_v1, %v10276_v18 }
 0xd35   : > { %5476 = vrot.lane.b32.xlu1 %v9976_v0, %s7538_s26  ;;  %v5331_v62 = vmul.f32 %v9976_v0, %v9976_v0  ;;  %v5328_v11 = vsel %vm5327_vm9, %v9976_v0, 0.0 }
 0xd37   : > { %5483 = vrot.lane.b32.xlu0 %v5331_v62, %s7538_s26  ;;  %v5332_v54 = vsel %vm5327_vm9, %v5331_v62, 0.0 }
 0xda7   : > { %v5477_v36 = vpop.permute.xlu1 %5476 }
 0xda8   : > { %v5479_v34 = vsel %vm5327_vm9, %v5477_v36, 0.0 }
 0xda9   : > { %5480 = vadd.xlane.f32.xlu1 %v5479_v34  ;;  %v5484_v4 = vpop.permute.xlu0 %5483 }
 0xdaa   : > { %v5486_v60 = vsel %vm5327_vm9, %v5484_v4, 0.0 }
 0xdab   : > { %5487 = vadd.xlane.f32.xlu0 %v5486_v60  ;;  %v5919_v60 = vld [vmem:[%s10083_s12 + $0x40] sm:$0xff] }
 0xdad   : > { %5333 = vadd.xlane.f32.xlu1 %v5332_v54  ;;  %v5920_v54 = vld [vmem:[%s10083_s12 + $0x48] sm:$0xff] }
 0xdae   : > { %v6686_v12 = vpack.c.bf16 %v5920_v54, %v5919_v60 }
 0xdaf   : > { %5329 = vadd.xlane.f32.xlu0 %v5328_v11 }
 0xdbe   : > { %5522 = vrot.lane.b32.xlu1 %v5374_v28, %s7538_s26 }
 0xe36   : > { %v5481_v23 = vpop.xlane.xlu1 %5480 }
 0xe37   : > { %v5489_v42 = vmul.f32 0.015625, %v5481_v23 }
 0xe38   : > { %v5488_v17 = vpop.xlane.xlu0 %5487 }
 0xe39   : > { %v5491_v39 = vmul.f32 %v5489_v42, %v5489_v42  ;;  %v5490_v56 = vmul.f32 0.015625, %v5488_v17  ;;  %v5494_v15 = vsub.f32 %v9976_v0, %v5489_v42 }
 0xe3a   : > { %v5334_v25 = vpop.xlane.xlu1 %5333 }
 0xe3b   : > { %v5492_v30 = vsub.f32 %v5490_v56, %v5491_v39  ;;  %v5336_v20 = vmul.f32 0.015625, %v5334_v25 }
 0xe3c   : > { %v5330_v47 = vpop.xlane.xlu0 %5329 }
 0xe3d   : > { %v5493_v44 = vmax.f32 %v5492_v30, 0.0  ;;  %v5335_v37 = vmul.f32 0.015625, %v5330_v47  ;;  %v10277_v47 = vld [vmem:[#allocation14_spill] sm:$0xff] }
 0xe3f   : > { %v5495_v26 = vadd.f32 1e-05, %v5493_v44  ;;  %v5337_v43 = vmul.f32 %v5335_v37, %v5335_v37  ;;  %v5340_v21 = vsub.f32 %v9976_v0, %v5335_v37  ;;  %v10278_v44 = vsub.s32 4, %v10277_v47 }
 0xe41   : > { %7402 = vrsqrt.f32 %v5495_v26  ;;  %v5338_v2 = vsub.f32 %v5336_v20, %v5337_v43  ;;  %v5468_v37 = vrot.slane %v9972_v1, %v10278_v44 }
 0xe43   : > { %v5339_v51 = vmax.f32 %v5338_v2, 0.0 }
 0xe45   : > { %v5341_v14 = vadd.f32 1e-05, %v5339_v51 }
 0xe47   : > { %7404 = vrsqrt.f32 %v5341_v14 }
 0xe4b   : > { %v7403_v35 = vpop.eup %7402 }
 0xe4c   : > { %v5497_v24 = vmul.f32 %v7403_v35, %v5494_v15 }
 0xe4e   : > { %v5498_v33 = vmul.f32 %v5497_v24, %v5347_v53 }
 0xe50   : > { %v5499_v5 = vadd.f32 %v5498_v33, %v5352_v40 }
 0xe51   : > { %v7405_v6 = vpop.eup %7404 }
 0xe52   : > { %v5343_v57 = vmul.f32 %v7405_v6, %v5340_v21  ;;  %v5501_v46 = vmul.f32 0.044715, %v5499_v5  ;;  %v5500_v36 = vmul.f32 0.5, %v5499_v5 }
 0xe54   : > { %v5348_v32 = vmul.f32 %v5347_v53, %v5343_v57  ;;  %v5502_v38 = vmul.f32 %v5501_v46, %v5499_v5 }
 0xe56   : > { %v5353_v31 = vadd.f32 %v5352_v40, %v5348_v32  ;;  %v5503_v48 = vmul.f32 %v5502_v38, %v5499_v5 }
 0xe58   : > { %v5504_v52 = vadd.f32 %v5503_v48, %v5499_v5  ;;  %v5355_v19 = vmul.f32 0.044715, %v5353_v31  ;;  %v5354_v8 = vmul.f32 0.5, %v5353_v31  ;;  %v7539_v48 = vmov 1966171168  }
 0xe5a   : > { %v5505_v50 = vmul.f32 0.7978846, %v5504_v52  ;;  %v5356_v41 = vmul.f32 %v5355_v19, %v5353_v31  ;;  %v5614_v52 = vunpack.c.l.s4 %v7539_v48 }
 0xe5c   : > { %7406 = vtanh.f32 %v5505_v50  ;;  %v5357_v49 = vmul.f32 %v5356_v41, %v5353_v31  ;;  %v5615_v50 = vunpack.c.0.s8 %v5614_v52 }
 0xe5e   : > { %v5358_v29 = vadd.f32 %v5357_v49, %v5353_v31 }
 0xe60   : > { %v5359_v62 = vmul.f32 0.7978846, %v5358_v29  ;;  %v5618_v29 = vsub.s32 %v5615_v50, %v10277_v47 }
 0xe62   : > { %7408 = vtanh.f32 %v5359_v62 }
 0xe66   : > { %v7407_v0 = vpop.eup %7406 }
 0xe67   : > { %v5507_v34 = vadd.f32 1.0, %v7407_v0 }
 0xe69   : > { %v5508_v4 = vmul.f32 %v5507_v34, %v5500_v36 }
 0xe6b   : > { %5519 = vrot.lane.b32.xlu0 %v5508_v4, %s7538_s26 }
 0xe6c   : > { %v7409_v11 = vpop.eup %7408 }
 0xe6d   : > { %v5361_v22 = vadd.f32 1.0, %v7409_v11 }
 0xe6f   : > { %v5362_v10 = vmul.f32 %v5361_v22, %v5354_v8 }
 0xe71   : > { %6628 = vmatmul.mubr.msk.f32.vlgmr.msra.gmra.mrb[0].mxu1 %vm2271_vm4, %v5362_v10 }
 0xe72   : > { %6687 = vmatpush3.bf16.msra.mxu1 %v6686_v12  ;;  %6646 = vmatprep.mubr.msk.f32.mxu1 %vm7536_vm7, %v7537_v13  ;;  %v5926_v13 = vld [vmem:[%s10083_s12 + $0x78] sm:$0xff] }
 0xe73   : > { %6688 = vmatprep.subr.bf16.mxu1 %v7535_v59  ;;  %v6695_v45 = vpack.c.bf16 %v5926_v13, %v5925_v27 }
 0xe76   : > { %6690 = vmatpush3.bf16.msra.mxu1 %v6689_v7 }
 0xe77   : > { %6691 = vmatprep.subr.bf16.mxu1 %v7535_v59 }
 0xe7a   : > { %6693 = vmatpush3.bf16.msra.mxu1 %v6692_v61 }
 0xe7b   : > { %6694 = vmatprep.subr.bf16.mxu1 %v7535_v59  ;;  %v5523_v59 = vpop.permute.xlu1 %5522 }
 0xe7e   : > { %6696 = vmatpush3.bf16.msra.mxu1 %v6695_v45 }
 0xedd   : > { %v5520_v23 = vpop.permute.xlu0 %5519 }
 0xede   : > { %6647 = vmatmul.mubr.msk.f32.vlgmr.msra.gmra.mrb[2].mxu1 %vm2271_vm4, %v5520_v23 }
 0xf44   : > { %v5445_v42 = vpop.f32.mrb[0].mxu1 }
 0xf45   : > { %v5446_v17 = vadd.f32 %v5445_v42, %v5374_v28  ;;  %v6629_v39 = vpop.f32.mrb[1].mxu1 }
 0xf47   : > { %v5449_v56 = vsel %vm5327_vm9, %v5446_v17, 0.0  ;;  %v5452_v30 = vmul.f32 %v5446_v17, %v5446_v17 }
 0xf48   : > { %5450 = vadd.xlane.f32.xlu1 %v5449_v56 }
 0xf49   : > { %v5453_v25 = vsel %vm5327_vm9, %v5452_v30, 0.0 }
 0xf4a   : > { %5454 = vadd.xlane.f32.xlu0 %v5453_v25 }
 0xf60   : > { %5471 = vrot.lane.b32.xlu0 %v5468_v37, %s7538_s26 }
 0xfb1   : > { %v5593_v26 = vpop.f32.mrb[2].mxu1 }
 0xfb2   : > { %v5594_v20 = vadd.f32 %v5593_v26, %v5523_v59  ;;  %v6648_v43 = vpop.f32.mrb[3].mxu1 }
 0xfb4   : > { %v5598_v2 = vand.u32 2147483647, %v5594_v20  ;;  %v5597_v35 = vmax.f32 %v5594_v20, 0.0 }
 0xfb6   : > { %v5599_v51 = vsub.f32 0.0, %v5598_v2 }
 0xfb8   : > { %v5600_v14 = vmul.f32 1.442695, %v5599_v51 }
 0xfba   : > { %7410 = vpow2.f32 %v5600_v14 }
 0xfc4   : > { %v7411_v15 = vpop.eup %7410 }
 0xfc5   : > { %v5602_v3 = vadd.f32 1.0, %v7411_v15 }
 0xfc7   : > { %7412 = vlog2.f32 %v5602_v3 }
 0xfd1   : > { %v7413_v53 = vpop.eup %7412 }
 0xfd2   : > { %v5604_v16 = vmul.f32 0.6931472, %v7413_v53 }
 0xfd4   : > { %v5605_v40 = vadd.f32 %v5604_v16, %v5597_v35 }
 0xfd5   : > { %v5451_v1 = vpop.xlane.xlu1 %5450 }
 0xfd6   : > { %v5606_v24 = vadd.f32 1e-06, %v5605_v40  ;;  %v5456_v33 = vmul.f32 0.015625, %v5451_v1 }
 0xfd7   : > { %v5455_v5 = vpop.xlane.xlu0 %5454 }
 0xfd8   : > { %5608 = vrot.lane.b32.xlu1 %v5606_v24, %s7538_s26  ;;  %v5458_v21 = vmul.f32 %v5456_v33, %v5456_v33  ;;  %v5457_v6 = vmul.f32 0.015625, %v5455_v5  ;;  %v5461_v31 = vsub.f32 %v5446_v17, %v5456_v33 }
 0xfda   : > { %v5459_v57 = vsub.f32 %v5457_v6, %v5458_v21 }
 0xfdb   : > { %v5472_v49 = vpop.permute.xlu0 %5471 }
 0xfdc   : > { %v5460_v46 = vmax.f32 %v5459_v57, 0.0 }
 0xfde   : > { %v5462_v32 = vadd.f32 1e-05, %v5460_v46 }
 0xfe0   : > { %7414 = vrsqrt.f32 %v5462_v32 }
 0xfea   : > { %v7415_v38 = vpop.eup %7414 }
 0xfeb   : > { %v5464_v19 = vmul.f32 %v7415_v38, %v5461_v31 }
 0xfed   : > { %v5469_v41 = vmul.f32 %v5468_v37, %v5464_v19 }
 0xfef   : > { %v5474_v18 = vadd.f32 %v5472_v49, %v5469_v41 }
0x104a   : > { %v5609_v28 = vpop.permute.xlu1 %5608 }
0x104b   : > { %v5611_v62 = vsel %vm2271_vm4, %v5474_v18, %v5609_v28 }
0x104c   : > { %v5619_v0 = vrot.slane %v5611_v62, %v5618_v29 }
0x104e   : > { %v5620_v36 = vcombine.high %v5619_v0, %v5619_v0  ;;  %5928 = vst.sshfl [vmem:[%s7629_s21] sm:$0x1 pattern:$0x73625140] %v5619_v0 }
0x1050   : > { %5929 = vst.sshfl [vmem:[%s7629_s21 + $0x1] sm:$0x1 pattern:$0x73625140] %v5620_v36 }
0x1051 PF: > { %s24_s29 = sadd.s32 1, %s7474_s29  }
0x1052   : > { %p21_p5 = scmp.ge.s32.totalorder %s24_s29, 4  }
0x1054   :  { %23 = sbr.rel (!%p21_p5) target bundleno = 1 (0x1), region = 132 }

</bundles_post_ra>
